<compile_context>
chip_gen: v5e
topology: v5e:2x2
jax: 0.10.0
libtpu: 0.0.40
codegen_flags: <defaults>
</compile_context>

<pallas_src>
import math
import numpy as np
import jax
import jax.numpy as jnp
from jax.experimental import pallas as pl
from jax.experimental.pallas import tpu as pltpu

# ----------------------------- model hyper-params -----------------------------
F_IN = 16          # raw feature dim (frontend input)
F_MODEL = 64       # conformer model dim F'
F_FF = 128         # feed-forward hidden dim
N_HEADS = 4
D_HEAD = F_MODEL // N_HEADS
CONV_K = 7         # depthwise conv kernel size
NUM_LAYERS = 4
LN_EPS = 1e-5
BN_EPS = 1e-5

VEC_W = 3 * F_MODEL             # width of vector slab rows (max = bqkv width)
NUM_VEC = 21 + CONV_K           # rows in the per-layer vector slab
VMEM_LIMIT = 32 * 1024 * 1024   # budget against v7x (64 MiB phys / 32 MiB scoped)


# ------------------------------- fused block kernel ----------------------------
# Vector slab row layout (per layer), each row padded to VEC_W lanes:
#   0 ff1_ln_g   1 ff1_ln_b   2 ff1_b1(128)  3 ff1_b2
#   4 mh_ln_g    5 mh_ln_b    6 bqkv(192)    7 bo
#   8 cv_ln_g    9 cv_ln_b   10 pw1_b(128)  11 dw_b
#  12 bn_scale  13 bn_shift  14 pw2_b
#  15 ff2_ln_g  16 ff2_ln_b  17 ff2_b1(128) 18 ff2_b2
#  19 fin_ln_g  20 fin_ln_b  21..27 dw_w[k]
def _block_group_kernel(x_ref, cm_ref, smq_ref, smk_ref, cmask_ref,
                        vec_ref, win_ref, wout_ref, wqkv_ref, wsq_ref, o_ref):
    F, FF, H, Dh, K = F_MODEL, F_FF, N_HEADS, D_HEAD, CONV_K
    T = o_ref.shape[1]
    scale = 1.0 / math.sqrt(Dh)
    pad_l = (K - 1) // 2
    bf16 = jnp.bfloat16

    l = pl.program_id(1)

    # Activation lives in the output block (index (b,0,0) is constant along l),
    # so it stays VMEM-resident across the whole layer group.
    @pl.when(l == 0)
    def _():
        o_ref[0] = x_ref[0]

    x = o_ref[0]                      # (T, F) f32
    vec = vec_ref[0]                  # (NUM_VEC, VEC_W) f32
    smq = smq_ref[0]                  # (T, 1) query-side sequence mask
    smk = smk_ref[0]                  # (1, T) key-side sequence mask
    allowed = jnp.logical_and(cm_ref[...] > 0.0, smk > 0.0)   # (T, T)

    def row(i, n):
        return vec[i, :n]

    def ln(v, gi, bi):
        m = jnp.mean(v, axis=-1, keepdims=True)
        c = v - m
        var = jnp.mean(c * c, axis=-1, keepdims=True)
        return c * jax.lax.rsqrt(var + LN_EPS) * row(gi, F) + row(bi, F)

    def mm(v, w):                     # bf16 MXU matmul, f32 accumulate
        return jnp.dot(v.astype(bf16), w, preferred_element_type=jnp.float32)

    # ---- FF1 (half-step) ----
    h = ln(x, 0, 1)
    h = mm(h, win_ref[0, 0]) + row(2, FF)
    h = h * jax.nn.sigmoid(h)                       # SiLU
    h = mm(h, wout_ref[0, 0]) + row(3, F)
    x = x + 0.5 * h

    # ---- MHSA: fused QKV projection, per-head softmax, fused output proj ----
    y = ln(x, 4, 5)
    qkv = mm(y, wqkv_ref[0]) + row(6, 3 * F)        # (T, 3F)
    heads = []
    for hi in range(H):
        qh = qkv[:, hi * Dh:(hi + 1) * Dh]
        kh = qkv[:, F + hi * Dh:F + (hi + 1) * Dh]
        vh = qkv[:, 2 * F + hi * Dh:2 * F + (hi + 1) * Dh]
        s = jax.lax.dot_general(qh.astype(bf16), kh.astype(bf16),
                                (((1,), (1,)), ((), ())),
                                preferred_element_type=jnp.float32) * scale
        s = jnp.where(allowed, s, jnp.float32(-1e30))
        smax = jnp.max(s, axis=-1, keepdims=True)
        p = jnp.where(allowed, jnp.exp(s - smax), 0.0)
        denom = jnp.maximum(jnp.sum(p, axis=-1, keepdims=True), 1e-30)
        p = p / denom
        heads.append(jnp.dot(p.astype(bf16), vh.astype(bf16),
                             preferred_element_type=jnp.float32))
    att = jnp.concatenate(heads, axis=-1)           # (T, F)
    x = x + mm(att, wsq_ref[0, 0]) + row(7, F)

    # zero padded frames before the conv module (reference masked_fill)
    x = jnp.where(smq > 0.0, x, 0.0)

    # ---- Conv module: LN -> pointwise GLU -> depthwise (rolls) -> BN -> SiLU -> pointwise ----
    h = ln(x, 8, 9)
    hg = mm(h, win_ref[0, 2]) + row(10, 2 * F)      # pointwise-1, 128-wide matmul
    h = hg[:, :F] * jax.nn.sigmoid(hg[:, F:])       # GLU via lane split
    acc = jnp.zeros((T, F), jnp.float32)
    for kk in range(K):                             # depthwise conv via sublane rolls
        off = kk - pad_l
        sh = h if off == 0 else pltpu.roll(h, shift=(-off) % T, axis=0)
        acc = acc + sh * cmask_ref[kk] * row(21 + kk, F)
    hc = (acc + row(11, F)) * row(12, F) + row(13, F)   # dw bias + folded eval BN
    hc = hc * jax.nn.sigmoid(hc)                        # SiLU
    h = mm(hc, wsq_ref[0, 1]) + row(14, F)
    x = x + h

    # ---- FF2 (half-step) ----
    h = ln(x, 15, 16)
    h = mm(h, win_ref[0, 1]) + row(17, FF)
    h = h * jax.nn.sigmoid(h)
    h = mm(h, wout_ref[0, 1]) + row(18, F)
    x = x + 0.5 * h

    # ---- final LayerNorm ----
    x = ln(x, 19, 20)

    o_ref[0] = x


# --------------------------- weight slab prep (hoisted) -------------------------
def _stack_slabs(block_params):
    """Consolidate per-layer weights into 5 stacked slabs (DMA'd once per layer)."""
    F, FF, K = F_MODEL, F_FF, CONV_K

    def padv(v):
        return jnp.pad(v, (0, VEC_W - v.shape[0]))

    vecs, wins, wouts, wqkvs, wsqs = [], [], [], [], []
    for p in block_params:
        bn_sc = p["conv_bn_g"] / jnp.sqrt(p["conv_bn_var"] + BN_EPS)
        bn_sh = p["conv_bn_b"] - p["conv_bn_mean"] * bn_sc
        rows = [
            p["ff1_ln_g"], p["ff1_ln_b"], p["ff1_b1"], p["ff1_b2"],
            p["mhsa_ln_g"], p["mhsa_ln_b"], p["mhsa_bqkv"], p["mhsa_bo"],
            p["conv_ln_g"], p["conv_ln_b"], p["conv_pw1_b"],
            p["conv_dw_b"], bn_sc, bn_sh, p["conv_pw2_b"],
            p["ff2_ln_g"], p["ff2_ln_b"], p["ff2_b1"], p["ff2_b2"],
            p["final_ln_g"], p["final_ln_b"],
        ] + [p["conv_dw_w"][kk] for kk in range(K)]
        vecs.append(jnp.stack([padv(r) for r in rows], axis=0))
        wins.append(jnp.stack([p["ff1_w1"], p["ff2_w1"], p["conv_pw1_w"]], axis=0))
        wouts.append(jnp.stack([p["ff1_w2"], p["ff2_w2"]], axis=0))
        wqkvs.append(p["mhsa_wqkv"])
        wsqs.append(jnp.stack([p["mhsa_wo"], p["conv_pw2_w"]], axis=0))

    bf = jnp.bfloat16
    return (jnp.stack(vecs, 0).astype(jnp.float32),      # (L, NUM_VEC, VEC_W)
            jnp.stack(wins, 0).astype(bf),                # (L, 3, F, FF)
            jnp.stack(wouts, 0).astype(bf),               # (L, 2, FF, F)
            jnp.stack(wqkvs, 0).astype(bf),               # (L, F, 3F)
            jnp.stack(wsqs, 0).astype(bf))                # (L, 2, F, F)


def _conv_shift_masks(T, chunk=None):
    """mask[k, t, 0] = 1 iff t + (k - pad) is in range and (chunked) same chunk."""
    pad_l = (CONV_K - 1) // 2
    m = np.zeros((CONV_K, T, 1), np.float32)
    for kk in range(CONV_K):
        off = kk - pad_l
        for t in range(T):
            s = t + off
            if 0 <= s < T and (chunk is None or (t // chunk) == (s // chunk)):
                m[kk, t, 0] = 1.0
    return jnp.asarray(m)


def run_block_group(block_params, x, chunk_mask, sm_q, sm_k, conv_mask):
    """Run a stack of conformer blocks fused in a single pallas_call.
    x: [B, T, F]; chunk_mask: [T, T] f32 (shared); sm_q: [B, T, 1]; sm_k: [B, 1, T];
    conv_mask: [K, T, 1] f32."""
    Lg = len(block_params)
    B, T, F = x.shape
    vec, w_in, w_out, w_qkv, w_sq = _stack_slabs(block_params)

    return pl.pallas_call(
        _block_group_kernel,
        grid=(B, Lg),
        out_shape=jax.ShapeDtypeStruct((B, T, F), jnp.float32),
        in_specs=[
            pl.BlockSpec((1, T, F), lambda b, l: (b, 0, 0)),                  # x
            pl.BlockSpec((T, T), lambda b, l: (0, 0)),                        # chunk mask
            pl.BlockSpec((1, T, 1), lambda b, l: (b, 0, 0)),                  # sm (query)
            pl.BlockSpec((1, 1, T), lambda b, l: (b, 0, 0)),                  # sm (key)
            pl.BlockSpec((CONV_K, T, 1), lambda b, l: (0, 0, 0)),             # conv masks
            pl.BlockSpec((1, NUM_VEC, VEC_W), lambda b, l: (l, 0, 0)),        # vector slab
            pl.BlockSpec((1, 3, F_MODEL, F_FF), lambda b, l: (l, 0, 0, 0)),   # ff1_w1/ff2_w1/pw1
            pl.BlockSpec((1, 2, F_FF, F_MODEL), lambda b, l: (l, 0, 0, 0)),   # ff1_w2/ff2_w2
            pl.BlockSpec((1, F_MODEL, 3 * F_MODEL), lambda b, l: (l, 0, 0)),  # wqkv
            pl.BlockSpec((1, 2, F_MODEL, F_MODEL), lambda b, l: (l, 0, 0, 0)),  # wo/pw2
        ],
        out_specs=pl.BlockSpec((1, T, F), lambda b, l: (b, 0, 0)),
        compiler_params=pltpu.CompilerParams(
            dimension_semantics=("parallel", "arbitrary"),
            vmem_limit_bytes=VMEM_LIMIT),
    )(x, chunk_mask, sm_q, sm_k, conv_mask, vec, w_in, w_out, w_qkv, w_sq)


# ------------------------------ model glue (JAX) ------------------------------
def _round_up(n, m):
    return ((n + m - 1) // m) * m


def _pad_time(a, T_pad, axis=1):
    pad = T_pad - a.shape[axis]
    if pad == 0:
        return a
    cfg = [(0, 0)] * a.ndim
    cfg[axis] = (0, pad)
    return jnp.pad(a, cfg)


def add_lookahead_v2(x, sequence_mask, lookahead_size):
    """x: [B, N, C, F], mask: [B, N, C] -> appends R frames of the next chunk."""
    if lookahead_size <= 0:
        return x, sequence_mask
    B, N, C, F = x.shape
    fut = jnp.concatenate(
        [x[:, 1:, :lookahead_size], jnp.zeros((B, 1, lookahead_size, F), x.dtype)], axis=1)
    fut_m = jnp.concatenate(
        [sequence_mask[:, 1:, :lookahead_size],
         jnp.zeros((B, 1, lookahead_size), sequence_mask.dtype)], axis=1)
    return (jnp.concatenate([x, fut], axis=2),
            jnp.concatenate([sequence_mask, fut_m], axis=2))


def create_chunk_mask(seq_len, chunk_size, lookahead_size, carry_over_size):
    """Bool [seq_len, seq_len]: True = may attend.  Each extended chunk attends to
    itself (incl. lookahead) and to `carry_over_size` previous chunks (no lookahead)."""
    m = np.zeros((seq_len, seq_len), dtype=bool)
    ext = chunk_size + lookahead_size
    for i in range(0, seq_len, ext):
        m[i:i + ext, i:i + ext] = True
        for co in range(1, int(carry_over_size) + 1):
            j = i - co * ext
            if j < 0:
                break
            m[i:i + ext, j:j + chunk_size] = True
    return m


def _encoder_forward(params, data_tensor, sequence_mask,
                     lookahead_size, carry_over_size, k):
    B, N, C, _ = data_tensor.shape

    # TODO(synk): the configurable VGG/conv-subsampling frontend is replaced by a
    # single linear projection (no time downsampling); the sequence mask passes through.
    x = jnp.dot(data_tensor, params["frontend_w"]) + params["frontend_b"]   # (B,N,C,F')
    sm = sequence_mask.reshape(B, N, C)

    x, sm = add_lookahead_v2(x, sm, lookahead_size)
    ext = x.shape[2]
    chunk_sz = ext - lookahead_size
    T_on = N * ext
    T_on_p = _round_up(T_on, 8)

    x3 = _pad_time(x.reshape(B, T_on, F_MODEL), T_on_p)
    sm3 = sm.reshape(B, T_on)
    sm3_p = _pad_time(sm3.astype(jnp.float32), T_on_p)

    # hoisted per-path constants (built once, shared across layers and batch)
    cm_on = jnp.asarray(
        create_chunk_mask(T_on_p, chunk_sz, lookahead_size, carry_over_size), jnp.float32)
    smq_on = sm3_p[:, :, None]
    smk_on = sm3_p[:, None, :]
    conv_m_on = _conv_shift_masks(T_on_p, chunk=ext)      # chunked depthwise conv

    blocks = params["blocks"]
    group1 = blocks[:NUM_LAYERS - k]
    group2 = blocks[NUM_LAYERS - k:]

    if group1:
        x3 = run_block_group(group1, x3, cm_on, smq_on, smk_on, conv_m_on)

    # fork offline branch (drop lookahead frames)
    x4 = x3[:, :T_on].reshape(B, N, ext, F_MODEL)
    if lookahead_size > 0:
        y4 = x4[:, :, :-lookahead_size]
        sm_off4 = sm[:, :, :-lookahead_size]
    else:
        y4, sm_off4 = x4, sm
    T_off = N * chunk_sz
    T_off_p = _round_up(T_off, 8)
    y = _pad_time(y4.reshape(B, T_off, F_MODEL), T_off_p)
    sm_off = sm_off4.reshape(B, T_off)
    sm_off_p = _pad_time(sm_off.astype(jnp.float32), T_off_p)

    cm_off = jnp.ones((T_off_p, T_off_p), jnp.float32)    # full attention (key mask in-kernel)
    smq_off = sm_off_p[:, :, None]
    smk_off = sm_off_p[:, None, :]
    conv_m_off = _conv_shift_masks(T_off_p, chunk=None)   # full-sequence conv

    if group2:
        x3 = run_block_group(group2, x3, cm_on, smq_on, smk_on, conv_m_on)
        y = run_block_group(group2, y, cm_off, smq_off, smk_off, conv_m_off)

    x3 = x3[:, :T_on]
    y = y[:, :T_off]

    def _merge_drop_fac(t):
        if lookahead_size > 0:
            t = t.reshape(-1, ext, t.shape[-1])
            t = t[:, :-lookahead_size]
        return t.reshape(B, -1, t.shape[-1])

    on_mask_merged = _merge_drop_fac(sm3[..., None])[..., 0]
    on_merged = _merge_drop_fac(x3)
    return on_merged, on_mask_merged, y, sm_off


_encoder_forward_jit = jax.jit(_encoder_forward, static_argnums=(3, 4, 5))


def conformer_encoder_forward(params, data_tensor, sequence_mask,
                              lookahead_size=0, carry_over_size=1, k=None):
    """data_tensor: [B, N, C, F_IN], sequence_mask: [B, N, C] bool."""
    assert k is not None, "Need min. number of splits"
    on_merged, on_mask, y, sm_off = _encoder_forward_jit(
        params, data_tensor, sequence_mask, lookahead_size, carry_over_size, k)
    on_out = (on_merged, on_mask, "STREAMING")
    off_out = (y, sm_off, "OFFLINE")
    return on_out, off_out


# --------------------------- deterministic parameters --------------------------
def _init_block(key):
    ks = jax.random.split(key, 9)
    nrm = lambda kk, shape: 0.02 * jax.random.normal(kk, shape, dtype=jnp.float32)
    ones = lambda n: jnp.ones((n,), jnp.float32)
    zeros = lambda n: jnp.zeros((n,), jnp.float32)
    return {
        "ff1_ln_g": ones(F_MODEL), "ff1_ln_b": zeros(F_MODEL),
        "ff1_w1": nrm(ks[0], (F_MODEL, F_FF)), "ff1_b1": zeros(F_FF),
        "ff1_w2": nrm(ks[1], (F_FF, F_MODEL)), "ff1_b2": zeros(F_MODEL),
        "mhsa_ln_g": ones(F_MODEL), "mhsa_ln_b": zeros(F_MODEL),
        "mhsa_wqkv": nrm(ks[2], (F_MODEL, 3 * F_MODEL)), "mhsa_bqkv": zeros(3 * F_MODEL),
        "mhsa_wo": nrm(ks[3], (F_MODEL, F_MODEL)), "mhsa_bo": zeros(F_MODEL),
        "conv_ln_g": ones(F_MODEL), "conv_ln_b": zeros(F_MODEL),
        "conv_pw1_w": nrm(ks[4], (F_MODEL, 2 * F_MODEL)), "conv_pw1_b": zeros(2 * F_MODEL),
        "conv_dw_w": nrm(ks[5], (CONV_K, F_MODEL)), "conv_dw_b": zeros(F_MODEL),
        "conv_bn_g": ones(F_MODEL), "conv_bn_b": zeros(F_MODEL),
        "conv_bn_mean": zeros(F_MODEL), "conv_bn_var": ones(F_MODEL),
        "conv_pw2_w": nrm(ks[6], (F_MODEL, F_MODEL)), "conv_pw2_b": zeros(F_MODEL),
        "ff2_ln_g": ones(F_MODEL), "ff2_ln_b": zeros(F_MODEL),
        "ff2_w1": nrm(ks[7], (F_MODEL, F_FF)), "ff2_b1": zeros(F_FF),
        "ff2_w2": nrm(ks[8], (F_FF, F_MODEL)), "ff2_b2": zeros(F_MODEL),
        "final_ln_g": ones(F_MODEL), "final_ln_b": zeros(F_MODEL),
    }


def init_params(key):
    keys = jax.random.split(key, NUM_LAYERS + 1)
    return {
        "frontend_w": 0.02 * jax.random.normal(keys[0], (F_IN, F_MODEL), dtype=jnp.float32),
        "frontend_b": jnp.zeros((F_MODEL,), jnp.float32),
        "blocks": [_init_block(keys[i + 1]) for i in range(NUM_LAYERS)],
    }


# ------------------------------------ main ------------------------------------
if __name__ == "__main__":
    key = jax.random.PRNGKey(0)
    kd, kp = jax.random.split(key)

    B, N, C = 2, 3, 8                 # batch, chunks per seq, chunk size
    lookahead_size, carry_over_size, k_splits = 2, 1, 2

    params = init_params(kp)
    data = jax.random.normal(kd, (B, N, C, F_IN), dtype=jnp.float32)
    lengths = jnp.array([22, 24], dtype=jnp.int32)               # true lengths of N*C = 24
    t_idx = jnp.arange(N * C)
    seq_mask = (t_idx[None, :] < lengths[:, None]).reshape(B, N, C)

    on_out, off_out = conformer_encoder_forward(
        params, data, seq_mask,
        lookahead_size=lookahead_size, carry_over_size=carry_over_size, k=k_splits)

    on_merged, on_mask, _ = on_out
    y_off, off_mask, _ = off_out
    jax.block_until_ready(on_merged)
    jax.block_until_ready(y_off)

    assert on_merged.shape == (B, N * C, F_MODEL)
    assert on_mask.shape == (B, N * C)
    assert y_off.shape == (B, N * C, F_MODEL)
    assert off_mask.shape == (B, N * C)
    assert bool(jnp.all(jnp.isfinite(on_merged))) and bool(jnp.all(jnp.isfinite(y_off)))
    print("KERNEL_OK")
</pallas_src>

<mosaic_0001>
module attributes {stable_mosaic.version = 11 : i64} {
  func.func @_block_group_kernel(%arg0: i32, %arg1: i32, %arg2: memref<1x32x64xf32, #tpu.memory_space<vmem>>, %arg3: memref<32x32xf32, #tpu.memory_space<vmem>>, %arg4: memref<1x32x1xf32, #tpu.memory_space<vmem>>, %arg5: memref<1x1x32xf32, #tpu.memory_space<vmem>>, %arg6: memref<7x32x1xf32, #tpu.memory_space<vmem>>, %arg7: memref<1x28x192xf32, #tpu.memory_space<vmem>>, %arg8: memref<1x3x64x128xbf16, #tpu.memory_space<vmem>>, %arg9: memref<1x2x128x64xbf16, #tpu.memory_space<vmem>>, %arg10: memref<1x64x192xbf16, #tpu.memory_space<vmem>>, %arg11: memref<1x2x64x64xbf16, #tpu.memory_space<vmem>>, %arg12: memref<1x32x64xf32, #tpu.memory_space<vmem>>) attributes {dimension_semantics = [#tpu.dimension_semantics<parallel>, #tpu.dimension_semantics<arbitrary>], iteration_bounds = array<i64: 2, 2>, scalar_prefetch = 0 : i64, scratch_operands = 0 : i64, tpu.core_type = #tpu.core_type<tc>, window_params = [{transform_indices = @transform_0, window_bounds = array<i64: 1, 32, 64>}, {pipeline_mode = #tpu.pipeline_mode<synchronous>, transform_indices = @transform_1, window_bounds = array<i64: 32, 32>}, {transform_indices = @transform_2, window_bounds = array<i64: 1, 32, 1>}, {transform_indices = @transform_3, window_bounds = array<i64: 1, 1, 32>}, {pipeline_mode = #tpu.pipeline_mode<synchronous>, transform_indices = @transform_4, window_bounds = array<i64: 7, 32, 1>}, {transform_indices = @transform_5, window_bounds = array<i64: 1, 28, 192>}, {transform_indices = @transform_6, window_bounds = array<i64: 1, 3, 64, 128>}, {transform_indices = @transform_7, window_bounds = array<i64: 1, 2, 128, 64>}, {transform_indices = @transform_8, window_bounds = array<i64: 1, 64, 192>}, {transform_indices = @transform_9, window_bounds = array<i64: 1, 2, 64, 64>}, {transform_indices = @transform_10, window_bounds = array<i64: 1, 32, 64>}]} {
    %c0_i32 = arith.constant 0 : i32
    %0 = arith.cmpi eq, %arg1, %c0_i32 : i32
    %1 = arith.extui %0 : i1 to i32
    %c0_i32_0 = arith.constant 0 : i32
    %2 = arith.cmpi ne, %1, %c0_i32_0 : i32
    scf.if %2 {
      %c0_138 = arith.constant 0 : index
      %c0_139 = arith.constant 0 : index
      %c0_140 = arith.constant 0 : index
      %460 = vector.load %arg2[%c0_138, %c0_139, %c0_140] : memref<1x32x64xf32, #tpu.memory_space<vmem>>, vector<1x32x64xf32>
      %461 = vector.shape_cast %460 : vector<1x32x64xf32> to vector<32x64xf32>
      %c0_141 = arith.constant 0 : index
      %c0_142 = arith.constant 0 : index
      %c0_143 = arith.constant 0 : index
      %462 = vector.load %arg12[%c0_141, %c0_142, %c0_143] : memref<1x32x64xf32, #tpu.memory_space<vmem>>, vector<1x32x64xf32>
      %463 = vector.shape_cast %462 : vector<1x32x64xf32> to vector<32x64xf32>
      %464 = vector.shape_cast %461 : vector<32x64xf32> to vector<1x32x64xf32>
      tpu.vector_store %arg12[%c0_141, %c0_142, %c0_143], %464 {strides = array<i32>} : memref<1x32x64xf32, #tpu.memory_space<vmem>>, vector<1x32x64xf32>,
    } else {
    }
    %c0 = arith.constant 0 : index
    %c0_1 = arith.constant 0 : index
    %c0_2 = arith.constant 0 : index
    %3 = vector.load %arg12[%c0, %c0_1, %c0_2] : memref<1x32x64xf32, #tpu.memory_space<vmem>>, vector<1x32x64xf32>
    %4 = vector.shape_cast %3 : vector<1x32x64xf32> to vector<32x64xf32>
    %c0_3 = arith.constant 0 : index
    %c0_4 = arith.constant 0 : index
    %c0_5 = arith.constant 0 : index
    %5 = vector.load %arg7[%c0_3, %c0_4, %c0_5] : memref<1x28x192xf32, #tpu.memory_space<vmem>>, vector<1x28x192xf32>
    %6 = vector.shape_cast %5 : vector<1x28x192xf32> to vector<28x192xf32>
    %c0_6 = arith.constant 0 : index
    %c0_7 = arith.constant 0 : index
    %c0_8 = arith.constant 0 : index
    %7 = vector.load %arg4[%c0_6, %c0_7, %c0_8] : memref<1x32x1xf32, #tpu.memory_space<vmem>>, vector<1x32x1xf32>
    %8 = vector.shape_cast %7 : vector<1x32x1xf32> to vector<32x1xf32>
    %c0_9 = arith.constant 0 : index
    %c0_10 = arith.constant 0 : index
    %c0_11 = arith.constant 0 : index
    %9 = vector.load %arg5[%c0_9, %c0_10, %c0_11] : memref<1x1x32xf32, #tpu.memory_space<vmem>>, vector<1x1x32xf32>
    %10 = vector.shape_cast %9 : vector<1x1x32xf32> to vector<1x32xf32>
    %c0_12 = arith.constant 0 : index
    %c0_13 = arith.constant 0 : index
    %11 = vector.load %arg3[%c0_12, %c0_13] : memref<32x32xf32, #tpu.memory_space<vmem>>, vector<32x32xf32>
    %cst = arith.constant 0.000000e+00 : f32
    %12 = vector.broadcast %cst : f32 to vector<32x32xf32>
    %13 = arith.cmpf ogt, %11, %12 : vector<32x32xf32>
    %cst_14 = arith.constant 0.000000e+00 : f32
    %14 = vector.broadcast %cst_14 : f32 to vector<1x32xf32>
    %15 = arith.cmpf ogt, %10, %14 : vector<1x32xf32>
    %16 = vector.broadcast %15 : vector<1x32xi1> to vector<32x32xi1>
    %17 = arith.andi %13, %16 : vector<32x32xi1>
    %cst_15 = arith.constant dense<0.000000e+00> : vector<32xf32>
    %18 = vector.multi_reduction <add>, %4, %cst_15 [1] : vector<32x64xf32> to vector<32xf32>
    %19 = vector.shape_cast %18 : vector<32xf32> to vector<32x1xf32>
    %cst_16 = arith.constant 6.400000e+01 : f32
    %20 = vector.broadcast %cst_16 : f32 to vector<32x1xf32>
    %21 = arith.divf %19, %20 : vector<32x1xf32>
    %22 = vector.broadcast %21 : vector<32x1xf32> to vector<32x64xf32>
    %23 = arith.subf %4, %22 : vector<32x64xf32>
    %24 = arith.mulf %23, %23 : vector<32x64xf32>
    %cst_17 = arith.constant dense<0.000000e+00> : vector<32xf32>
    %25 = vector.multi_reduction <add>, %24, %cst_17 [1] : vector<32x64xf32> to vector<32xf32>
    %26 = vector.shape_cast %25 : vector<32xf32> to vector<32x1xf32>
    %cst_18 = arith.constant 6.400000e+01 : f32
    %27 = vector.broadcast %cst_18 : f32 to vector<32x1xf32>
    %28 = arith.divf %26, %27 : vector<32x1xf32>
    %cst_19 = arith.constant 9.99999974E-6 : f32
    %29 = vector.broadcast %cst_19 : f32 to vector<32x1xf32>
    %30 = arith.addf %28, %29 : vector<32x1xf32>
    %31 = math.rsqrt %30 : vector<32x1xf32>
    %32 = vector.broadcast %31 : vector<32x1xf32> to vector<32x64xf32>
    %33 = arith.mulf %23, %32 : vector<32x64xf32>
    %34 = vector.extract_strided_slice %6 {offsets = [0, 0], sizes = [1, 64], strides = [1, 1]} : vector<28x192xf32> to vector<1x64xf32>
    %35 = vector.shape_cast %34 : vector<1x64xf32> to vector<64xf32>
    %36 = vector.shape_cast %35 : vector<64xf32> to vector<1x64xf32>
    %37 = vector.broadcast %36 : vector<1x64xf32> to vector<32x64xf32>
    %38 = arith.mulf %33, %37 : vector<32x64xf32>
    %39 = vector.extract_strided_slice %6 {offsets = [1, 0], sizes = [1, 64], strides = [1, 1]} : vector<28x192xf32> to vector<1x64xf32>
    %40 = vector.shape_cast %39 : vector<1x64xf32> to vector<64xf32>
    %41 = vector.shape_cast %40 : vector<64xf32> to vector<1x64xf32>
    %42 = vector.broadcast %41 : vector<1x64xf32> to vector<32x64xf32>
    %43 = arith.addf %38, %42 : vector<32x64xf32>
    %c0_20 = arith.constant 0 : index
    %c0_21 = arith.constant 0 : index
    %c0_22 = arith.constant 0 : index
    %c0_23 = arith.constant 0 : index
    %44 = vector.load %arg8[%c0_20, %c0_21, %c0_22, %c0_23] : memref<1x3x64x128xbf16, #tpu.memory_space<vmem>>, vector<1x1x64x128xbf16>
    %45 = vector.shape_cast %44 : vector<1x1x64x128xbf16> to vector<64x128xbf16>
    %46 = arith.truncf %43 : vector<32x64xf32> to vector<32x64xbf16>
    %cst_24 = arith.constant dense<0.000000e+00> : vector<32x128xf32>
    %47 = tpu.matmul %46, %45, %cst_24 {dimension_numbers = #tpu.dot_dimension_numbers<[1], [0], [0], [1], [0, 0, 1, 1], [], []>} : vector<32x64xbf16>, vector<64x128xbf16>, vector<32x128xf32> -> vector<32x128xf32>
    %48 = vector.extract_strided_slice %6 {offsets = [2, 0], sizes = [1, 128], strides = [1, 1]} : vector<28x192xf32> to vector<1x128xf32>
    %49 = vector.shape_cast %48 : vector<1x128xf32> to vector<128xf32>
    %50 = vector.shape_cast %49 : vector<128xf32> to vector<1x128xf32>
    %51 = vector.broadcast %50 : vector<1x128xf32> to vector<32x128xf32>
    %52 = arith.addf %47, %51 : vector<32x128xf32>
    %53 = arith.negf %52 : vector<32x128xf32>
    %54 = math.exp %53 : vector<32x128xf32>
    %cst_25 = arith.constant 1.000000e+00 : f32
    %55 = vector.broadcast %cst_25 : f32 to vector<32x128xf32>
    %56 = arith.addf %55, %54 : vector<32x128xf32>
    %57 = arith.divf %55, %56 : vector<32x128xf32>
    %58 = arith.mulf %52, %57 : vector<32x128xf32>
    %c0_26 = arith.constant 0 : index
    %c0_27 = arith.constant 0 : index
    %c0_28 = arith.constant 0 : index
    %c0_29 = arith.constant 0 : index
    %59 = vector.load %arg9[%c0_26, %c0_27, %c0_28, %c0_29] : memref<1x2x128x64xbf16, #tpu.memory_space<vmem>>, vector<1x1x128x64xbf16>
    %60 = vector.shape_cast %59 : vector<1x1x128x64xbf16> to vector<128x64xbf16>
    %61 = arith.truncf %58 : vector<32x128xf32> to vector<32x128xbf16>
    %cst_30 = arith.constant dense<0.000000e+00> : vector<32x64xf32>
    %62 = tpu.matmul %61, %60, %cst_30 {dimension_numbers = #tpu.dot_dimension_numbers<[1], [0], [0], [1], [0, 0, 1, 1], [], []>} : vector<32x128xbf16>, vector<128x64xbf16>, vector<32x64xf32> -> vector<32x64xf32>
    %63 = vector.extract_strided_slice %6 {offsets = [3, 0], sizes = [1, 64], strides = [1, 1]} : vector<28x192xf32> to vector<1x64xf32>
    %64 = vector.shape_cast %63 : vector<1x64xf32> to vector<64xf32>
    %65 = vector.shape_cast %64 : vector<64xf32> to vector<1x64xf32>
    %66 = vector.broadcast %65 : vector<1x64xf32> to vector<32x64xf32>
    %67 = arith.addf %62, %66 : vector<32x64xf32>
    %cst_31 = arith.constant 5.000000e-01 : f32
    %68 = vector.broadcast %cst_31 : f32 to vector<32x64xf32>
    %69 = arith.mulf %68, %67 : vector<32x64xf32>
    %70 = arith.addf %4, %69 : vector<32x64xf32>
    %cst_32 = arith.constant dense<0.000000e+00> : vector<32xf32>
    %71 = vector.multi_reduction <add>, %70, %cst_32 [1] : vector<32x64xf32> to vector<32xf32>
    %72 = vector.shape_cast %71 : vector<32xf32> to vector<32x1xf32>
    %cst_33 = arith.constant 6.400000e+01 : f32
    %73 = vector.broadcast %cst_33 : f32 to vector<32x1xf32>
    %74 = arith.divf %72, %73 : vector<32x1xf32>
    %75 = vector.broadcast %74 : vector<32x1xf32> to vector<32x64xf32>
    %76 = arith.subf %70, %75 : vector<32x64xf32>
    %77 = arith.mulf %76, %76 : vector<32x64xf32>
    %cst_34 = arith.constant dense<0.000000e+00> : vector<32xf32>
    %78 = vector.multi_reduction <add>, %77, %cst_34 [1] : vector<32x64xf32> to vector<32xf32>
    %79 = vector.shape_cast %78 : vector<32xf32> to vector<32x1xf32>
    %cst_35 = arith.constant 6.400000e+01 : f32
    %80 = vector.broadcast %cst_35 : f32 to vector<32x1xf32>
    %81 = arith.divf %79, %80 : vector<32x1xf32>
    %cst_36 = arith.constant 9.99999974E-6 : f32
    %82 = vector.broadcast %cst_36 : f32 to vector<32x1xf32>
    %83 = arith.addf %81, %82 : vector<32x1xf32>
    %84 = math.rsqrt %83 : vector<32x1xf32>
    %85 = vector.broadcast %84 : vector<32x1xf32> to vector<32x64xf32>
    %86 = arith.mulf %76, %85 : vector<32x64xf32>
    %87 = vector.extract_strided_slice %6 {offsets = [4, 0], sizes = [1, 64], strides = [1, 1]} : vector<28x192xf32> to vector<1x64xf32>
    %88 = vector.shape_cast %87 : vector<1x64xf32> to vector<64xf32>
    %89 = vector.shape_cast %88 : vector<64xf32> to vector<1x64xf32>
    %90 = vector.broadcast %89 : vector<1x64xf32> to vector<32x64xf32>
    %91 = arith.mulf %86, %90 : vector<32x64xf32>
    %92 = vector.extract_strided_slice %6 {offsets = [5, 0], sizes = [1, 64], strides = [1, 1]} : vector<28x192xf32> to vector<1x64xf32>
    %93 = vector.shape_cast %92 : vector<1x64xf32> to vector<64xf32>
    %94 = vector.shape_cast %93 : vector<64xf32> to vector<1x64xf32>
    %95 = vector.broadcast %94 : vector<1x64xf32> to vector<32x64xf32>
    %96 = arith.addf %91, %95 : vector<32x64xf32>
    %c0_37 = arith.constant 0 : index
    %c0_38 = arith.constant 0 : index
    %c0_39 = arith.constant 0 : index
    %97 = vector.load %arg10[%c0_37, %c0_38, %c0_39] : memref<1x64x192xbf16, #tpu.memory_space<vmem>>, vector<1x64x192xbf16>
    %98 = vector.shape_cast %97 : vector<1x64x192xbf16> to vector<64x192xbf16>
    %99 = arith.truncf %96 : vector<32x64xf32> to vector<32x64xbf16>
    %cst_40 = arith.constant dense<0.000000e+00> : vector<32x192xf32>
    %100 = tpu.matmul %99, %98, %cst_40 {dimension_numbers = #tpu.dot_dimension_numbers<[1], [0], [0], [1], [0, 0, 1, 1], [], []>} : vector<32x64xbf16>, vector<64x192xbf16>, vector<32x192xf32> -> vector<32x192xf32>
    %101 = vector.extract_strided_slice %6 {offsets = [6, 0], sizes = [1, 192], strides = [1, 1]} : vector<28x192xf32> to vector<1x192xf32>
    %102 = vector.shape_cast %101 : vector<1x192xf32> to vector<192xf32>
    %103 = vector.shape_cast %102 : vector<192xf32> to vector<1x192xf32>
    %104 = vector.broadcast %103 : vector<1x192xf32> to vector<32x192xf32>
    %105 = arith.addf %100, %104 : vector<32x192xf32>
    %106 = vector.extract_strided_slice %105 {offsets = [0, 0], sizes = [32, 16], strides = [1, 1]} : vector<32x192xf32> to vector<32x16xf32>
    %107 = vector.extract_strided_slice %105 {offsets = [0, 64], sizes = [32, 16], strides = [1, 1]} : vector<32x192xf32> to vector<32x16xf32>
    %108 = vector.extract_strided_slice %105 {offsets = [0, 128], sizes = [32, 16], strides = [1, 1]} : vector<32x192xf32> to vector<32x16xf32>
    %109 = arith.truncf %106 : vector<32x16xf32> to vector<32x16xbf16>
    %110 = arith.truncf %107 : vector<32x16xf32> to vector<32x16xbf16>
    %cst_41 = arith.constant dense<0.000000e+00> : vector<32x32xf32>
    %111 = tpu.matmul %109, %110, %cst_41 {dimension_numbers = #tpu.dot_dimension_numbers<[1], [1], [0], [0], [0, 0, 1, 0], [], []>} : vector<32x16xbf16>, vector<32x16xbf16>, vector<32x32xf32> -> vector<32x32xf32>
    %cst_42 = arith.constant 2.500000e-01 : f32
    %112 = vector.broadcast %cst_42 : f32 to vector<32x32xf32>
    %113 = arith.mulf %111, %112 : vector<32x32xf32>
    %cst_43 = arith.constant -1.000000e+30 : f32
    %114 = vector.broadcast %cst_43 : f32 to vector<32x32xf32>
    %115 = arith.select %17, %113, %114 : vector<32x32xi1>, vector<32x32xf32>
    %cst_44 = arith.constant dense<0xFF800000> : vector<32xf32>
    %116 = vector.multi_reduction <maximumf>, %115, %cst_44 [1] : vector<32x32xf32> to vector<32xf32>
    %117 = vector.shape_cast %116 : vector<32xf32> to vector<32x1xf32>
    %118 = vector.broadcast %117 : vector<32x1xf32> to vector<32x32xf32>
    %119 = arith.subf %115, %118 : vector<32x32xf32>
    %120 = math.exp %119 : vector<32x32xf32>
    %cst_45 = arith.constant 0.000000e+00 : f32
    %121 = vector.broadcast %cst_45 : f32 to vector<32x32xf32>
    %122 = arith.select %17, %120, %121 : vector<32x32xi1>, vector<32x32xf32>
    %cst_46 = arith.constant dense<0.000000e+00> : vector<32xf32>
    %123 = vector.multi_reduction <add>, %122, %cst_46 [1] : vector<32x32xf32> to vector<32xf32>
    %124 = vector.shape_cast %123 : vector<32xf32> to vector<32x1xf32>
    %cst_47 = arith.constant 1.000000e-30 : f32
    %125 = vector.broadcast %cst_47 : f32 to vector<32x1xf32>
    %126 = arith.maximumf %124, %125 : vector<32x1xf32>
    %127 = vector.broadcast %126 : vector<32x1xf32> to vector<32x32xf32>
    %128 = arith.divf %122, %127 : vector<32x32xf32>
    %129 = arith.truncf %128 : vector<32x32xf32> to vector<32x32xbf16>
    %130 = arith.truncf %108 : vector<32x16xf32> to vector<32x16xbf16>
    %cst_48 = arith.constant dense<0.000000e+00> : vector<32x16xf32>
    %131 = tpu.matmul %129, %130, %cst_48 {dimension_numbers = #tpu.dot_dimension_numbers<[1], [0], [0], [1], [0, 0, 1, 1], [], []>} : vector<32x32xbf16>, vector<32x16xbf16>, vector<32x16xf32> -> vector<32x16xf32>
    %132 = vector.extract_strided_slice %105 {offsets = [0, 16], sizes = [32, 16], strides = [1, 1]} : vector<32x192xf32> to vector<32x16xf32>
    %133 = vector.extract_strided_slice %105 {offsets = [0, 80], sizes = [32, 16], strides = [1, 1]} : vector<32x192xf32> to vector<32x16xf32>
    %134 = vector.extract_strided_slice %105 {offsets = [0, 144], sizes = [32, 16], strides = [1, 1]} : vector<32x192xf32> to vector<32x16xf32>
    %135 = arith.truncf %132 : vector<32x16xf32> to vector<32x16xbf16>
    %136 = arith.truncf %133 : vector<32x16xf32> to vector<32x16xbf16>
    %cst_49 = arith.constant dense<0.000000e+00> : vector<32x32xf32>
    %137 = tpu.matmul %135, %136, %cst_49 {dimension_numbers = #tpu.dot_dimension_numbers<[1], [1], [0], [0], [0, 0, 1, 0], [], []>} : vector<32x16xbf16>, vector<32x16xbf16>, vector<32x32xf32> -> vector<32x32xf32>
    %cst_50 = arith.constant 2.500000e-01 : f32
    %138 = vector.broadcast %cst_50 : f32 to vector<32x32xf32>
    %139 = arith.mulf %137, %138 : vector<32x32xf32>
    %cst_51 = arith.constant -1.000000e+30 : f32
    %140 = vector.broadcast %cst_51 : f32 to vector<32x32xf32>
    %141 = arith.select %17, %139, %140 : vector<32x32xi1>, vector<32x32xf32>
    %cst_52 = arith.constant dense<0xFF800000> : vector<32xf32>
    %142 = vector.multi_reduction <maximumf>, %141, %cst_52 [1] : vector<32x32xf32> to vector<32xf32>
    %143 = vector.shape_cast %142 : vector<32xf32> to vector<32x1xf32>
    %144 = vector.broadcast %143 : vector<32x1xf32> to vector<32x32xf32>
    %145 = arith.subf %141, %144 : vector<32x32xf32>
    %146 = math.exp %145 : vector<32x32xf32>
    %cst_53 = arith.constant 0.000000e+00 : f32
    %147 = vector.broadcast %cst_53 : f32 to vector<32x32xf32>
    %148 = arith.select %17, %146, %147 : vector<32x32xi1>, vector<32x32xf32>
    %cst_54 = arith.constant dense<0.000000e+00> : vector<32xf32>
    %149 = vector.multi_reduction <add>, %148, %cst_54 [1] : vector<32x32xf32> to vector<32xf32>
    %150 = vector.shape_cast %149 : vector<32xf32> to vector<32x1xf32>
    %cst_55 = arith.constant 1.000000e-30 : f32
    %151 = vector.broadcast %cst_55 : f32 to vector<32x1xf32>
    %152 = arith.maximumf %150, %151 : vector<32x1xf32>
    %153 = vector.broadcast %152 : vector<32x1xf32> to vector<32x32xf32>
    %154 = arith.divf %148, %153 : vector<32x32xf32>
    %155 = arith.truncf %154 : vector<32x32xf32> to vector<32x32xbf16>
    %156 = arith.truncf %134 : vector<32x16xf32> to vector<32x16xbf16>
    %cst_56 = arith.constant dense<0.000000e+00> : vector<32x16xf32>
    %157 = tpu.matmul %155, %156, %cst_56 {dimension_numbers = #tpu.dot_dimension_numbers<[1], [0], [0], [1], [0, 0, 1, 1], [], []>} : vector<32x32xbf16>, vector<32x16xbf16>, vector<32x16xf32> -> vector<32x16xf32>
    %158 = vector.extract_strided_slice %105 {offsets = [0, 32], sizes = [32, 16], strides = [1, 1]} : vector<32x192xf32> to vector<32x16xf32>
    %159 = vector.extract_strided_slice %105 {offsets = [0, 96], sizes = [32, 16], strides = [1, 1]} : vector<32x192xf32> to vector<32x16xf32>
    %160 = vector.extract_strided_slice %105 {offsets = [0, 160], sizes = [32, 16], strides = [1, 1]} : vector<32x192xf32> to vector<32x16xf32>
    %161 = arith.truncf %158 : vector<32x16xf32> to vector<32x16xbf16>
    %162 = arith.truncf %159 : vector<32x16xf32> to vector<32x16xbf16>
    %cst_57 = arith.constant dense<0.000000e+00> : vector<32x32xf32>
    %163 = tpu.matmul %161, %162, %cst_57 {dimension_numbers = #tpu.dot_dimension_numbers<[1], [1], [0], [0], [0, 0, 1, 0], [], []>} : vector<32x16xbf16>, vector<32x16xbf16>, vector<32x32xf32> -> vector<32x32xf32>
    %cst_58 = arith.constant 2.500000e-01 : f32
    %164 = vector.broadcast %cst_58 : f32 to vector<32x32xf32>
    %165 = arith.mulf %163, %164 : vector<32x32xf32>
    %cst_59 = arith.constant -1.000000e+30 : f32
    %166 = vector.broadcast %cst_59 : f32 to vector<32x32xf32>
    %167 = arith.select %17, %165, %166 : vector<32x32xi1>, vector<32x32xf32>
    %cst_60 = arith.constant dense<0xFF800000> : vector<32xf32>
    %168 = vector.multi_reduction <maximumf>, %167, %cst_60 [1] : vector<32x32xf32> to vector<32xf32>
    %169 = vector.shape_cast %168 : vector<32xf32> to vector<32x1xf32>
    %170 = vector.broadcast %169 : vector<32x1xf32> to vector<32x32xf32>
    %171 = arith.subf %167, %170 : vector<32x32xf32>
    %172 = math.exp %171 : vector<32x32xf32>
    %cst_61 = arith.constant 0.000000e+00 : f32
    %173 = vector.broadcast %cst_61 : f32 to vector<32x32xf32>
    %174 = arith.select %17, %172, %173 : vector<32x32xi1>, vector<32x32xf32>
    %cst_62 = arith.constant dense<0.000000e+00> : vector<32xf32>
    %175 = vector.multi_reduction <add>, %174, %cst_62 [1] : vector<32x32xf32> to vector<32xf32>
    %176 = vector.shape_cast %175 : vector<32xf32> to vector<32x1xf32>
    %cst_63 = arith.constant 1.000000e-30 : f32
    %177 = vector.broadcast %cst_63 : f32 to vector<32x1xf32>
    %178 = arith.maximumf %176, %177 : vector<32x1xf32>
    %179 = vector.broadcast %178 : vector<32x1xf32> to vector<32x32xf32>
    %180 = arith.divf %174, %179 : vector<32x32xf32>
    %181 = arith.truncf %180 : vector<32x32xf32> to vector<32x32xbf16>
    %182 = arith.truncf %160 : vector<32x16xf32> to vector<32x16xbf16>
    %cst_64 = arith.constant dense<0.000000e+00> : vector<32x16xf32>
    %183 = tpu.matmul %181, %182, %cst_64 {dimension_numbers = #tpu.dot_dimension_numbers<[1], [0], [0], [1], [0, 0, 1, 1], [], []>} : vector<32x32xbf16>, vector<32x16xbf16>, vector<32x16xf32> -> vector<32x16xf32>
    %184 = vector.extract_strided_slice %105 {offsets = [0, 48], sizes = [32, 16], strides = [1, 1]} : vector<32x192xf32> to vector<32x16xf32>
    %185 = vector.extract_strided_slice %105 {offsets = [0, 112], sizes = [32, 16], strides = [1, 1]} : vector<32x192xf32> to vector<32x16xf32>
    %186 = vector.extract_strided_slice %105 {offsets = [0, 176], sizes = [32, 16], strides = [1, 1]} : vector<32x192xf32> to vector<32x16xf32>
    %187 = arith.truncf %184 : vector<32x16xf32> to vector<32x16xbf16>
    %188 = arith.truncf %185 : vector<32x16xf32> to vector<32x16xbf16>
    %cst_65 = arith.constant dense<0.000000e+00> : vector<32x32xf32>
    %189 = tpu.matmul %187, %188, %cst_65 {dimension_numbers = #tpu.dot_dimension_numbers<[1], [1], [0], [0], [0, 0, 1, 0], [], []>} : vector<32x16xbf16>, vector<32x16xbf16>, vector<32x32xf32> -> vector<32x32xf32>
    %cst_66 = arith.constant 2.500000e-01 : f32
    %190 = vector.broadcast %cst_66 : f32 to vector<32x32xf32>
    %191 = arith.mulf %189, %190 : vector<32x32xf32>
    %cst_67 = arith.constant -1.000000e+30 : f32
    %192 = vector.broadcast %cst_67 : f32 to vector<32x32xf32>
    %193 = arith.select %17, %191, %192 : vector<32x32xi1>, vector<32x32xf32>
    %cst_68 = arith.constant dense<0xFF800000> : vector<32xf32>
    %194 = vector.multi_reduction <maximumf>, %193, %cst_68 [1] : vector<32x32xf32> to vector<32xf32>
    %195 = vector.shape_cast %194 : vector<32xf32> to vector<32x1xf32>
    %196 = vector.broadcast %195 : vector<32x1xf32> to vector<32x32xf32>
    %197 = arith.subf %193, %196 : vector<32x32xf32>
    %198 = math.exp %197 : vector<32x32xf32>
    %cst_69 = arith.constant 0.000000e+00 : f32
    %199 = vector.broadcast %cst_69 : f32 to vector<32x32xf32>
    %200 = arith.select %17, %198, %199 : vector<32x32xi1>, vector<32x32xf32>
    %cst_70 = arith.constant dense<0.000000e+00> : vector<32xf32>
    %201 = vector.multi_reduction <add>, %200, %cst_70 [1] : vector<32x32xf32> to vector<32xf32>
    %202 = vector.shape_cast %201 : vector<32xf32> to vector<32x1xf32>
    %cst_71 = arith.constant 1.000000e-30 : f32
    %203 = vector.broadcast %cst_71 : f32 to vector<32x1xf32>
    %204 = arith.maximumf %202, %203 : vector<32x1xf32>
    %205 = vector.broadcast %204 : vector<32x1xf32> to vector<32x32xf32>
    %206 = arith.divf %200, %205 : vector<32x32xf32>
    %207 = arith.truncf %206 : vector<32x32xf32> to vector<32x32xbf16>
    %208 = arith.truncf %186 : vector<32x16xf32> to vector<32x16xbf16>
    %cst_72 = arith.constant dense<0.000000e+00> : vector<32x16xf32>
    %209 = tpu.matmul %207, %208, %cst_72 {dimension_numbers = #tpu.dot_dimension_numbers<[1], [0], [0], [1], [0, 0, 1, 1], [], []>} : vector<32x32xbf16>, vector<32x16xbf16>, vector<32x16xf32> -> vector<32x16xf32>
    %210 = tpu.concatenate %131, %157, %183, %209 in 1 : vector<32x16xf32>, vector<32x16xf32>, vector<32x16xf32>, vector<32x16xf32> -> vector<32x64xf32>
    %c0_73 = arith.constant 0 : index
    %c0_74 = arith.constant 0 : index
    %c0_75 = arith.constant 0 : index
    %c0_76 = arith.constant 0 : index
    %211 = vector.load %arg11[%c0_73, %c0_74, %c0_75, %c0_76] : memref<1x2x64x64xbf16, #tpu.memory_space<vmem>>, vector<1x1x64x64xbf16>
    %212 = vector.shape_cast %211 : vector<1x1x64x64xbf16> to vector<64x64xbf16>
    %213 = arith.truncf %210 : vector<32x64xf32> to vector<32x64xbf16>
    %cst_77 = arith.constant dense<0.000000e+00> : vector<32x64xf32>
    %214 = tpu.matmul %213, %212, %cst_77 {dimension_numbers = #tpu.dot_dimension_numbers<[1], [0], [0], [1], [0, 0, 1, 1], [], []>} : vector<32x64xbf16>, vector<64x64xbf16>, vector<32x64xf32> -> vector<32x64xf32>
    %215 = arith.addf %70, %214 : vector<32x64xf32>
    %216 = vector.extract_strided_slice %6 {offsets = [7, 0], sizes = [1, 64], strides = [1, 1]} : vector<28x192xf32> to vector<1x64xf32>
    %217 = vector.shape_cast %216 : vector<1x64xf32> to vector<64xf32>
    %218 = vector.shape_cast %217 : vector<64xf32> to vector<1x64xf32>
    %219 = vector.broadcast %218 : vector<1x64xf32> to vector<32x64xf32>
    %220 = arith.addf %215, %219 : vector<32x64xf32>
    %cst_78 = arith.constant 0.000000e+00 : f32
    %221 = vector.broadcast %cst_78 : f32 to vector<32x1xf32>
    %222 = arith.cmpf ogt, %8, %221 : vector<32x1xf32>
    %cst_79 = arith.constant 0.000000e+00 : f32
    %223 = vector.shape_cast %222 : vector<32x1xi1> to vector<32x1xi1>
    %224 = vector.broadcast %223 : vector<32x1xi1> to vector<32x64xi1>
    %225 = vector.broadcast %cst_79 : f32 to vector<32x64xf32>
    %226 = arith.select %224, %220, %225 : vector<32x64xi1>, vector<32x64xf32>
    %cst_80 = arith.constant dense<0.000000e+00> : vector<32xf32>
    %227 = vector.multi_reduction <add>, %226, %cst_80 [1] : vector<32x64xf32> to vector<32xf32>
    %228 = vector.shape_cast %227 : vector<32xf32> to vector<32x1xf32>
    %cst_81 = arith.constant 6.400000e+01 : f32
    %229 = vector.broadcast %cst_81 : f32 to vector<32x1xf32>
    %230 = arith.divf %228, %229 : vector<32x1xf32>
    %231 = vector.broadcast %230 : vector<32x1xf32> to vector<32x64xf32>
    %232 = arith.subf %226, %231 : vector<32x64xf32>
    %233 = arith.mulf %232, %232 : vector<32x64xf32>
    %cst_82 = arith.constant dense<0.000000e+00> : vector<32xf32>
    %234 = vector.multi_reduction <add>, %233, %cst_82 [1] : vector<32x64xf32> to vector<32xf32>
    %235 = vector.shape_cast %234 : vector<32xf32> to vector<32x1xf32>
    %cst_83 = arith.constant 6.400000e+01 : f32
    %236 = vector.broadcast %cst_83 : f32 to vector<32x1xf32>
    %237 = arith.divf %235, %236 : vector<32x1xf32>
    %cst_84 = arith.constant 9.99999974E-6 : f32
    %238 = vector.broadcast %cst_84 : f32 to vector<32x1xf32>
    %239 = arith.addf %237, %238 : vector<32x1xf32>
    %240 = math.rsqrt %239 : vector<32x1xf32>
    %241 = vector.broadcast %240 : vector<32x1xf32> to vector<32x64xf32>
    %242 = arith.mulf %232, %241 : vector<32x64xf32>
    %243 = vector.extract_strided_slice %6 {offsets = [8, 0], sizes = [1, 64], strides = [1, 1]} : vector<28x192xf32> to vector<1x64xf32>
    %244 = vector.shape_cast %243 : vector<1x64xf32> to vector<64xf32>
    %245 = vector.shape_cast %244 : vector<64xf32> to vector<1x64xf32>
    %246 = vector.broadcast %245 : vector<1x64xf32> to vector<32x64xf32>
    %247 = arith.mulf %242, %246 : vector<32x64xf32>
    %248 = vector.extract_strided_slice %6 {offsets = [9, 0], sizes = [1, 64], strides = [1, 1]} : vector<28x192xf32> to vector<1x64xf32>
    %249 = vector.shape_cast %248 : vector<1x64xf32> to vector<64xf32>
    %250 = vector.shape_cast %249 : vector<64xf32> to vector<1x64xf32>
    %251 = vector.broadcast %250 : vector<1x64xf32> to vector<32x64xf32>
    %252 = arith.addf %247, %251 : vector<32x64xf32>
    %c0_85 = arith.constant 0 : index
    %c2 = arith.constant 2 : index
    %c0_86 = arith.constant 0 : index
    %c0_87 = arith.constant 0 : index
    %253 = vector.load %arg8[%c0_85, %c2, %c0_86, %c0_87] : memref<1x3x64x128xbf16, #tpu.memory_space<vmem>>, vector<1x1x64x128xbf16>
    %254 = vector.shape_cast %253 : vector<1x1x64x128xbf16> to vector<64x128xbf16>
    %255 = arith.truncf %252 : vector<32x64xf32> to vector<32x64xbf16>
    %cst_88 = arith.constant dense<0.000000e+00> : vector<32x128xf32>
    %256 = tpu.matmul %255, %254, %cst_88 {dimension_numbers = #tpu.dot_dimension_numbers<[1], [0], [0], [1], [0, 0, 1, 1], [], []>} : vector<32x64xbf16>, vector<64x128xbf16>, vector<32x128xf32> -> vector<32x128xf32>
    %257 = vector.extract_strided_slice %6 {offsets = [10, 0], sizes = [1, 128], strides = [1, 1]} : vector<28x192xf32> to vector<1x128xf32>
    %258 = vector.shape_cast %257 : vector<1x128xf32> to vector<128xf32>
    %259 = vector.shape_cast %258 : vector<128xf32> to vector<1x128xf32>
    %260 = vector.broadcast %259 : vector<1x128xf32> to vector<32x128xf32>
    %261 = arith.addf %256, %260 : vector<32x128xf32>
    %262 = vector.extract_strided_slice %261 {offsets = [0, 0], sizes = [32, 64], strides = [1, 1]} : vector<32x128xf32> to vector<32x64xf32>
    %263 = vector.extract_strided_slice %261 {offsets = [0, 64], sizes = [32, 64], strides = [1, 1]} : vector<32x128xf32> to vector<32x64xf32>
    %264 = arith.negf %263 : vector<32x64xf32>
    %265 = math.exp %264 : vector<32x64xf32>
    %cst_89 = arith.constant 1.000000e+00 : f32
    %266 = vector.broadcast %cst_89 : f32 to vector<32x64xf32>
    %267 = arith.addf %266, %265 : vector<32x64xf32>
    %268 = arith.divf %266, %267 : vector<32x64xf32>
    %269 = arith.mulf %262, %268 : vector<32x64xf32>
    %cst_90 = arith.constant 0.000000e+00 : f32
    %270 = vector.broadcast %cst_90 : f32 to vector<32x64xf32>
    %c3_i32 = arith.constant 3 : i32
    %271 = tpu.dynamic_rotate %269 by %c3_i32 dim 0 : vector<32x64xf32>, i32 -> vector<32x64xf32>
    %c0_91 = arith.constant 0 : index
    %c0_92 = arith.constant 0 : index
    %c0_93 = arith.constant 0 : index
    %272 = vector.load %arg6[%c0_91, %c0_92, %c0_93] : memref<7x32x1xf32, #tpu.memory_space<vmem>>, vector<1x32x1xf32>
    %273 = vector.shape_cast %272 : vector<1x32x1xf32> to vector<32x1xf32>
    %274 = vector.broadcast %273 : vector<32x1xf32> to vector<32x64xf32>
    %275 = arith.mulf %271, %274 : vector<32x64xf32>
    %276 = vector.extract_strided_slice %6 {offsets = [21, 0], sizes = [1, 64], strides = [1, 1]} : vector<28x192xf32> to vector<1x64xf32>
    %277 = vector.shape_cast %276 : vector<1x64xf32> to vector<64xf32>
    %278 = vector.shape_cast %277 : vector<64xf32> to vector<1x64xf32>
    %279 = vector.broadcast %278 : vector<1x64xf32> to vector<32x64xf32>
    %280 = arith.mulf %275, %279 : vector<32x64xf32>
    %281 = arith.addf %270, %280 : vector<32x64xf32>
    %c2_i32 = arith.constant 2 : i32
    %282 = tpu.dynamic_rotate %269 by %c2_i32 dim 0 : vector<32x64xf32>, i32 -> vector<32x64xf32>
    %c1 = arith.constant 1 : index
    %c0_94 = arith.constant 0 : index
    %c0_95 = arith.constant 0 : index
    %283 = vector.load %arg6[%c1, %c0_94, %c0_95] : memref<7x32x1xf32, #tpu.memory_space<vmem>>, vector<1x32x1xf32>
    %284 = vector.shape_cast %283 : vector<1x32x1xf32> to vector<32x1xf32>
    %285 = vector.broadcast %284 : vector<32x1xf32> to vector<32x64xf32>
    %286 = arith.mulf %282, %285 : vector<32x64xf32>
    %287 = vector.extract_strided_slice %6 {offsets = [22, 0], sizes = [1, 64], strides = [1, 1]} : vector<28x192xf32> to vector<1x64xf32>
    %288 = vector.shape_cast %287 : vector<1x64xf32> to vector<64xf32>
    %289 = vector.shape_cast %288 : vector<64xf32> to vector<1x64xf32>
    %290 = vector.broadcast %289 : vector<1x64xf32> to vector<32x64xf32>
    %291 = arith.mulf %286, %290 : vector<32x64xf32>
    %292 = arith.addf %281, %291 : vector<32x64xf32>
    %c1_i32 = arith.constant 1 : i32
    %293 = tpu.dynamic_rotate %269 by %c1_i32 dim 0 : vector<32x64xf32>, i32 -> vector<32x64xf32>
    %c2_96 = arith.constant 2 : index
    %c0_97 = arith.constant 0 : index
    %c0_98 = arith.constant 0 : index
    %294 = vector.load %arg6[%c2_96, %c0_97, %c0_98] : memref<7x32x1xf32, #tpu.memory_space<vmem>>, vector<1x32x1xf32>
    %295 = vector.shape_cast %294 : vector<1x32x1xf32> to vector<32x1xf32>
    %296 = vector.broadcast %295 : vector<32x1xf32> to vector<32x64xf32>
    %297 = arith.mulf %293, %296 : vector<32x64xf32>
    %298 = vector.extract_strided_slice %6 {offsets = [23, 0], sizes = [1, 64], strides = [1, 1]} : vector<28x192xf32> to vector<1x64xf32>
    %299 = vector.shape_cast %298 : vector<1x64xf32> to vector<64xf32>
    %300 = vector.shape_cast %299 : vector<64xf32> to vector<1x64xf32>
    %301 = vector.broadcast %300 : vector<1x64xf32> to vector<32x64xf32>
    %302 = arith.mulf %297, %301 : vector<32x64xf32>
    %303 = arith.addf %292, %302 : vector<32x64xf32>
    %c3 = arith.constant 3 : index
    %c0_99 = arith.constant 0 : index
    %c0_100 = arith.constant 0 : index
    %304 = vector.load %arg6[%c3, %c0_99, %c0_100] : memref<7x32x1xf32, #tpu.memory_space<vmem>>, vector<1x32x1xf32>
    %305 = vector.shape_cast %304 : vector<1x32x1xf32> to vector<32x1xf32>
    %306 = vector.broadcast %305 : vector<32x1xf32> to vector<32x64xf32>
    %307 = arith.mulf %269, %306 : vector<32x64xf32>
    %308 = vector.extract_strided_slice %6 {offsets = [24, 0], sizes = [1, 64], strides = [1, 1]} : vector<28x192xf32> to vector<1x64xf32>
    %309 = vector.shape_cast %308 : vector<1x64xf32> to vector<64xf32>
    %310 = vector.shape_cast %309 : vector<64xf32> to vector<1x64xf32>
    %311 = vector.broadcast %310 : vector<1x64xf32> to vector<32x64xf32>
    %312 = arith.mulf %307, %311 : vector<32x64xf32>
    %313 = arith.addf %303, %312 : vector<32x64xf32>
    %c31_i32 = arith.constant 31 : i32
    %314 = tpu.dynamic_rotate %269 by %c31_i32 dim 0 : vector<32x64xf32>, i32 -> vector<32x64xf32>
    %c4 = arith.constant 4 : index
    %c0_101 = arith.constant 0 : index
    %c0_102 = arith.constant 0 : index
    %315 = vector.load %arg6[%c4, %c0_101, %c0_102] : memref<7x32x1xf32, #tpu.memory_space<vmem>>, vector<1x32x1xf32>
    %316 = vector.shape_cast %315 : vector<1x32x1xf32> to vector<32x1xf32>
    %317 = vector.broadcast %316 : vector<32x1xf32> to vector<32x64xf32>
    %318 = arith.mulf %314, %317 : vector<32x64xf32>
    %319 = vector.extract_strided_slice %6 {offsets = [25, 0], sizes = [1, 64], strides = [1, 1]} : vector<28x192xf32> to vector<1x64xf32>
    %320 = vector.shape_cast %319 : vector<1x64xf32> to vector<64xf32>
    %321 = vector.shape_cast %320 : vector<64xf32> to vector<1x64xf32>
    %322 = vector.broadcast %321 : vector<1x64xf32> to vector<32x64xf32>
    %323 = arith.mulf %318, %322 : vector<32x64xf32>
    %324 = arith.addf %313, %323 : vector<32x64xf32>
    %c30_i32 = arith.constant 30 : i32
    %325 = tpu.dynamic_rotate %269 by %c30_i32 dim 0 : vector<32x64xf32>, i32 -> vector<32x64xf32>
    %c5 = arith.constant 5 : index
    %c0_103 = arith.constant 0 : index
    %c0_104 = arith.constant 0 : index
    %326 = vector.load %arg6[%c5, %c0_103, %c0_104] : memref<7x32x1xf32, #tpu.memory_space<vmem>>, vector<1x32x1xf32>
    %327 = vector.shape_cast %326 : vector<1x32x1xf32> to vector<32x1xf32>
    %328 = vector.broadcast %327 : vector<32x1xf32> to vector<32x64xf32>
    %329 = arith.mulf %325, %328 : vector<32x64xf32>
    %330 = vector.extract_strided_slice %6 {offsets = [26, 0], sizes = [1, 64], strides = [1, 1]} : vector<28x192xf32> to vector<1x64xf32>
    %331 = vector.shape_cast %330 : vector<1x64xf32> to vector<64xf32>
    %332 = vector.shape_cast %331 : vector<64xf32> to vector<1x64xf32>
    %333 = vector.broadcast %332 : vector<1x64xf32> to vector<32x64xf32>
    %334 = arith.mulf %329, %333 : vector<32x64xf32>
    %335 = arith.addf %324, %334 : vector<32x64xf32>
    %c29_i32 = arith.constant 29 : i32
    %336 = tpu.dynamic_rotate %269 by %c29_i32 dim 0 : vector<32x64xf32>, i32 -> vector<32x64xf32>
    %c6 = arith.constant 6 : index
    %c0_105 = arith.constant 0 : index
    %c0_106 = arith.constant 0 : index
    %337 = vector.load %arg6[%c6, %c0_105, %c0_106] : memref<7x32x1xf32, #tpu.memory_space<vmem>>, vector<1x32x1xf32>
    %338 = vector.shape_cast %337 : vector<1x32x1xf32> to vector<32x1xf32>
    %339 = vector.broadcast %338 : vector<32x1xf32> to vector<32x64xf32>
    %340 = arith.mulf %336, %339 : vector<32x64xf32>
    %341 = vector.extract_strided_slice %6 {offsets = [27, 0], sizes = [1, 64], strides = [1, 1]} : vector<28x192xf32> to vector<1x64xf32>
    %342 = vector.shape_cast %341 : vector<1x64xf32> to vector<64xf32>
    %343 = vector.shape_cast %342 : vector<64xf32> to vector<1x64xf32>
    %344 = vector.broadcast %343 : vector<1x64xf32> to vector<32x64xf32>
    %345 = arith.mulf %340, %344 : vector<32x64xf32>
    %346 = arith.addf %335, %345 : vector<32x64xf32>
    %347 = vector.extract_strided_slice %6 {offsets = [11, 0], sizes = [1, 64], strides = [1, 1]} : vector<28x192xf32> to vector<1x64xf32>
    %348 = vector.shape_cast %347 : vector<1x64xf32> to vector<64xf32>
    %349 = vector.shape_cast %348 : vector<64xf32> to vector<1x64xf32>
    %350 = vector.broadcast %349 : vector<1x64xf32> to vector<32x64xf32>
    %351 = arith.addf %346, %350 : vector<32x64xf32>
    %352 = vector.extract_strided_slice %6 {offsets = [12, 0], sizes = [1, 64], strides = [1, 1]} : vector<28x192xf32> to vector<1x64xf32>
    %353 = vector.shape_cast %352 : vector<1x64xf32> to vector<64xf32>
    %354 = vector.shape_cast %353 : vector<64xf32> to vector<1x64xf32>
    %355 = vector.broadcast %354 : vector<1x64xf32> to vector<32x64xf32>
    %356 = arith.mulf %351, %355 : vector<32x64xf32>
    %357 = vector.extract_strided_slice %6 {offsets = [13, 0], sizes = [1, 64], strides = [1, 1]} : vector<28x192xf32> to vector<1x64xf32>
    %358 = vector.shape_cast %357 : vector<1x64xf32> to vector<64xf32>
    %359 = vector.shape_cast %358 : vector<64xf32> to vector<1x64xf32>
    %360 = vector.broadcast %359 : vector<1x64xf32> to vector<32x64xf32>
    %361 = arith.addf %356, %360 : vector<32x64xf32>
    %362 = arith.negf %361 : vector<32x64xf32>
    %363 = math.exp %362 : vector<32x64xf32>
    %cst_107 = arith.constant 1.000000e+00 : f32
    %364 = vector.broadcast %cst_107 : f32 to vector<32x64xf32>
    %365 = arith.addf %364, %363 : vector<32x64xf32>
    %366 = arith.divf %364, %365 : vector<32x64xf32>
    %367 = arith.mulf %361, %366 : vector<32x64xf32>
    %c0_108 = arith.constant 0 : index
    %c1_109 = arith.constant 1 : index
    %c0_110 = arith.constant 0 : index
    %c0_111 = arith.constant 0 : index
    %368 = vector.load %arg11[%c0_108, %c1_109, %c0_110, %c0_111] : memref<1x2x64x64xbf16, #tpu.memory_space<vmem>>, vector<1x1x64x64xbf16>
    %369 = vector.shape_cast %368 : vector<1x1x64x64xbf16> to vector<64x64xbf16>
    %370 = arith.truncf %367 : vector<32x64xf32> to vector<32x64xbf16>
    %cst_112 = arith.constant dense<0.000000e+00> : vector<32x64xf32>
    %371 = tpu.matmul %370, %369, %cst_112 {dimension_numbers = #tpu.dot_dimension_numbers<[1], [0], [0], [1], [0, 0, 1, 1], [], []>} : vector<32x64xbf16>, vector<64x64xbf16>, vector<32x64xf32> -> vector<32x64xf32>
    %372 = vector.extract_strided_slice %6 {offsets = [14, 0], sizes = [1, 64], strides = [1, 1]} : vector<28x192xf32> to vector<1x64xf32>
    %373 = vector.shape_cast %372 : vector<1x64xf32> to vector<64xf32>
    %374 = vector.shape_cast %373 : vector<64xf32> to vector<1x64xf32>
    %375 = vector.broadcast %374 : vector<1x64xf32> to vector<32x64xf32>
    %376 = arith.addf %371, %375 : vector<32x64xf32>
    %377 = arith.addf %226, %376 : vector<32x64xf32>
    %cst_113 = arith.constant dense<0.000000e+00> : vector<32xf32>
    %378 = vector.multi_reduction <add>, %377, %cst_113 [1] : vector<32x64xf32> to vector<32xf32>
    %379 = vector.shape_cast %378 : vector<32xf32> to vector<32x1xf32>
    %cst_114 = arith.constant 6.400000e+01 : f32
    %380 = vector.broadcast %cst_114 : f32 to vector<32x1xf32>
    %381 = arith.divf %379, %380 : vector<32x1xf32>
    %382 = vector.broadcast %381 : vector<32x1xf32> to vector<32x64xf32>
    %383 = arith.subf %377, %382 : vector<32x64xf32>
    %384 = arith.mulf %383, %383 : vector<32x64xf32>
    %cst_115 = arith.constant dense<0.000000e+00> : vector<32xf32>
    %385 = vector.multi_reduction <add>, %384, %cst_115 [1] : vector<32x64xf32> to vector<32xf32>
    %386 = vector.shape_cast %385 : vector<32xf32> to vector<32x1xf32>
    %cst_116 = arith.constant 6.400000e+01 : f32
    %387 = vector.broadcast %cst_116 : f32 to vector<32x1xf32>
    %388 = arith.divf %386, %387 : vector<32x1xf32>
    %cst_117 = arith.constant 9.99999974E-6 : f32
    %389 = vector.broadcast %cst_117 : f32 to vector<32x1xf32>
    %390 = arith.addf %388, %389 : vector<32x1xf32>
    %391 = math.rsqrt %390 : vector<32x1xf32>
    %392 = vector.broadcast %391 : vector<32x1xf32> to vector<32x64xf32>
    %393 = arith.mulf %383, %392 : vector<32x64xf32>
    %394 = vector.extract_strided_slice %6 {offsets = [15, 0], sizes = [1, 64], strides = [1, 1]} : vector<28x192xf32> to vector<1x64xf32>
    %395 = vector.shape_cast %394 : vector<1x64xf32> to vector<64xf32>
    %396 = vector.shape_cast %395 : vector<64xf32> to vector<1x64xf32>
    %397 = vector.broadcast %396 : vector<1x64xf32> to vector<32x64xf32>
    %398 = arith.mulf %393, %397 : vector<32x64xf32>
    %399 = vector.extract_strided_slice %6 {offsets = [16, 0], sizes = [1, 64], strides = [1, 1]} : vector<28x192xf32> to vector<1x64xf32>
    %400 = vector.shape_cast %399 : vector<1x64xf32> to vector<64xf32>
    %401 = vector.shape_cast %400 : vector<64xf32> to vector<1x64xf32>
    %402 = vector.broadcast %401 : vector<1x64xf32> to vector<32x64xf32>
    %403 = arith.addf %398, %402 : vector<32x64xf32>
    %c0_118 = arith.constant 0 : index
    %c1_119 = arith.constant 1 : index
    %c0_120 = arith.constant 0 : index
    %c0_121 = arith.constant 0 : index
    %404 = vector.load %arg8[%c0_118, %c1_119, %c0_120, %c0_121] : memref<1x3x64x128xbf16, #tpu.memory_space<vmem>>, vector<1x1x64x128xbf16>
    %405 = vector.shape_cast %404 : vector<1x1x64x128xbf16> to vector<64x128xbf16>
    %406 = arith.truncf %403 : vector<32x64xf32> to vector<32x64xbf16>
    %cst_122 = arith.constant dense<0.000000e+00> : vector<32x128xf32>
    %407 = tpu.matmul %406, %405, %cst_122 {dimension_numbers = #tpu.dot_dimension_numbers<[1], [0], [0], [1], [0, 0, 1, 1], [], []>} : vector<32x64xbf16>, vector<64x128xbf16>, vector<32x128xf32> -> vector<32x128xf32>
    %408 = vector.extract_strided_slice %6 {offsets = [17, 0], sizes = [1, 128], strides = [1, 1]} : vector<28x192xf32> to vector<1x128xf32>
    %409 = vector.shape_cast %408 : vector<1x128xf32> to vector<128xf32>
    %410 = vector.shape_cast %409 : vector<128xf32> to vector<1x128xf32>
    %411 = vector.broadcast %410 : vector<1x128xf32> to vector<32x128xf32>
    %412 = arith.addf %407, %411 : vector<32x128xf32>
    %413 = arith.negf %412 : vector<32x128xf32>
    %414 = math.exp %413 : vector<32x128xf32>
    %cst_123 = arith.constant 1.000000e+00 : f32
    %415 = vector.broadcast %cst_123 : f32 to vector<32x128xf32>
    %416 = arith.addf %415, %414 : vector<32x128xf32>
    %417 = arith.divf %415, %416 : vector<32x128xf32>
    %418 = arith.mulf %412, %417 : vector<32x128xf32>
    %c0_124 = arith.constant 0 : index
    %c1_125 = arith.constant 1 : index
    %c0_126 = arith.constant 0 : index
    %c0_127 = arith.constant 0 : index
    %419 = vector.load %arg9[%c0_124, %c1_125, %c0_126, %c0_127] : memref<1x2x128x64xbf16, #tpu.memory_space<vmem>>, vector<1x1x128x64xbf16>
    %420 = vector.shape_cast %419 : vector<1x1x128x64xbf16> to vector<128x64xbf16>
    %421 = arith.truncf %418 : vector<32x128xf32> to vector<32x128xbf16>
    %cst_128 = arith.constant dense<0.000000e+00> : vector<32x64xf32>
    %422 = tpu.matmul %421, %420, %cst_128 {dimension_numbers = #tpu.dot_dimension_numbers<[1], [0], [0], [1], [0, 0, 1, 1], [], []>} : vector<32x128xbf16>, vector<128x64xbf16>, vector<32x64xf32> -> vector<32x64xf32>
    %423 = vector.extract_strided_slice %6 {offsets = [18, 0], sizes = [1, 64], strides = [1, 1]} : vector<28x192xf32> to vector<1x64xf32>
    %424 = vector.shape_cast %423 : vector<1x64xf32> to vector<64xf32>
    %425 = vector.shape_cast %424 : vector<64xf32> to vector<1x64xf32>
    %426 = vector.broadcast %425 : vector<1x64xf32> to vector<32x64xf32>
    %427 = arith.addf %422, %426 : vector<32x64xf32>
    %cst_129 = arith.constant 5.000000e-01 : f32
    %428 = vector.broadcast %cst_129 : f32 to vector<32x64xf32>
    %429 = arith.mulf %428, %427 : vector<32x64xf32>
    %430 = arith.addf %377, %429 : vector<32x64xf32>
    %cst_130 = arith.constant dense<0.000000e+00> : vector<32xf32>
    %431 = vector.multi_reduction <add>, %430, %cst_130 [1] : vector<32x64xf32> to vector<32xf32>
    %432 = vector.shape_cast %431 : vector<32xf32> to vector<32x1xf32>
    %cst_131 = arith.constant 6.400000e+01 : f32
    %433 = vector.broadcast %cst_131 : f32 to vector<32x1xf32>
    %434 = arith.divf %432, %433 : vector<32x1xf32>
    %435 = vector.broadcast %434 : vector<32x1xf32> to vector<32x64xf32>
    %436 = arith.subf %430, %435 : vector<32x64xf32>
    %437 = arith.mulf %436, %436 : vector<32x64xf32>
    %cst_132 = arith.constant dense<0.000000e+00> : vector<32xf32>
    %438 = vector.multi_reduction <add>, %437, %cst_132 [1] : vector<32x64xf32> to vector<32xf32>
    %439 = vector.shape_cast %438 : vector<32xf32> to vector<32x1xf32>
    %cst_133 = arith.constant 6.400000e+01 : f32
    %440 = vector.broadcast %cst_133 : f32 to vector<32x1xf32>
    %441 = arith.divf %439, %440 : vector<32x1xf32>
    %cst_134 = arith.constant 9.99999974E-6 : f32
    %442 = vector.broadcast %cst_134 : f32 to vector<32x1xf32>
    %443 = arith.addf %441, %442 : vector<32x1xf32>
    %444 = math.rsqrt %443 : vector<32x1xf32>
    %445 = vector.broadcast %444 : vector<32x1xf32> to vector<32x64xf32>
    %446 = arith.mulf %436, %445 : vector<32x64xf32>
    %447 = vector.extract_strided_slice %6 {offsets = [19, 0], sizes = [1, 64], strides = [1, 1]} : vector<28x192xf32> to vector<1x64xf32>
    %448 = vector.shape_cast %447 : vector<1x64xf32> to vector<64xf32>
    %449 = vector.shape_cast %448 : vector<64xf32> to vector<1x64xf32>
    %450 = vector.broadcast %449 : vector<1x64xf32> to vector<32x64xf32>
    %451 = arith.mulf %446, %450 : vector<32x64xf32>
    %452 = vector.extract_strided_slice %6 {offsets = [20, 0], sizes = [1, 64], strides = [1, 1]} : vector<28x192xf32> to vector<1x64xf32>
    %453 = vector.shape_cast %452 : vector<1x64xf32> to vector<64xf32>
    %454 = vector.shape_cast %453 : vector<64xf32> to vector<1x64xf32>
    %455 = vector.broadcast %454 : vector<1x64xf32> to vector<32x64xf32>
    %456 = arith.addf %451, %455 : vector<32x64xf32>
    %c0_135 = arith.constant 0 : index
    %c0_136 = arith.constant 0 : index
    %c0_137 = arith.constant 0 : index
    %457 = vector.load %arg12[%c0_135, %c0_136, %c0_137] : memref<1x32x64xf32, #tpu.memory_space<vmem>>, vector<1x32x64xf32>
    %458 = vector.shape_cast %457 : vector<1x32x64xf32> to vector<32x64xf32>
    %459 = vector.shape_cast %456 : vector<32x64xf32> to vector<1x32x64xf32>
    tpu.vector_store %arg12[%c0_135, %c0_136, %c0_137], %459 {strides = array<i32>} : memref<1x32x64xf32, #tpu.memory_space<vmem>>, vector<1x32x64xf32>,
    return
  }
  func.func @transform_0(%arg0: i32, %arg1: i32) -> (i32, i32, i32) {
    %c0_i32 = arith.constant 0 : i32
    %c0_i32_0 = arith.constant 0 : i32
    %c0_i32_1 = arith.constant 0 : i32
    return %arg0, %c0_i32, %c0_i32_0 : i32, i32, i32
  }
  func.func @transform_1(%arg0: i32, %arg1: i32) -> (i32, i32) {
    %c0_i32 = arith.constant 0 : i32
    %c0_i32_0 = arith.constant 0 : i32
    %c0_i32_1 = arith.constant 0 : i32
    return %c0_i32, %c0_i32_0 : i32, i32
  }
  func.func @transform_2(%arg0: i32, %arg1: i32) -> (i32, i32, i32) {
    %c0_i32 = arith.constant 0 : i32
    %c0_i32_0 = arith.constant 0 : i32
    %c0_i32_1 = arith.constant 0 : i32
    return %arg0, %c0_i32, %c0_i32_0 : i32, i32, i32
  }
  func.func @transform_3(%arg0: i32, %arg1: i32) -> (i32, i32, i32) {
    %c0_i32 = arith.constant 0 : i32
    %c0_i32_0 = arith.constant 0 : i32
    %c0_i32_1 = arith.constant 0 : i32
    return %arg0, %c0_i32, %c0_i32_0 : i32, i32, i32
  }
  func.func @transform_4(%arg0: i32, %arg1: i32) -> (i32, i32, i32) {
    %c0_i32 = arith.constant 0 : i32
    %c0_i32_0 = arith.constant 0 : i32
    %c0_i32_1 = arith.constant 0 : i32
    %c0_i32_2 = arith.constant 0 : i32
    return %c0_i32, %c0_i32_0, %c0_i32_1 : i32, i32, i32
  }
  func.func @transform_5(%arg0: i32, %arg1: i32) -> (i32, i32, i32) {
    %c0_i32 = arith.constant 0 : i32
    %c0_i32_0 = arith.constant 0 : i32
    %c0_i32_1 = arith.constant 0 : i32
    return %arg1, %c0_i32, %c0_i32_0 : i32, i32, i32
  }
  func.func @transform_6(%arg0: i32, %arg1: i32) -> (i32, i32, i32, i32) {
    %c0_i32 = arith.constant 0 : i32
    %c0_i32_0 = arith.constant 0 : i32
    %c0_i32_1 = arith.constant 0 : i32
    %c0_i32_2 = arith.constant 0 : i32
    return %arg1, %c0_i32, %c0_i32_0, %c0_i32_1 : i32, i32, i32, i32
  }
  func.func @transform_7(%arg0: i32, %arg1: i32) -> (i32, i32, i32, i32) {
    %c0_i32 = arith.constant 0 : i32
    %c0_i32_0 = arith.constant 0 : i32
    %c0_i32_1 = arith.constant 0 : i32
    %c0_i32_2 = arith.constant 0 : i32
    return %arg1, %c0_i32, %c0_i32_0, %c0_i32_1 : i32, i32, i32, i32
  }
  func.func @transform_8(%arg0: i32, %arg1: i32) -> (i32, i32, i32) {
    %c0_i32 = arith.constant 0 : i32
    %c0_i32_0 = arith.constant 0 : i32
    %c0_i32_1 = arith.constant 0 : i32
    return %arg1, %c0_i32, %c0_i32_0 : i32, i32, i32
  }
  func.func @transform_9(%arg0: i32, %arg1: i32) -> (i32, i32, i32, i32) {
    %c0_i32 = arith.constant 0 : i32
    %c0_i32_0 = arith.constant 0 : i32
    %c0_i32_1 = arith.constant 0 : i32
    %c0_i32_2 = arith.constant 0 : i32
    return %arg1, %c0_i32, %c0_i32_0, %c0_i32_1 : i32, i32, i32, i32
  }
  func.func @transform_10(%arg0: i32, %arg1: i32) -> (i32, i32, i32) {
    %c0_i32 = arith.constant 0 : i32
    %c0_i32_0 = arith.constant 0 : i32
    %c0_i32_1 = arith.constant 0 : i32
    return %arg0, %c0_i32, %c0_i32_0 : i32, i32, i32
  }
}

module attributes {stable_mosaic.version = 11 : i64} {
  func.func @_block_group_kernel(%arg0: i32, %arg1: i32, %arg2: memref<1x24x64xf32, #tpu.memory_space<vmem>>, %arg3: memref<24x24xf32, #tpu.memory_space<vmem>>, %arg4: memref<1x24x1xf32, #tpu.memory_space<vmem>>, %arg5: memref<1x1x24xf32, #tpu.memory_space<vmem>>, %arg6: memref<7x24x1xf32, #tpu.memory_space<vmem>>, %arg7: memref<1x28x192xf32, #tpu.memory_space<vmem>>, %arg8: memref<1x3x64x128xbf16, #tpu.memory_space<vmem>>, %arg9: memref<1x2x128x64xbf16, #tpu.memory_space<vmem>>, %arg10: memref<1x64x192xbf16, #tpu.memory_space<vmem>>, %arg11: memref<1x2x64x64xbf16, #tpu.memory_space<vmem>>, %arg12: memref<1x24x64xf32, #tpu.memory_space<vmem>>) attributes {dimension_semantics = [#tpu.dimension_semantics<parallel>, #tpu.dimension_semantics<arbitrary>], iteration_bounds = array<i64: 2, 2>, scalar_prefetch = 0 : i64, scratch_operands = 0 : i64, tpu.core_type = #tpu.core_type<tc>, window_params = [{transform_indices = @transform_0, window_bounds = array<i64: 1, 24, 64>}, {pipeline_mode = #tpu.pipeline_mode<synchronous>, transform_indices = @transform_1, window_bounds = array<i64: 24, 24>}, {transform_indices = @transform_2, window_bounds = array<i64: 1, 24, 1>}, {transform_indices = @transform_3, window_bounds = array<i64: 1, 1, 24>}, {pipeline_mode = #tpu.pipeline_mode<synchronous>, transform_indices = @transform_4, window_bounds = array<i64: 7, 24, 1>}, {transform_indices = @transform_5, window_bounds = array<i64: 1, 28, 192>}, {transform_indices = @transform_6, window_bounds = array<i64: 1, 3, 64, 128>}, {transform_indices = @transform_7, window_bounds = array<i64: 1, 2, 128, 64>}, {transform_indices = @transform_8, window_bounds = array<i64: 1, 64, 192>}, {transform_indices = @transform_9, window_bounds = array<i64: 1, 2, 64, 64>}, {transform_indices = @transform_10, window_bounds = array<i64: 1, 24, 64>}]} {
    %c0_i32 = arith.constant 0 : i32
    %0 = arith.cmpi eq, %arg1, %c0_i32 : i32
    %1 = arith.extui %0 : i1 to i32
    %c0_i32_0 = arith.constant 0 : i32
    %2 = arith.cmpi ne, %1, %c0_i32_0 : i32
    scf.if %2 {
      %c0_138 = arith.constant 0 : index
      %c0_139 = arith.constant 0 : index
      %c0_140 = arith.constant 0 : index
      %460 = vector.load %arg2[%c0_138, %c0_139, %c0_140] : memref<1x24x64xf32, #tpu.memory_space<vmem>>, vector<1x24x64xf32>
      %461 = vector.shape_cast %460 : vector<1x24x64xf32> to vector<24x64xf32>
      %c0_141 = arith.constant 0 : index
      %c0_142 = arith.constant 0 : index
      %c0_143 = arith.constant 0 : index
      %462 = vector.load %arg12[%c0_141, %c0_142, %c0_143] : memref<1x24x64xf32, #tpu.memory_space<vmem>>, vector<1x24x64xf32>
      %463 = vector.shape_cast %462 : vector<1x24x64xf32> to vector<24x64xf32>
      %464 = vector.shape_cast %461 : vector<24x64xf32> to vector<1x24x64xf32>
      tpu.vector_store %arg12[%c0_141, %c0_142, %c0_143], %464 {strides = array<i32>} : memref<1x24x64xf32, #tpu.memory_space<vmem>>, vector<1x24x64xf32>,
    } else {
    }
    %c0 = arith.constant 0 : index
    %c0_1 = arith.constant 0 : index
    %c0_2 = arith.constant 0 : index
    %3 = vector.load %arg12[%c0, %c0_1, %c0_2] : memref<1x24x64xf32, #tpu.memory_space<vmem>>, vector<1x24x64xf32>
    %4 = vector.shape_cast %3 : vector<1x24x64xf32> to vector<24x64xf32>
    %c0_3 = arith.constant 0 : index
    %c0_4 = arith.constant 0 : index
    %c0_5 = arith.constant 0 : index
    %5 = vector.load %arg7[%c0_3, %c0_4, %c0_5] : memref<1x28x192xf32, #tpu.memory_space<vmem>>, vector<1x28x192xf32>
    %6 = vector.shape_cast %5 : vector<1x28x192xf32> to vector<28x192xf32>
    %c0_6 = arith.constant 0 : index
    %c0_7 = arith.constant 0 : index
    %c0_8 = arith.constant 0 : index
    %7 = vector.load %arg4[%c0_6, %c0_7, %c0_8] : memref<1x24x1xf32, #tpu.memory_space<vmem>>, vector<1x24x1xf32>
    %8 = vector.shape_cast %7 : vector<1x24x1xf32> to vector<24x1xf32>
    %c0_9 = arith.constant 0 : index
    %c0_10 = arith.constant 0 : index
    %c0_11 = arith.constant 0 : index
    %9 = vector.load %arg5[%c0_9, %c0_10, %c0_11] : memref<1x1x24xf32, #tpu.memory_space<vmem>>, vector<1x1x24xf32>
    %10 = vector.shape_cast %9 : vector<1x1x24xf32> to vector<1x24xf32>
    %c0_12 = arith.constant 0 : index
    %c0_13 = arith.constant 0 : index
    %11 = vector.load %arg3[%c0_12, %c0_13] : memref<24x24xf32, #tpu.memory_space<vmem>>, vector<24x24xf32>
    %cst = arith.constant 0.000000e+00 : f32
    %12 = vector.broadcast %cst : f32 to vector<24x24xf32>
    %13 = arith.cmpf ogt, %11, %12 : vector<24x24xf32>
    %cst_14 = arith.constant 0.000000e+00 : f32
    %14 = vector.broadcast %cst_14 : f32 to vector<1x24xf32>
    %15 = arith.cmpf ogt, %10, %14 : vector<1x24xf32>
    %16 = vector.broadcast %15 : vector<1x24xi1> to vector<24x24xi1>
    %17 = arith.andi %13, %16 : vector<24x24xi1>
    %cst_15 = arith.constant dense<0.000000e+00> : vector<24xf32>
    %18 = vector.multi_reduction <add>, %4, %cst_15 [1] : vector<24x64xf32> to vector<24xf32>
    %19 = vector.shape_cast %18 : vector<24xf32> to vector<24x1xf32>
    %cst_16 = arith.constant 6.400000e+01 : f32
    %20 = vector.broadcast %cst_16 : f32 to vector<24x1xf32>
    %21 = arith.divf %19, %20 : vector<24x1xf32>
    %22 = vector.broadcast %21 : vector<24x1xf32> to vector<24x64xf32>
    %23 = arith.subf %4, %22 : vector<24x64xf32>
    %24 = arith.mulf %23, %23 : vector<24x64xf32>
    %cst_17 = arith.constant dense<0.000000e+00> : vector<24xf32>
    %25 = vector.multi_reduction <add>, %24, %cst_17 [1] : vector<24x64xf32> to vector<24xf32>
    %26 = vector.shape_cast %25 : vector<24xf32> to vector<24x1xf32>
    %cst_18 = arith.constant 6.400000e+01 : f32
    %27 = vector.broadcast %cst_18 : f32 to vector<24x1xf32>
    %28 = arith.divf %26, %27 : vector<24x1xf32>
    %cst_19 = arith.constant 9.99999974E-6 : f32
    %29 = vector.broadcast %cst_19 : f32 to vector<24x1xf32>
    %30 = arith.addf %28, %29 : vector<24x1xf32>
    %31 = math.rsqrt %30 : vector<24x1xf32>
    %32 = vector.broadcast %31 : vector<24x1xf32> to vector<24x64xf32>
    %33 = arith.mulf %23, %32 : vector<24x64xf32>
    %34 = vector.extract_strided_slice %6 {offsets = [0, 0], sizes = [1, 64], strides = [1, 1]} : vector<28x192xf32> to vector<1x64xf32>
    %35 = vector.shape_cast %34 : vector<1x64xf32> to vector<64xf32>
    %36 = vector.shape_cast %35 : vector<64xf32> to vector<1x64xf32>
    %37 = vector.broadcast %36 : vector<1x64xf32> to vector<24x64xf32>
    %38 = arith.mulf %33, %37 : vector<24x64xf32>
    %39 = vector.extract_strided_slice %6 {offsets = [1, 0], sizes = [1, 64], strides = [1, 1]} : vector<28x192xf32> to vector<1x64xf32>
    %40 = vector.shape_cast %39 : vector<1x64xf32> to vector<64xf32>
    %41 = vector.shape_cast %40 : vector<64xf32> to vector<1x64xf32>
    %42 = vector.broadcast %41 : vector<1x64xf32> to vector<24x64xf32>
    %43 = arith.addf %38, %42 : vector<24x64xf32>
    %c0_20 = arith.constant 0 : index
    %c0_21 = arith.constant 0 : index
    %c0_22 = arith.constant 0 : index
    %c0_23 = arith.constant 0 : index
    %44 = vector.load %arg8[%c0_20, %c0_21, %c0_22, %c0_23] : memref<1x3x64x128xbf16, #tpu.memory_space<vmem>>, vector<1x1x64x128xbf16>
    %45 = vector.shape_cast %44 : vector<1x1x64x128xbf16> to vector<64x128xbf16>
    %46 = arith.truncf %43 : vector<24x64xf32> to vector<24x64xbf16>
    %cst_24 = arith.constant dense<0.000000e+00> : vector<24x128xf32>
    %47 = tpu.matmul %46, %45, %cst_24 {dimension_numbers = #tpu.dot_dimension_numbers<[1], [0], [0], [1], [0, 0, 1, 1], [], []>} : vector<24x64xbf16>, vector<64x128xbf16>, vector<24x128xf32> -> vector<24x128xf32>
    %48 = vector.extract_strided_slice %6 {offsets = [2, 0], sizes = [1, 128], strides = [1, 1]} : vector<28x192xf32> to vector<1x128xf32>
    %49 = vector.shape_cast %48 : vector<1x128xf32> to vector<128xf32>
    %50 = vector.shape_cast %49 : vector<128xf32> to vector<1x128xf32>
    %51 = vector.broadcast %50 : vector<1x128xf32> to vector<24x128xf32>
    %52 = arith.addf %47, %51 : vector<24x128xf32>
    %53 = arith.negf %52 : vector<24x128xf32>
    %54 = math.exp %53 : vector<24x128xf32>
    %cst_25 = arith.constant 1.000000e+00 : f32
    %55 = vector.broadcast %cst_25 : f32 to vector<24x128xf32>
    %56 = arith.addf %55, %54 : vector<24x128xf32>
    %57 = arith.divf %55, %56 : vector<24x128xf32>
    %58 = arith.mulf %52, %57 : vector<24x128xf32>
    %c0_26 = arith.constant 0 : index
    %c0_27 = arith.constant 0 : index
    %c0_28 = arith.constant 0 : index
    %c0_29 = arith.constant 0 : index
    %59 = vector.load %arg9[%c0_26, %c0_27, %c0_28, %c0_29] : memref<1x2x128x64xbf16, #tpu.memory_space<vmem>>, vector<1x1x128x64xbf16>
    %60 = vector.shape_cast %59 : vector<1x1x128x64xbf16> to vector<128x64xbf16>
    %61 = arith.truncf %58 : vector<24x128xf32> to vector<24x128xbf16>
    %cst_30 = arith.constant dense<0.000000e+00> : vector<24x64xf32>
    %62 = tpu.matmul %61, %60, %cst_30 {dimension_numbers = #tpu.dot_dimension_numbers<[1], [0], [0], [1], [0, 0, 1, 1], [], []>} : vector<24x128xbf16>, vector<128x64xbf16>, vector<24x64xf32> -> vector<24x64xf32>
    %63 = vector.extract_strided_slice %6 {offsets = [3, 0], sizes = [1, 64], strides = [1, 1]} : vector<28x192xf32> to vector<1x64xf32>
    %64 = vector.shape_cast %63 : vector<1x64xf32> to vector<64xf32>
    %65 = vector.shape_cast %64 : vector<64xf32> to vector<1x64xf32>
    %66 = vector.broadcast %65 : vector<1x64xf32> to vector<24x64xf32>
    %67 = arith.addf %62, %66 : vector<24x64xf32>
    %cst_31 = arith.constant 5.000000e-01 : f32
    %68 = vector.broadcast %cst_31 : f32 to vector<24x64xf32>
    %69 = arith.mulf %68, %67 : vector<24x64xf32>
    %70 = arith.addf %4, %69 : vector<24x64xf32>
    %cst_32 = arith.constant dense<0.000000e+00> : vector<24xf32>
    %71 = vector.multi_reduction <add>, %70, %cst_32 [1] : vector<24x64xf32> to vector<24xf32>
    %72 = vector.shape_cast %71 : vector<24xf32> to vector<24x1xf32>
    %cst_33 = arith.constant 6.400000e+01 : f32
    %73 = vector.broadcast %cst_33 : f32 to vector<24x1xf32>
    %74 = arith.divf %72, %73 : vector<24x1xf32>
    %75 = vector.broadcast %74 : vector<24x1xf32> to vector<24x64xf32>
    %76 = arith.subf %70, %75 : vector<24x64xf32>
    %77 = arith.mulf %76, %76 : vector<24x64xf32>
    %cst_34 = arith.constant dense<0.000000e+00> : vector<24xf32>
    %78 = vector.multi_reduction <add>, %77, %cst_34 [1] : vector<24x64xf32> to vector<24xf32>
    %79 = vector.shape_cast %78 : vector<24xf32> to vector<24x1xf32>
    %cst_35 = arith.constant 6.400000e+01 : f32
    %80 = vector.broadcast %cst_35 : f32 to vector<24x1xf32>
    %81 = arith.divf %79, %80 : vector<24x1xf32>
    %cst_36 = arith.constant 9.99999974E-6 : f32
    %82 = vector.broadcast %cst_36 : f32 to vector<24x1xf32>
    %83 = arith.addf %81, %82 : vector<24x1xf32>
    %84 = math.rsqrt %83 : vector<24x1xf32>
    %85 = vector.broadcast %84 : vector<24x1xf32> to vector<24x64xf32>
    %86 = arith.mulf %76, %85 : vector<24x64xf32>
    %87 = vector.extract_strided_slice %6 {offsets = [4, 0], sizes = [1, 64], strides = [1, 1]} : vector<28x192xf32> to vector<1x64xf32>
    %88 = vector.shape_cast %87 : vector<1x64xf32> to vector<64xf32>
    %89 = vector.shape_cast %88 : vector<64xf32> to vector<1x64xf32>
    %90 = vector.broadcast %89 : vector<1x64xf32> to vector<24x64xf32>
    %91 = arith.mulf %86, %90 : vector<24x64xf32>
    %92 = vector.extract_strided_slice %6 {offsets = [5, 0], sizes = [1, 64], strides = [1, 1]} : vector<28x192xf32> to vector<1x64xf32>
    %93 = vector.shape_cast %92 : vector<1x64xf32> to vector<64xf32>
    %94 = vector.shape_cast %93 : vector<64xf32> to vector<1x64xf32>
    %95 = vector.broadcast %94 : vector<1x64xf32> to vector<24x64xf32>
    %96 = arith.addf %91, %95 : vector<24x64xf32>
    %c0_37 = arith.constant 0 : index
    %c0_38 = arith.constant 0 : index
    %c0_39 = arith.constant 0 : index
    %97 = vector.load %arg10[%c0_37, %c0_38, %c0_39] : memref<1x64x192xbf16, #tpu.memory_space<vmem>>, vector<1x64x192xbf16>
    %98 = vector.shape_cast %97 : vector<1x64x192xbf16> to vector<64x192xbf16>
    %99 = arith.truncf %96 : vector<24x64xf32> to vector<24x64xbf16>
    %cst_40 = arith.constant dense<0.000000e+00> : vector<24x192xf32>
    %100 = tpu.matmul %99, %98, %cst_40 {dimension_numbers = #tpu.dot_dimension_numbers<[1], [0], [0], [1], [0, 0, 1, 1], [], []>} : vector<24x64xbf16>, vector<64x192xbf16>, vector<24x192xf32> -> vector<24x192xf32>
    %101 = vector.extract_strided_slice %6 {offsets = [6, 0], sizes = [1, 192], strides = [1, 1]} : vector<28x192xf32> to vector<1x192xf32>
    %102 = vector.shape_cast %101 : vector<1x192xf32> to vector<192xf32>
    %103 = vector.shape_cast %102 : vector<192xf32> to vector<1x192xf32>
    %104 = vector.broadcast %103 : vector<1x192xf32> to vector<24x192xf32>
    %105 = arith.addf %100, %104 : vector<24x192xf32>
    %106 = vector.extract_strided_slice %105 {offsets = [0, 0], sizes = [24, 16], strides = [1, 1]} : vector<24x192xf32> to vector<24x16xf32>
    %107 = vector.extract_strided_slice %105 {offsets = [0, 64], sizes = [24, 16], strides = [1, 1]} : vector<24x192xf32> to vector<24x16xf32>
    %108 = vector.extract_strided_slice %105 {offsets = [0, 128], sizes = [24, 16], strides = [1, 1]} : vector<24x192xf32> to vector<24x16xf32>
    %109 = arith.truncf %106 : vector<24x16xf32> to vector<24x16xbf16>
    %110 = arith.truncf %107 : vector<24x16xf32> to vector<24x16xbf16>
    %cst_41 = arith.constant dense<0.000000e+00> : vector<24x24xf32>
    %111 = tpu.matmul %109, %110, %cst_41 {dimension_numbers = #tpu.dot_dimension_numbers<[1], [1], [0], [0], [0, 0, 1, 0], [], []>} : vector<24x16xbf16>, vector<24x16xbf16>, vector<24x24xf32> -> vector<24x24xf32>
    %cst_42 = arith.constant 2.500000e-01 : f32
    %112 = vector.broadcast %cst_42 : f32 to vector<24x24xf32>
    %113 = arith.mulf %111, %112 : vector<24x24xf32>
    %cst_43 = arith.constant -1.000000e+30 : f32
    %114 = vector.broadcast %cst_43 : f32 to vector<24x24xf32>
    %115 = arith.select %17, %113, %114 : vector<24x24xi1>, vector<24x24xf32>
    %cst_44 = arith.constant dense<0xFF800000> : vector<24xf32>
    %116 = vector.multi_reduction <maximumf>, %115, %cst_44 [1] : vector<24x24xf32> to vector<24xf32>
    %117 = vector.shape_cast %116 : vector<24xf32> to vector<24x1xf32>
    %118 = vector.broadcast %117 : vector<24x1xf32> to vector<24x24xf32>
    %119 = arith.subf %115, %118 : vector<24x24xf32>
    %120 = math.exp %119 : vector<24x24xf32>
    %cst_45 = arith.constant 0.000000e+00 : f32
    %121 = vector.broadcast %cst_45 : f32 to vector<24x24xf32>
    %122 = arith.select %17, %120, %121 : vector<24x24xi1>, vector<24x24xf32>
    %cst_46 = arith.constant dense<0.000000e+00> : vector<24xf32>
    %123 = vector.multi_reduction <add>, %122, %cst_46 [1] : vector<24x24xf32> to vector<24xf32>
    %124 = vector.shape_cast %123 : vector<24xf32> to vector<24x1xf32>
    %cst_47 = arith.constant 1.000000e-30 : f32
    %125 = vector.broadcast %cst_47 : f32 to vector<24x1xf32>
    %126 = arith.maximumf %124, %125 : vector<24x1xf32>
    %127 = vector.broadcast %126 : vector<24x1xf32> to vector<24x24xf32>
    %128 = arith.divf %122, %127 : vector<24x24xf32>
    %129 = arith.truncf %128 : vector<24x24xf32> to vector<24x24xbf16>
    %130 = arith.truncf %108 : vector<24x16xf32> to vector<24x16xbf16>
    %cst_48 = arith.constant dense<0.000000e+00> : vector<24x16xf32>
    %131 = tpu.matmul %129, %130, %cst_48 {dimension_numbers = #tpu.dot_dimension_numbers<[1], [0], [0], [1], [0, 0, 1, 1], [], []>} : vector<24x24xbf16>, vector<24x16xbf16>, vector<24x16xf32> -> vector<24x16xf32>
    %132 = vector.extract_strided_slice %105 {offsets = [0, 16], sizes = [24, 16], strides = [1, 1]} : vector<24x192xf32> to vector<24x16xf32>
    %133 = vector.extract_strided_slice %105 {offsets = [0, 80], sizes = [24, 16], strides = [1, 1]} : vector<24x192xf32> to vector<24x16xf32>
    %134 = vector.extract_strided_slice %105 {offsets = [0, 144], sizes = [24, 16], strides = [1, 1]} : vector<24x192xf32> to vector<24x16xf32>
    %135 = arith.truncf %132 : vector<24x16xf32> to vector<24x16xbf16>
    %136 = arith.truncf %133 : vector<24x16xf32> to vector<24x16xbf16>
    %cst_49 = arith.constant dense<0.000000e+00> : vector<24x24xf32>
    %137 = tpu.matmul %135, %136, %cst_49 {dimension_numbers = #tpu.dot_dimension_numbers<[1], [1], [0], [0], [0, 0, 1, 0], [], []>} : vector<24x16xbf16>, vector<24x16xbf16>, vector<24x24xf32> -> vector<24x24xf32>
    %cst_50 = arith.constant 2.500000e-01 : f32
    %138 = vector.broadcast %cst_50 : f32 to vector<24x24xf32>
    %139 = arith.mulf %137, %138 : vector<24x24xf32>
    %cst_51 = arith.constant -1.000000e+30 : f32
    %140 = vector.broadcast %cst_51 : f32 to vector<24x24xf32>
    %141 = arith.select %17, %139, %140 : vector<24x24xi1>, vector<24x24xf32>
    %cst_52 = arith.constant dense<0xFF800000> : vector<24xf32>
    %142 = vector.multi_reduction <maximumf>, %141, %cst_52 [1] : vector<24x24xf32> to vector<24xf32>
    %143 = vector.shape_cast %142 : vector<24xf32> to vector<24x1xf32>
    %144 = vector.broadcast %143 : vector<24x1xf32> to vector<24x24xf32>
    %145 = arith.subf %141, %144 : vector<24x24xf32>
    %146 = math.exp %145 : vector<24x24xf32>
    %cst_53 = arith.constant 0.000000e+00 : f32
    %147 = vector.broadcast %cst_53 : f32 to vector<24x24xf32>
    %148 = arith.select %17, %146, %147 : vector<24x24xi1>, vector<24x24xf32>
    %cst_54 = arith.constant dense<0.000000e+00> : vector<24xf32>
    %149 = vector.multi_reduction <add>, %148, %cst_54 [1] : vector<24x24xf32> to vector<24xf32>
    %150 = vector.shape_cast %149 : vector<24xf32> to vector<24x1xf32>
    %cst_55 = arith.constant 1.000000e-30 : f32
    %151 = vector.broadcast %cst_55 : f32 to vector<24x1xf32>
    %152 = arith.maximumf %150, %151 : vector<24x1xf32>
    %153 = vector.broadcast %152 : vector<24x1xf32> to vector<24x24xf32>
    %154 = arith.divf %148, %153 : vector<24x24xf32>
    %155 = arith.truncf %154 : vector<24x24xf32> to vector<24x24xbf16>
    %156 = arith.truncf %134 : vector<24x16xf32> to vector<24x16xbf16>
    %cst_56 = arith.constant dense<0.000000e+00> : vector<24x16xf32>
    %157 = tpu.matmul %155, %156, %cst_56 {dimension_numbers = #tpu.dot_dimension_numbers<[1], [0], [0], [1], [0, 0, 1, 1], [], []>} : vector<24x24xbf16>, vector<24x16xbf16>, vector<24x16xf32> -> vector<24x16xf32>
    %158 = vector.extract_strided_slice %105 {offsets = [0, 32], sizes = [24, 16], strides = [1, 1]} : vector<24x192xf32> to vector<24x16xf32>
    %159 = vector.extract_strided_slice %105 {offsets = [0, 96], sizes = [24, 16], strides = [1, 1]} : vector<24x192xf32> to vector<24x16xf32>
    %160 = vector.extract_strided_slice %105 {offsets = [0, 160], sizes = [24, 16], strides = [1, 1]} : vector<24x192xf32> to vector<24x16xf32>
    %161 = arith.truncf %158 : vector<24x16xf32> to vector<24x16xbf16>
    %162 = arith.truncf %159 : vector<24x16xf32> to vector<24x16xbf16>
    %cst_57 = arith.constant dense<0.000000e+00> : vector<24x24xf32>
    %163 = tpu.matmul %161, %162, %cst_57 {dimension_numbers = #tpu.dot_dimension_numbers<[1], [1], [0], [0], [0, 0, 1, 0], [], []>} : vector<24x16xbf16>, vector<24x16xbf16>, vector<24x24xf32> -> vector<24x24xf32>
    %cst_58 = arith.constant 2.500000e-01 : f32
    %164 = vector.broadcast %cst_58 : f32 to vector<24x24xf32>
    %165 = arith.mulf %163, %164 : vector<24x24xf32>
    %cst_59 = arith.constant -1.000000e+30 : f32
    %166 = vector.broadcast %cst_59 : f32 to vector<24x24xf32>
    %167 = arith.select %17, %165, %166 : vector<24x24xi1>, vector<24x24xf32>
    %cst_60 = arith.constant dense<0xFF800000> : vector<24xf32>
    %168 = vector.multi_reduction <maximumf>, %167, %cst_60 [1] : vector<24x24xf32> to vector<24xf32>
    %169 = vector.shape_cast %168 : vector<24xf32> to vector<24x1xf32>
    %170 = vector.broadcast %169 : vector<24x1xf32> to vector<24x24xf32>
    %171 = arith.subf %167, %170 : vector<24x24xf32>
    %172 = math.exp %171 : vector<24x24xf32>
    %cst_61 = arith.constant 0.000000e+00 : f32
    %173 = vector.broadcast %cst_61 : f32 to vector<24x24xf32>
    %174 = arith.select %17, %172, %173 : vector<24x24xi1>, vector<24x24xf32>
    %cst_62 = arith.constant dense<0.000000e+00> : vector<24xf32>
    %175 = vector.multi_reduction <add>, %174, %cst_62 [1] : vector<24x24xf32> to vector<24xf32>
    %176 = vector.shape_cast %175 : vector<24xf32> to vector<24x1xf32>
    %cst_63 = arith.constant 1.000000e-30 : f32
    %177 = vector.broadcast %cst_63 : f32 to vector<24x1xf32>
    %178 = arith.maximumf %176, %177 : vector<24x1xf32>
    %179 = vector.broadcast %178 : vector<24x1xf32> to vector<24x24xf32>
    %180 = arith.divf %174, %179 : vector<24x24xf32>
    %181 = arith.truncf %180 : vector<24x24xf32> to vector<24x24xbf16>
    %182 = arith.truncf %160 : vector<24x16xf32> to vector<24x16xbf16>
    %cst_64 = arith.constant dense<0.000000e+00> : vector<24x16xf32>
    %183 = tpu.matmul %181, %182, %cst_64 {dimension_numbers = #tpu.dot_dimension_numbers<[1], [0], [0], [1], [0, 0, 1, 1], [], []>} : vector<24x24xbf16>, vector<24x16xbf16>, vector<24x16xf32> -> vector<24x16xf32>
    %184 = vector.extract_strided_slice %105 {offsets = [0, 48], sizes = [24, 16], strides = [1, 1]} : vector<24x192xf32> to vector<24x16xf32>
    %185 = vector.extract_strided_slice %105 {offsets = [0, 112], sizes = [24, 16], strides = [1, 1]} : vector<24x192xf32> to vector<24x16xf32>
    %186 = vector.extract_strided_slice %105 {offsets = [0, 176], sizes = [24, 16], strides = [1, 1]} : vector<24x192xf32> to vector<24x16xf32>
    %187 = arith.truncf %184 : vector<24x16xf32> to vector<24x16xbf16>
    %188 = arith.truncf %185 : vector<24x16xf32> to vector<24x16xbf16>
    %cst_65 = arith.constant dense<0.000000e+00> : vector<24x24xf32>
    %189 = tpu.matmul %187, %188, %cst_65 {dimension_numbers = #tpu.dot_dimension_numbers<[1], [1], [0], [0], [0, 0, 1, 0], [], []>} : vector<24x16xbf16>, vector<24x16xbf16>, vector<24x24xf32> -> vector<24x24xf32>
    %cst_66 = arith.constant 2.500000e-01 : f32
    %190 = vector.broadcast %cst_66 : f32 to vector<24x24xf32>
    %191 = arith.mulf %189, %190 : vector<24x24xf32>
    %cst_67 = arith.constant -1.000000e+30 : f32
    %192 = vector.broadcast %cst_67 : f32 to vector<24x24xf32>
    %193 = arith.select %17, %191, %192 : vector<24x24xi1>, vector<24x24xf32>
    %cst_68 = arith.constant dense<0xFF800000> : vector<24xf32>
    %194 = vector.multi_reduction <maximumf>, %193, %cst_68 [1] : vector<24x24xf32> to vector<24xf32>
    %195 = vector.shape_cast %194 : vector<24xf32> to vector<24x1xf32>
    %196 = vector.broadcast %195 : vector<24x1xf32> to vector<24x24xf32>
    %197 = arith.subf %193, %196 : vector<24x24xf32>
    %198 = math.exp %197 : vector<24x24xf32>
    %cst_69 = arith.constant 0.000000e+00 : f32
    %199 = vector.broadcast %cst_69 : f32 to vector<24x24xf32>
    %200 = arith.select %17, %198, %199 : vector<24x24xi1>, vector<24x24xf32>
    %cst_70 = arith.constant dense<0.000000e+00> : vector<24xf32>
    %201 = vector.multi_reduction <add>, %200, %cst_70 [1] : vector<24x24xf32> to vector<24xf32>
    %202 = vector.shape_cast %201 : vector<24xf32> to vector<24x1xf32>
    %cst_71 = arith.constant 1.000000e-30 : f32
    %203 = vector.broadcast %cst_71 : f32 to vector<24x1xf32>
    %204 = arith.maximumf %202, %203 : vector<24x1xf32>
    %205 = vector.broadcast %204 : vector<24x1xf32> to vector<24x24xf32>
    %206 = arith.divf %200, %205 : vector<24x24xf32>
    %207 = arith.truncf %206 : vector<24x24xf32> to vector<24x24xbf16>
    %208 = arith.truncf %186 : vector<24x16xf32> to vector<24x16xbf16>
    %cst_72 = arith.constant dense<0.000000e+00> : vector<24x16xf32>
    %209 = tpu.matmul %207, %208, %cst_72 {dimension_numbers = #tpu.dot_dimension_numbers<[1], [0], [0], [1], [0, 0, 1, 1], [], []>} : vector<24x24xbf16>, vector<24x16xbf16>, vector<24x16xf32> -> vector<24x16xf32>
    %210 = tpu.concatenate %131, %157, %183, %209 in 1 : vector<24x16xf32>, vector<24x16xf32>, vector<24x16xf32>, vector<24x16xf32> -> vector<24x64xf32>
    %c0_73 = arith.constant 0 : index
    %c0_74 = arith.constant 0 : index
    %c0_75 = arith.constant 0 : index
    %c0_76 = arith.constant 0 : index
    %211 = vector.load %arg11[%c0_73, %c0_74, %c0_75, %c0_76] : memref<1x2x64x64xbf16, #tpu.memory_space<vmem>>, vector<1x1x64x64xbf16>
    %212 = vector.shape_cast %211 : vector<1x1x64x64xbf16> to vector<64x64xbf16>
    %213 = arith.truncf %210 : vector<24x64xf32> to vector<24x64xbf16>
    %cst_77 = arith.constant dense<0.000000e+00> : vector<24x64xf32>
    %214 = tpu.matmul %213, %212, %cst_77 {dimension_numbers = #tpu.dot_dimension_numbers<[1], [0], [0], [1], [0, 0, 1, 1], [], []>} : vector<24x64xbf16>, vector<64x64xbf16>, vector<24x64xf32> -> vector<24x64xf32>
    %215 = arith.addf %70, %214 : vector<24x64xf32>
    %216 = vector.extract_strided_slice %6 {offsets = [7, 0], sizes = [1, 64], strides = [1, 1]} : vector<28x192xf32> to vector<1x64xf32>
    %217 = vector.shape_cast %216 : vector<1x64xf32> to vector<64xf32>
    %218 = vector.shape_cast %217 : vector<64xf32> to vector<1x64xf32>
    %219 = vector.broadcast %218 : vector<1x64xf32> to vector<24x64xf32>
    %220 = arith.addf %215, %219 : vector<24x64xf32>
    %cst_78 = arith.constant 0.000000e+00 : f32
    %221 = vector.broadcast %cst_78 : f32 to vector<24x1xf32>
    %222 = arith.cmpf ogt, %8, %221 : vector<24x1xf32>
    %cst_79 = arith.constant 0.000000e+00 : f32
    %223 = vector.shape_cast %222 : vector<24x1xi1> to vector<24x1xi1>
    %224 = vector.broadcast %223 : vector<24x1xi1> to vector<24x64xi1>
    %225 = vector.broadcast %cst_79 : f32 to vector<24x64xf32>
    %226 = arith.select %224, %220, %225 : vector<24x64xi1>, vector<24x64xf32>
    %cst_80 = arith.constant dense<0.000000e+00> : vector<24xf32>
    %227 = vector.multi_reduction <add>, %226, %cst_80 [1] : vector<24x64xf32> to vector<24xf32>
    %228 = vector.shape_cast %227 : vector<24xf32> to vector<24x1xf32>
    %cst_81 = arith.constant 6.400000e+01 : f32
    %229 = vector.broadcast %cst_81 : f32 to vector<24x1xf32>
    %230 = arith.divf %228, %229 : vector<24x1xf32>
    %231 = vector.broadcast %230 : vector<24x1xf32> to vector<24x64xf32>
    %232 = arith.subf %226, %231 : vector<24x64xf32>
    %233 = arith.mulf %232, %232 : vector<24x64xf32>
    %cst_82 = arith.constant dense<0.000000e+00> : vector<24xf32>
    %234 = vector.multi_reduction <add>, %233, %cst_82 [1] : vector<24x64xf32> to vector<24xf32>
    %235 = vector.shape_cast %234 : vector<24xf32> to vector<24x1xf32>
    %cst_83 = arith.constant 6.400000e+01 : f32
    %236 = vector.broadcast %cst_83 : f32 to vector<24x1xf32>
    %237 = arith.divf %235, %236 : vector<24x1xf32>
    %cst_84 = arith.constant 9.99999974E-6 : f32
    %238 = vector.broadcast %cst_84 : f32 to vector<24x1xf32>
    %239 = arith.addf %237, %238 : vector<24x1xf32>
    %240 = math.rsqrt %239 : vector<24x1xf32>
    %241 = vector.broadcast %240 : vector<24x1xf32> to vector<24x64xf32>
    %242 = arith.mulf %232, %241 : vector<24x64xf32>
    %243 = vector.extract_strided_slice %6 {offsets = [8, 0], sizes = [1, 64], strides = [1, 1]} : vector<28x192xf32> to vector<1x64xf32>
    %244 = vector.shape_cast %243 : vector<1x64xf32> to vector<64xf32>
    %245 = vector.shape_cast %244 : vector<64xf32> to vector<1x64xf32>
    %246 = vector.broadcast %245 : vector<1x64xf32> to vector<24x64xf32>
    %247 = arith.mulf %242, %246 : vector<24x64xf32>
    %248 = vector.extract_strided_slice %6 {offsets = [9, 0], sizes = [1, 64], strides = [1, 1]} : vector<28x192xf32> to vector<1x64xf32>
    %249 = vector.shape_cast %248 : vector<1x64xf32> to vector<64xf32>
    %250 = vector.shape_cast %249 : vector<64xf32> to vector<1x64xf32>
    %251 = vector.broadcast %250 : vector<1x64xf32> to vector<24x64xf32>
    %252 = arith.addf %247, %251 : vector<24x64xf32>
    %c0_85 = arith.constant 0 : index
    %c2 = arith.constant 2 : index
    %c0_86 = arith.constant 0 : index
    %c0_87 = arith.constant 0 : index
    %253 = vector.load %arg8[%c0_85, %c2, %c0_86, %c0_87] : memref<1x3x64x128xbf16, #tpu.memory_space<vmem>>, vector<1x1x64x128xbf16>
    %254 = vector.shape_cast %253 : vector<1x1x64x128xbf16> to vector<64x128xbf16>
    %255 = arith.truncf %252 : vector<24x64xf32> to vector<24x64xbf16>
    %cst_88 = arith.constant dense<0.000000e+00> : vector<24x128xf32>
    %256 = tpu.matmul %255, %254, %cst_88 {dimension_numbers = #tpu.dot_dimension_numbers<[1], [0], [0], [1], [0, 0, 1, 1], [], []>} : vector<24x64xbf16>, vector<64x128xbf16>, vector<24x128xf32> -> vector<24x128xf32>
    %257 = vector.extract_strided_slice %6 {offsets = [10, 0], sizes = [1, 128], strides = [1, 1]} : vector<28x192xf32> to vector<1x128xf32>
    %258 = vector.shape_cast %257 : vector<1x128xf32> to vector<128xf32>
    %259 = vector.shape_cast %258 : vector<128xf32> to vector<1x128xf32>
    %260 = vector.broadcast %259 : vector<1x128xf32> to vector<24x128xf32>
    %261 = arith.addf %256, %260 : vector<24x128xf32>
    %262 = vector.extract_strided_slice %261 {offsets = [0, 0], sizes = [24, 64], strides = [1, 1]} : vector<24x128xf32> to vector<24x64xf32>
    %263 = vector.extract_strided_slice %261 {offsets = [0, 64], sizes = [24, 64], strides = [1, 1]} : vector<24x128xf32> to vector<24x64xf32>
    %264 = arith.negf %263 : vector<24x64xf32>
    %265 = math.exp %264 : vector<24x64xf32>
    %cst_89 = arith.constant 1.000000e+00 : f32
    %266 = vector.broadcast %cst_89 : f32 to vector<24x64xf32>
    %267 = arith.addf %266, %265 : vector<24x64xf32>
    %268 = arith.divf %266, %267 : vector<24x64xf32>
    %269 = arith.mulf %262, %268 : vector<24x64xf32>
    %cst_90 = arith.constant 0.000000e+00 : f32
    %270 = vector.broadcast %cst_90 : f32 to vector<24x64xf32>
    %c3_i32 = arith.constant 3 : i32
    %271 = tpu.dynamic_rotate %269 by %c3_i32 dim 0 : vector<24x64xf32>, i32 -> vector<24x64xf32>
    %c0_91 = arith.constant 0 : index
    %c0_92 = arith.constant 0 : index
    %c0_93 = arith.constant 0 : index
    %272 = vector.load %arg6[%c0_91, %c0_92, %c0_93] : memref<7x24x1xf32, #tpu.memory_space<vmem>>, vector<1x24x1xf32>
    %273 = vector.shape_cast %272 : vector<1x24x1xf32> to vector<24x1xf32>
    %274 = vector.broadcast %273 : vector<24x1xf32> to vector<24x64xf32>
    %275 = arith.mulf %271, %274 : vector<24x64xf32>
    %276 = vector.extract_strided_slice %6 {offsets = [21, 0], sizes = [1, 64], strides = [1, 1]} : vector<28x192xf32> to vector<1x64xf32>
    %277 = vector.shape_cast %276 : vector<1x64xf32> to vector<64xf32>
    %278 = vector.shape_cast %277 : vector<64xf32> to vector<1x64xf32>
    %279 = vector.broadcast %278 : vector<1x64xf32> to vector<24x64xf32>
    %280 = arith.mulf %275, %279 : vector<24x64xf32>
    %281 = arith.addf %270, %280 : vector<24x64xf32>
    %c2_i32 = arith.constant 2 : i32
    %282 = tpu.dynamic_rotate %269 by %c2_i32 dim 0 : vector<24x64xf32>, i32 -> vector<24x64xf32>
    %c1 = arith.constant 1 : index
    %c0_94 = arith.constant 0 : index
    %c0_95 = arith.constant 0 : index
    %283 = vector.load %arg6[%c1, %c0_94, %c0_95] : memref<7x24x1xf32, #tpu.memory_space<vmem>>, vector<1x24x1xf32>
    %284 = vector.shape_cast %283 : vector<1x24x1xf32> to vector<24x1xf32>
    %285 = vector.broadcast %284 : vector<24x1xf32> to vector<24x64xf32>
    %286 = arith.mulf %282, %285 : vector<24x64xf32>
    %287 = vector.extract_strided_slice %6 {offsets = [22, 0], sizes = [1, 64], strides = [1, 1]} : vector<28x192xf32> to vector<1x64xf32>
    %288 = vector.shape_cast %287 : vector<1x64xf32> to vector<64xf32>
    %289 = vector.shape_cast %288 : vector<64xf32> to vector<1x64xf32>
    %290 = vector.broadcast %289 : vector<1x64xf32> to vector<24x64xf32>
    %291 = arith.mulf %286, %290 : vector<24x64xf32>
    %292 = arith.addf %281, %291 : vector<24x64xf32>
    %c1_i32 = arith.constant 1 : i32
    %293 = tpu.dynamic_rotate %269 by %c1_i32 dim 0 : vector<24x64xf32>, i32 -> vector<24x64xf32>
    %c2_96 = arith.constant 2 : index
    %c0_97 = arith.constant 0 : index
    %c0_98 = arith.constant 0 : index
    %294 = vector.load %arg6[%c2_96, %c0_97, %c0_98] : memref<7x24x1xf32, #tpu.memory_space<vmem>>, vector<1x24x1xf32>
    %295 = vector.shape_cast %294 : vector<1x24x1xf32> to vector<24x1xf32>
    %296 = vector.broadcast %295 : vector<24x1xf32> to vector<24x64xf32>
    %297 = arith.mulf %293, %296 : vector<24x64xf32>
    %298 = vector.extract_strided_slice %6 {offsets = [23, 0], sizes = [1, 64], strides = [1, 1]} : vector<28x192xf32> to vector<1x64xf32>
    %299 = vector.shape_cast %298 : vector<1x64xf32> to vector<64xf32>
    %300 = vector.shape_cast %299 : vector<64xf32> to vector<1x64xf32>
    %301 = vector.broadcast %300 : vector<1x64xf32> to vector<24x64xf32>
    %302 = arith.mulf %297, %301 : vector<24x64xf32>
    %303 = arith.addf %292, %302 : vector<24x64xf32>
    %c3 = arith.constant 3 : index
    %c0_99 = arith.constant 0 : index
    %c0_100 = arith.constant 0 : index
    %304 = vector.load %arg6[%c3, %c0_99, %c0_100] : memref<7x24x1xf32, #tpu.memory_space<vmem>>, vector<1x24x1xf32>
    %305 = vector.shape_cast %304 : vector<1x24x1xf32> to vector<24x1xf32>
    %306 = vector.broadcast %305 : vector<24x1xf32> to vector<24x64xf32>
    %307 = arith.mulf %269, %306 : vector<24x64xf32>
    %308 = vector.extract_strided_slice %6 {offsets = [24, 0], sizes = [1, 64], strides = [1, 1]} : vector<28x192xf32> to vector<1x64xf32>
    %309 = vector.shape_cast %308 : vector<1x64xf32> to vector<64xf32>
    %310 = vector.shape_cast %309 : vector<64xf32> to vector<1x64xf32>
    %311 = vector.broadcast %310 : vector<1x64xf32> to vector<24x64xf32>
    %312 = arith.mulf %307, %311 : vector<24x64xf32>
    %313 = arith.addf %303, %312 : vector<24x64xf32>
    %c23_i32 = arith.constant 23 : i32
    %314 = tpu.dynamic_rotate %269 by %c23_i32 dim 0 : vector<24x64xf32>, i32 -> vector<24x64xf32>
    %c4 = arith.constant 4 : index
    %c0_101 = arith.constant 0 : index
    %c0_102 = arith.constant 0 : index
    %315 = vector.load %arg6[%c4, %c0_101, %c0_102] : memref<7x24x1xf32, #tpu.memory_space<vmem>>, vector<1x24x1xf32>
    %316 = vector.shape_cast %315 : vector<1x24x1xf32> to vector<24x1xf32>
    %317 = vector.broadcast %316 : vector<24x1xf32> to vector<24x64xf32>
    %318 = arith.mulf %314, %317 : vector<24x64xf32>
    %319 = vector.extract_strided_slice %6 {offsets = [25, 0], sizes = [1, 64], strides = [1, 1]} : vector<28x192xf32> to vector<1x64xf32>
    %320 = vector.shape_cast %319 : vector<1x64xf32> to vector<64xf32>
    %321 = vector.shape_cast %320 : vector<64xf32> to vector<1x64xf32>
    %322 = vector.broadcast %321 : vector<1x64xf32> to vector<24x64xf32>
    %323 = arith.mulf %318, %322 : vector<24x64xf32>
    %324 = arith.addf %313, %323 : vector<24x64xf32>
    %c22_i32 = arith.constant 22 : i32
    %325 = tpu.dynamic_rotate %269 by %c22_i32 dim 0 : vector<24x64xf32>, i32 -> vector<24x64xf32>
    %c5 = arith.constant 5 : index
    %c0_103 = arith.constant 0 : index
    %c0_104 = arith.constant 0 : index
    %326 = vector.load %arg6[%c5, %c0_103, %c0_104] : memref<7x24x1xf32, #tpu.memory_space<vmem>>, vector<1x24x1xf32>
    %327 = vector.shape_cast %326 : vector<1x24x1xf32> to vector<24x1xf32>
    %328 = vector.broadcast %327 : vector<24x1xf32> to vector<24x64xf32>
    %329 = arith.mulf %325, %328 : vector<24x64xf32>
    %330 = vector.extract_strided_slice %6 {offsets = [26, 0], sizes = [1, 64], strides = [1, 1]} : vector<28x192xf32> to vector<1x64xf32>
    %331 = vector.shape_cast %330 : vector<1x64xf32> to vector<64xf32>
    %332 = vector.shape_cast %331 : vector<64xf32> to vector<1x64xf32>
    %333 = vector.broadcast %332 : vector<1x64xf32> to vector<24x64xf32>
    %334 = arith.mulf %329, %333 : vector<24x64xf32>
    %335 = arith.addf %324, %334 : vector<24x64xf32>
    %c21_i32 = arith.constant 21 : i32
    %336 = tpu.dynamic_rotate %269 by %c21_i32 dim 0 : vector<24x64xf32>, i32 -> vector<24x64xf32>
    %c6 = arith.constant 6 : index
    %c0_105 = arith.constant 0 : index
    %c0_106 = arith.constant 0 : index
    %337 = vector.load %arg6[%c6, %c0_105, %c0_106] : memref<7x24x1xf32, #tpu.memory_space<vmem>>, vector<1x24x1xf32>
    %338 = vector.shape_cast %337 : vector<1x24x1xf32> to vector<24x1xf32>
    %339 = vector.broadcast %338 : vector<24x1xf32> to vector<24x64xf32>
    %340 = arith.mulf %336, %339 : vector<24x64xf32>
    %341 = vector.extract_strided_slice %6 {offsets = [27, 0], sizes = [1, 64], strides = [1, 1]} : vector<28x192xf32> to vector<1x64xf32>
    %342 = vector.shape_cast %341 : vector<1x64xf32> to vector<64xf32>
    %343 = vector.shape_cast %342 : vector<64xf32> to vector<1x64xf32>
    %344 = vector.broadcast %343 : vector<1x64xf32> to vector<24x64xf32>
    %345 = arith.mulf %340, %344 : vector<24x64xf32>
    %346 = arith.addf %335, %345 : vector<24x64xf32>
    %347 = vector.extract_strided_slice %6 {offsets = [11, 0], sizes = [1, 64], strides = [1, 1]} : vector<28x192xf32> to vector<1x64xf32>
    %348 = vector.shape_cast %347 : vector<1x64xf32> to vector<64xf32>
    %349 = vector.shape_cast %348 : vector<64xf32> to vector<1x64xf32>
    %350 = vector.broadcast %349 : vector<1x64xf32> to vector<24x64xf32>
    %351 = arith.addf %346, %350 : vector<24x64xf32>
    %352 = vector.extract_strided_slice %6 {offsets = [12, 0], sizes = [1, 64], strides = [1, 1]} : vector<28x192xf32> to vector<1x64xf32>
    %353 = vector.shape_cast %352 : vector<1x64xf32> to vector<64xf32>
    %354 = vector.shape_cast %353 : vector<64xf32> to vector<1x64xf32>
    %355 = vector.broadcast %354 : vector<1x64xf32> to vector<24x64xf32>
    %356 = arith.mulf %351, %355 : vector<24x64xf32>
    %357 = vector.extract_strided_slice %6 {offsets = [13, 0], sizes = [1, 64], strides = [1, 1]} : vector<28x192xf32> to vector<1x64xf32>
    %358 = vector.shape_cast %357 : vector<1x64xf32> to vector<64xf32>
    %359 = vector.shape_cast %358 : vector<64xf32> to vector<1x64xf32>
    %360 = vector.broadcast %359 : vector<1x64xf32> to vector<24x64xf32>
    %361 = arith.addf %356, %360 : vector<24x64xf32>
    %362 = arith.negf %361 : vector<24x64xf32>
    %363 = math.exp %362 : vector<24x64xf32>
    %cst_107 = arith.constant 1.000000e+00 : f32
    %364 = vector.broadcast %cst_107 : f32 to vector<24x64xf32>
    %365 = arith.addf %364, %363 : vector<24x64xf32>
    %366 = arith.divf %364, %365 : vector<24x64xf32>
    %367 = arith.mulf %361, %366 : vector<24x64xf32>
    %c0_108 = arith.constant 0 : index
    %c1_109 = arith.constant 1 : index
    %c0_110 = arith.constant 0 : index
    %c0_111 = arith.constant 0 : index
    %368 = vector.load %arg11[%c0_108, %c1_109, %c0_110, %c0_111] : memref<1x2x64x64xbf16, #tpu.memory_space<vmem>>, vector<1x1x64x64xbf16>
    %369 = vector.shape_cast %368 : vector<1x1x64x64xbf16> to vector<64x64xbf16>
    %370 = arith.truncf %367 : vector<24x64xf32> to vector<24x64xbf16>
    %cst_112 = arith.constant dense<0.000000e+00> : vector<24x64xf32>
    %371 = tpu.matmul %370, %369, %cst_112 {dimension_numbers = #tpu.dot_dimension_numbers<[1], [0], [0], [1], [0, 0, 1, 1], [], []>} : vector<24x64xbf16>, vector<64x64xbf16>, vector<24x64xf32> -> vector<24x64xf32>
    %372 = vector.extract_strided_slice %6 {offsets = [14, 0], sizes = [1, 64], strides = [1, 1]} : vector<28x192xf32> to vector<1x64xf32>
    %373 = vector.shape_cast %372 : vector<1x64xf32> to vector<64xf32>
    %374 = vector.shape_cast %373 : vector<64xf32> to vector<1x64xf32>
    %375 = vector.broadcast %374 : vector<1x64xf32> to vector<24x64xf32>
    %376 = arith.addf %371, %375 : vector<24x64xf32>
    %377 = arith.addf %226, %376 : vector<24x64xf32>
    %cst_113 = arith.constant dense<0.000000e+00> : vector<24xf32>
    %378 = vector.multi_reduction <add>, %377, %cst_113 [1] : vector<24x64xf32> to vector<24xf32>
    %379 = vector.shape_cast %378 : vector<24xf32> to vector<24x1xf32>
    %cst_114 = arith.constant 6.400000e+01 : f32
    %380 = vector.broadcast %cst_114 : f32 to vector<24x1xf32>
    %381 = arith.divf %379, %380 : vector<24x1xf32>
    %382 = vector.broadcast %381 : vector<24x1xf32> to vector<24x64xf32>
    %383 = arith.subf %377, %382 : vector<24x64xf32>
    %384 = arith.mulf %383, %383 : vector<24x64xf32>
    %cst_115 = arith.constant dense<0.000000e+00> : vector<24xf32>
    %385 = vector.multi_reduction <add>, %384, %cst_115 [1] : vector<24x64xf32> to vector<24xf32>
    %386 = vector.shape_cast %385 : vector<24xf32> to vector<24x1xf32>
    %cst_116 = arith.constant 6.400000e+01 : f32
    %387 = vector.broadcast %cst_116 : f32 to vector<24x1xf32>
    %388 = arith.divf %386, %387 : vector<24x1xf32>
    %cst_117 = arith.constant 9.99999974E-6 : f32
    %389 = vector.broadcast %cst_117 : f32 to vector<24x1xf32>
    %390 = arith.addf %388, %389 : vector<24x1xf32>
    %391 = math.rsqrt %390 : vector<24x1xf32>
    %392 = vector.broadcast %391 : vector<24x1xf32> to vector<24x64xf32>
    %393 = arith.mulf %383, %392 : vector<24x64xf32>
    %394 = vector.extract_strided_slice %6 {offsets = [15, 0], sizes = [1, 64], strides = [1, 1]} : vector<28x192xf32> to vector<1x64xf32>
    %395 = vector.shape_cast %394 : vector<1x64xf32> to vector<64xf32>
    %396 = vector.shape_cast %395 : vector<64xf32> to vector<1x64xf32>
    %397 = vector.broadcast %396 : vector<1x64xf32> to vector<24x64xf32>
    %398 = arith.mulf %393, %397 : vector<24x64xf32>
    %399 = vector.extract_strided_slice %6 {offsets = [16, 0], sizes = [1, 64], strides = [1, 1]} : vector<28x192xf32> to vector<1x64xf32>
    %400 = vector.shape_cast %399 : vector<1x64xf32> to vector<64xf32>
    %401 = vector.shape_cast %400 : vector<64xf32> to vector<1x64xf32>
    %402 = vector.broadcast %401 : vector<1x64xf32> to vector<24x64xf32>
    %403 = arith.addf %398, %402 : vector<24x64xf32>
    %c0_118 = arith.constant 0 : index
    %c1_119 = arith.constant 1 : index
    %c0_120 = arith.constant 0 : index
    %c0_121 = arith.constant 0 : index
    %404 = vector.load %arg8[%c0_118, %c1_119, %c0_120, %c0_121] : memref<1x3x64x128xbf16, #tpu.memory_space<vmem>>, vector<1x1x64x128xbf16>
    %405 = vector.shape_cast %404 : vector<1x1x64x128xbf16> to vector<64x128xbf16>
    %406 = arith.truncf %403 : vector<24x64xf32> to vector<24x64xbf16>
    %cst_122 = arith.constant dense<0.000000e+00> : vector<24x128xf32>
    %407 = tpu.matmul %406, %405, %cst_122 {dimension_numbers = #tpu.dot_dimension_numbers<[1], [0], [0], [1], [0, 0, 1, 1], [], []>} : vector<24x64xbf16>, vector<64x128xbf16>, vector<24x128xf32> -> vector<24x128xf32>
    %408 = vector.extract_strided_slice %6 {offsets = [17, 0], sizes = [1, 128], strides = [1, 1]} : vector<28x192xf32> to vector<1x128xf32>
    %409 = vector.shape_cast %408 : vector<1x128xf32> to vector<128xf32>
    %410 = vector.shape_cast %409 : vector<128xf32> to vector<1x128xf32>
    %411 = vector.broadcast %410 : vector<1x128xf32> to vector<24x128xf32>
    %412 = arith.addf %407, %411 : vector<24x128xf32>
    %413 = arith.negf %412 : vector<24x128xf32>
    %414 = math.exp %413 : vector<24x128xf32>
    %cst_123 = arith.constant 1.000000e+00 : f32
    %415 = vector.broadcast %cst_123 : f32 to vector<24x128xf32>
    %416 = arith.addf %415, %414 : vector<24x128xf32>
    %417 = arith.divf %415, %416 : vector<24x128xf32>
    %418 = arith.mulf %412, %417 : vector<24x128xf32>
    %c0_124 = arith.constant 0 : index
    %c1_125 = arith.constant 1 : index
    %c0_126 = arith.constant 0 : index
    %c0_127 = arith.constant 0 : index
    %419 = vector.load %arg9[%c0_124, %c1_125, %c0_126, %c0_127] : memref<1x2x128x64xbf16, #tpu.memory_space<vmem>>, vector<1x1x128x64xbf16>
    %420 = vector.shape_cast %419 : vector<1x1x128x64xbf16> to vector<128x64xbf16>
    %421 = arith.truncf %418 : vector<24x128xf32> to vector<24x128xbf16>
    %cst_128 = arith.constant dense<0.000000e+00> : vector<24x64xf32>
    %422 = tpu.matmul %421, %420, %cst_128 {dimension_numbers = #tpu.dot_dimension_numbers<[1], [0], [0], [1], [0, 0, 1, 1], [], []>} : vector<24x128xbf16>, vector<128x64xbf16>, vector<24x64xf32> -> vector<24x64xf32>
    %423 = vector.extract_strided_slice %6 {offsets = [18, 0], sizes = [1, 64], strides = [1, 1]} : vector<28x192xf32> to vector<1x64xf32>
    %424 = vector.shape_cast %423 : vector<1x64xf32> to vector<64xf32>
    %425 = vector.shape_cast %424 : vector<64xf32> to vector<1x64xf32>
    %426 = vector.broadcast %425 : vector<1x64xf32> to vector<24x64xf32>
    %427 = arith.addf %422, %426 : vector<24x64xf32>
    %cst_129 = arith.constant 5.000000e-01 : f32
    %428 = vector.broadcast %cst_129 : f32 to vector<24x64xf32>
    %429 = arith.mulf %428, %427 : vector<24x64xf32>
    %430 = arith.addf %377, %429 : vector<24x64xf32>
    %cst_130 = arith.constant dense<0.000000e+00> : vector<24xf32>
    %431 = vector.multi_reduction <add>, %430, %cst_130 [1] : vector<24x64xf32> to vector<24xf32>
    %432 = vector.shape_cast %431 : vector<24xf32> to vector<24x1xf32>
    %cst_131 = arith.constant 6.400000e+01 : f32
    %433 = vector.broadcast %cst_131 : f32 to vector<24x1xf32>
    %434 = arith.divf %432, %433 : vector<24x1xf32>
    %435 = vector.broadcast %434 : vector<24x1xf32> to vector<24x64xf32>
    %436 = arith.subf %430, %435 : vector<24x64xf32>
    %437 = arith.mulf %436, %436 : vector<24x64xf32>
    %cst_132 = arith.constant dense<0.000000e+00> : vector<24xf32>
    %438 = vector.multi_reduction <add>, %437, %cst_132 [1] : vector<24x64xf32> to vector<24xf32>
    %439 = vector.shape_cast %438 : vector<24xf32> to vector<24x1xf32>
    %cst_133 = arith.constant 6.400000e+01 : f32
    %440 = vector.broadcast %cst_133 : f32 to vector<24x1xf32>
    %441 = arith.divf %439, %440 : vector<24x1xf32>
    %cst_134 = arith.constant 9.99999974E-6 : f32
    %442 = vector.broadcast %cst_134 : f32 to vector<24x1xf32>
    %443 = arith.addf %441, %442 : vector<24x1xf32>
    %444 = math.rsqrt %443 : vector<24x1xf32>
    %445 = vector.broadcast %444 : vector<24x1xf32> to vector<24x64xf32>
    %446 = arith.mulf %436, %445 : vector<24x64xf32>
    %447 = vector.extract_strided_slice %6 {offsets = [19, 0], sizes = [1, 64], strides = [1, 1]} : vector<28x192xf32> to vector<1x64xf32>
    %448 = vector.shape_cast %447 : vector<1x64xf32> to vector<64xf32>
    %449 = vector.shape_cast %448 : vector<64xf32> to vector<1x64xf32>
    %450 = vector.broadcast %449 : vector<1x64xf32> to vector<24x64xf32>
    %451 = arith.mulf %446, %450 : vector<24x64xf32>
    %452 = vector.extract_strided_slice %6 {offsets = [20, 0], sizes = [1, 64], strides = [1, 1]} : vector<28x192xf32> to vector<1x64xf32>
    %453 = vector.shape_cast %452 : vector<1x64xf32> to vector<64xf32>
    %454 = vector.shape_cast %453 : vector<64xf32> to vector<1x64xf32>
    %455 = vector.broadcast %454 : vector<1x64xf32> to vector<24x64xf32>
    %456 = arith.addf %451, %455 : vector<24x64xf32>
    %c0_135 = arith.constant 0 : index
    %c0_136 = arith.constant 0 : index
    %c0_137 = arith.constant 0 : index
    %457 = vector.load %arg12[%c0_135, %c0_136, %c0_137] : memref<1x24x64xf32, #tpu.memory_space<vmem>>, vector<1x24x64xf32>
    %458 = vector.shape_cast %457 : vector<1x24x64xf32> to vector<24x64xf32>
    %459 = vector.shape_cast %456 : vector<24x64xf32> to vector<1x24x64xf32>
    tpu.vector_store %arg12[%c0_135, %c0_136, %c0_137], %459 {strides = array<i32>} : memref<1x24x64xf32, #tpu.memory_space<vmem>>, vector<1x24x64xf32>,
    return
  }
  func.func @transform_0(%arg0: i32, %arg1: i32) -> (i32, i32, i32) {
    %c0_i32 = arith.constant 0 : i32
    %c0_i32_0 = arith.constant 0 : i32
    %c0_i32_1 = arith.constant 0 : i32
    return %arg0, %c0_i32, %c0_i32_0 : i32, i32, i32
  }
  func.func @transform_1(%arg0: i32, %arg1: i32) -> (i32, i32) {
    %c0_i32 = arith.constant 0 : i32
    %c0_i32_0 = arith.constant 0 : i32
    %c0_i32_1 = arith.constant 0 : i32
    return %c0_i32, %c0_i32_0 : i32, i32
  }
  func.func @transform_2(%arg0: i32, %arg1: i32) -> (i32, i32, i32) {
    %c0_i32 = arith.constant 0 : i32
    %c0_i32_0 = arith.constant 0 : i32
    %c0_i32_1 = arith.constant 0 : i32
    return %arg0, %c0_i32, %c0_i32_0 : i32, i32, i32
  }
  func.func @transform_3(%arg0: i32, %arg1: i32) -> (i32, i32, i32) {
    %c0_i32 = arith.constant 0 : i32
    %c0_i32_0 = arith.constant 0 : i32
    %c0_i32_1 = arith.constant 0 : i32
    return %arg0, %c0_i32, %c0_i32_0 : i32, i32, i32
  }
  func.func @transform_4(%arg0: i32, %arg1: i32) -> (i32, i32, i32) {
    %c0_i32 = arith.constant 0 : i32
    %c0_i32_0 = arith.constant 0 : i32
    %c0_i32_1 = arith.constant 0 : i32
    %c0_i32_2 = arith.constant 0 : i32
    return %c0_i32, %c0_i32_0, %c0_i32_1 : i32, i32, i32
  }
  func.func @transform_5(%arg0: i32, %arg1: i32) -> (i32, i32, i32) {
    %c0_i32 = arith.constant 0 : i32
    %c0_i32_0 = arith.constant 0 : i32
    %c0_i32_1 = arith.constant 0 : i32
    return %arg1, %c0_i32, %c0_i32_0 : i32, i32, i32
  }
  func.func @transform_6(%arg0: i32, %arg1: i32) -> (i32, i32, i32, i32) {
    %c0_i32 = arith.constant 0 : i32
    %c0_i32_0 = arith.constant 0 : i32
    %c0_i32_1 = arith.constant 0 : i32
    %c0_i32_2 = arith.constant 0 : i32
    return %arg1, %c0_i32, %c0_i32_0, %c0_i32_1 : i32, i32, i32, i32
  }
  func.func @transform_7(%arg0: i32, %arg1: i32) -> (i32, i32, i32, i32) {
    %c0_i32 = arith.constant 0 : i32
    %c0_i32_0 = arith.constant 0 : i32
    %c0_i32_1 = arith.constant 0 : i32
    %c0_i32_2 = arith.constant 0 : i32
    return %arg1, %c0_i32, %c0_i32_0, %c0_i32_1 : i32, i32, i32, i32
  }
  func.func @transform_8(%arg0: i32, %arg1: i32) -> (i32, i32, i32) {
    %c0_i32 = arith.constant 0 : i32
    %c0_i32_0 = arith.constant 0 : i32
    %c0_i32_1 = arith.constant 0 : i32
    return %arg1, %c0_i32, %c0_i32_0 : i32, i32, i32
  }
  func.func @transform_9(%arg0: i32, %arg1: i32) -> (i32, i32, i32, i32) {
    %c0_i32 = arith.constant 0 : i32
    %c0_i32_0 = arith.constant 0 : i32
    %c0_i32_1 = arith.constant 0 : i32
    %c0_i32_2 = arith.constant 0 : i32
    return %arg1, %c0_i32, %c0_i32_0, %c0_i32_1 : i32, i32, i32, i32
  }
  func.func @transform_10(%arg0: i32, %arg1: i32) -> (i32, i32, i32) {
    %c0_i32 = arith.constant 0 : i32
    %c0_i32_0 = arith.constant 0 : i32
    %c0_i32_1 = arith.constant 0 : i32
    return %arg0, %c0_i32, %c0_i32_0 : i32, i32, i32
  }
}

</mosaic_0001>

<bundles_post_ra>
// kernel: _encoder_forward.5
= control target key start
LH: loop header
LB: loop body
LE: loop exit
PB: predicated region body
PF: predicated region fallthrough
CT: control target
= control target key end

     0   :  { %s4667_s0 = inlined_call_operand.vmem [shape: f32[2,24,64], index: 0, kind: input, shape index: {}]   ;;  %s4668_s1 = inlined_call_operand.vmem [shape: f32[24,24], index: 1, kind: input, shape index: {}]   ;;  %s4669_s2 = inlined_call_operand.vmem [shape: f32[2,24,1], index: 2, kind: input, shape index: {}]   ;;  %s4670_s3 = inlined_call_operand.vmem [shape: f32[2,1,24], index: 3, kind: input, shape index: {}]   ;;  %s4671_s4 = inlined_call_operand.vmem [shape: f32[7,24,1], index: 4, kind: input, shape index: {}]   ;;  %s4672_s5 = inlined_call_operand.vmem [shape: f32[2,28,192], index: 5, kind: input, shape index: {}]   ;;  %s4673_s6 = inlined_call_operand.vmem [shape: bf16[2,3,64,128], index: 6, kind: input, shape index: {}]   ;;  %s4674_s7 = inlined_call_operand.vmem [shape: bf16[2,2,128,64], index: 7, kind: input, shape index: {}]   ;;  %s4675_s8 = inlined_call_operand.vmem [shape: bf16[2,64,192], index: 8, kind: input, shape index: {}]   ;;  %s4676_s9 = inlined_call_operand.vmem [shape: bf16[2,2,64,64], index: 9, kind: input, shape index: {}]   ;;  %s4677_s10 = inlined_call_operand.hbm [shape: f32[2,24,64], index: 10, kind: output, shape index: {}]  }
   0x1   :  { %4691 = sst [smem:[#allocation16_spill]] %s4667_s0 }
   0x2   :  { %4692 = sst [smem:[#allocation17_spill]] %s4669_s2 }
   0x3   :  { %4693 = sst [smem:[#allocation18_spill]] %s4677_s10 }
   0x4   :  { %15 = vsyncpa [#allocation3], 0 }
   0x5   :  { %17 = vsyncpa [#allocation3 + $0x1], 0  ;;  %s3623_s13 = smov 0   ;;  %s3625_s14 = smov 0  }
   0x6   :  { %s3627_s15 = smov 0   ;;  %s3629_s16 = smov 0  }
   0x7   :  { %s3631_s17 = smov 0   ;;  %s3633_s18 = smov 0  }
   0x8   :  { %s3635_s19 = smov 0   ;;  %s3637_s20 = smov 0  }
   0x9 LB: > { %4694 = sst [smem:[#allocation5_spill]] %s3527_s13  ;;  %s2880_s21 = sadd.s32 4294967295, %s3555_s20   ;;  %s3555_s20 = sphi %s3637_s20, %s23_s20   ;;  %s3551_s19 = sphi %s3635_s19, %s4738_s19   ;;  %s3547_s18 = sphi %s3633_s18, %s4737_s18   ;;  %s3543_s17 = sphi %s3631_s17, %s4736_s17   ;;  %s3539_s16 = sphi %s3629_s16, %s4735_s16   ;;  %s3535_s15 = sphi %s3627_s15, %s4734_s15   ;;  %s3531_s14 = sphi %s3625_s14, %s4733_s14   ;;  %s3527_s13 = sphi %s3623_s13, %s4732_s13  }
   0xa   : > { %4695 = sst [smem:[#allocation6_spill]] %s3531_s14  ;;  %s2881_s22 = sadd.s32 4294967294, %s3555_s20  }
   0xb   : > { %4696 = sst [smem:[#allocation7_spill]] %s3535_s15  ;;  %s32_s23 = sadd.s32 1, %s3547_s18 }
   0xc   : > { %4697 = sst [smem:[#allocation8_spill]] %s3547_s18  ;;  %p33_p0 = scmp.ge.s32.totalorder %s32_s23, 2 }
   0xd   : > { %4698 = sst [smem:[#allocation9_spill]] %s3551_s19  ;;  %s35_s24 = sadd.s32 1, %s3551_s19 }
   0xe   : > { %4699 = sst [smem:[#allocation10_spill]] %s3555_s20  ;;  %p302_p1 = scmp.ne.s32.totalorder %s3535_s15, %s3531_s14 }
   0xf   : > { %p303_p2 = scmp.eq.s32.totalorder %s2880_s21, 3  ;;  %s4740_s23 = smov (%p33_p0, %s32_s23), 0 }
  0x10   : > { %4700 = sst [smem:[#allocation11_spill]] %s4740_s23  ;;  %s4742_s24 = smov (!%p33_p0, %s35_s24), %s3551_s19 }
  0x11   : > { %p3672_p3 = por %p303_p2, %p302_p1  ;;  %p308_p4 = scmp.ne.s32.totalorder %s3531_s14, %s3527_s13 }
  0x12   : > { %p37_p5 = scmp.ge.s32.totalorder %s4742_s24, 2  ;;  %p309_p6 = scmp.eq.s32.totalorder %s2881_s22, 3 }
  0x13   : > { %s4701_s25 = scalar_select %p3672_p3, 1, 0 }
  0x14   : > { %p2884_p7 = scmp.ge.s32.totalorder %s3555_s20, 1  ;;  %p395_p8 = scmp.lt.s32.totalorder %s3555_s20, 5 }
  0x15   : > { %4702 = sst [smem:[#allocation12_spill]] %s4701_s25  ;;  %s4744_s24 = smov (%p37_p5, %s4742_s24), 0 }
  0x16   : > { %4703 = sst [smem:[#allocation13_spill]] %s4744_s24  ;;  %p3682_p9 = por %p309_p6, %p308_p4 }
  0x17   : > { %p396_p10 = pnand %p2884_p7, %p395_p8  ;;  %s289_s27 = ssub.s32 %s3551_s19, %s4744_s24 }
  0x18   : > { %s4704_s26 = scalar_select %p3682_p9, 1, 0 }
  0x19   : > { %s292_s28 = sadd.s32 1, %s3535_s15  ;;  %p290_p11 = scmp.eq.s32.totalorder %s289_s27, 0 }
  0x1a   : > { %4705 = sst [smem:[#allocation14_spill]] %s4704_s26  ;;  %399 = sbr.rel (%p396_p10) target bundleno = 3681 (0xe61), region = 60 }
  0x1b   : > { %s3690_s29 = scalar_select %p290_p11, %s3535_s15, %s292_s28  }
  0x1c   : > { %s4683_s30 = sand.u32 (!%p396_p10), 1, %s3531_s14   ;;  %p466_p12 = scmp.lt.s32.totalorder (!%p396_p10), %s3543_s17, 1 }
  0x1d   : > { %4706 = sst [smem:[#allocation15_spill]] %s3690_s29  ;;  %s3228_s11 = smul.u32 (!%p396_p10), 24, %s4683_s30 }
  0x1e   : > { %p479_p13 = scmp.lt.s32.totalorder (!%p396_p10), %s3539_s16, 1  ;;  %s4707_s0 = sld [smem:[#allocation16_spill]] (!%p396_p10) }
  0x1f   : > { %s3698_s12 = scalar_select %p466_p12, %s3543_s17, 1 }
  0x20   : > { %s480_s24 = scalar_select %p479_p13, %s3539_s16, 1 }
  0x21   : > { %s3229_s21 = smul.u32 24, %s3698_s12  ;;  %s4708_s2 = sld [smem:[#allocation17_spill]] }
  0x22   : > { %s3176_s30 = sshll.u32 %s480_s24, 6  ;;  %s3230_s13 = smul.u32 96, %s480_s24 }
  0x23   : > { %s3717_s10 = scalar_lea.vmem %s4672_s5, %s3176_s30  ;;  %s3177_s14 = sshll.u32 %s480_s24, 7 }
  0x24   : > { %s470_s18 = scalar_lea.vmem %s4707_s0, %s3229_s21  ;;  %s3722_s28 = scalar_lea.vmem %s4673_s6, %s3230_s13 }
  0x25   : > { %s3727_s0 = scalar_lea.vmem %s4674_s7, %s3177_s14  ;;  %s3737_s25 = scalar_lea.vmem %s4676_s9, %s3176_s30 }
  0x26   : > { %s3739_s24 = scalar_lea.vmem [#allocation2], %s3228_s11  ;;  %p2896_p0 = scmp.ne.s32.totalorder %s3539_s16, 0 }
  0x27   : > { %s3712_s26 = scalar_lea.vmem %s4708_s2, %s3229_s21  ;;  %s3732_s21 = scalar_lea.vmem %s4675_s8, %s3176_s30 }
  0x28   : > { %508 = sbr.rel (%p2896_p0) target bundleno = 49 (0x31), region = 64 }
  0x2d   : > { %v509_v0 = vld [vmem:[%s470_s18] sm:$0xff]  ;;  %vm512_vm0 = vcmask 523264   ;;  %v510_v1 = vld [vmem:[%s470_s18 + $0x8] sm:$0xff]  ;;  %v511_v2 = vld [vmem:[%s470_s18 + $0x10] sm:$0xff] }
  0x2e   : > { %513 = vst.msk [vmem:[%s3739_s24] sm:$0xff] %vm512_vm0, %v509_v0 }
  0x2f   : > { %514 = vst.msk [vmem:[%s3739_s24 + $0x8] sm:$0xff] %vm512_vm0, %v510_v1 }
  0x30   : > { %515 = vst.msk [vmem:[%s3739_s24 + $0x10] sm:$0xff] %vm512_vm0, %v511_v2 }
  0x31 PF: > { %vm541_vm1 = vcmask 523264   ;;  %v3557_v9 = vmov 64.0   ;;  %v3183_v31 = vld [vmem:[%s3722_s28 + $0x18] sm:$0xff]  ;;  %v3182_v32 = vld [vmem:[%s3722_s28 + $0x10] sm:$0xff]  ;;  %v3181_v33 = vld [vmem:[%s3722_s28 + $0x8] sm:$0xff]  ;;  %s3558_s2 = smov 64   ;;  %s4709_s19 = scalar_lea.vmem %s4670_s3, %s3698_s12 }
  0x32   : > { %3332 = vrcp.f32 %v3557_v9  ;;  %668 = vmatpush.bf16.msra.mxu0 %v3183_v31  ;;  %3224 = vmatpush.bf16.msra.mxu2 %v3183_v31  ;;  %v3180_v36 = vld [vmem:[%s3722_s28] sm:$0xff]  ;;  %s3559_s13 = smov 112   ;;  %s3560_s14 = smov 48  }
  0x33   : > { %v3783_v55 = vld [vmem:[%s3717_s10] sm:$0xff]  ;;  %s3561_s16 = smov 16   ;;  %s3562_s18 = smov 32  }
  0x34   : > { %v615_v59 = vperm.slane %v3783_v55, 0  ;;  %v619_v2 = vperm.slane %v3783_v55, 1  ;;  %s3563_s30 = smov 96   ;;  %s3564_s11 = smov 80  }
  0x35   : > { %v3746_v3 = vld [vmem:[%s3739_s24] sm:$0xff]  ;;  %s2723_s29 = sshll.u32 %s3739_s24, 4  ;;  %s2724_s29 = int_to_ptr.vmem [resolvable:$true] %s2723_s29 }
  0x36   : > { %v542_v5 = vsel %vm541_vm1, %v3746_v3, 0.0  ;;  %v3756_v7 = vld [vmem:[%s3739_s24 + $0x8] sm:$0xff]  ;;  %669 = vmatpush.bf16.msra.mxu0 %v3182_v32  ;;  %3225 = vmatpush.bf16.msra.mxu2 %v3182_v32 }
  0x37   : > { %v3749_v4 = vld [vmem:[%s3739_s24 + $0x10] sm:$0xff]  ;;  %543 = vadd.xlane.f32.xlu0 %v542_v5  ;;  %v545_v8 = vsel %vm541_vm1, %v3756_v7, 0.0 }
  0x38   : > { %v548_v6 = vsel %vm541_vm1, %v3749_v4, 0.0  ;;  %v3333_v10 = vpop.eup %3332 }
  0x39   : > { %549 = vadd.xlane.f32.xlu1 %v548_v6  ;;  %v552_v11 = vmul.f32 64.0, %v3333_v10  ;;  %vm556_vm2 = vweird.f32 %v3333_v10 }
  0x3a   : > { %670 = vmatpush.bf16.msra.mxu0 %v3181_v33  ;;  %3226 = vmatpush.bf16.msra.mxu2 %v3181_v33 }
  0x3b   : > { %v553_v12 = vsub.f32 1.0, %v552_v11 }
  0x3d   : > { %v554_v13 = vmul.f32 %v3333_v10, %v553_v12 }
  0x3e   : > { %671 = vmatpush.bf16.msra.mxu0 %v3180_v36  ;;  %3227 = vmatpush.bf16.msra.mxu2 %v3180_v36 }
  0x3f   : > { %546 = vadd.xlane.f32.xlu0 %v545_v8  ;;  %v555_v14 = vadd.f32 %v3333_v10, %v554_v13 }
  0x41   : > { %v3760_v15 = vsel %vm556_vm2, %v3333_v10, %v555_v14 }
  0xaa   : > { %v544_v16 = vpop.xlane.xlu0 %543 }
  0xab   : > { %v558_v17 = vmul.f32 %v3760_v15, %v544_v16 }
  0xac   : > { %v550_v20 = vpop.xlane.xlu1 %549 }
  0xad   : > { %v561_v18 = vsub.f32 %v3746_v3, %v558_v17  ;;  %v560_v24 = vmul.f32 %v3760_v15, %v550_v20  ;;  %v3190_v20 = vld [vmem:[%s3727_s0 + $0x30] sm:$0xff] }
  0xaf   : > { %v564_v19 = vmul.f32 %v561_v18, %v561_v18  ;;  %v3769_v26 = vsub.f32 %v3749_v4, %v560_v24  ;;  %v633_v24 = vperm.slane %v3783_v55, 2 }
  0xb1   : > { %v567_v21 = vsel %vm541_vm1, %v564_v19, 0.0  ;;  %v566_v29 = vmul.f32 %v3769_v26, %v3769_v26  ;;  %v3191_v19 = vld [vmem:[%s3727_s0 + $0x38] sm:$0xff] }
  0xb2   : > { %568 = vadd.xlane.f32.xlu1 %v567_v21  ;;  %v547_v22 = vpop.xlane.xlu0 %546  ;;  %809 = vmatpush.bf16.msra.mxu1 %v3191_v19  ;;  %v3189_v21 = vld [vmem:[%s3727_s0 + $0x28] sm:$0xff] }
  0xb3   : > { %v559_v23 = vmul.f32 %v3760_v15, %v547_v22  ;;  %v573_v30 = vsel %vm541_vm1, %v566_v29, 0.0  ;;  %v3188_v22 = vld [vmem:[%s3727_s0 + $0x20] sm:$0xff] }
  0xb5   : > { %v562_v25 = vsub.f32 %v3756_v7, %v559_v23  ;;  %v3187_v23 = vld [vmem:[%s3727_s0 + $0x18] sm:$0xff] }
  0xb6   : > { %810 = vmatpush.bf16.msra.mxu1 %v3190_v20  ;;  %v760_v20 = vperm.slane %v3783_v55, 3 }
  0xb7   : > { %v565_v27 = vmul.f32 %v562_v25, %v562_v25 }
  0xb9   : > { %v570_v28 = vsel %vm541_vm1, %v565_v27, 0.0 }
  0xba   : > { %571 = vadd.xlane.f32.xlu2 %v570_v28  ;;  %811 = vmatpush.bf16.msra.mxu1 %v3189_v21  ;;  %v3185_v28 = vld [vmem:[%s3727_s0 + $0x8] sm:$0xff] }
  0xbe   : > { %812 = vmatpush.bf16.msra.mxu1 %v3188_v22 }
  0xc2   : > { %574 = vadd.xlane.f32.xlu2 %v573_v30  ;;  %813 = vmatpush.bf16.msra.mxu1 %v3187_v23  ;;  %v3184_v30 = vld [vmem:[%s3727_s0] sm:$0xff] }
 0x125   : > { %v569_v34 = vpop.xlane.xlu1 %568 }
 0x126   : > { %v576_v35 = vmul.f32 %v569_v34, %v3760_v15 }
 0x128   : > { %v579_v37 = vadd.f32 1e-05, %v576_v35 }
 0x12a   : > { %3334 = vrsqrt.f32 %v579_v37  ;;  %vm588_vm4 = vweird.f32 %v579_v37 }
 0x12d   : > { %v572_v38 = vpop.xlane.xlu2 %571 }
 0x12e   : > { %v577_v39 = vmul.f32 %v572_v38, %v3760_v15 }
 0x130   : > { %v3335_v40 = vpop.eup %3334  ;;  %v580_v41 = vadd.f32 1e-05, %v577_v39 }
 0x131   : > { %v583_v42 = vmul.f32 %v3335_v40, %v579_v37  ;;  %vm589_vm3 = vweird.f32 %v3335_v40 }
 0x132   : > { %3336 = vrsqrt.f32 %v580_v41  ;;  %vm590_vm5 = vmor %vm588_vm4, %vm589_vm3  ;;  %vm598_vm7 = vweird.f32 %v580_v41 }
 0x133   : > { %v584_v43 = vmul.f32 %v3335_v40, %v583_v42 }
 0x135   : > { %v585_v44 = vmul.f32 0.5, %v584_v43  ;;  %v575_v45 = vpop.xlane.xlu2 %574 }
 0x136   : > { %v578_v46 = vmul.f32 %v575_v45, %v3760_v15 }
 0x137   : > { %v586_v47 = vsub.f32 1.5, %v585_v44 }
 0x138   : > { %v3337_v48 = vpop.eup %3336  ;;  %v581_v49 = vadd.f32 1e-05, %v578_v46 }
 0x139   : > { %v587_v50 = vmul.f32 %v3335_v40, %v586_v47  ;;  %v593_v51 = vmul.f32 %v3337_v48, %v580_v41  ;;  %vm599_vm6 = vweird.f32 %v3337_v48 }
 0x13a   : > { %3338 = vrsqrt.f32 %v581_v49  ;;  %vm600_vm8 = vmor %vm598_vm7, %vm599_vm6  ;;  %vm608_vm9 = vweird.f32 %v581_v49 }
 0x13b   : > { %v594_v52 = vmul.f32 %v3337_v48, %v593_v51  ;;  %v591_v53 = vsel %vm590_vm5, %v3335_v40, %v587_v50 }
 0x13c   : > { %v612_v58 = vmul.f32 %v591_v53, %v561_v18 }
 0x13d   : > { %v595_v54 = vmul.f32 0.5, %v594_v52 }
 0x13e   : > { %v616_v1 = vmul.f32 %v615_v59, %v612_v58 }
 0x13f   : > { %v596_v56 = vsub.f32 1.5, %v595_v54 }
 0x140   : > { %v3339_v57 = vpop.eup %3338  ;;  %v620_v9 = vadd.f32 %v619_v2, %v616_v1 }
 0x141   : > { %v597_v60 = vmul.f32 %v3337_v48, %v596_v56  ;;  %v603_v61 = vmul.f32 %v3339_v57, %v581_v49  ;;  %vm609_vm10 = vweird.f32 %v3339_v57 }
 0x142   : > { %vm610_vm11 = vmor %vm608_vm9, %vm609_vm10 }
 0x143   : > { %v601_v62 = vsel %vm600_vm8, %v3337_v48, %v597_v60  ;;  %v604_v63 = vmul.f32 %v3339_v57, %v603_v61 }
 0x144   : > { %v613_v0 = vmul.f32 %v601_v62, %v562_v25  ;;  %v3186_v25 = vld [vmem:[%s3727_s0 + $0x10] sm:$0xff] }
 0x145   : > { %v605_v5 = vmul.f32 0.5, %v604_v63  ;;  %814 = vmatpush.bf16.msra.mxu1 %v3186_v25 }
 0x146   : > { %v617_v6 = vmul.f32 %v615_v59, %v613_v0 }
 0x147   : > { %v606_v8 = vsub.f32 1.5, %v605_v5 }
 0x148   : > { %v621_v10 = vadd.f32 %v619_v2, %v617_v6 }
 0x149   : > { %v607_v11 = vmul.f32 %v3339_v57, %v606_v8  ;;  %815 = vmatpush.bf16.msra.mxu1 %v3185_v28 }
 0x14a   : > { %v631_v12 = vpack.c.bf16 %v621_v10, %v620_v9 }
 0x14b   : > { %v611_v13 = vsel %vm610_vm11, %v3339_v57, %v607_v11 }
 0x14c   : > { %2913 = vmatmul.msk.bf16.vlgmr.msra.gmra.mxu0 %vm541_vm1, %v631_v12  ;;  %v614_v14 = vmul.f32 %v611_v13, %v3769_v26 }
 0x14d   : > { %816 = vmatpush.bf16.msra.mxu1 %v3184_v30 }
 0x14e   : > { %v618_v16 = vmul.f32 %v615_v59, %v614_v14 }
 0x150   : > { %v622_v17 = vadd.f32 %v619_v2, %v618_v16 }
 0x152   : > { %v632_v18 = vpack.c.bf16 %v622_v17, %v622_v17 }
 0x154   : > { %2914 = vmatmul.msk.bf16.vlgmr.msra.gmra.mxu2 %vm541_vm1, %v632_v18 }
 0x1c9   : > { %v673_v26 = vpop.f32.mrf.mxu0 }
 0x1ca   : > { %v674_v27 = vadd.f32 %v673_v26, %v633_v24 }
 0x1cc   : > { %v2915_v29 = vmul.f32 -1.442695, %v674_v27 }
 0x1ce   : > { %3340 = vpow2.f32 %v2915_v29 }
 0x1d1   : > { %v675_v31 = vpop.f32.mrf.mxu0 }
 0x1d2   : > { %v676_v32 = vadd.f32 %v675_v31, %v633_v24 }
 0x1d4   : > { %v3341_v33 = vpop.eup %3340  ;;  %v2916_v34 = vmul.f32 -1.442695, %v676_v32 }
 0x1d5   : > { %v691_v35 = vadd.f32 1.0, %v3341_v33 }
 0x1d6   : > { %3342 = vpow2.f32 %v2916_v34 }
 0x1d7   : > { %3344 = vrcp.f32 %v691_v35  ;;  %v678_v36 = vpop.f32.mrf.mxu2  ;;  %v705_v51 = vand.u32 2147483648, %v691_v35  ;;  %vm699_vm13 = vweird.f32 %v691_v35  ;;  %v703_v52 = vand.u32 2147483647, %v691_v35 }
 0x1d8   : > { %v679_v37 = vadd.f32 %v678_v36, %v633_v24 }
 0x1d9   : > { %v706_v60 = vor.u32 1.1754944e-38, %v705_v51  ;;  %vm704_vm0 = vcmp.eq.f32.partialorder %v703_v52, 8.507059e+37  ;;  %v3198_v51 = vld [vmem:[%s3732_s21 + $0x34] sm:$0xf] }
 0x1da   : > { %v2917_v38 = vmul.f32 -1.442695, %v679_v37 }
 0x1dc   : > { %v3343_v39 = vpop.eup %3342  ;;  %3346 = vpow2.f32 %v2917_v38 }
 0x1dd   : > { %v3345_v40 = vpop.eup %3344  ;;  %v692_v41 = vadd.f32 1.0, %v3343_v39 }
 0x1de   : > { %v695_v42 = vmul.f32 %v3345_v40, %v691_v35  ;;  %vm700_vm12 = vweird.f32 %v3345_v40 }
 0x1df   : > { %3348 = vrcp.f32 %v692_v41  ;;  %v680_v43 = vpop.f32.mrf.mxu2  ;;  %vm701_vm14 = vmor %vm699_vm13, %vm700_vm12  ;;  %v720_v54 = vand.u32 2147483648, %v692_v41  ;;  %v718_v58 = vand.u32 2147483647, %v692_v41  ;;  %vm714_vm2 = vweird.f32 %v692_v41 }
 0x1e0   : > { %v696_v44 = vsub.f32 1.0, %v695_v42 }
 0x1e1   : > { %v721_v0 = vor.u32 1.1754944e-38, %v720_v54  ;;  %vm719_vm4 = vcmp.eq.f32.partialorder %v718_v58, 8.507059e+37  ;;  %v3196_v58 = vld [vmem:[%s3732_s21 + $0x24] sm:$0xf] }
 0x1e2   : > { %v3347_v45 = vpop.eup %3346  ;;  %v697_v46 = vmul.f32 %v3345_v40, %v696_v44 }
 0x1e3   : > { %v693_v47 = vadd.f32 1.0, %v3347_v45 }
 0x1e4   : > { %v698_v49 = vadd.f32 %v3345_v40, %v697_v46 }
 0x1e5   : > { %v3349_v48 = vpop.eup %3348  ;;  %3350 = vrcp.f32 %v693_v47  ;;  %v735_v12 = vand.u32 2147483648, %v693_v47  ;;  %vm729_vm6 = vweird.f32 %v693_v47  ;;  %v733_v13 = vand.u32 2147483647, %v693_v47 }
 0x1e6   : > { %v710_v50 = vmul.f32 %v3349_v48, %v692_v41  ;;  %v702_v56 = vsel %vm701_vm14, %v3345_v40, %v698_v49  ;;  %vm715_vm15 = vweird.f32 %v3349_v48  ;;  %v2976_v49 = vld [vmem:[%s3732_s21 + $0x30] sm:$0xf] }
 0x1e7   : > { %v707_v63 = vsel %vm704_vm0, %v706_v60, %v702_v56  ;;  %vm716_vm3 = vmor %vm714_vm2, %vm715_vm15  ;;  %v736_v16 = vor.u32 1.1754944e-38, %v735_v12  ;;  %vm734_vm8 = vcmp.eq.f32.partialorder %v733_v13, 8.507059e+37  ;;  %v2968_v56 = vld [vmem:[%s3732_s21 + $0x20] sm:$0xf]  ;;  %v2970_v60 = vld [vmem:[%s3732_s21 + $0x28] sm:$0xf0] }
 0x1e8   : > { %v711_v53 = vsub.f32 1.0, %v710_v50  ;;  %v739_v6 = vmul.f32 %v707_v63, %v674_v27  ;;  %v3199_v50 = vld [vmem:[%s3732_s21 + $0x34] sm:$0xf0]  ;;  %v2954_v13 = vld [vmem:[%s3732_s21 + $0x8] sm:$0xf0] }
 0x1e9   : > { %v2977_v52 = vor.u32 %v3199_v50, %v2976_v49  ;;  %v3195_v63 = vld [vmem:[%s3732_s21 + $0x14] sm:$0xf0] }
 0x1ea   : > { %v712_v57 = vmul.f32 %v3349_v48, %v711_v53  ;;  %v2978_v53 = vld [vmem:[%s3732_s21 + $0x38] sm:$0xf0] }
 0x1eb   : > { %v3351_v59 = vpop.eup %3350  ;;  %v2981_v54 = vor.u32 %v3198_v51, %v2978_v53  ;;  %969 = vmatpush.bf16.msrb.mxu2 %v2977_v52 }
 0x1ec   : > { %v713_v61 = vadd.f32 %v3349_v48, %v712_v57  ;;  %v725_v62 = vmul.f32 %v3351_v59, %v693_v47  ;;  %vm730_vm5 = vweird.f32 %v3351_v59  ;;  %v3197_v57 = vld [vmem:[%s3732_s21 + $0x24] sm:$0xf0] }
 0x1ed   : > { %vm731_vm7 = vmor %vm729_vm6, %vm730_vm5  ;;  %987 = vmatpush.bf16.msra.mxu3 %v2981_v54 }
 0x1ee   : > { %v717_v1 = vsel %vm716_vm3, %v3349_v48, %v713_v61  ;;  %v726_v2 = vsub.f32 1.0, %v725_v62  ;;  %v2973_v61 = vor.u32 %v3196_v58, %v2970_v60  ;;  %v2960_v62 = vld [vmem:[%s3732_s21 + $0x10] sm:$0xf]  ;;  %vm1135_vm3 = vcmask 1043456  }
 0x1ef   : > { %v722_v5 = vsel %vm719_vm4, %v721_v0, %v717_v1  ;;  %v3194_v0 = vld [vmem:[%s3732_s21 + $0x14] sm:$0xf]  ;;  %v2961_v1 = vor.u32 %v3195_v63, %v2960_v62  ;;  %vm1009_vm4 = vcmask 130048  }
 0x1f0   : > { %v740_v8 = vmul.f32 %v722_v5, %v676_v32  ;;  %v727_v9 = vmul.f32 %v3351_v59, %v726_v2  ;;  %v2962_v2 = vld [vmem:[%s3732_s21 + $0x18] sm:$0xf0] }
 0x1f1   : > { %988 = vmatpush.bf16.msra.mxu3 %v2973_v61  ;;  %v2965_v5 = vor.u32 %v3194_v0, %v2962_v2  ;;  %v917_v61 = vperm.slane %v3783_v55, 6 }
 0x1f2   : > { %v758_v10 = vpack.c.bf16 %v740_v8, %v739_v6  ;;  %v728_v11 = vadd.f32 %v3351_v59, %v727_v9  ;;  %v2952_v9 = vld [vmem:[%s3732_s21] sm:$0xf] }
 0x1f4   : > { %817 = vmatmul.bf16.vlgmr.msra.gmra.mxu1 %v758_v10  ;;  %v732_v14 = vsel %vm731_vm7, %v3351_v59, %v728_v11  ;;  %v2969_v59 = vor.u32 %v3197_v57, %v2968_v56  ;;  %v3193_v10 = vld [vmem:[%s3732_s21 + $0x4] sm:$0xf0]  ;;  %v3192_v11 = vld [vmem:[%s3732_s21 + $0x4] sm:$0xf] }
 0x1f5   : > { %v737_v17 = vsel %vm734_vm8, %v736_v16, %v732_v14  ;;  %989 = vmatpush.bf16.msra.mxu3 %v2965_v5  ;;  %v2953_v12 = vor.u32 %v3193_v10, %v2952_v9  ;;  %v2957_v16 = vor.u32 %v3192_v11, %v2954_v13  ;;  %v520_v5 = vld [vmem:[%s3717_s10 + $0x8] sm:$0xff] }
 0x1f6   : > { %v741_v18 = vmul.f32 %v737_v17, %v679_v37  ;;  %970 = vmatpush.bf16.msrb.mxu2 %v2969_v59 }
 0x1f8   : > { %v759_v19 = vpack.c.bf16 %v741_v18, %v741_v18 }
 0x1f9   : > { %990 = vmatpush.bf16.msra.mxu3 %v2957_v16 }
 0x1fa   : > { %971 = vmatpush.bf16.msrb.mxu2 %v2961_v1 }
 0x1fe   : > { %972 = vmatpush.bf16.msrb.mxu2 %v2953_v12 }
 0x204   : > { %822 = vmatmul.bf16.gmra.mxu1 %v759_v19 }
 0x271   : > { %v818_v21 = vpop.f32.mrf.mxu1 }
 0x272   : > { %v819_v22 = vadd.f32 %v818_v21, %v760_v20 }
 0x274   : > { %v827_v23 = vmul.f32 0.5, %v819_v22 }
 0x276   : > { %v3801_v24 = vadd.f32 %v827_v23, %v3746_v3 }
 0x278   : > { %v833_v25 = vsel %vm541_vm1, %v3801_v24, 0.0 }
 0x279   : > { %v820_v26 = vpop.f32.mrf.mxu1  ;;  %834 = vadd.xlane.f32.xlu0 %v833_v25 }
 0x27a   : > { %v821_v27 = vadd.f32 %v820_v26, %v760_v20 }
 0x27c   : > { %v828_v28 = vmul.f32 0.5, %v821_v27 }
 0x27e   : > { %v3806_v29 = vadd.f32 %v828_v28, %v3756_v7 }
 0x280   : > { %v836_v30 = vsel %vm541_vm1, %v3806_v29, 0.0 }
 0x281   : > { %837 = vadd.xlane.f32.xlu1 %v836_v30  ;;  %v823_v31 = vpop.f32.mrf.mxu1 }
 0x282   : > { %v824_v32 = vadd.f32 %v823_v31, %v760_v20 }
 0x284   : > { %v829_v33 = vmul.f32 0.5, %v824_v32 }
 0x286   : > { %v3811_v3 = vadd.f32 %v829_v33, %v3749_v4 }
 0x288   : > { %v839_v34 = vsel %vm541_vm1, %v3811_v3, 0.0 }
 0x289   : > { %v825_v35 = vpop.f32.mrf.mxu1  ;;  %840 = vadd.xlane.f32.xlu2 %v839_v34 }
 0x2ec   : > { %v835_v36 = vpop.xlane.xlu0 %834 }
 0x2ed   : > { %v842_v37 = vmul.f32 %v835_v36, %v3760_v15 }
 0x2ef   : > { %v3817_v7 = vsub.f32 %v3801_v24, %v842_v37 }
 0x2f1   : > { %v848_v38 = vmul.f32 %v3817_v7, %v3817_v7 }
 0x2f3   : > { %v851_v39 = vsel %vm541_vm1, %v848_v38, 0.0 }
 0x2f4   : > { %v838_v4 = vpop.xlane.xlu1 %837  ;;  %852 = vadd.xlane.f32.xlu0 %v851_v39  ;;  %v899_v39 = vperm.slane %v3783_v55, 4 }
 0x2f5   : > { %v843_v40 = vmul.f32 %v838_v4, %v3760_v15 }
 0x2f7   : > { %v3824_v41 = vsub.f32 %v3806_v29, %v843_v40 }
 0x2f9   : > { %v849_v42 = vmul.f32 %v3824_v41, %v3824_v41 }
 0x2fb   : > { %v854_v43 = vsel %vm541_vm1, %v849_v42, 0.0 }
 0x2fc   : > { %855 = vadd.xlane.f32.xlu1 %v854_v43  ;;  %v841_v44 = vpop.xlane.xlu2 %840 }
 0x2fd   : > { %v844_v45 = vmul.f32 %v841_v44, %v3760_v15 }
 0x2ff   : > { %v3831_v46 = vsub.f32 %v3811_v3, %v844_v45 }
 0x301   : > { %v850_v47 = vmul.f32 %v3831_v46, %v3831_v46 }
 0x303   : > { %v857_v48 = vsel %vm541_vm1, %v850_v47, 0.0  ;;  %v903_v47 = vperm.slane %v3783_v55, 5 }
 0x304   : > { %858 = vadd.xlane.f32.xlu2 %v857_v48 }
 0x367   : > { %v853_v6 = vpop.xlane.xlu0 %852 }
 0x368   : > { %v860_v8 = vmul.f32 %v853_v6, %v3760_v15 }
 0x36a   : > { %v863_v14 = vadd.f32 1e-05, %v860_v8 }
 0x36c   : > { %3352 = vrsqrt.f32 %v863_v14  ;;  %vm872_vm10 = vweird.f32 %v863_v14 }
 0x36f   : > { %v856_v17 = vpop.xlane.xlu1 %855 }
 0x370   : > { %v861_v18 = vmul.f32 %v856_v17, %v3760_v15 }
 0x372   : > { %v3353_v19 = vpop.eup %3352  ;;  %v864_v20 = vadd.f32 1e-05, %v861_v18 }
 0x373   : > { %v867_v21 = vmul.f32 %v3353_v19, %v863_v14  ;;  %vm873_vm9 = vweird.f32 %v3353_v19 }
 0x374   : > { %3354 = vrsqrt.f32 %v864_v20  ;;  %vm874_vm11 = vmor %vm872_vm10, %vm873_vm9  ;;  %vm882_vm13 = vweird.f32 %v864_v20  ;;  %vm1046_vm9 = vcmask 195584  }
 0x375   : > { %v868_v22 = vmul.f32 %v3353_v19, %v867_v21 }
 0x377   : > { %v869_v23 = vmul.f32 0.5, %v868_v22  ;;  %v859_v25 = vpop.xlane.xlu2 %858 }
 0x378   : > { %v862_v26 = vmul.f32 %v859_v25, %v3760_v15 }
 0x379   : > { %v870_v27 = vsub.f32 1.5, %v869_v23 }
 0x37a   : > { %v3355_v28 = vpop.eup %3354  ;;  %v865_v30 = vadd.f32 1e-05, %v862_v26 }
 0x37b   : > { %v871_v31 = vmul.f32 %v3353_v19, %v870_v27  ;;  %v877_v32 = vmul.f32 %v3355_v28, %v864_v20  ;;  %vm883_vm12 = vweird.f32 %v3355_v28 }
 0x37c   : > { %3356 = vrsqrt.f32 %v865_v30  ;;  %vm884_vm14 = vmor %vm882_vm13, %vm883_vm12  ;;  %vm892_vm0 = vweird.f32 %v865_v30 }
 0x37d   : > { %v878_v33 = vmul.f32 %v3355_v28, %v877_v32  ;;  %v875_v34 = vsel %vm874_vm11, %v3353_v19, %v871_v31 }
 0x37e   : > { %v896_v38 = vmul.f32 %v875_v34, %v3817_v7 }
 0x37f   : > { %v879_v35 = vmul.f32 0.5, %v878_v33 }
 0x380   : > { %v900_v45 = vmul.f32 %v899_v39, %v896_v38 }
 0x381   : > { %v880_v36 = vsub.f32 1.5, %v879_v35 }
 0x382   : > { %v3357_v37 = vpop.eup %3356  ;;  %v904_v51 = vadd.f32 %v903_v47, %v900_v45  ;;  %v3565_v45 = vmov 0  }
 0x383   : > { %v881_v4 = vmul.f32 %v3355_v28, %v880_v36  ;;  %v887_v40 = vmul.f32 %v3357_v37, %v865_v30  ;;  %vm893_vm15 = vweird.f32 %v3357_v37  ;;  %3329 = vset.pattern.permute.xlu0 %v3565_v45  ;;  %3330 = vset.pattern.permute.xlu1 %v3565_v45 }
 0x384   : > { %vm894_vm2 = vmor %vm892_vm0, %vm893_vm15  ;;  %3331 = vset.pattern.permute.xlu2 %v3565_v45 }
 0x385   : > { %v885_v42 = vsel %vm884_vm14, %v3355_v28, %v881_v4  ;;  %v888_v43 = vmul.f32 %v3357_v37, %v887_v40 }
 0x386   : > { %v897_v44 = vmul.f32 %v885_v42, %v3824_v41 }
 0x387   : > { %v889_v48 = vmul.f32 0.5, %v888_v43 }
 0x388   : > { %v901_v49 = vmul.f32 %v899_v39, %v897_v44 }
 0x389   : > { %v890_v50 = vsub.f32 1.5, %v889_v48 }
 0x38a   : > { %v905_v52 = vadd.f32 %v903_v47, %v901_v49 }
 0x38b   : > { %v891_v7 = vmul.f32 %v3357_v37, %v890_v50  ;;  %v528_v50 = vld [vmem:[%s4668_s1] sm:$0xff] }
 0x38c   : > { %v915_v53 = vpack.c.bf16 %v905_v52, %v904_v51  ;;  %vm531_vm6 = vcmp.gt.f32.partialorder %v528_v50, 0.0 }
 0x38d   : > { %v895_v54 = vsel %vm894_vm2, %v3357_v37, %v891_v7 }
 0x38e   : > { %2982 = vmatmul.msk.bf16.vlgmr.msrb.gmra.mxu2 %vm541_vm1, %v915_v53  ;;  %2984 = vmatmul.msk.bf16.vlgmr.msra.gmra.mxu3 %vm541_vm1, %v915_v53  ;;  %v898_v41 = vmul.f32 %v895_v54, %v3831_v46  ;;  %v918_v46 = vperm.slane %v520_v5, 6  ;;  %v529_v54 = vld [vmem:[%s4668_s1 + $0x8] sm:$0xff] }
 0x38f   : > { %vm532_vm10 = vcmp.gt.f32.partialorder %v529_v54, 0.0 }
 0x390   : > { %v902_v56 = vmul.f32 %v899_v39, %v898_v41 }
 0x392   : > { %v906_v57 = vadd.f32 %v903_v47, %v902_v56  ;;  %v527_v47 = vld [vmem:[%s4709_s19] sm:$0x1]  ;;  %s4725_s19 = sld [smem:[#allocation18_spill]] }
 0x393   : > { %vm534_vm5 = vcmp.gt.f32.partialorder %v527_v47, 0.0 }
 0x394   : > { %v916_v58 = vpack.c.bf16 %v906_v57, %v906_v57  ;;  %v535_v48 = vsel %vm534_vm5, 1, %v3565_v45 }
 0x395   : > { %v536_v49 = vperm.slane %v535_v48, 0 }
 0x397   : > { %vm3928_vm7 = vcmp.eq.s32.totalorder %v536_v49, 1 }
 0x398   : > { %vm3934_vm8 = vmand %vm531_vm6, %vm3928_vm7  ;;  %s4726_s23 = smov %s4725_s19 }
 0x399   : > { %vm3949_vm11 = vmand %vm532_vm10, %vm3928_vm7 }
 0x39e   : > { %2983 = vmatmul.msk.bf16.gmra.mxu2 %vm541_vm1, %v916_v58  ;;  %2985 = vmatmul.msk.bf16.gmra.mxu3 %vm541_vm1, %v916_v58 }
 0x411   : > { %v974_v59 = vpop.f32.mrf.mxu2  ;;  %v992_v60 = vpop.f32.mrf.mxu3 }
 0x412   : > { %v975_v0 = vadd.f32 %v974_v59, %v917_v61  ;;  %v993_v14 = vadd.f32 %v992_v60, %v918_v46 }
 0x419   : > { %v976_v62 = vpop.f32.mrf.mxu2  ;;  %v994_v63 = vpop.f32.mrf.mxu3 }
 0x41a   : > { %v977_v1 = vadd.f32 %v976_v62, %v917_v61  ;;  %v995_v55 = vadd.f32 %v994_v63, %v918_v46 }
 0x41c   : > { %v3865_v2 = vpack.c.bf16 %v977_v1, %v975_v0  ;;  %v3878_v16 = vpack.c.bf16 %v995_v55, %v993_v14  ;;  %v530_v0 = vld [vmem:[%s4668_s1 + $0x10] sm:$0xff] }
 0x41d   : > { %vm533_vm12 = vcmp.gt.f32.partialorder %v530_v0, 0.0 }
 0x41e   : > { %1005 = vrot.lane.b32.xlu2 %v3865_v2, %s3558_s2  ;;  %vm3970_vm13 = vmand %vm533_vm12, %vm3928_vm7 }
 0x421   : > { %v979_v6 = vpop.f32.mrf.mxu2  ;;  %v997_v8 = vpop.f32.mrf.mxu3 }
 0x422   : > { %v980_v9 = vadd.f32 %v979_v6, %v917_v61  ;;  %v998_v10 = vadd.f32 %v997_v8, %v918_v46 }
 0x424   : > { %v1002_v11 = vpack.c.bf16 %v980_v9, %v980_v9  ;;  %v3870_v12 = vpack.c.bf16 %v998_v10, %v998_v10 }
 0x426   : > { %1157 = vrot.lane.b32.xlu2 %v3865_v2, %s3559_s13  ;;  %1163 = vrot.lane.b32.xlu1 %v1002_v11, %s3560_s14  ;;  %v1137_v13 = vsel %vm1135_vm3, %v3870_v12, 0 }
 0x427   : > { %1007 = vrot.lane.b32.xlu0 %v1002_v11, %s3558_s2  ;;  %1145 = vmatpush.bf16.msra.mxu2 %v1137_v13 }
 0x429   : > { %v981_v17 = vpop.f32.mrf.mxu2  ;;  %v999_v18 = vpop.f32.mrf.mxu3 }
 0x42b   : > { %1146 = vmatpush.bf16.msra.mxu2 %v3878_v16 }
 0x42e   : > { %1477 = vrot.lane.b32.xlu2 %v1002_v11, %s3561_s16  ;;  %1321 = vrot.lane.b32.xlu1 %v1002_v11, %s3562_s18 }
 0x42f   : > { %1161 = vrot.lane.b32.xlu0 %v3865_v2, %s3560_s14 }
 0x436   : > { %1315 = vrot.lane.b32.xlu2 %v3865_v2, %s3563_s30  ;;  %1319 = vrot.lane.b32.xlu1 %v3865_v2, %s3562_s18 }
 0x437   : > { %1159 = vrot.lane.b32.xlu0 %v1002_v11, %s3559_s13 }
 0x43e   : > { %1473 = vrot.lane.b32.xlu2 %v1002_v11, %s3564_s11  ;;  %1471 = vrot.lane.b32.xlu1 %v3865_v2, %s3564_s11 }
 0x43f   : > { %1475 = vrot.lane.b32.xlu0 %v3865_v2, %s3561_s16 }
 0x446   : > { %1285 = vrot.lane.b32.xlu1 %v3870_v12, %s3559_s13 }
 0x447   : > { %1317 = vrot.lane.b32.xlu0 %v1002_v11, %s3563_s30 }
 0x478   : > { %v1006_v19 = vpop.permute.xlu2 %1005 }
 0x479   : > { %v1017_v31 = vsel %vm1009_vm4, %v1006_v19, 0 }
 0x480   : > { %v1158_v20 = vpop.permute.xlu2 %1157 }
 0x488   : > { %v1478_v26 = vpop.permute.xlu2 %1477 }
 0x489   : > { %v1489_v33 = vsel %vm1009_vm4, %v1478_v26, 0 }
 0x490   : > { %v1316_v42 = vpop.permute.xlu2 %1315 }
 0x498   : > { %v1164_v21 = vpop.permute.xlu1 %1163  ;;  %v1474_v43 = vpop.permute.xlu2 %1473 }
 0x499   : > { %v1008_v22 = vpop.permute.xlu0 %1007  ;;  %v1175_v23 = vsel %vm1009_vm4, %v1164_v21, 0 }
 0x49a   : > { %v1020_v25 = vsel %vm1009_vm4, %v1008_v22, 0  ;;  %1183 = vmatpush.bf16.xpose.msrb.mxu3 %v1175_v23 }
 0x49b   : > { %1028 = vmatpush.bf16.xpose.msrb.mxu0 %v1020_v25 }
 0x4a0   : > { %v1322_v27 = vpop.permute.xlu1 %1321 }
 0x4a1   : > { %v1333_v28 = vsel %vm1009_vm4, %v1322_v27, 0  ;;  %v1162_v30 = vpop.permute.xlu0 %1161 }
 0x4a2   : > { %v1172_v32 = vsel %vm1009_vm4, %v1162_v30, 0 }
 0x4a3   : > { %1029 = vmatpush.bf16.xpose.msrb.mxu0 %v1017_v31  ;;  %1184 = vmatpush.bf16.xpose.msrb.mxu3 %v1172_v32 }
 0x4a8   : > { %v1320_v34 = vpop.permute.xlu1 %1319 }
 0x4a9   : > { %v1330_v35 = vsel %vm1009_vm4, %v1320_v34, 0  ;;  %v1160_v36 = vpop.permute.xlu0 %1159 }
 0x4aa   : > { %2986 = vmatmul.msk.bf16.vlgmr.msrb.gmra.mxu0 %vm1009_vm4, %v3865_v2  ;;  %2990 = vmatmul.msk.bf16.vlgmr.msrb.gmra.mxu3 %vm1009_vm4, %v1158_v20 }
 0x4ab   : > { %1341 = vmatpush.bf16.xpose.msra.mxu0 %v1333_v28  ;;  %1497 = vmatpush.bf16.xpose.msra.mxu3 %v1489_v33 }
 0x4b0   : > { %v1472_v37 = vpop.permute.xlu1 %1471 }
 0x4b1   : > { %v1476_v38 = vpop.permute.xlu0 %1475 }
 0x4b2   : > { %v1486_v39 = vsel %vm1009_vm4, %v1476_v38, 0 }
 0x4b3   : > { %1342 = vmatpush.bf16.xpose.msra.mxu0 %v1330_v35  ;;  %1498 = vmatpush.bf16.xpose.msra.mxu3 %v1486_v39 }
 0x4b8   : > { %v1286_v4 = vpop.permute.xlu1 %1285 }
 0x4b9   : > { %v1295_v40 = vsel %vm1135_vm3, %v1286_v4, 0  ;;  %v1318_v44 = vpop.permute.xlu0 %1317 }
 0x4ba   : > { %2987 = vmatmul.msk.bf16.gmra.mxu0 %vm1009_vm4, %v1002_v11  ;;  %2991 = vmatmul.msk.bf16.gmra.mxu3 %vm1009_vm4, %v1160_v36 }
 0x4bb   : > { %1303 = vmatpush.bf16.msrb.mxu1 %v1295_v40 }
 0x4ca   : > { %2994 = vmatmul.msk.bf16.vlgmr.msra.gmra.mxu0 %vm1009_vm4, %v1316_v42  ;;  %2998 = vmatmul.msk.bf16.vlgmr.msra.gmra.mxu3 %vm1009_vm4, %v1472_v37 }
 0x4da   : > { %2995 = vmatmul.msk.bf16.gmra.mxu0 %vm1009_vm4, %v1318_v44  ;;  %2999 = vmatmul.msk.bf16.gmra.mxu3 %vm1009_vm4, %v1474_v43 }
 0x527   : > { %v1031_v52 = vpop.f32.mrf.mxu0 }
 0x528   : > { %v1040_v53 = vmul.f32 0.25, %v1031_v52 }
 0x52a   : > { %v3943_v41 = vsel %vm3934_vm8, %v1040_v53, -1e+30 }
 0x52b   : > { %v1047_v56 = vsel %vm1046_vm9, %v3943_v41, -inf }
 0x52c   : > { %1048 = vmax.xlane.f32.xlu1 %v1047_v56 }
 0x52d   : > { %v1186_v57 = vpop.f32.mrf.mxu3 }
 0x52e   : > { %v1195_v58 = vmul.f32 0.25, %v1186_v57 }
 0x52f   : > { %v1033_v59 = vpop.f32.mrf.mxu0 }
 0x530   : > { %v1041_v61 = vmul.f32 0.25, %v1033_v59  ;;  %v3955_v62 = vsel %vm3934_vm8, %v1195_v58, -1e+30 }
 0x531   : > { %v1201_v63 = vsel %vm1046_vm9, %v3955_v62, -inf }
 0x532   : > { %1202 = vmax.xlane.f32.xlu2 %v1201_v63  ;;  %v3964_v1 = vsel %vm3949_vm11, %v1041_v61, -1e+30 }
 0x533   : > { %v1050_v2 = vsel %vm1046_vm9, %v3964_v1, -inf }
 0x534   : > { %1051 = vmax.xlane.f32.xlu0 %v1050_v2 }
 0x535   : > { %v1188_v5 = vpop.f32.mrf.mxu3 }
 0x536   : > { %v1196_v46 = vmul.f32 0.25, %v1188_v5 }
 0x537   : > { %v1036_v6 = vpop.f32.mrf.mxu0 }
 0x538   : > { %v1042_v9 = vmul.f32 0.25, %v1036_v6  ;;  %v3976_v10 = vsel %vm3949_vm11, %v1196_v46, -1e+30 }
 0x539   : > { %v1204_v11 = vsel %vm1046_vm9, %v3976_v10, -inf }
 0x53a   : > { %1205 = vmax.xlane.f32.xlu1 %v1204_v11  ;;  %v3982_v55 = vsel %vm3970_vm13, %v1042_v9, -1e+30 }
 0x53b   : > { %v1053_v13 = vsel %vm1046_vm9, %v3982_v55, -inf }
 0x53c   : > { %1054 = vmax.xlane.f32.xlu0 %v1053_v13 }
 0x53d   : > { %v1191_v14 = vpop.f32.mrf.mxu3 }
 0x53e   : > { %v1197_v17 = vmul.f32 0.25, %v1191_v14 }
 0x53f   : > { %v1038_v18 = vpop.f32.mrf.mxu0 }
 0x540   : > { %v3988_v19 = vsel %vm3970_vm13, %v1197_v17, -1e+30 }
 0x541   : > { %v1207_v20 = vsel %vm1046_vm9, %v3988_v19, -inf }
 0x542   : > { %1208 = vmax.xlane.f32.xlu2 %v1207_v20 }
 0x545   : > { %v1193_v21 = vpop.f32.mrf.mxu3 }
 0x547   : > { %v1344_v22 = vpop.f32.mrf.mxu0 }
 0x548   : > { %v1353_v23 = vmul.f32 0.25, %v1344_v22 }
 0x54a   : > { %v3994_v25 = vsel %vm3934_vm8, %v1353_v23, -1e+30 }
 0x54b   : > { %v1359_v26 = vsel %vm1046_vm9, %v3994_v25, -inf }
 0x54c   : > { %1360 = vmax.xlane.f32.xlu1 %v1359_v26 }
 0x54d   : > { %v1500_v27 = vpop.f32.mrf.mxu3 }
 0x54e   : > { %v1509_v28 = vmul.f32 0.25, %v1500_v27 }
 0x54f   : > { %v1346_v30 = vpop.f32.mrf.mxu0 }
 0x550   : > { %v1354_v31 = vmul.f32 0.25, %v1346_v30  ;;  %v4000_v32 = vsel %vm3934_vm8, %v1509_v28, -1e+30 }
 0x551   : > { %v1515_v33 = vsel %vm1046_vm9, %v4000_v32, -inf }
 0x552   : > { %1516 = vmax.xlane.f32.xlu2 %v1515_v33  ;;  %v4006_v34 = vsel %vm3949_vm11, %v1354_v31, -1e+30 }
 0x553   : > { %v1362_v35 = vsel %vm1046_vm9, %v4006_v34, -inf }
 0x554   : > { %1363 = vmax.xlane.f32.xlu0 %v1362_v35 }
 0x555   : > { %v1502_v36 = vpop.f32.mrf.mxu3 }
 0x556   : > { %v1510_v37 = vmul.f32 0.25, %v1502_v36 }
 0x557   : > { %v1349_v38 = vpop.f32.mrf.mxu0 }
 0x558   : > { %v1355_v39 = vmul.f32 0.25, %v1349_v38  ;;  %v4012_v4 = vsel %vm3949_vm11, %v1510_v37, -1e+30 }
 0x559   : > { %v1518_v40 = vsel %vm1046_vm9, %v4012_v4, -inf }
 0x55a   : > { %1519 = vmax.xlane.f32.xlu1 %v1518_v40  ;;  %v4018_v42 = vsel %vm3970_vm13, %v1355_v39, -1e+30 }
 0x55b   : > { %v1365_v43 = vsel %vm1046_vm9, %v4018_v42, -inf }
 0x55c   : > { %1366 = vmax.xlane.f32.xlu2 %v1365_v43 }
 0x55d   : > { %v1505_v44 = vpop.f32.mrf.mxu3 }
 0x55e   : > { %v1511_v47 = vmul.f32 0.25, %v1505_v44 }
 0x55f   : > { %v1351_v48 = vpop.f32.mrf.mxu0 }
 0x560   : > { %v4024_v49 = vsel %vm3970_vm13, %v1511_v47, -1e+30 }
 0x561   : > { %v1521_v50 = vsel %vm1046_vm9, %v4024_v49, -inf }
 0x562   : > { %1522 = vmax.xlane.f32.xlu0 %v1521_v50 }
 0x565   : > { %v1507_v51 = vpop.f32.mrf.mxu3 }
 0x59f   : > { %v1049_v52 = vpop.xlane.xlu1 %1048 }
 0x5a0   : > { %v1056_v53 = vsub.f32 %v3943_v41, %v1049_v52 }
 0x5a2   : > { %v1059_v54 = vmul.f32 1.442695, %v1056_v53 }
 0x5a4   : > { %3358 = vpow2.f32 %v1059_v54 }
 0x5a5   : > { %v1203_v56 = vpop.xlane.xlu2 %1202 }
 0x5a6   : > { %v1210_v57 = vsub.f32 %v3955_v62, %v1203_v56 }
 0x5a7   : > { %v1052_v58 = vpop.xlane.xlu0 %1051 }
 0x5a8   : > { %v1213_v59 = vmul.f32 1.442695, %v1210_v57  ;;  %v1057_v61 = vsub.f32 %v3964_v1, %v1052_v58 }
 0x5aa   : > { %v3359_v63 = vpop.eup %3358  ;;  %3360 = vpow2.f32 %v1213_v59  ;;  %v1061_v0 = vmul.f32 1.442695, %v1057_v61 }
 0x5ab   : > { %v4033_v2 = vsel %vm3934_vm8, %v3359_v63, 0.0 }
 0x5ac   : > { %3362 = vpow2.f32 %v1061_v0  ;;  %v1068_v41 = vsel %vm1046_vm9, %v4033_v2, 0.0 }
 0x5ad   : > { %v1206_v5 = vpop.xlane.xlu1 %1205  ;;  %1069 = vadd.xlane.f32.xlu0 %v1068_v41 }
 0x5ae   : > { %v1211_v46 = vsub.f32 %v3976_v10, %v1206_v5 }
 0x5af   : > { %v1055_v62 = vpop.xlane.xlu0 %1054 }
 0x5b0   : > { %v3361_v6 = vpop.eup %3360  ;;  %v1215_v9 = vmul.f32 1.442695, %v1211_v46  ;;  %v1058_v1 = vsub.f32 %v3982_v55, %v1055_v62 }
 0x5b1   : > { %v4041_v11 = vsel %vm3934_vm8, %v3361_v6, 0.0 }
 0x5b2   : > { %v3363_v13 = vpop.eup %3362  ;;  %3364 = vpow2.f32 %v1215_v9  ;;  %v1063_v14 = vmul.f32 1.442695, %v1058_v1  ;;  %v1222_v17 = vsel %vm1046_vm9, %v4041_v11, 0.0 }
 0x5b3   : > { %1223 = vadd.xlane.f32.xlu1 %v1222_v17  ;;  %v4047_v18 = vsel %vm3949_vm11, %v3363_v13, 0.0 }
 0x5b4   : > { %3366 = vpow2.f32 %v1063_v14  ;;  %v1071_v10 = vsel %vm1046_vm9, %v4047_v18, 0.0 }
 0x5b5   : > { %1072 = vadd.xlane.f32.xlu2 %v1071_v10  ;;  %v1209_v55 = vpop.xlane.xlu2 %1208 }
 0x5b6   : > { %v1212_v20 = vsub.f32 %v3988_v19, %v1209_v55 }
 0x5b8   : > { %v3365_v21 = vpop.eup %3364  ;;  %v1217_v22 = vmul.f32 1.442695, %v1212_v20 }
 0x5b9   : > { %v4054_v23 = vsel %vm3949_vm11, %v3365_v21, 0.0 }
 0x5ba   : > { %v3367_v26 = vpop.eup %3366  ;;  %3368 = vpow2.f32 %v1217_v22  ;;  %v1225_v27 = vsel %vm1046_vm9, %v4054_v23, 0.0 }
 0x5bb   : > { %1226 = vadd.xlane.f32.xlu0 %v1225_v27  ;;  %v4060_v28 = vsel %vm3970_vm13, %v3367_v26, 0.0 }
 0x5bc   : > { %v1074_v30 = vsel %vm1046_vm9, %v4060_v28, 0.0 }
 0x5bd   : > { %1075 = vadd.xlane.f32.xlu1 %v1074_v30 }
 0x5bf   : > { %v1361_v19 = vpop.xlane.xlu1 %1360 }
 0x5c0   : > { %v3369_v31 = vpop.eup %3368  ;;  %v1368_v33 = vsub.f32 %v3994_v25, %v1361_v19 }
 0x5c1   : > { %v4067_v35 = vsel %vm3970_vm13, %v3369_v31, 0.0 }
 0x5c2   : > { %v1371_v36 = vmul.f32 1.442695, %v1368_v33  ;;  %v1228_v37 = vsel %vm1046_vm9, %v4067_v35, 0.0 }
 0x5c3   : > { %1229 = vadd.xlane.f32.xlu2 %v1228_v37 }
 0x5c4   : > { %3370 = vpow2.f32 %v1371_v36 }
 0x5c5   : > { %v1517_v38 = vpop.xlane.xlu2 %1516 }
 0x5c6   : > { %v1524_v39 = vsub.f32 %v4000_v32, %v1517_v38 }
 0x5c7   : > { %v1364_v40 = vpop.xlane.xlu0 %1363 }
 0x5c8   : > { %v1527_v43 = vmul.f32 1.442695, %v1524_v39  ;;  %v1369_v44 = vsub.f32 %v4006_v34, %v1364_v40 }
 0x5ca   : > { %v3371_v47 = vpop.eup %3370  ;;  %3372 = vpow2.f32 %v1527_v43  ;;  %v1373_v48 = vmul.f32 1.442695, %v1369_v44 }
 0x5cb   : > { %v4075_v25 = vsel %vm3934_vm8, %v3371_v47, 0.0 }
 0x5cc   : > { %v1380_v50 = vsel %vm1046_vm9, %v4075_v25, 0.0  ;;  %3374 = vpow2.f32 %v1373_v48 }
 0x5cd   : > { %1381 = vadd.xlane.f32.xlu2 %v1380_v50  ;;  %v1520_v7 = vpop.xlane.xlu1 %1519 }
 0x5ce   : > { %v1525_v56 = vsub.f32 %v4012_v4, %v1520_v7 }
 0x5cf   : > { %1283 = vrot.lane.b32.xlu0 %v3878_v16, %s3559_s13  ;;  %v1367_v61 = vpop.xlane.xlu2 %1366 }
 0x5d0   : > { %v3373_v51 = vpop.eup %3372  ;;  %v1529_v57 = vmul.f32 1.442695, %v1525_v56  ;;  %v1370_v4 = vsub.f32 %v4018_v42, %v1367_v61 }
 0x5d1   : > { %v4083_v32 = vsel %vm3934_vm8, %v3373_v51, 0.0 }
 0x5d2   : > { %v1536_v34 = vsel %vm1046_vm9, %v4083_v32, 0.0  ;;  %v3375_v52 = vpop.eup %3374  ;;  %3376 = vpow2.f32 %v1529_v57  ;;  %v1375_v63 = vmul.f32 1.442695, %v1370_v4 }
 0x5d3   : > { %v4091_v53 = vsel %vm3949_vm11, %v3375_v52, 0.0 }
 0x5d4   : > { %v1383_v54 = vsel %vm1046_vm9, %v4091_v53, 0.0  ;;  %3378 = vpow2.f32 %v1375_v63 }
 0x5d5   : > { %1537 = vadd.xlane.f32.xlu2 %v1536_v34  ;;  %v1523_v0 = vpop.xlane.xlu0 %1522 }
 0x5d6   : > { %1441 = vrot.lane.b32.xlu1 %v3870_v12, %s3563_s30  ;;  %v1526_v5 = vsub.f32 %v4024_v49, %v1523_v0 }
 0x5d8   : > { %v3377_v58 = vpop.eup %3376  ;;  %v1531_v60 = vmul.f32 1.442695, %v1526_v5 }
 0x5d9   : > { %v4104_v59 = vsel %vm3949_vm11, %v3377_v58, 0.0 }
 0x5da   : > { %v3379_v41 = vpop.eup %3378  ;;  %3380 = vpow2.f32 %v1531_v60 }
 0x5dd   : > { %1384 = vadd.xlane.f32.xlu2 %v1383_v54 }
 0x5de   : > { %1597 = vrot.lane.b32.xlu1 %v3870_v12, %s3564_s11  ;;  %v1539_v12 = vsel %vm1046_vm9, %v4104_v59, 0.0 }
 0x5e0   : > { %v3381_v62 = vpop.eup %3380 }
 0x5e1   : > { %v4118_v42 = vsel %vm3970_vm13, %v3381_v62, 0.0 }
 0x5e2   : > { %v1542_v6 = vsel %vm1046_vm9, %v4118_v42, 0.0 }
 0x5e6   : > { %1595 = vrot.lane.b32.xlu1 %v3878_v16, %s3564_s11 }
 0x5f5   : > { %1439 = vrot.lane.b32.xlu2 %v3878_v16, %s3563_s30  ;;  %v4112_v16 = vsel %vm3970_vm13, %v3379_v41, 0.0 }
 0x5f6   : > { %v1386_v46 = vsel %vm1046_vm9, %v4112_v16, 0.0 }
 0x5f9   : > { %1540 = vadd.xlane.f32.xlu0 %v1539_v12 }
 0x610   : > { %1387 = vadd.xlane.f32.xlu1 %v1386_v46 }
 0x61e   : > { %1543 = vadd.xlane.f32.xlu2 %v1542_v6 }
 0x620   : > { %v1070_v49 = vpop.xlane.xlu0 %1069 }
 0x621   : > { %v1077_v9 = vmax.f32 %v1070_v49, 1e-30 }
 0x623   : > { %3382 = vrcp.f32 %v1077_v9  ;;  %v1089_v19 = vand.u32 2147483647, %v1077_v9  ;;  %v1091_v33 = vand.u32 2147483648, %v1077_v9  ;;  %vm1085_vm15 = vweird.f32 %v1077_v9 }
 0x625   : > { %vm4136_vm0 = vcmp.eq.f32.partialorder %v1089_v19, 8.507059e+37  ;;  %v1092_v48 = vor.u32 1.1754944e-38, %v1091_v33 }
 0x626   : > { %v1224_v1 = vpop.xlane.xlu1 %1223 }
 0x627   : > { %v4122_v13 = vmax.f32 %v1224_v1, 1e-30 }
 0x628   : > { %v1073_v14 = vpop.xlane.xlu2 %1072 }
 0x629   : > { %v3383_v17 = vpop.eup %3382  ;;  %3384 = vrcp.f32 %v4122_v13  ;;  %v1078_v55 = vmax.f32 %v1073_v14, 1e-30  ;;  %vm1239_vm5 = vweird.f32 %v4122_v13  ;;  %v1243_v57 = vand.u32 2147483647, %v4122_v13 }
 0x62a   : > { %v1081_v10 = vmul.f32 %v3383_v17, %v1077_v9  ;;  %vm1086_vm14 = vweird.f32 %v3383_v17  ;;  %v1245_v12 = vand.u32 2147483648, %v4122_v13 }
 0x62b   : > { %3386 = vrcp.f32 %v1078_v55  ;;  %vm4140_vm2 = vmor %vm1085_vm15, %vm1086_vm14  ;;  %v1104_v50 = vand.u32 2147483647, %v1078_v55  ;;  %v1106_v51 = vand.u32 2147483648, %v1078_v55  ;;  %vm1100_vm8 = vweird.f32 %v1078_v55 }
 0x62c   : > { %v1082_v20 = vsub.f32 1.0, %v1081_v10  ;;  %vm1244_vm15 = vcmp.eq.f32.partialorder %v1243_v57, 8.507059e+37 }
 0x62d   : > { %vm1105_vm11 = vcmp.eq.f32.partialorder %v1104_v50, 8.507059e+37  ;;  %v1107_v0 = vor.u32 1.1754944e-38, %v1106_v51 }
 0x62e   : > { %v1227_v8 = vpop.xlane.xlu0 %1226  ;;  %v1083_v22 = vmul.f32 %v3383_v17, %v1082_v20 }
 0x62f   : > { %v4125_v21 = vpop.eup %3384  ;;  %v4127_v26 = vmax.f32 %v1227_v8, 1e-30 }
 0x630   : > { %v1235_v27 = vmul.f32 %v4125_v21, %v4122_v13  ;;  %v1076_v30 = vpop.xlane.xlu1 %1075  ;;  %v1084_v38 = vadd.f32 %v3383_v17, %v1083_v22  ;;  %vm1240_vm7 = vweird.f32 %v4125_v21 }
 0x631   : > { %3388 = vrcp.f32 %v4127_v26  ;;  %v3387_v31 = vpop.eup %3386  ;;  %v4132_v37 = vmax.f32 %v1076_v30, 1e-30  ;;  %vm4159_vm12 = vmor %vm1239_vm5, %vm1240_vm7  ;;  %v1258_v62 = vand.u32 2147483647, %v4127_v26  ;;  %v1260_v6 = vand.u32 2147483648, %v4127_v26 }
 0x632   : > { %v1236_v36 = vsub.f32 1.0, %v1235_v27  ;;  %v1096_v39 = vmul.f32 %v3387_v31, %v1078_v55  ;;  %v1088_v54 = vsel %vm4140_vm2, %v3383_v17, %v1084_v38  ;;  %vm1101_vm6 = vweird.f32 %v3387_v31 }
 0x633   : > { %3390 = vrcp.f32 %v4132_v37  ;;  %vm1102_vm10 = vmor %vm1100_vm8, %vm1101_vm6  ;;  %v1093_v5 = vsel %vm4136_vm0, %v1092_v48, %v1088_v54  ;;  %v1246_v17 = vor.u32 1.1754944e-38, %v1245_v12  ;;  %vm1254_vm14 = vweird.f32 %v4127_v26 }
 0x634   : > { %v1237_v40 = vmul.f32 %v4125_v21, %v1236_v36  ;;  %v1097_v44 = vsub.f32 1.0, %v1096_v39  ;;  %v1094_v10 = vmul.f32 %v1093_v5, %v4033_v2  ;;  %v1261_v22 = vor.u32 1.1754944e-38, %v1260_v6 }
 0x635   : > { %vm1259_vm2 = vcmp.eq.f32.partialorder %v1258_v62, 8.507059e+37  ;;  %v1121_v43 = vand.u32 2147483648, %v4132_v37  ;;  %vm1115_vm6 = vweird.f32 %v4132_v37 }
 0x636   : > { %v1230_v34 = vpop.xlane.xlu2 %1229  ;;  %v1098_v7 = vmul.f32 %v3387_v31, %v1097_v44  ;;  %v1238_v61 = vadd.f32 %v4125_v21, %v1237_v40  ;;  %v1119_v44 = vand.u32 2147483647, %v4132_v37 }
 0x637   : > { %v3389_v52 = vpop.eup %3388  ;;  %v4147_v56 = vmax.f32 %v1230_v34, 1e-30  ;;  %v1122_v51 = vor.u32 1.1754944e-38, %v1121_v43 }
 0x638   : > { %v1250_v58 = vmul.f32 %v3389_v52, %v4127_v26  ;;  %v1099_v4 = vadd.f32 %v3387_v31, %v1098_v7  ;;  %vm1255_vm13 = vweird.f32 %v3389_v52  ;;  %v1242_v14 = vsel %vm4159_vm12, %v4125_v21, %v1238_v61 }
 0x639   : > { %3392 = vrcp.f32 %v4147_v56  ;;  %v3391_v63 = vpop.eup %3390  ;;  %vm1256_vm0 = vmor %vm1254_vm14, %vm1255_vm13  ;;  %v1247_v30 = vsel %vm1244_vm15, %v1246_v17, %v1242_v14 }
 0x63a   : > { %v1251_v41 = vsub.f32 1.0, %v1250_v58  ;;  %v1103_v46 = vsel %vm1102_vm10, %v3387_v31, %v1099_v4  ;;  %v1111_v49 = vmul.f32 %v3391_v63, %v4132_v37  ;;  %vm1116_vm5 = vweird.f32 %v3391_v63 }
 0x63b   : > { %v1108_v1 = vsel %vm1105_vm11, %v1107_v0, %v1103_v46  ;;  %v1248_v39 = vmul.f32 %v1247_v30, %v4041_v11  ;;  %vm1117_vm7 = vmor %vm1115_vm6, %vm1116_vm5  ;;  %vm1120_vm10 = vcmp.eq.f32.partialorder %v1119_v44, 8.507059e+37  ;;  %v1275_v11 = vand.u32 2147483648, %v4147_v56 }
 0x63c   : > { %v1252_v9 = vmul.f32 %v3389_v52, %v1251_v41  ;;  %v1112_v13 = vsub.f32 1.0, %v1111_v49  ;;  %v1109_v55 = vmul.f32 %v1108_v1, %v4047_v18  ;;  %vm1269_vm11 = vweird.f32 %v4147_v56 }
 0x63d   : > { %v1273_v37 = vand.u32 2147483647, %v4147_v56  ;;  %v1276_v12 = vor.u32 1.1754944e-38, %v1275_v11 }
 0x63e   : > { %v1253_v20 = vadd.f32 %v3389_v52, %v1252_v9  ;;  %v1125_v27 = vpack.c.bf16 %v1109_v55, %v1094_v10  ;;  %v1113_v19 = vmul.f32 %v3391_v63, %v1112_v13 }
 0x63f   : > { %v3393_v8 = vpop.eup %3392  ;;  %vm1274_vm13 = vcmp.eq.f32.partialorder %v1273_v37, 8.507059e+37 }
 0x640   : > { %v1265_v31 = vmul.f32 %v3393_v8, %v4147_v56  ;;  %v1382_v33 = vpop.xlane.xlu2 %1381  ;;  %v1257_v21 = vsel %vm1256_vm0, %v3389_v52, %v1253_v20  ;;  %2988 = vmatmul.msk.bf16.vlgmr.msra.gmra.mxu2 %vm1046_vm9, %v1125_v27  ;;  %v1114_v26 = vadd.f32 %v3391_v63, %v1113_v19  ;;  %vm1270_vm8 = vweird.f32 %v3393_v8 }
 0x641   : > { %v4174_v2 = vmax.f32 %v1382_v33, 1e-30  ;;  %v1284_v18 = vpop.permute.xlu0 %1283  ;;  %v1262_v36 = vsel %vm1259_vm2, %v1261_v22, %v1257_v21  ;;  %vm1271_vm12 = vmor %vm1269_vm11, %vm1270_vm8 }
 0x642   : > { %v1266_v38 = vsub.f32 1.0, %v1265_v31  ;;  %1304 = vmatpush.bf16.msrb.mxu1 %v1284_v18  ;;  %v1263_v40 = vmul.f32 %v1262_v36, %v4054_v23  ;;  %v1118_v50 = vsel %vm1117_vm7, %v3391_v63, %v1114_v26 }
 0x643   : > { %3394 = vrcp.f32 %v4174_v2  ;;  %v1123_v54 = vsel %vm1120_vm10, %v1122_v51, %v1118_v50  ;;  %v1403_v17 = vand.u32 2147483648, %v4174_v2  ;;  %v1401_v13 = vand.u32 2147483647, %v4174_v2 }
 0x644   : > { %v1279_v47 = vpack.c.bf16 %v1263_v40, %v1248_v39  ;;  %v1267_v48 = vmul.f32 %v3393_v8, %v1266_v38  ;;  %v1124_v61 = vmul.f32 %v1123_v54, %v4060_v28 }
 0x645   : > { %v1404_v30 = vor.u32 1.1754944e-38, %v1403_v17  ;;  %vm1402_vm2 = vcmp.eq.f32.partialorder %v1401_v13, 8.507059e+37 }
 0x646   : > { %2992 = vmatmul.msk.bf16.vlgmr.msrb.gmra.mxu1 %vm1046_vm9, %v1279_v47  ;;  %v1268_v34 = vadd.f32 %v3393_v8, %v1267_v48  ;;  %v1126_v0 = vpack.c.bf16 %v1124_v61, %v1124_v61 }
 0x648   : > { %v1442_v23 = vpop.permute.xlu1 %1441  ;;  %v1538_v52 = vpop.xlane.xlu2 %1537  ;;  %v1272_v57 = vsel %vm1271_vm12, %v3393_v8, %v1268_v34 }
 0x649   : > { %v1451_v7 = vsel %vm1135_vm3, %v1442_v23, 0  ;;  %v3395_v58 = vpop.eup %3394  ;;  %v1277_v4 = vsel %vm1274_vm13, %v1276_v12, %v1272_v57  ;;  %v1545_v55 = vmax.f32 %v1538_v52, 1e-30 }
 0x64a   : > { %1459 = vmatpush.bf16.msrb.mxu2 %v1451_v7  ;;  %v1393_v63 = vmul.f32 %v3395_v58, %v4174_v2  ;;  %v1278_v60 = vmul.f32 %v1277_v4, %v4067_v35  ;;  %vm1398_vm14 = vweird.f32 %v3395_v58 }
 0x64b   : > { %v1559_v34 = vand.u32 2147483648, %v1545_v55  ;;  %vm1553_vm10 = vweird.f32 %v1545_v55  ;;  %v1557_v11 = vand.u32 2147483647, %v1545_v55 }
 0x64c   : > { %v1394_v62 = vsub.f32 1.0, %v1393_v63  ;;  %v1280_v6 = vpack.c.bf16 %v1278_v60, %v1278_v60 }
 0x64d   : > { %v1560_v37 = vor.u32 1.1754944e-38, %v1559_v34  ;;  %vm1558_vm13 = vcmp.eq.f32.partialorder %v1557_v11, 8.507059e+37 }
 0x64e   : > { %v1395_v28 = vmul.f32 %v3395_v58, %v1394_v62 }
 0x650   : > { %v1598_v41 = vpop.permute.xlu1 %1597  ;;  %v1385_v5 = vpop.xlane.xlu2 %1384  ;;  %2989 = vmatmul.msk.bf16.gmra.mxu2 %vm1046_vm9, %v1126_v0  ;;  %v1396_v14 = vadd.f32 %v3395_v58, %v1395_v28 }
 0x651   : > { %v1607_v56 = vsel %vm1135_vm3, %v1598_v41, 0  ;;  %v1390_v46 = vmax.f32 %v1385_v5, 1e-30  ;;  %vm1397_vm3 = vweird.f32 %v4174_v2 }
 0x652   : > { %1615 = vmatpush.bf16.msra.mxu1 %v1607_v56  ;;  %vm1399_vm15 = vmor %vm1397_vm3, %vm1398_vm14 }
 0x653   : > { %3396 = vrcp.f32 %v1390_v46  ;;  %v1418_v20 = vand.u32 2147483648, %v1390_v46  ;;  %v1400_v8 = vsel %vm1399_vm15, %v3395_v58, %v1396_v14  ;;  %v1416_v27 = vand.u32 2147483647, %v1390_v46 }
 0x654   : > { %vm1412_vm5 = vweird.f32 %v1390_v46  ;;  %3398 = vrcp.f32 %v1545_v55  ;;  %v1405_v33 = vsel %vm1402_vm2, %v1404_v30, %v1400_v8 }
 0x655   : > { %v1419_v31 = vor.u32 1.1754944e-38, %v1418_v20  ;;  %vm1417_vm7 = vcmp.eq.f32.partialorder %v1416_v27, 8.507059e+37  ;;  %v1406_v2 = vmul.f32 %v1405_v33, %v4075_v25 }
 0x656   : > { %2993 = vmatmul.msk.bf16.gmra.mxu1 %vm1046_vm9, %v1280_v6 }
 0x658   : > { %v1596_v49 = vpop.permute.xlu1 %1595  ;;  %v1440_v9 = vpop.permute.xlu2 %1439 }
 0x659   : > { %v3397_v1 = vpop.eup %3396  ;;  %1460 = vmatpush.bf16.msrb.mxu2 %v1440_v9  ;;  %1616 = vmatpush.bf16.msra.mxu1 %v1596_v49 }
 0x65a   : > { %v1408_v35 = vmul.f32 %v3397_v1, %v1390_v46  ;;  %vm1413_vm0 = vweird.f32 %v3397_v1  ;;  %v3399_v38 = vpop.eup %3398 }
 0x65b   : > { %vm1414_vm6 = vmor %vm1412_vm5, %vm1413_vm0  ;;  %v1549_v39 = vmul.f32 %v3399_v38, %v1545_v55  ;;  %vm1554_vm8 = vweird.f32 %v3399_v38 }
 0x65c   : > { %v1409_v10 = vsub.f32 1.0, %v1408_v35  ;;  %vm1555_vm11 = vmor %vm1553_vm10, %vm1554_vm8 }
 0x65d   : > { %v1550_v44 = vsub.f32 1.0, %v1549_v39 }
 0x65e   : > { %v1410_v22 = vmul.f32 %v3397_v1, %v1409_v10 }
 0x65f   : > { %v1551_v47 = vmul.f32 %v3399_v38, %v1550_v44 }
 0x660   : > { %v1411_v19 = vadd.f32 %v3397_v1, %v1410_v22 }
 0x661   : > { %v1552_v50 = vadd.f32 %v3399_v38, %v1551_v47 }
 0x662   : > { %v1415_v21 = vsel %vm1414_vm6, %v3397_v1, %v1411_v19 }
 0x663   : > { %v1420_v18 = vsel %vm1417_vm7, %v1419_v31, %v1415_v21  ;;  %v1556_v23 = vsel %vm1555_vm11, %v3399_v38, %v1552_v50 }
 0x664   : > { %v1421_v36 = vmul.f32 %v1420_v18, %v4091_v53  ;;  %v1561_v58 = vsel %vm1558_vm13, %v1560_v37, %v1556_v23  ;;  %v3203_v23 = vld [vmem:[%s3737_s25 + $0x18] sm:$0xff]  ;;  %v3200_v37 = vld [vmem:[%s3737_s25] sm:$0xff]  ;;  %vm1666_vm13 = vcmask 261120  }
 0x665   : > { %v1562_v4 = vmul.f32 %v1561_v58, %v4083_v32  ;;  %1718 = vmatpush.bf16.msrb.mxu0 %v3203_v23 }
 0x666   : > { %v1437_v26 = vpack.c.bf16 %v1421_v36, %v1406_v2 }
 0x668   : > { %2996 = vmatmul.msk.bf16.vlgmr.msrb.gmra.mxu2 %vm1046_vm9, %v1437_v26 }
 0x66c   : > { %v1541_v40 = vpop.xlane.xlu0 %1540 }
 0x66d   : > { %v1546_v43 = vmax.f32 %v1541_v40, 1e-30 }
 0x66f   : > { %3400 = vrcp.f32 %v1546_v43  ;;  %v1574_v53 = vand.u32 2147483648, %v1546_v43  ;;  %v1572_v54 = vand.u32 2147483647, %v1546_v43  ;;  %vm1568_vm14 = vweird.f32 %v1546_v43 }
 0x671   : > { %v1575_v57 = vor.u32 1.1754944e-38, %v1574_v53  ;;  %vm1573_vm15 = vcmp.eq.f32.partialorder %v1572_v54, 8.507059e+37  ;;  %v3201_v54 = vld [vmem:[%s3737_s25 + $0x8] sm:$0xff] }
 0x675   : > { %v3401_v48 = vpop.eup %3400 }
 0x676   : > { %v1564_v51 = vmul.f32 %v3401_v48, %v1546_v43  ;;  %vm1569_vm12 = vweird.f32 %v3401_v48 }
 0x677   : > { %vm1570_vm3 = vmor %vm1568_vm14, %vm1569_vm12  ;;  %vm1670_vm14 = vcmask 392192  }
 0x678   : > { %v1565_v25 = vsub.f32 1.0, %v1564_v51 }
 0x67a   : > { %v1566_v52 = vmul.f32 %v3401_v48, %v1565_v25 }
 0x67c   : > { %v1567_v7 = vadd.f32 %v3401_v48, %v1566_v52  ;;  %v3202_v52 = vld [vmem:[%s3737_s25 + $0x10] sm:$0xff] }
 0x67d   : > { %1719 = vmatpush.bf16.msrb.mxu0 %v3202_v52 }
 0x67e   : > { %v1571_v61 = vsel %vm1570_vm3, %v3401_v48, %v1567_v7  ;;  %v524_v7 = vld [vmem:[%s3712_s26] sm:$0xff] }
 0x67f   : > { %v1576_v12 = vsel %vm1573_vm15, %v1575_v57, %v1571_v61 }
 0x680   : > { %v1577_v63 = vmul.f32 %v1576_v12, %v4104_v59  ;;  %v525_v12 = vld [vmem:[%s3712_s26 + $0x8] sm:$0xff] }
 0x681   : > { %1720 = vmatpush.bf16.msrb.mxu0 %v3201_v54  ;;  %vm1740_vm12 = vcmp.gt.f32.partialorder %v525_v12, 0.0  ;;  %v3052_v12 = vld [vmem:[%s4671_s4 + $0x30] sm:$0xff] }
 0x682   : > { %v1593_v0 = vpack.c.bf16 %v1577_v63, %v1562_v4 }
 0x683   : > { %v1388_v41 = vpop.xlane.xlu1 %1387 }
 0x684   : > { %v1391_v5 = vmax.f32 %v1388_v41, 1e-30  ;;  %3000 = vmatmul.msk.bf16.vlgmr.msra.gmra.mxu1 %vm1046_vm9, %v1593_v0  ;;  %v1743_v0 = vsel %vm1740_vm12, 1, %v3565_v45 }
 0x685   : > { %1721 = vmatpush.bf16.msrb.mxu0 %v3200_v37 }
 0x686   : > { %3402 = vrcp.f32 %v1391_v5  ;;  %v1433_v62 = vand.u32 2147483648, %v1391_v5  ;;  %v1431_v49 = vand.u32 2147483647, %v1391_v5  ;;  %vm1427_vm2 = vweird.f32 %v1391_v5 }
 0x688   : > { %v1434_v32 = vor.u32 1.1754944e-38, %v1433_v62  ;;  %vm1432_vm6 = vcmp.eq.f32.partialorder %v1431_v49, 8.507059e+37 }
 0x68c   : > { %v3403_v60 = vpop.eup %3402 }
 0x68d   : > { %v1423_v56 = vmul.f32 %v3403_v60, %v1391_v5  ;;  %vm1428_vm0 = vweird.f32 %v3403_v60 }
 0x68e   : > { %vm1429_vm5 = vmor %vm1427_vm2, %vm1428_vm0 }
 0x68f   : > { %v1424_v46 = vsub.f32 1.0, %v1423_v56 }
 0x691   : > { %v1544_v6 = vpop.xlane.xlu2 %1543  ;;  %v1425_v28 = vmul.f32 %v3403_v60, %v1424_v46 }
 0x692   : > { %v1547_v9 = vmax.f32 %v1544_v6, 1e-30 }
 0x693   : > { %v1426_v1 = vadd.f32 %v3403_v60, %v1425_v28 }
 0x694   : > { %3404 = vrcp.f32 %v1547_v9  ;;  %v1589_v20 = vand.u32 2147483648, %v1547_v9  ;;  %v1587_v22 = vand.u32 2147483647, %v1547_v9  ;;  %vm1583_vm8 = vweird.f32 %v1547_v9 }
 0x695   : > { %v1430_v59 = vsel %vm1429_vm5, %v3403_v60, %v1426_v1  ;;  %v526_v60 = vld [vmem:[%s3712_s26 + $0x10] sm:$0xff] }
 0x696   : > { %v1435_v14 = vsel %vm1432_vm6, %v1434_v32, %v1430_v59  ;;  %v1590_v30 = vor.u32 1.1754944e-38, %v1589_v20  ;;  %vm1588_vm11 = vcmp.eq.f32.partialorder %v1587_v22, 8.507059e+37  ;;  %vm1741_vm3 = vcmp.gt.f32.partialorder %v526_v60, 0.0  ;;  %v3207_v60 = vld [vmem:[%s3722_s28 + $0x58] sm:$0xff] }
 0x697   : > { %v1436_v35 = vmul.f32 %v1435_v14, %v4112_v16  ;;  %v1744_v49 = vsel %vm1741_vm3, 1, %v3565_v45  ;;  %1880 = vmatpush.bf16.msra.mxu2 %v3207_v60 }
 0x699   : > { %v1438_v17 = vpack.c.bf16 %v1436_v35, %v1436_v35 }
 0x69a   : > { %v3405_v13 = vpop.eup %3404 }
 0x69b   : > { %v1579_v10 = vmul.f32 %v3405_v13, %v1547_v9  ;;  %2997 = vmatmul.msk.bf16.gmra.mxu2 %vm1046_vm9, %v1438_v17  ;;  %vm1584_vm7 = vweird.f32 %v3405_v13 }
 0x69c   : > { %vm1585_vm10 = vmor %vm1583_vm8, %vm1584_vm7 }
 0x69d   : > { %v1580_v55 = vsub.f32 1.0, %v1579_v10 }
 0x69f   : > { %v1581_v8 = vmul.f32 %v3405_v13, %v1580_v55 }
 0x6a1   : > { %v1582_v27 = vadd.f32 %v3405_v13, %v1581_v8  ;;  %v3460_v8 = vld [vmem:[%s3717_s10] sm:$0xff] }
 0x6a2   : > { %v1735_v22 = vperm.slane %v3460_v8, 7  ;;  %v4301_v8 = vld [vmem:[%s3717_s10 + $0x10] sm:$0xff] }
 0x6a3   : > { %v1586_v19 = vsel %vm1585_vm10, %v3405_v13, %v1582_v27 }
 0x6a4   : > { %v1591_v31 = vsel %vm1588_vm11, %v1590_v30, %v1586_v19 }
 0x6a5   : > { %v1592_v33 = vmul.f32 %v1591_v31, %v4118_v42 }
 0x6a7   : > { %v1594_v16 = vpack.c.bf16 %v1592_v33, %v1592_v33 }
 0x6a9   : > { %3001 = vmatmul.msk.bf16.gmra.mxu1 %vm1046_vm9, %v1594_v16  ;;  %vm1739_vm9 = vcmp.gt.f32.partialorder %v524_v7, 0.0  ;;  %v1976_v7 = vld [vmem:[%s4671_s4 + $0x8] sm:$0xff] }
 0x6aa   : > { %v1742_v57 = vsel %vm1739_vm9, 1, %v3565_v45 }
 0x6c3   : > { %v1306_v21 = vpop.f32.mrf.mxu1  ;;  %v1148_v18 = vpop.f32.mrf.mxu2 }
 0x6cb   : > { %v1308_v2 = vpop.f32.mrf.mxu1  ;;  %v1150_v36 = vpop.f32.mrf.mxu2 }
 0x6cc   : > { %v3314_v26 = vpack.i.bf16 %v1308_v2, %v1306_v21 }
 0x6ce   : > { %3315 = vrot.lane.b32.xlu0 %v3314_v26, %s3561_s16 }
 0x6d3   : > { %v1311_v38 = vpop.f32.mrf.mxu1  ;;  %v1153_v39 = vpop.f32.mrf.mxu2 }
 0x6db   : > { %v1313_v40 = vpop.f32.mrf.mxu1  ;;  %v1155_v43 = vpop.f32.mrf.mxu2 }
 0x6eb   : > { %v1462_v44 = vpop.f32.mrf.mxu2 }
 0x6f3   : > { %v1464_v47 = vpop.f32.mrf.mxu2 }
 0x6f4   : > { %v3319_v48 = vpack.i.bf16 %v1464_v47, %v1462_v44 }
 0x6f6   : > { %3320 = vrot.lane.b32.xlu0 %v3319_v48, %s3562_s18 }
 0x6fe   : > { %1634 = vrot.lane.b32.xlu0 %v1311_v38, %s3561_s16  ;;  %s3481_s16 = scalar_lea.hbm %s4726_s23, 48 }
 0x701   : > { %v1618_v42 = vpop.f32.mrf.mxu1 }
 0x709   : > { %v1620_v50 = vpop.f32.mrf.mxu1 }
 0x70a   : > { %v3324_v51 = vpack.i.bf16 %v1620_v50, %v1618_v42 }
 0x70c   : > { %3325 = vrot.lane.b32.xlu1 %v3324_v51, %s3560_s14 }
 0x714   : > { %1749 = vperm.xlu1 %3330, %v1743_v0   ;;  %v3055_v0 = vld [vmem:[%s4671_s4 + $0x48] sm:$0xff] }
 0x71e   : > { %v1467_v34 = vpop.f32.mrf.mxu2 }
 0x71f   : > { %1646 = vrot.lane.b32.xlu2 %v1467_v34, %s3562_s18 }
 0x726   : > { %v1469_v11 = vpop.f32.mrf.mxu2  ;;  %v1623_v25 = vpop.f32.mrf.mxu1 }
 0x727   : > { %1658 = vrot.lane.b32.xlu0 %v1623_v25, %s3560_s14  ;;  %1752 = vperm.xlu2 %3331, %v1744_v49   ;;  %v3204_v49 = vld [vmem:[%s3722_s28 + $0x40] sm:$0xff] }
 0x72e   : > { %v1625_v53 = vpop.f32.mrf.mxu1 }
 0x72f   : > { %1746 = vperm.xlu0 %3329, %v1742_v57  }
 0x740   : > { %v3316_v58 = vpop.permute.xlu0 %3315 }
 0x741   : > { %v3317_v4 = vunpack.i.l.bf16 %v3316_v58  ;;  %v3318_v63 = vunpack.i.h.bf16 %v3316_v58 }
 0x743   : > { %v1663_v56 = vsel %vm1009_vm4, %v1148_v18, %v3317_v4  ;;  %v1664_v62 = vsel %vm1009_vm4, %v1150_v36, %v3318_v63  ;;  %v3050_v4 = vld [vmem:[%s4671_s4 + $0x20] sm:$0xff]  ;;  %v3056_v63 = vld [vmem:[%s4671_s4 + $0x50] sm:$0xff] }
 0x768   : > { %v3321_v61 = vpop.permute.xlu0 %3320 }
 0x769   : > { %v3323_v41 = vunpack.i.h.bf16 %v3321_v61  ;;  %v3322_v5 = vunpack.i.l.bf16 %v3321_v61  ;;  %v1975_v61 = vld [vmem:[%s4671_s4] sm:$0xff] }
 0x76b   : > { %v1667_v9 = vsel %vm1666_vm13, %v1663_v56, %v3322_v5  ;;  %v1668_v1 = vsel %vm1666_vm13, %v1664_v62, %v3323_v41  ;;  %v3049_v41 = vld [vmem:[%s4671_s4 + $0x18] sm:$0xff]  ;;  %v3206_v56 = vld [vmem:[%s3722_s28 + $0x50] sm:$0xff]  ;;  %v3205_v62 = vld [vmem:[%s3722_s28 + $0x48] sm:$0xff] }
 0x76c   : > { %v3053_v5 = vld [vmem:[%s4671_s4 + $0x38] sm:$0xff]  ;;  %1881 = vmatpush.bf16.msra.mxu2 %v3206_v56 }
 0x770   : > { %v1635_v35 = vpop.permute.xlu0 %1634  ;;  %1882 = vmatpush.bf16.msra.mxu2 %v3205_v62 }
 0x771   : > { %v1665_v13 = vsel %vm1009_vm4, %v1153_v39, %v1635_v35 }
 0x774   : > { %1883 = vmatpush.bf16.msra.mxu2 %v3204_v49 }
 0x779   : > { %v1647_v17 = vpop.permute.xlu2 %1646 }
 0x77a   : > { %v1669_v10 = vsel %vm1666_vm13, %v1665_v13, %v1647_v17 }
 0x77e   : > { %v3326_v46 = vpop.permute.xlu1 %3325 }
 0x77f   : > { %v3328_v6 = vunpack.i.h.bf16 %v3326_v46  ;;  %v3327_v28 = vunpack.i.l.bf16 %v3326_v46 }
 0x781   : > { %v1671_v32 = vsel %vm1670_vm14, %v1667_v9, %v3327_v28  ;;  %v1672_v59 = vsel %vm1670_vm14, %v1668_v1, %v3328_v6 }
 0x782   : > { %v1682_v14 = vpack.c.bf16 %v1672_v59, %v1671_v32 }
 0x784   : > { %3018 = vmatmul.msk.bf16.vlgmr.msrb.gmra.mxu0 %vm541_vm1, %v1682_v14 }
 0x786   : > { %v1750_v21 = vpop.permute.xlu1 %1749 }
 0x787   : > { %vm1755_vm4 = vcmp.eq.s32.totalorder %v1750_v21, 1 }
 0x799   : > { %v1659_v45 = vpop.permute.xlu0 %1658 }
 0x79a   : > { %v1673_v55 = vsel %vm1670_vm14, %v1669_v10, %v1659_v45 }
 0x79b   : > { %v1683_v20 = vpack.c.bf16 %v1673_v55, %v1673_v55 }
 0x79d   : > { %3019 = vmatmul.msk.bf16.gmra.mxu0 %vm541_vm1, %v1683_v20 }
 0x7a1   : > { %v1747_v27 = vpop.permute.xlu0 %1746 }
 0x7a2   : > { %vm1754_vm15 = vcmp.eq.s32.totalorder %v1747_v27, 1 }
 0x801   : > { %v1723_v30 = vpop.f32.mrf.mxu0 }
 0x802   : > { %v1732_v19 = vadd.f32 %v1723_v30, %v3801_v24  ;;  %v1753_v24 = vpop.permute.xlu2 %1752 }
 0x803   : > { %vm1756_vm0 = vcmp.eq.s32.totalorder %v1753_v24, 1 }
 0x804   : > { %v1736_v31 = vadd.f32 %v1735_v22, %v1732_v19 }
 0x806   : > { %v4235_v33 = vsel %vm1754_vm15, %v1736_v31, 0.0 }
 0x807   : > { %v1760_v16 = vsel %vm541_vm1, %v4235_v33, 0.0 }
 0x808   : > { %1761 = vadd.xlane.f32.xlu1 %v1760_v16  ;;  %v1826_v16 = vperm.slane %v4301_v8, 0 }
 0x809   : > { %v1725_v18 = vpop.f32.mrf.mxu0 }
 0x80a   : > { %v1733_v2 = vadd.f32 %v1725_v18, %v3806_v29 }
 0x80c   : > { %v1737_v36 = vadd.f32 %v1735_v22, %v1733_v2 }
 0x80e   : > { %v4240_v26 = vsel %vm1755_vm4, %v1737_v36, 0.0 }
 0x80f   : > { %v1763_v38 = vsel %vm541_vm1, %v4240_v26, 0.0 }
 0x810   : > { %1764 = vadd.xlane.f32.xlu0 %v1763_v38  ;;  %v1830_v38 = vperm.slane %v4301_v8, 1 }
 0x81a   : > { %v1728_v39 = vpop.f32.mrf.mxu0 }
 0x81b   : > { %v1734_v40 = vadd.f32 %v1728_v39, %v3811_v3 }
 0x81d   : > { %v1738_v43 = vadd.f32 %v1735_v22, %v1734_v40 }
 0x81f   : > { %v4245_v44 = vsel %vm1756_vm0, %v1738_v43, 0.0 }
 0x820   : > { %v1766_v47 = vsel %vm541_vm1, %v4245_v44, 0.0 }
 0x821   : > { %1767 = vadd.xlane.f32.xlu2 %v1766_v47 }
 0x822   : > { %v1730_v29 = vpop.f32.mrf.mxu0 }
 0x87b   : > { %v1762_v48 = vpop.xlane.xlu1 %1761 }
 0x87c   : > { %v1769_v42 = vmul.f32 %v1762_v48, %v3760_v15 }
 0x87e   : > { %v4251_v50 = vsub.f32 %v4235_v33, %v1769_v42 }
 0x880   : > { %v1775_v51 = vmul.f32 %v4251_v50, %v4251_v50 }
 0x882   : > { %v1778_v3 = vsel %vm541_vm1, %v1775_v51, 0.0 }
 0x883   : > { %1779 = vadd.xlane.f32.xlu1 %v1778_v3  ;;  %v1765_v34 = vpop.xlane.xlu0 %1764 }
 0x884   : > { %v1770_v11 = vmul.f32 %v1765_v34, %v3760_v15 }
 0x886   : > { %v4258_v25 = vsub.f32 %v4240_v26, %v1770_v11 }
 0x888   : > { %v1776_v53 = vmul.f32 %v4258_v25, %v4258_v25 }
 0x88a   : > { %v1781_v23 = vsel %vm541_vm1, %v1776_v53, 0.0 }
 0x88b   : > { %1782 = vadd.xlane.f32.xlu0 %v1781_v23 }
 0x894   : > { %v1768_v52 = vpop.xlane.xlu2 %1767 }
 0x895   : > { %v1771_v54 = vmul.f32 %v1768_v52, %v3760_v15 }
 0x897   : > { %v4265_v37 = vsub.f32 %v4245_v44, %v1771_v54  ;;  %v1845_v54 = vperm.slane %v4301_v8, 2 }
 0x899   : > { %v1777_v57 = vmul.f32 %v4265_v37, %v4265_v37 }
 0x89b   : > { %v1784_v58 = vsel %vm541_vm1, %v1777_v57, 0.0 }
 0x89c   : > { %1985 = vperm.xlu1 %3330, %v1976_v7   ;;  %1785 = vadd.xlane.f32.xlu2 %v1784_v58 }
 0x89f   : > { %1980 = vperm.xlu0 %3329, %v1975_v61  }
 0x8a4   : > { %2052 = vperm.xlu1 %3330, %v3052_v12  }
 0x8a7   : > { %2021 = vperm.xlu0 %3329, %v3050_v4  }
 0x8ac   : > { %2086 = vperm.xlu1 %3330, %v3056_v63  }
 0x8af   : > { %2081 = vperm.xlu0 %3329, %v3055_v0  }
 0x8b4   : > { %2016 = vperm.xlu2 %3331, %v3049_v41  }
 0x8bc   : > { %2057 = vperm.xlu2 %3331, %v3053_v5  }
 0x8f6   : > { %v1780_v46 = vpop.xlane.xlu1 %1779 }
 0x8f7   : > { %v1787_v6 = vmul.f32 %v1780_v46, %v3760_v15 }
 0x8f9   : > { %v1790_v28 = vadd.f32 1e-05, %v1787_v6 }
 0x8fb   : > { %3406 = vrsqrt.f32 %v1790_v28  ;;  %vm1799_vm5 = vweird.f32 %v1790_v28 }
 0x8fe   : > { %v1783_v9 = vpop.xlane.xlu0 %1782 }
 0x8ff   : > { %v1788_v1 = vmul.f32 %v1783_v9, %v3760_v15 }
 0x901   : > { %v3407_v32 = vpop.eup %3406  ;;  %v1791_v59 = vadd.f32 1e-05, %v1788_v1 }
 0x902   : > { %v1794_v14 = vmul.f32 %v3407_v32, %v1790_v28  ;;  %vm1800_vm2 = vweird.f32 %v3407_v32 }
 0x903   : > { %3408 = vrsqrt.f32 %v1791_v59  ;;  %vm1801_vm6 = vmor %vm1799_vm5, %vm1800_vm2  ;;  %vm1809_vm8 = vweird.f32 %v1791_v59 }
 0x904   : > { %v1795_v35 = vmul.f32 %v3407_v32, %v1794_v14 }
 0x906   : > { %v1796_v17 = vmul.f32 0.5, %v1795_v35 }
 0x908   : > { %v1797_v13 = vsub.f32 1.5, %v1796_v17 }
 0x909   : > { %v3409_v10 = vpop.eup %3408 }
 0x90a   : > { %v1798_v45 = vmul.f32 %v3407_v32, %v1797_v13  ;;  %v1804_v55 = vmul.f32 %v3409_v10, %v1791_v59  ;;  %vm1810_vm7 = vweird.f32 %v3409_v10 }
 0x90b   : > { %vm1811_vm10 = vmor %vm1809_vm8, %vm1810_vm7 }
 0x90c   : > { %v1805_v20 = vmul.f32 %v3409_v10, %v1804_v55  ;;  %v1802_v22 = vsel %vm1801_vm6, %v3407_v32, %v1798_v45 }
 0x90d   : > { %v1823_v21 = vmul.f32 %v1802_v22, %v4251_v50 }
 0x90e   : > { %v1806_v27 = vmul.f32 0.5, %v1805_v20 }
 0x90f   : > { %v1786_v30 = vpop.xlane.xlu2 %1785  ;;  %v1827_v24 = vmul.f32 %v1826_v16, %v1823_v21 }
 0x910   : > { %v1807_v19 = vsub.f32 1.5, %v1806_v27  ;;  %v1789_v31 = vmul.f32 %v1786_v30, %v3760_v15 }
 0x911   : > { %v1831_v43 = vadd.f32 %v1830_v38, %v1827_v24 }
 0x912   : > { %v1808_v18 = vmul.f32 %v3409_v10, %v1807_v19  ;;  %v1792_v2 = vadd.f32 1e-05, %v1789_v31  ;;  %v3061_v31 = vld [vmem:[%s4671_s4 + $0x78] sm:$0xff] }
 0x914   : > { %v1812_v36 = vsel %vm1811_vm10, %v3409_v10, %v1808_v18  ;;  %3410 = vrsqrt.f32 %v1792_v2  ;;  %vm1819_vm9 = vweird.f32 %v1792_v2 }
 0x915   : > { %v1824_v39 = vmul.f32 %v1812_v36, %v4258_v25 }
 0x917   : > { %v1828_v40 = vmul.f32 %v1826_v16, %v1824_v39 }
 0x919   : > { %v1832_v47 = vadd.f32 %v1830_v38, %v1828_v40  ;;  %v3059_v40 = vld [vmem:[%s4671_s4 + $0x68] sm:$0xff] }
 0x91a   : > { %v3411_v29 = vpop.eup %3410 }
 0x91b   : > { %v1814_v48 = vmul.f32 %v3411_v29, %v1792_v2  ;;  %v1843_v42 = vpack.c.bf16 %v1832_v47, %v1831_v43  ;;  %vm1820_vm11 = vweird.f32 %v3411_v29  ;;  %v3065_v43 = vld [vmem:[%s4671_s4 + $0x98] sm:$0xff] }
 0x91c   : > { %vm1821_vm12 = vmor %vm1819_vm9, %vm1820_vm11 }
 0x91d   : > { %v1815_v51 = vmul.f32 %v3411_v29, %v1814_v48  ;;  %3044 = vmatmul.msk.bf16.vlgmr.msra.gmra.mxu2 %vm541_vm1, %v1843_v42 }
 0x91f   : > { %v1816_v50 = vmul.f32 0.5, %v1815_v51  ;;  %v3064_v51 = vld [vmem:[%s4671_s4 + $0x90] sm:$0xff] }
 0x921   : > { %v1817_v3 = vsub.f32 1.5, %v1816_v50  ;;  %v3054_v50 = vld [vmem:[%s4671_s4 + $0x40] sm:$0xff] }
 0x923   : > { %v1818_v34 = vmul.f32 %v3411_v29, %v1817_v3  ;;  %v3058_v3 = vld [vmem:[%s4671_s4 + $0x60] sm:$0xff] }
 0x925   : > { %v1822_v11 = vsel %vm1821_vm12, %v3411_v29, %v1818_v34  ;;  %v3051_v34 = vld [vmem:[%s4671_s4 + $0x28] sm:$0xff] }
 0x926   : > { %v1825_v53 = vmul.f32 %v1822_v11, %v4265_v37  ;;  %v3063_v11 = vld [vmem:[%s4671_s4 + $0x88] sm:$0xff] }
 0x928   : > { %v1829_v23 = vmul.f32 %v1826_v16, %v1825_v53  ;;  %v3062_v53 = vld [vmem:[%s4671_s4 + $0x80] sm:$0xff] }
 0x92a   : > { %v1833_v25 = vadd.f32 %v1830_v38, %v1829_v23  ;;  %v3060_v23 = vld [vmem:[%s4671_s4 + $0x70] sm:$0xff] }
 0x92c   : > { %v1844_v52 = vpack.c.bf16 %v1833_v25, %v1833_v25  ;;  %v1977_v25 = vld [vmem:[%s4671_s4 + $0x10] sm:$0xff] }
 0x92e   : > { %3045 = vmatmul.msk.bf16.gmra.mxu2 %vm541_vm1, %v1844_v52  ;;  %v3057_v52 = vld [vmem:[%s4671_s4 + $0x58] sm:$0xff] }
 0x9a0   : > { %v1885_v7 = vpop.f32.mrf.mxu2 }
 0x9a1   : > { %v4312_v57 = vadd.f32 %v1885_v7, %v1845_v54  ;;  %v1986_v7 = vpop.permute.xlu1 %1985 }
 0x9a3   : > { %v3046_v58 = vmul.f32 -1.442695, %v4312_v57 }
 0x9a5   : > { %3412 = vpow2.f32 %v3046_v58  ;;  %v2017_v58 = vpop.permute.xlu2 %2016 }
 0x9a8   : > { %v1887_v61 = vpop.f32.mrf.mxu2 }
 0x9a9   : > { %v4315_v12 = vadd.f32 %v1887_v61, %v1845_v54  ;;  %v1981_v61 = vpop.permute.xlu0 %1980 }
 0x9ab   : > { %v3413_v4 = vpop.eup %3412  ;;  %v3047_v63 = vmul.f32 -1.442695, %v4315_v12 }
 0x9ac   : > { %v1903_v37 = vadd.f32 1.0, %v3413_v4  ;;  %v2053_v4 = vpop.permute.xlu1 %2052 }
 0x9ad   : > { %3414 = vpow2.f32 %v3047_v63  ;;  %v4363_v63 = vpop.permute.xlu2 %2057 }
 0x9ae   : > { %3416 = vrcp.f32 %v1903_v37  ;;  %v1917_v28 = vand.u32 2147483648, %v1903_v37  ;;  %v1915_v1 = vand.u32 2147483647, %v1903_v37  ;;  %vm1911_vm14 = vweird.f32 %v1903_v37 }
 0x9b0   : > { %v1918_v14 = vor.u32 1.1754944e-38, %v1917_v28  ;;  %vm1916_vm15 = vcmp.eq.f32.partialorder %v1915_v1, 8.507059e+37 }
 0x9b1   : > { %v1890_v0 = vpop.f32.mrf.mxu2 }
 0x9b2   : > { %v4318_v41 = vadd.f32 %v1890_v0, %v1845_v54  ;;  %v3066_v54 = vld [vmem:[%s4671_s4 + $0xa0] sm:$0xff] }
 0x9b3   : > { %v3415_v5 = vpop.eup %3414 }
 0x9b4   : > { %v3417_v60 = vpop.eup %3416  ;;  %v1904_v56 = vadd.f32 1.0, %v3415_v5  ;;  %v3048_v46 = vmul.f32 -1.442695, %v4318_v41  ;;  %v4367_v0 = vpop.permute.xlu1 %2086 }
 0x9b5   : > { %v1907_v62 = vmul.f32 %v3417_v60, %v1903_v37  ;;  %vm1912_vm13 = vweird.f32 %v3417_v60  ;;  %v4365_v37 = vpop.permute.xlu0 %2021 }
 0x9b6   : > { %3418 = vrcp.f32 %v1904_v56  ;;  %vm1913_vm3 = vmor %vm1911_vm14, %vm1912_vm13  ;;  %v1932_v20 = vand.u32 2147483648, %v1904_v56  ;;  %v1930_v27 = vand.u32 2147483647, %v1904_v56  ;;  %vm1926_vm0 = vweird.f32 %v1904_v56 }
 0x9b7   : > { %3420 = vpow2.f32 %v3048_v46  ;;  %v1908_v6 = vsub.f32 1.0, %v1907_v62 }
 0x9b8   : > { %v1933_v19 = vor.u32 1.1754944e-38, %v1932_v20  ;;  %vm1931_vm5 = vcmp.eq.f32.partialorder %v1930_v27, 8.507059e+37 }
 0x9b9   : > { %v1892_v49 = vpop.f32.mrf.mxu2  ;;  %v1909_v9 = vmul.f32 %v3417_v60, %v1908_v6 }
 0x9bb   : > { %v1910_v32 = vadd.f32 %v3417_v60, %v1909_v9 }
 0x9bc   : > { %v3419_v59 = vpop.eup %3418 }
 0x9bd   : > { %v3421_v35 = vpop.eup %3420  ;;  %v1914_v17 = vsel %vm1913_vm3, %v3417_v60, %v1910_v32  ;;  %v1922_v13 = vmul.f32 %v3419_v59, %v1904_v56  ;;  %vm1927_vm4 = vweird.f32 %v3419_v59  ;;  %v1969_v60 = vlaneseq  ;;  %v2082_v62 = vpop.permute.xlu0 %2081 }
 0x9be   : > { %v1905_v10 = vadd.f32 1.0, %v3421_v35  ;;  %v1919_v45 = vsel %vm1916_vm15, %v1918_v14, %v1914_v17  ;;  %vm1928_vm2 = vmor %vm1926_vm0, %vm1927_vm4 }
 0x9bf   : > { %1954 = vrot.lane.b32.xlu1 %v1919_v45, %s3558_s2  ;;  %v1923_v55 = vsub.f32 1.0, %v1922_v13  ;;  %v4369_v56 = vshrl.u32 %v1969_v60, 7  ;;  %v3210_v60 = vld [vmem:[%s3737_s25 + $0x30] sm:$0xff] }
 0x9c0   : > { %3422 = vrcp.f32 %v1905_v10  ;;  %v1947_v38 = vand.u32 2147483648, %v1905_v10  ;;  %v1945_v39 = vand.u32 2147483647, %v1905_v10  ;;  %vm1941_vm7 = vweird.f32 %v1905_v10 }
 0x9c1   : > { %v1924_v22 = vmul.f32 %v3419_v59, %v1923_v55  ;;  %vm1971_vm11 = vcmp.lt.s32.totalorder %v4369_v56, 3  ;;  %vm2006_vm9 = vcmp.lt.s32.totalorder %v4369_v56, 2  ;;  %vm2042_vm12 = vcmp.lt.s32.totalorder %v4369_v56, 1 }
 0x9c2   : > { %v1948_v29 = vor.u32 1.1754944e-38, %v1947_v38  ;;  %vm1946_vm10 = vcmp.eq.f32.partialorder %v1945_v39, 8.507059e+37  ;;  %vm2107_vm13 = vcmp.lt.s32.totalorder %v4369_v56, 7  ;;  %vm2143_vm14 = vcmp.lt.s32.totalorder %v4369_v56, 6 }
 0x9c3   : > { %v1925_v30 = vadd.f32 %v3419_v59, %v1924_v22  ;;  %vm2179_vm3 = vcmp.lt.s32.totalorder %v4369_v56, 5 }
 0x9c5   : > { %v1929_v16 = vsel %vm1928_vm2, %v3419_v59, %v1925_v30  ;;  %v4384_v59 = vld [vmem:[%s3717_s10 + $0x20] sm:$0xff]  ;;  %v523_v30 = vld [vmem:[%s3717_s10 + $0x30] sm:$0xf]  ;;  %s4724_s10 = sld [smem:[#allocation6_spill]] }
 0x9c6   : > { %v3423_v21 = vpop.eup %3422  ;;  %v1934_v18 = vsel %vm1931_vm5, %v1933_v19, %v1929_v16  ;;  %v4397_v45 = vperm.slane %v4384_v59, 5  ;;  %v4400_v55 = vperm.slane %v4384_v59, 6 }
 0x9c7   : > { %1956 = vrot.lane.b32.xlu0 %v1934_v18, %s3558_s2  ;;  %2153 = vperm.xlu1 %3330, %v3061_v31   ;;  %v1937_v2 = vmul.f32 %v3423_v21, %v1905_v10  ;;  %vm1942_vm6 = vweird.f32 %v3423_v21 }
 0x9c8   : > { %vm1943_vm8 = vmor %vm1941_vm7, %vm1942_vm6 }
 0x9c9   : > { %v1938_v36 = vsub.f32 1.0, %v1937_v2 }
 0x9cb   : > { %v1939_v24 = vmul.f32 %v3423_v21, %v1938_v36 }
 0x9cd   : > { %v1940_v47 = vadd.f32 %v3423_v21, %v1939_v24  ;;  %v4424_v24 = vperm.slane %v523_v30, 0 }
 0x9cf   : > { %2122 = vperm.xlu0 %3329, %v3059_v40   ;;  %2194 = vperm.xlu1 %3330, %v3065_v43   ;;  %v1944_v48 = vsel %vm1943_vm8, %v3423_v21, %v1940_v47  ;;  %v4428_v40 = vperm.slane %v4384_v59, 7 }
 0x9d0   : > { %v1949_v42 = vsel %vm1946_vm10, %v1948_v29, %v1944_v48  ;;  %v4431_v29 = vperm.slane %v523_v30, 1 }
 0x9d1   : > { %1958 = vrot.lane.b32.xlu2 %v1949_v42, %s3558_s2 }
 0x9d7   : > { %2189 = vperm.xlu0 %3329, %v3064_v51   ;;  %2062 = vperm.xlu1 %3330, %v3054_v50  }
 0x9d9   : > { %2117 = vperm.xlu2 %3331, %v3058_v3  }
 0x9df   : > { %2026 = vperm.xlu0 %3329, %v3051_v34   ;;  %2163 = vperm.xlu1 %3330, %v3063_v11  }
 0x9e1   : > { %2158 = vperm.xlu2 %3331, %v3062_v53  }
 0x9e7   : > { %2127 = vperm.xlu0 %3329, %v3060_v23   ;;  %v3211_v23 = vld [vmem:[%s3737_s25 + $0x38] sm:$0xff] }
 0x9e8   : > { %2330 = vmatpush.bf16.msrb.mxu3 %v3211_v23 }
 0x9e9   : > { %1990 = vperm.xlu2 %3331, %v1977_v25  }
 0x9ec   : > { %2331 = vmatpush.bf16.msrb.mxu3 %v3210_v60 }
 0x9f1   : > { %2091 = vperm.xlu2 %3331, %v3057_v52  }
 0x9f9   : > { %2199 = vperm.xlu2 %3331, %v3066_v54  }
 0xa2b   : > { %v1959_v5 = vpop.permute.xlu2 %1958 }
 0xa2c   : > { %v4372_v46 = vmul.f32 %v1959_v5, %v4318_v41 }
 0xa2e   : > { %v1968_v1 = vrot.slane %v4372_v46, 5  ;;  %v2005_v41 = vrot.slane %v4372_v46, 6  ;;  %v2041_v27 = vrot.slane %v4372_v46, 7 }
 0xa31   : > { %v1955_v6 = vpop.permute.xlu1 %1954 }
 0xa32   : > { %v4375_v28 = vmul.f32 %v1955_v6, %v4312_v57 }
 0xa33   : > { %v2118_v49 = vpop.permute.xlu2 %2117 }
 0xa34   : > { %v1966_v9 = vrot.slane %v4375_v28, 5  ;;  %v2003_v32 = vrot.slane %v4375_v28, 6  ;;  %v2039_v35 = vrot.slane %v4375_v28, 7  ;;  %v2104_v31 = vrot.slane %v4375_v28, 1 }
 0xa35   : > { %v2094_v51 = vmul.f32 %v2082_v62, %v4375_v28  ;;  %v2140_v50 = vrot.slane %v4375_v28, 2 }
 0xa36   : > { %v1974_v57 = vsel %vm1971_vm11, %v1968_v1, %v1966_v9  ;;  %v2009_v14 = vsel %vm2006_vm9, %v2005_v41, %v2003_v32  ;;  %v2045_v18 = vsel %vm2042_vm12, %v2041_v27, %v2039_v35 }
 0xa37   : > { %v1993_v10 = vmul.f32 %v1981_v61, %v1974_v57  ;;  %v2029_v20 = vmul.f32 %v2017_v58, %v2009_v14  ;;  %v2065_v43 = vmul.f32 %v2053_v4, %v2045_v18  ;;  %v2106_v61 = vrot.slane %v4372_v46, 1 }
 0xa38   : > { %v2098_v5 = vmul.f32 %v4424_v24, %v2094_v51 }
 0xa39   : > { %v2154_v17 = vpop.permute.xlu1 %2153  ;;  %v1957_v13 = vpop.permute.xlu0 %1956  ;;  %v2033_v2 = vmul.f32 %v4400_v55, %v2029_v20  ;;  %v2069_v54 = vmul.f32 %v4428_v40, %v2065_v43 }
 0xa3a   : > { %v4403_v22 = vmul.f32 %v1957_v13, %v4315_v12  ;;  %v1997_v12 = vmul.f32 %v4397_v45, %v1993_v10  ;;  %v2176_v13 = vrot.slane %v4375_v28, 3 }
 0xa3b   : > { %v4407_v19 = vpop.permute.xlu2 %2158 }
 0xa3c   : > { %v2105_v16 = vrot.slane %v4403_v22, 1  ;;  %v1967_v21 = vrot.slane %v4403_v22, 5  ;;  %v2040_v38 = vrot.slane %v4403_v22, 7  ;;  %v2141_v39 = vrot.slane %v4403_v22, 2 }
 0xa3d   : > { %v2004_v47 = vrot.slane %v4403_v22, 6  ;;  %v2036_v11 = vadd.f32 %v2033_v2, %v1997_v12  ;;  %v2177_v58 = vrot.slane %v4403_v22, 3  ;;  %v2095_v20 = vmul.f32 %v4367_v0, %v4403_v22  ;;  %v3209_v12 = vld [vmem:[%s3737_s25 + $0x28] sm:$0xff] }
 0xa3e   : > { %v2109_v36 = vsel %vm2107_vm13, %v2104_v31, %v2105_v16  ;;  %v1973_v42 = vsel %vm1971_vm11, %v1966_v9, %v1967_v21  ;;  %v2044_v53 = vsel %vm2042_vm12, %v2039_v35, %v2040_v38  ;;  %v2145_v25 = vsel %vm2143_vm14, %v2140_v50, %v2141_v39  ;;  %2332 = vmatpush.bf16.msrb.mxu3 %v3209_v12 }
 0xa3f   : > { %v2130_v48 = vmul.f32 %v2118_v49, %v2109_v36  ;;  %v1994_v34 = vmul.f32 %v1986_v7, %v1973_v42  ;;  %v2008_v7 = vsel %vm2006_vm9, %v2003_v32, %v2004_v47  ;;  %v2066_v49 = vmul.f32 %v4363_v63, %v2044_v53 }
 0xa40   : > { %v2030_v9 = vmul.f32 %v4365_v37, %v2008_v7  ;;  %v2072_v57 = vadd.f32 %v2069_v54, %v2036_v11  ;;  %v2142_v32 = vrot.slane %v4372_v46, 2  ;;  %v2166_v14 = vmul.f32 %v2154_v17, %v2145_v25  ;;  %v3208_v54 = vld [vmem:[%s3737_s25 + $0x20] sm:$0xff] }
 0xa41   : > { %v2123_v3 = vpop.permute.xlu0 %2122  ;;  %v2195_v52 = vpop.permute.xlu1 %2194  ;;  %v2134_v4 = vmul.f32 %v4431_v29, %v2130_v48  ;;  %v1998_v62 = vmul.f32 %v4397_v45, %v1994_v34  ;;  %v4463_v35 = vperm.slane %v523_v30, 2  ;;  %v2108_v10 = vsel %vm2107_vm13, %v2105_v16, %v2106_v61 }
 0xa42   : > { %v2034_v63 = vmul.f32 %v4400_v55, %v2030_v9  ;;  %v2101_v18 = vadd.f32 %v2098_v5, %v2072_v57  ;;  %v2144_v37 = vsel %vm2143_vm14, %v2141_v39, %v2142_v32  ;;  %v2131_v17 = vmul.f32 %v2123_v3, %v2108_v10  ;;  %2333 = vmatpush.bf16.msrb.mxu3 %v3208_v54 }
 0xa43   : > { %v1991_v6 = vpop.permute.xlu2 %1990  ;;  %v2070_v2 = vmul.f32 %v4428_v40, %v2066_v49  ;;  %v2181_v0 = vsel %vm2179_vm3, %v2176_v13, %v2177_v58  ;;  %v2170_v48 = vmul.f32 %v4463_v35, %v2166_v14  ;;  %v4485_v42 = vperm.slane %v523_v30, 3 }
 0xa44   : > { %v2037_v36 = vadd.f32 %v2034_v63, %v1998_v62  ;;  %v2137_v43 = vadd.f32 %v2134_v4, %v2101_v18  ;;  %v2178_v39 = vrot.slane %v4372_v46, 3  ;;  %v2167_v3 = vmul.f32 %v4407_v19, %v2144_v37 }
 0xa45   : > { %v2099_v34 = vmul.f32 %v4424_v24, %v2095_v20  ;;  %v2212_v7 = vperm.slane %v4301_v8, 3  ;;  %v2135_v4 = vmul.f32 %v4431_v29, %v2131_v17  ;;  %v2216_v19 = vperm.slane %v4301_v8, 4 }
 0xa46   : > { %v2073_v11 = vadd.f32 %v2070_v2, %v2037_v36  ;;  %v2180_v53 = vsel %vm2179_vm3, %v2177_v58, %v2178_v39  ;;  %v2173_v25 = vadd.f32 %v2170_v48, %v2137_v43  ;;  %v2171_v49 = vmul.f32 %v4463_v35, %v2167_v3 }
 0xa47   : > { %v2203_v30 = vmul.f32 %v2195_v52, %v2180_v53  ;;  %v1972_v58 = vsel %vm1971_vm11, %v1967_v21, %v1968_v1  ;;  %v2220_v10 = vperm.slane %v4301_v8, 5  ;;  %v2043_v63 = vsel %vm2042_vm12, %v2040_v38, %v2041_v27 }
 0xa48   : > { %v2102_v60 = vadd.f32 %v2099_v34, %v2073_v11  ;;  %v1995_v14 = vmul.f32 %v1991_v6, %v1972_v58  ;;  %v2007_v1 = vsel %vm2006_vm9, %v2004_v47, %v2005_v41 }
 0xa49   : > { %v2190_v16 = vpop.permute.xlu0 %2189  ;;  %v2063_v5 = vpop.permute.xlu1 %2062  ;;  %v2207_v20 = vmul.f32 %v4485_v42, %v2203_v30 }
 0xa4a   : > { %v2202_v51 = vmul.f32 %v2190_v16, %v2181_v0  ;;  %v2138_v57 = vadd.f32 %v2135_v4, %v2102_v60  ;;  %v2067_v6 = vmul.f32 %v2063_v5, %v2043_v63  ;;  %v1999_v2 = vmul.f32 %v4397_v45, %v1995_v14 }
 0xa4b   : > { %v2092_v9 = vpop.permute.xlu2 %2091  ;;  %v2146_v45 = vsel %vm2143_vm14, %v2142_v32, %v2140_v50 }
 0xa4c   : > { %v2206_v23 = vmul.f32 %v4485_v42, %v2202_v51  ;;  %v2174_v21 = vadd.f32 %v2171_v49, %v2138_v57  ;;  %v2071_v38 = vmul.f32 %v4428_v40, %v2067_v6  ;;  %v2096_v36 = vmul.f32 %v2092_v9, %v4372_v46 }
 0xa4d   : > { %v2110_v40 = vsel %vm2107_vm13, %v2106_v61, %v2104_v31 }
 0xa4e   : > { %v2209_v62 = vadd.f32 %v2206_v23, %v2173_v25  ;;  %v2210_v12 = vadd.f32 %v2207_v20, %v2174_v21  ;;  %v2100_v34 = vmul.f32 %v4424_v24, %v2096_v36  ;;  %v2182_v23 = vsel %vm2179_vm3, %v2178_v39, %v2176_v13 }
 0xa50   : > { %v2213_v52 = vadd.f32 %v2212_v7, %v2209_v62  ;;  %v2214_v27 = vadd.f32 %v2212_v7, %v2210_v12 }
 0xa51   : > { %v2027_v18 = vpop.permute.xlu0 %2026  ;;  %v2164_v41 = vpop.permute.xlu1 %2163 }
 0xa52   : > { %v2031_v37 = vmul.f32 %v2027_v18, %v2007_v1  ;;  %v2217_v17 = vmul.f32 %v2216_v19, %v2213_v52  ;;  %v2218_v47 = vmul.f32 %v2216_v19, %v2214_v27  ;;  %v2168_v11 = vmul.f32 %v2164_v41, %v2146_v45 }
 0xa54   : > { %v2035_v0 = vmul.f32 %v4400_v55, %v2031_v37  ;;  %v4520_v16 = vadd.f32 %v2220_v10, %v2217_v17  ;;  %v2200_v55 = vpop.permute.xlu2 %2199  ;;  %v2222_v3 = vadd.f32 %v2220_v10, %v2218_v47  ;;  %v2172_v30 = vmul.f32 %v4463_v35, %v2168_v11 }
 0xa55   : > { %v2204_v32 = vmul.f32 %v2200_v55, %v2182_v23 }
 0xa56   : > { %v2038_v22 = vadd.f32 %v2035_v0, %v1999_v2  ;;  %v3067_v43 = vmul.f32 -1.442695, %v4520_v16  ;;  %v3068_v50 = vmul.f32 -1.442695, %v2222_v3 }
 0xa57   : > { %v2208_v24 = vmul.f32 %v4485_v42, %v2204_v32 }
 0xa58   : > { %v2074_v48 = vadd.f32 %v2071_v38, %v2038_v22  ;;  %3424 = vpow2.f32 %v3067_v43 }
 0xa59   : > { %v2128_v51 = vpop.permute.xlu0 %2127  ;;  %3426 = vpow2.f32 %v3068_v50 }
 0xa5a   : > { %v2132_v53 = vmul.f32 %v2128_v51, %v2110_v40  ;;  %v2103_v25 = vadd.f32 %v2100_v34, %v2074_v48 }
 0xa5c   : > { %v2136_v54 = vmul.f32 %v4431_v29, %v2132_v53 }
 0xa5e   : > { %v3425_v46 = vpop.eup %3424  ;;  %v2139_v31 = vadd.f32 %v2136_v54, %v2103_v25 }
 0xa5f   : > { %v2233_v61 = vadd.f32 1.0, %v3425_v46  ;;  %v3427_v28 = vpop.eup %3426 }
 0xa60   : > { %v2175_v4 = vadd.f32 %v2172_v30, %v2139_v31  ;;  %v2234_v60 = vadd.f32 1.0, %v3427_v28 }
 0xa61   : > { %3428 = vrcp.f32 %v2233_v61  ;;  %v2247_v35 = vand.u32 2147483648, %v2233_v61  ;;  %v2245_v14 = vand.u32 2147483647, %v2233_v61  ;;  %vm2241_vm4 = vweird.f32 %v2233_v61 }
 0xa62   : > { %v2211_v5 = vadd.f32 %v2208_v24, %v2175_v4  ;;  %3430 = vrcp.f32 %v2234_v60  ;;  %v2262_v18 = vand.u32 2147483648, %v2234_v60  ;;  %vm2256_vm6 = vweird.f32 %v2234_v60 }
 0xa63   : > { %vm2246_vm2 = vcmp.eq.f32.partialorder %v2245_v14, 8.507059e+37  ;;  %v3214_v14 = vld [vmem:[%s3722_s28 + $0x30] sm:$0xff] }
 0xa64   : > { %v2215_v56 = vadd.f32 %v2212_v7, %v2211_v5  ;;  %v2248_v7 = vor.u32 1.1754944e-38, %v2247_v35  ;;  %v2263_v37 = vor.u32 1.1754944e-38, %v2262_v18  ;;  %v3215_v35 = vld [vmem:[%s3722_s28 + $0x38] sm:$0xff] }
 0xa65   : > { %2467 = vmatpush.bf16.msrb.mxu1 %v3215_v35 }
 0xa66   : > { %v2219_v39 = vmul.f32 %v2216_v19, %v2215_v56 }
 0xa67   : > { %v3429_v13 = vpop.eup %3428 }
 0xa68   : > { %v2237_v62 = vmul.f32 %v3429_v13, %v2233_v61  ;;  %v2223_v49 = vadd.f32 %v2220_v10, %v2219_v39  ;;  %v3431_v9 = vpop.eup %3430  ;;  %vm2242_vm15 = vweird.f32 %v3429_v13  ;;  %v2260_v10 = vand.u32 2147483647, %v2234_v60 }
 0xa69   : > { %v2252_v52 = vmul.f32 %v3431_v9, %v2234_v60  ;;  %vm2243_vm0 = vmor %vm2241_vm4, %vm2242_vm15  ;;  %vm2257_vm5 = vweird.f32 %v3431_v9  ;;  %2468 = vmatpush.bf16.msrb.mxu1 %v3214_v14  ;;  %v3216_v14 = vld [vmem:[%s3727_s0 + $0x40] sm:$0xff] }
 0xa6a   : > { %v2238_v29 = vsub.f32 1.0, %v2237_v62  ;;  %v3069_v58 = vmul.f32 -1.442695, %v2223_v49  ;;  %vm2258_vm7 = vmor %vm2256_vm6, %vm2257_vm5  ;;  %vm2261_vm8 = vcmp.eq.f32.partialorder %v2260_v10, 8.507059e+37 }
 0xa6b   : > { %v2253_v20 = vsub.f32 1.0, %v2252_v52 }
 0xa6c   : > { %v2239_v57 = vmul.f32 %v3429_v13, %v2238_v29  ;;  %3432 = vpow2.f32 %v3069_v58 }
 0xa6d   : > { %v2254_v19 = vmul.f32 %v3431_v9, %v2253_v20  ;;  %v3213_v20 = vld [vmem:[%s3722_s28 + $0x28] sm:$0xff] }
 0xa6e   : > { %v2240_v42 = vadd.f32 %v3429_v13, %v2239_v57  ;;  %2469 = vmatpush.bf16.msrb.mxu1 %v3213_v20 }
 0xa6f   : > { %v2255_v6 = vadd.f32 %v3431_v9, %v2254_v19 }
 0xa70   : > { %v2244_v63 = vsel %vm2243_vm0, %v3429_v13, %v2240_v42 }
 0xa71   : > { %v2249_v1 = vsel %vm2246_vm2, %v2248_v7, %v2244_v63  ;;  %v2259_v12 = vsel %vm2258_vm7, %v3431_v9, %v2255_v6  ;;  %v3212_v7 = vld [vmem:[%s3722_s28 + $0x20] sm:$0xff] }
 0xa72   : > { %v3433_v21 = vpop.eup %3432  ;;  %v2281_v2 = vmul.f32 %v2249_v1, %v4520_v16  ;;  %v2264_v0 = vsel %vm2261_vm8, %v2263_v37, %v2259_v12  ;;  %2470 = vmatpush.bf16.msrb.mxu1 %v3212_v7 }
 0xa73   : > { %v2235_v17 = vadd.f32 1.0, %v3433_v21  ;;  %v2282_v27 = vmul.f32 %v2264_v0, %v2222_v3  ;;  %v2295_v3 = vperm.slane %v4301_v8, 6 }
 0xa75   : > { %3434 = vrcp.f32 %v2235_v17  ;;  %v2293_v38 = vpack.c.bf16 %v2282_v27, %v2281_v2  ;;  %v2277_v41 = vand.u32 2147483648, %v2235_v17  ;;  %v2275_v48 = vand.u32 2147483647, %v2235_v17 }
 0xa76   : > { %vm2271_vm11 = vweird.f32 %v2235_v17 }
 0xa77   : > { %3094 = vmatmul.msk.bf16.vlgmr.msrb.gmra.mxu3 %vm541_vm1, %v2293_v38  ;;  %v2278_v55 = vor.u32 1.1754944e-38, %v2277_v41  ;;  %vm2276_vm12 = vcmp.eq.f32.partialorder %v2275_v48, 8.507059e+37 }
 0xa7b   : > { %v3435_v36 = vpop.eup %3434 }
 0xa7c   : > { %v2267_v22 = vmul.f32 %v3435_v36, %v2235_v17  ;;  %vm2272_vm10 = vweird.f32 %v3435_v36 }
 0xa7d   : > { %vm2273_vm9 = vmor %vm2271_vm11, %vm2272_vm10 }
 0xa7e   : > { %v2268_v43 = vsub.f32 1.0, %v2267_v22 }
 0xa80   : > { %v2269_v47 = vmul.f32 %v3435_v36, %v2268_v43 }
 0xa82   : > { %v2270_v45 = vadd.f32 %v3435_v36, %v2269_v47 }
 0xa84   : > { %v2274_v51 = vsel %vm2273_vm9, %v3435_v36, %v2270_v45  ;;  %v2413_v45 = vperm.slane %v4301_v8, 7 }
 0xa85   : > { %v2279_v16 = vsel %vm2276_vm12, %v2278_v55, %v2274_v51 }
 0xa86   : > { %v2283_v40 = vmul.f32 %v2279_v16, %v2223_v49 }
 0xa88   : > { %v2294_v34 = vpack.c.bf16 %v2283_v40, %v2283_v40 }
 0xa8a   : > { %3095 = vmatmul.msk.bf16.gmra.mxu3 %vm541_vm1, %v2294_v34 }
 0xafa   : > { %v2335_v11 = vpop.f32.mrf.mxu3 }
 0xafb   : > { %v2336_v53 = vadd.f32 %v2335_v11, %v2295_v3 }
 0xafd   : > { %v4550_v23 = vadd.f32 %v2336_v53, %v4235_v33 }
 0xaff   : > { %v2347_v50 = vsel %vm541_vm1, %v4550_v23, 0.0 }
 0xb00   : > { %2348 = vadd.xlane.f32.xlu0 %v2347_v50 }
 0xb02   : > { %v2337_v32 = vpop.f32.mrf.mxu3 }
 0xb03   : > { %v2338_v25 = vadd.f32 %v2337_v32, %v2295_v3 }
 0xb05   : > { %v4555_v54 = vadd.f32 %v2338_v25, %v4240_v26 }
 0xb07   : > { %v2350_v46 = vsel %vm541_vm1, %v4555_v54, 0.0 }
 0xb08   : > { %2351 = vadd.xlane.f32.xlu1 %v2350_v46 }
 0xb0d   : > { %v2340_v30 = vpop.f32.mrf.mxu3 }
 0xb0e   : > { %v2341_v31 = vadd.f32 %v2340_v30, %v2295_v3  ;;  %v2417_v3 = vperm.slane %v4384_v59, 0 }
 0xb10   : > { %v4560_v61 = vadd.f32 %v2341_v31, %v4245_v44 }
 0xb12   : > { %v2353_v33 = vsel %vm541_vm1, %v4560_v61, 0.0 }
 0xb13   : > { %2354 = vadd.xlane.f32.xlu2 %v2353_v33 }
 0xb15   : > { %v2342_v24 = vpop.f32.mrf.mxu3 }
 0xb73   : > { %v2349_v4 = vpop.xlane.xlu0 %2348 }
 0xb74   : > { %v2356_v5 = vmul.f32 %v2349_v4, %v3760_v15 }
 0xb76   : > { %v2359_v26 = vsub.f32 %v4550_v23, %v2356_v5 }
 0xb78   : > { %v2362_v28 = vmul.f32 %v2359_v26, %v2359_v26 }
 0xb7a   : > { %v2365_v60 = vsel %vm541_vm1, %v2362_v28, 0.0  ;;  %v3223_v28 = vld [vmem:[%s3727_s0 + $0x78] sm:$0xff] }
 0xb7b   : > { %v2352_v56 = vpop.xlane.xlu1 %2351  ;;  %2366 = vadd.xlane.f32.xlu0 %v2365_v60  ;;  %2609 = vmatpush.bf16.msra.mxu0 %v3223_v28  ;;  %v3222_v60 = vld [vmem:[%s3727_s0 + $0x70] sm:$0xff] }
 0xb7c   : > { %v2357_v44 = vmul.f32 %v2352_v56, %v3760_v15  ;;  %v3221_v56 = vld [vmem:[%s3727_s0 + $0x68] sm:$0xff] }
 0xb7e   : > { %v2360_v13 = vsub.f32 %v4555_v54, %v2357_v44  ;;  %v3220_v44 = vld [vmem:[%s3727_s0 + $0x60] sm:$0xff] }
 0xb7f   : > { %2610 = vmatpush.bf16.msra.mxu0 %v3222_v60  ;;  %v2560_v60 = vperm.slane %v4384_v59, 2 }
 0xb80   : > { %v2363_v39 = vmul.f32 %v2360_v13, %v2360_v13 }
 0xb82   : > { %v2368_v62 = vsel %vm541_vm1, %v2363_v39, 0.0  ;;  %v3219_v39 = vld [vmem:[%s3727_s0 + $0x58] sm:$0xff] }
 0xb83   : > { %2369 = vadd.xlane.f32.xlu1 %v2368_v62  ;;  %2611 = vmatpush.bf16.msra.mxu0 %v3221_v56 }
 0xb86   : > { %v2355_v49 = vpop.xlane.xlu2 %2354 }
 0xb87   : > { %v2358_v29 = vmul.f32 %v2355_v49, %v3760_v15  ;;  %2612 = vmatpush.bf16.msra.mxu0 %v3220_v44 }
 0xb89   : > { %v4572_v58 = vsub.f32 %v4560_v61, %v2358_v29  ;;  %v3218_v29 = vld [vmem:[%s3727_s0 + $0x50] sm:$0xff] }
 0xb8b   : > { %v2364_v9 = vmul.f32 %v4572_v58, %v4572_v58  ;;  %2613 = vmatpush.bf16.msra.mxu0 %v3219_v39 }
 0xb8d   : > { %v2371_v57 = vsel %vm541_vm1, %v2364_v9, 0.0  ;;  %v3217_v9 = vld [vmem:[%s3727_s0 + $0x48] sm:$0xff]  ;;  %s3231_s0 = smul.u32 24, %s3543_s17  ;;  %s4728_s17 = sand.u32 1, %s4724_s10  }
 0xb8e   : > { %2372 = vadd.xlane.f32.xlu2 %v2371_v57  ;;  %s2711_s21 = scalar_lea.sflag [#allocation3], %s4728_s17 }
 0xb8f   : > { %2614 = vmatpush.bf16.msra.mxu0 %v3218_v29  ;;  %s2722_s12 = scalar_lea.hbm %s4725_s19, %s3231_s0 }
 0xb90   : > { %s2725_s2 = sshll.u32 %s2722_s12, 4  ;;  %s2726_s2 = int_to_ptr.hbm [resolvable:$true] %s2725_s2 }
 0xb91   : > { %s3475_s20 = sshra.s32 %s2726_s2, 4  ;;  %s3476_s20 = int_to_ptr.hbm [resolvable:$true] %s3475_s20 }
 0xb92   : > { %s3477_s26 = scalar_lea.hbm %s3476_s20, 24  ;;  %p3482_p5 = scmp.lt.s32.totalorder %s3476_s20, %s4726_s23 }
 0xb93   : > { %2615 = vmatpush.bf16.msra.mxu0 %v3217_v9  ;;  %p3478_p1 = scmp.ne.s32.totalorder %s3476_s20, %s3477_s26  ;;  %p3483_p6 = scmp.lt.s32.totalorder %s3481_s16, %s3477_s26 }
 0xb95   : > { %p3479_p2 = pnand %p3478_p1, %p3672_p3  ;;  %p3484_p7 = por %p3483_p6, %p3482_p5 }
 0xb97   : > { %2616 = vmatpush.bf16.msra.mxu0 %v3216_v14  ;;  %p3480_p4 = pneg %p3479_p2 }
 0xb99   : > { %p3485_p8 = pnand %p3484_p7, %p3480_p4 }
 0xbee   : > { %v2367_v52 = vpop.xlane.xlu0 %2366 }
 0xbef   : > { %v2374_v42 = vmul.f32 %v2367_v52, %v3760_v15 }
 0xbf1   : > { %v2377_v63 = vadd.f32 1e-05, %v2374_v42 }
 0xbf3   : > { %3436 = vrsqrt.f32 %v2377_v63  ;;  %vm2386_vm14 = vweird.f32 %v2377_v63 }
 0xbf6   : > { %v2370_v18 = vpop.xlane.xlu1 %2369 }
 0xbf7   : > { %v2375_v19 = vmul.f32 %v2370_v18, %v3760_v15 }
 0xbf9   : > { %v3437_v10 = vpop.eup %3436  ;;  %v2378_v1 = vadd.f32 1e-05, %v2375_v19 }
 0xbfa   : > { %v2381_v21 = vmul.f32 %v3437_v10, %v2377_v63  ;;  %vm2387_vm13 = vweird.f32 %v3437_v10 }
 0xbfb   : > { %3438 = vrsqrt.f32 %v2378_v1  ;;  %vm2388_vm3 = vmor %vm2386_vm14, %vm2387_vm13  ;;  %vm2396_vm4 = vweird.f32 %v2378_v1 }
 0xbfc   : > { %v2382_v6 = vmul.f32 %v3437_v10, %v2381_v21 }
 0xbfe   : > { %v2383_v37 = vmul.f32 0.5, %v2382_v6 }
 0xc00   : > { %v2384_v2 = vsub.f32 1.5, %v2383_v37 }
 0xc01   : > { %v2373_v17 = vpop.xlane.xlu2 %2372  ;;  %v3439_v0 = vpop.eup %3438 }
 0xc02   : > { %v2376_v12 = vmul.f32 %v2373_v17, %v3760_v15  ;;  %v2385_v38 = vmul.f32 %v3437_v10, %v2384_v2  ;;  %v2391_v36 = vmul.f32 %v3439_v0, %v2378_v1  ;;  %vm2397_vm15 = vweird.f32 %v3439_v0 }
 0xc03   : > { %vm2398_vm0 = vmor %vm2396_vm4, %vm2397_vm15 }
 0xc04   : > { %v2379_v27 = vadd.f32 1e-05, %v2376_v12  ;;  %v2392_v22 = vmul.f32 %v3439_v0, %v2391_v36  ;;  %v2389_v43 = vsel %vm2388_vm3, %v3437_v10, %v2385_v38 }
 0xc05   : > { %v2410_v55 = vmul.f32 %v2389_v43, %v2359_v26 }
 0xc06   : > { %3440 = vrsqrt.f32 %v2379_v27  ;;  %v2393_v41 = vmul.f32 0.5, %v2392_v22  ;;  %vm2406_vm5 = vweird.f32 %v2379_v27 }
 0xc07   : > { %v2414_v11 = vmul.f32 %v2413_v45, %v2410_v55 }
 0xc08   : > { %v2394_v47 = vsub.f32 1.5, %v2393_v41 }
 0xc09   : > { %v2418_v46 = vadd.f32 %v2417_v3, %v2414_v11 }
 0xc0a   : > { %v2395_v51 = vmul.f32 %v3439_v0, %v2394_v47 }
 0xc0c   : > { %v3441_v48 = vpop.eup %3440  ;;  %v2399_v40 = vsel %vm2398_vm0, %v3439_v0, %v2395_v51 }
 0xc0d   : > { %v2401_v16 = vmul.f32 %v3441_v48, %v2379_v27  ;;  %v2411_v53 = vmul.f32 %v2399_v40, %v2360_v13  ;;  %vm2407_vm2 = vweird.f32 %v3441_v48  ;;  %v2432_v13 = vperm.slane %v4384_v59, 1 }
 0xc0e   : > { %vm2408_vm6 = vmor %vm2406_vm5, %vm2407_vm2 }
 0xc0f   : > { %v2402_v34 = vmul.f32 %v3441_v48, %v2401_v16  ;;  %v2415_v32 = vmul.f32 %v2413_v45, %v2411_v53 }
 0xc11   : > { %v2403_v50 = vmul.f32 0.5, %v2402_v34  ;;  %v2419_v30 = vadd.f32 %v2417_v3, %v2415_v32 }
 0xc13   : > { %v2404_v25 = vsub.f32 1.5, %v2403_v50  ;;  %v2430_v31 = vpack.c.bf16 %v2419_v30, %v2418_v46 }
 0xc15   : > { %v2405_v8 = vmul.f32 %v3441_v48, %v2404_v25  ;;  %3120 = vmatmul.msk.bf16.vlgmr.msrb.gmra.mxu1 %vm541_vm1, %v2430_v31 }
 0xc17   : > { %v2409_v33 = vsel %vm2408_vm6, %v3441_v48, %v2405_v8 }
 0xc18   : > { %v2412_v24 = vmul.f32 %v2409_v33, %v4572_v58 }
 0xc1a   : > { %v2416_v4 = vmul.f32 %v2413_v45, %v2412_v24 }
 0xc1c   : > { %v2420_v5 = vadd.f32 %v2417_v3, %v2416_v4 }
 0xc1e   : > { %v2431_v26 = vpack.c.bf16 %v2420_v5, %v2420_v5 }
 0xc25   : > { %3121 = vmatmul.msk.bf16.gmra.mxu1 %vm541_vm1, %v2431_v26 }
 0xc92   : > { %v2472_v62 = vpop.f32.mrf.mxu1 }
 0xc93   : > { %v2473_v49 = vadd.f32 %v2472_v62, %v2432_v13 }
 0xc95   : > { %v3122_v58 = vmul.f32 -1.442695, %v2473_v49 }
 0xc97   : > { %3442 = vpow2.f32 %v3122_v58 }
 0xc9a   : > { %v2474_v57 = vpop.f32.mrf.mxu1 }
 0xc9b   : > { %v2475_v35 = vadd.f32 %v2474_v57, %v2432_v13 }
 0xc9d   : > { %v3443_v52 = vpop.eup %3442  ;;  %v3123_v42 = vmul.f32 -1.442695, %v2475_v35 }
 0xc9e   : > { %v2490_v20 = vadd.f32 1.0, %v3443_v52 }
 0xc9f   : > { %3444 = vpow2.f32 %v3123_v42 }
 0xca0   : > { %3446 = vrcp.f32 %v2490_v20  ;;  %v2504_v36 = vand.u32 2147483648, %v2490_v20  ;;  %vm2498_vm8 = vweird.f32 %v2490_v20  ;;  %v2502_v22 = vand.u32 2147483647, %v2490_v20 }
 0xca2   : > { %v2477_v63 = vpop.f32.mrf.mxu1  ;;  %v2505_v55 = vor.u32 1.1754944e-38, %v2504_v36  ;;  %vm2503_vm9 = vcmp.eq.f32.partialorder %v2502_v22, 8.507059e+37 }
 0xca3   : > { %v2478_v7 = vadd.f32 %v2477_v63, %v2432_v13 }
 0xca5   : > { %v3445_v18 = vpop.eup %3444  ;;  %v3124_v19 = vmul.f32 -1.442695, %v2478_v7 }
 0xca6   : > { %v3447_v10 = vpop.eup %3446  ;;  %v2491_v1 = vadd.f32 1.0, %v3445_v18 }
 0xca7   : > { %v2494_v21 = vmul.f32 %v3447_v10, %v2490_v20  ;;  %3448 = vpow2.f32 %v3124_v19  ;;  %vm2499_vm7 = vweird.f32 %v3447_v10 }
 0xca8   : > { %3450 = vrcp.f32 %v2491_v1  ;;  %vm2500_vm10 = vmor %vm2498_vm8, %vm2499_vm7  ;;  %v2519_v41 = vand.u32 2147483648, %v2491_v1  ;;  %v2517_v45 = vand.u32 2147483647, %v2491_v1  ;;  %vm2513_vm12 = vweird.f32 %v2491_v1 }
 0xca9   : > { %v2495_v6 = vsub.f32 1.0, %v2494_v21 }
 0xcaa   : > { %v2479_v37 = vpop.f32.mrf.mxu1  ;;  %v2520_v34 = vor.u32 1.1754944e-38, %v2519_v41  ;;  %vm2518_vm14 = vcmp.eq.f32.partialorder %v2517_v45, 8.507059e+37 }
 0xcab   : > { %v2496_v17 = vmul.f32 %v3447_v10, %v2495_v6 }
 0xcad   : > { %v3449_v12 = vpop.eup %3448  ;;  %v2497_v27 = vadd.f32 %v3447_v10, %v2496_v17 }
 0xcae   : > { %v3451_v2 = vpop.eup %3450  ;;  %v2492_v0 = vadd.f32 1.0, %v3449_v12 }
 0xcaf   : > { %v2509_v38 = vmul.f32 %v3451_v2, %v2491_v1  ;;  %v2501_v47 = vsel %vm2500_vm10, %v3447_v10, %v2497_v27  ;;  %vm2514_vm11 = vweird.f32 %v3451_v2 }
 0xcb0   : > { %3452 = vrcp.f32 %v2492_v0  ;;  %v2506_v40 = vsel %vm2503_vm9, %v2505_v55, %v2501_v47  ;;  %vm2515_vm13 = vmor %vm2513_vm12, %vm2514_vm11  ;;  %v2534_v31 = vand.u32 2147483648, %v2492_v0  ;;  %vm2528_vm15 = vweird.f32 %v2492_v0 }
 0xcb1   : > { %v2510_v43 = vsub.f32 1.0, %v2509_v38  ;;  %v2538_v50 = vmul.f32 %v2506_v40, %v2473_v49  ;;  %v2532_v33 = vand.u32 2147483647, %v2492_v0 }
 0xcb2   : > { %v2535_v4 = vor.u32 1.1754944e-38, %v2534_v31 }
 0xcb3   : > { %v2511_v48 = vmul.f32 %v3451_v2, %v2510_v43  ;;  %vm2533_vm0 = vcmp.eq.f32.partialorder %v2532_v33, 8.507059e+37 }
 0xcb5   : > { %v2512_v51 = vadd.f32 %v3451_v2, %v2511_v48 }
 0xcb6   : > { %v3453_v16 = vpop.eup %3452 }
 0xcb7   : > { %v2516_v3 = vsel %vm2515_vm13, %v3451_v2, %v2512_v51  ;;  %v2524_v11 = vmul.f32 %v3453_v16, %v2492_v0  ;;  %vm2529_vm3 = vweird.f32 %v3453_v16 }
 0xcb8   : > { %v2521_v53 = vsel %vm2518_vm14, %v2520_v34, %v2516_v3  ;;  %vm2530_vm4 = vmor %vm2528_vm15, %vm2529_vm3 }
 0xcb9   : > { %v2539_v32 = vmul.f32 %v2521_v53, %v2475_v35  ;;  %v2525_v25 = vsub.f32 1.0, %v2524_v11 }
 0xcbb   : > { %v2558_v46 = vpack.c.bf16 %v2539_v32, %v2538_v50  ;;  %v2526_v30 = vmul.f32 %v3453_v16, %v2525_v25  ;;  %v2699_v50 = vperm.slane %v4384_v59, 3 }
 0xcbd   : > { %2617 = vmatmul.bf16.vlgmr.msra.gmra.mxu0 %v2558_v46  ;;  %v2527_v8 = vadd.f32 %v3453_v16, %v2526_v30  ;;  %v2703_v46 = vperm.slane %v4384_v59, 4 }
 0xcbf   : > { %v2531_v24 = vsel %vm2530_vm4, %v3453_v16, %v2527_v8 }
 0xcc0   : > { %v2536_v5 = vsel %vm2533_vm0, %v2535_v4, %v2531_v24 }
 0xcc1   : > { %v2540_v26 = vmul.f32 %v2536_v5, %v2478_v7 }
 0xcc3   : > { %v2559_v28 = vpack.c.bf16 %v2540_v26, %v2540_v26 }
 0xccd   : > { %2622 = vmatmul.bf16.gmra.mxu0 %v2559_v28 }
 0xd3a   : > { %v2618_v56 = vpop.f32.mrf.mxu0 }
 0xd3b   : > { %v2619_v44 = vadd.f32 %v2618_v56, %v2560_v60 }
 0xd3d   : > { %v2627_v13 = vmul.f32 0.5, %v2619_v44 }
 0xd3f   : > { %v2630_v39 = vadd.f32 %v2627_v13, %v4550_v23 }
 0xd41   : > { %v2633_v62 = vsel %vm541_vm1, %v2630_v39, 0.0 }
 0xd42   : > { %v2620_v49 = vpop.f32.mrf.mxu0  ;;  %2634 = vadd.xlane.f32.xlu0 %v2633_v62 }
 0xd43   : > { %v2621_v29 = vadd.f32 %v2620_v49, %v2560_v60 }
 0xd45   : > { %v2628_v58 = vmul.f32 0.5, %v2621_v29 }
 0xd47   : > { %v2631_v9 = vadd.f32 %v2628_v58, %v4555_v54 }
 0xd49   : > { %v2636_v57 = vsel %vm541_vm1, %v2631_v9, 0.0 }
 0xd4a   : > { %2637 = vadd.xlane.f32.xlu1 %v2636_v57  ;;  %v2623_v35 = vpop.f32.mrf.mxu0 }
 0xd4b   : > { %v2624_v14 = vadd.f32 %v2623_v35, %v2560_v60 }
 0xd4d   : > { %v2629_v52 = vmul.f32 0.5, %v2624_v14 }
 0xd4f   : > { %v2632_v42 = vadd.f32 %v2629_v52, %v4560_v61 }
 0xd51   : > { %v2639_v20 = vsel %vm541_vm1, %v2632_v42, 0.0 }
 0xd52   : > { %v2625_v63 = vpop.f32.mrf.mxu0  ;;  %2640 = vadd.xlane.f32.xlu2 %v2639_v20 }
 0xdb5   : > { %v2635_v23 = vpop.xlane.xlu0 %2634 }
 0xdb6   : > { %v2642_v7 = vmul.f32 %v2635_v23, %v3760_v15 }
 0xdb8   : > { %v2645_v18 = vsub.f32 %v2630_v39, %v2642_v7 }
 0xdba   : > { %v2648_v19 = vmul.f32 %v2645_v18, %v2645_v18 }
 0xdbc   : > { %v2651_v10 = vsel %vm541_vm1, %v2648_v19, 0.0 }
 0xdbd   : > { %v2638_v54 = vpop.xlane.xlu1 %2637  ;;  %2652 = vadd.xlane.f32.xlu0 %v2651_v10 }
 0xdbe   : > { %v2643_v1 = vmul.f32 %v2638_v54, %v3760_v15 }
 0xdc0   : > { %v2646_v21 = vsub.f32 %v2631_v9, %v2643_v1 }
 0xdc2   : > { %v2649_v6 = vmul.f32 %v2646_v21, %v2646_v21 }
 0xdc4   : > { %v2654_v37 = vsel %vm541_vm1, %v2649_v6, 0.0 }
 0xdc5   : > { %2655 = vadd.xlane.f32.xlu1 %v2654_v37  ;;  %v2641_v61 = vpop.xlane.xlu2 %2640 }
 0xdc6   : > { %v2644_v17 = vmul.f32 %v2641_v61, %v3760_v15 }
 0xdc8   : > { %v2647_v12 = vsub.f32 %v2632_v42, %v2644_v17 }
 0xdca   : > { %v2650_v2 = vmul.f32 %v2647_v12, %v2647_v12 }
 0xdcc   : > { %v2657_v0 = vsel %vm541_vm1, %v2650_v2, 0.0 }
 0xdcd   : > { %2658 = vadd.xlane.f32.xlu2 %v2657_v0 }
 0xe30   : > { %v2653_v27 = vpop.xlane.xlu0 %2652 }
 0xe31   : > { %v2660_v38 = vmul.f32 %v2653_v27, %v3760_v15 }
 0xe33   : > { %v2663_v36 = vadd.f32 1e-05, %v2660_v38 }
 0xe35   : > { %3454 = vrsqrt.f32 %v2663_v36  ;;  %vm2672_vm5 = vweird.f32 %v2663_v36 }
 0xe38   : > { %v2656_v22 = vpop.xlane.xlu1 %2655 }
 0xe39   : > { %v2661_v43 = vmul.f32 %v2656_v22, %v3760_v15 }
 0xe3b   : > { %v3455_v41 = vpop.eup %3454  ;;  %v2664_v47 = vadd.f32 1e-05, %v2661_v43 }
 0xe3c   : > { %v2667_v48 = vmul.f32 %v3455_v41, %v2663_v36  ;;  %vm2673_vm2 = vweird.f32 %v3455_v41 }
 0xe3d   : > { %3456 = vrsqrt.f32 %v2664_v47  ;;  %vm2674_vm6 = vmor %vm2672_vm5, %vm2673_vm2  ;;  %vm2682_vm8 = vweird.f32 %v2664_v47 }
 0xe3e   : > { %v2668_v45 = vmul.f32 %v3455_v41, %v2667_v48 }
 0xe40   : > { %v2669_v55 = vmul.f32 0.5, %v2668_v45  ;;  %v2659_v51 = vpop.xlane.xlu2 %2658 }
 0xe41   : > { %v2662_v16 = vmul.f32 %v2659_v51, %v3760_v15 }
 0xe42   : > { %v2670_v40 = vsub.f32 1.5, %v2669_v55 }
 0xe43   : > { %v3457_v34 = vpop.eup %3456  ;;  %v2665_v3 = vadd.f32 1e-05, %v2662_v16 }
 0xe44   : > { %v2671_v11 = vmul.f32 %v3455_v41, %v2670_v40  ;;  %v2677_v53 = vmul.f32 %v3457_v34, %v2664_v47  ;;  %vm2683_vm7 = vweird.f32 %v3457_v34 }
 0xe45   : > { %3458 = vrsqrt.f32 %v2665_v3  ;;  %vm2684_vm10 = vmor %vm2682_vm8, %vm2683_vm7  ;;  %vm2692_vm9 = vweird.f32 %v2665_v3 }
 0xe46   : > { %v2675_v32 = vsel %vm2674_vm6, %v3455_v41, %v2671_v11  ;;  %v2678_v25 = vmul.f32 %v3457_v34, %v2677_v53 }
 0xe47   : > { %v2696_v30 = vmul.f32 %v2675_v32, %v2645_v18 }
 0xe48   : > { %v2679_v8 = vmul.f32 0.5, %v2678_v25 }
 0xe49   : > { %v2700_v15 = vmul.f32 %v2699_v50, %v2696_v30 }
 0xe4a   : > { %v2680_v31 = vsub.f32 1.5, %v2679_v8 }
 0xe4b   : > { %v3459_v33 = vpop.eup %3458  ;;  %v2704_v24 = vadd.f32 %v2703_v46, %v2700_v15 }
 0xe4c   : > { %v2681_v4 = vmul.f32 %v3457_v34, %v2680_v31  ;;  %v2687_v5 = vmul.f32 %v3459_v33, %v2665_v3  ;;  %vm2693_vm11 = vweird.f32 %v3459_v33 }
 0xe4d   : > { %2707 = vst.msk [vmem:[%s3739_s24] sm:$0xff] %vm541_vm1, %v2704_v24  ;;  %vm2694_vm12 = vmor %vm2692_vm9, %vm2693_vm11 }
 0xe4e   : > { %v2685_v26 = vsel %vm2684_vm10, %v3457_v34, %v2681_v4  ;;  %v2688_v28 = vmul.f32 %v3459_v33, %v2687_v5 }
 0xe4f   : > { %v2697_v60 = vmul.f32 %v2685_v26, %v2646_v21 }
 0xe50   : > { %v2689_v59 = vmul.f32 0.5, %v2688_v28 }
 0xe51   : > { %v2701_v56 = vmul.f32 %v2699_v50, %v2697_v60 }
 0xe52   : > { %v2690_v44 = vsub.f32 1.5, %v2689_v59 }
 0xe53   : > { %v2705_v13 = vadd.f32 %v2703_v46, %v2701_v56 }
 0xe54   : > { %v2691_v39 = vmul.f32 %v3459_v33, %v2690_v44 }
 0xe55   : > { %2708 = vst.msk [vmem:[%s3739_s24 + $0x8] sm:$0xff] %vm541_vm1, %v2705_v13 }
 0xe56   : > { %v2695_v62 = vsel %vm2694_vm12, %v3459_v33, %v2691_v39 }
 0xe57   : > { %v2698_v49 = vmul.f32 %v2695_v62, %v2647_v12 }
 0xe59   : > { %v2702_v29 = vmul.f32 %v2699_v50, %v2698_v49 }
 0xe5b   : > { %v2706_v58 = vadd.f32 %v2703_v46, %v2702_v29 }
 0xe5d   : > { %2709 = vst.msk [vmem:[%s3739_s24 + $0x10] sm:$0xff] %vm541_vm1, %v2706_v58 }
 0xe5e   : > { %3488 = shalt.err (!%p3485_p8)
}
 0xe5f   : > { %s3566_s24 = smov 128   ;;  %s3567_s11 = smov 8  }
 0xe60   : > { %3232 = dma.vmem_to_hbm [thread:$0]  (%p3672_p3), %s2724_s29, 384, %s2726_s2, %s2711_s21, %s3566_s24, %s3566_s24, %s3567_s11  }
 0xe61 PF: > { %s4729_s22 = sld [smem:[#allocation10_spill]] }
 0xe62   : > { %s4730_s27 = sld [smem:[#allocation5_spill]] }
 0xe67   : > { %p3238_p10 = scmp.ge.s32.totalorder %s4729_s22, 2 }
 0xe68   : > { %s2740_s10 = sand.u32 1, %s4730_s27  }
 0xe69   : > { %p3235_p11 = pnand %p3238_p10, %p3682_p9  ;;  %s2741_s28 = scalar_lea.sflag [#allocation3], %s2740_s10 }
 0xe6b   : > { %p3236_p12 = pneg %p3235_p11 }
 0xe6d   : > { %3522 = dma.done.wait (%p3236_p12), %s2741_s28, 384  }
 0xe6e   : > { %3524 = vsyncadd (%p3236_p12), %s2741_s28, 4294966912  ;;  %s23_s20 = sadd.s32 1, %s4729_s22   ;;  %s4732_s13 = sld [smem:[#allocation6_spill]] }
 0xe6f   : > { %p20_p13 = scmp.ge.s32.totalorder %s23_s20, 6   ;;  %s4733_s14 = sld [smem:[#allocation7_spill]] }
 0xe70   : > { %s4734_s15 = sld [smem:[#allocation15_spill]] }
 0xe71   : > { %s4735_s16 = sld [smem:[#allocation8_spill]]  ;;  %22 = sbr.rel (!%p20_p13) target bundleno = 9 (0x9), region = 130 }
 0xe72   : > { %s4736_s17 = sld [smem:[#allocation9_spill]] }
 0xe73   : > { %s4737_s18 = sld [smem:[#allocation11_spill]] }
 0xe74   : > { %s4738_s19 = sld [smem:[#allocation13_spill]] }
 0xe76   :  { %2747 = vsyncpa [#allocation3], 1 }
 0xe77   :  { %2749 = vsyncpa [#allocation3 + $0x1], 1 }

// kernel: _encoder_forward.3
= control target key start
LH: loop header
LB: loop body
LE: loop exit
PB: predicated region body
PF: predicated region fallthrough
CT: control target
= control target key end

     0   :  { %s4020_s13 = smov 0   ;;  %s4022_s14 = smov 0   ;;  %s5344_s0 = inlined_call_operand.vmem [shape: f32[2,32,64], index: 0, kind: input, shape index: {}]   ;;  %s5345_s1 = inlined_call_operand.vmem [shape: f32[32,32], index: 1, kind: input, shape index: {}]   ;;  %s5346_s2 = inlined_call_operand.vmem [shape: f32[2,32,1], index: 2, kind: input, shape index: {}]   ;;  %s5347_s3 = inlined_call_operand.vmem [shape: f32[2,1,32], index: 3, kind: input, shape index: {}]   ;;  %s5348_s4 = inlined_call_operand.vmem [shape: f32[7,32,1], index: 4, kind: input, shape index: {}]   ;;  %s5349_s5 = inlined_call_operand.vmem [shape: f32[2,28,192], index: 5, kind: input, shape index: {}]   ;;  %s5350_s6 = inlined_call_operand.vmem [shape: bf16[2,3,64,128], index: 6, kind: input, shape index: {}]   ;;  %s5351_s7 = inlined_call_operand.vmem [shape: bf16[2,2,128,64], index: 7, kind: input, shape index: {}]   ;;  %s5352_s8 = inlined_call_operand.vmem [shape: bf16[2,64,192], index: 8, kind: input, shape index: {}]   ;;  %s5353_s9 = inlined_call_operand.vmem [shape: bf16[2,2,64,64], index: 9, kind: input, shape index: {}]   ;;  %s5354_s10 = inlined_call_operand.vmem [shape: f32[2,32,64], index: 10, kind: output, shape index: {}]  }
   0x1   :  { %5359 = sst [smem:[#allocation7_spill]] %s5344_s0  ;;  %s4024_s15 = smov 0  }
   0x2   :  { %5360 = sst [smem:[#allocation8_spill]] %s5346_s2  ;;  %s4026_s16 = smov 0  }
   0x3   :  { %5361 = sst [smem:[#allocation9_spill]] %s5349_s5  ;;  %s4028_s17 = smov 0  }
   0x4 LB: > { %5362 = sst [smem:[#allocation2_spill]] %s3946_s15  ;;  %s29_s18 = sadd.s32 1, %s3946_s15  ;;  %s3954_s17 = sphi %s4028_s17, %s20_s17   ;;  %s3950_s16 = sphi %s4026_s16, %s5400_s16   ;;  %s3946_s15 = sphi %s4024_s15, %s5399_s15   ;;  %s3942_s14 = sphi %s4022_s14, %s5398_s14   ;;  %s3938_s13 = sphi %s4020_s13, %s5397_s13  }
   0x5   : > { %5363 = sst [smem:[#allocation3_spill]] %s3950_s16  ;;  %s32_s19 = sadd.s32 1, %s3950_s16 }
   0x6   : > { %5364 = sst [smem:[#allocation4_spill]] %s3954_s17  ;;  %p30_p0 = scmp.ge.s32.totalorder %s29_s18, 2 }
   0x7   : > { %p3300_p1 = scmp.ge.s32.totalorder %s3954_s17, 1  ;;  %p392_p2 = scmp.lt.s32.totalorder %s3954_s17, 5 }
   0x8   : > { %s5402_s18 = smov (%p30_p0, %s29_s18), 0  ;;  %s5404_s19 = smov (!%p30_p0, %s32_s19), %s3950_s16 }
   0x9   : > { %5365 = sst [smem:[#allocation5_spill]] %s5402_s18  ;;  %p393_p3 = pnand %p3300_p1, %p392_p2 }
   0xa   : > { %p34_p4 = scmp.ge.s32.totalorder %s5404_s19, 2  ;;  %p463_p5 = scmp.lt.s32.totalorder (!%p393_p3), %s3942_s14, 1 }
   0xb   : > { %396 = sbr.rel (%p393_p3) target bundleno = 3719 (0xe87), region = 60  ;;  %p476_p6 = scmp.lt.s32.totalorder (!%p393_p3), %s3938_s13, 1 }
   0xc   : > { %s5406_s19 = smov (%p34_p4, %s5404_s19), 0  ;;  %s5367_s0 = sld [smem:[#allocation7_spill]] (!%p393_p3) }
   0xd   : > { %5366 = sst [smem:[#allocation6_spill]] %s5406_s19  ;;  %p3316_p7 = scmp.ne.s32.totalorder (!%p393_p3), %s3938_s13, 0 }
   0xe   : > { %s5368_s2 = sld [smem:[#allocation8_spill]] (!%p393_p3) }
   0xf   : > { %s5369_s5 = sld [smem:[#allocation9_spill]] (!%p393_p3) }
  0x10   : > { %s5408_s14 = smov (!%p463_p5, %s3942_s14), 1 }
  0x11   : > { %s477_s20 = scalar_select %p476_p6, %s3938_s13, 1 }
  0x12   : > { %s3605_s21 = sshll.u32 %s5408_s14, 5 }
  0x13   : > { %s467_s27 = scalar_lea.vmem %s5367_s0, %s3605_s21  ;;  %s3607_s11 = sshll.u32 %s477_s20, 6 }
  0x14   : > { %s4067_s30 = scalar_lea.vmem %s5368_s2, %s3605_s21  ;;  %s3660_s12 = smul.u32 96, %s477_s20 }
  0x15   : > { %s4072_s16 = scalar_lea.vmem %s5369_s5, %s3607_s11  ;;  %s3608_s15 = sshll.u32 %s477_s20, 7 }
  0x16   : > { %s4077_s23 = scalar_lea.vmem %s5350_s6, %s3660_s12  ;;  %s4082_s24 = scalar_lea.vmem %s5351_s7, %s3608_s15 }
  0x17   : > { %s4087_s0 = scalar_lea.vmem %s5352_s8, %s3607_s11  ;;  %s4092_s19 = scalar_lea.vmem %s5353_s9, %s3607_s11 }
  0x18   : > { %s4097_s17 = scalar_lea.vmem %s5354_s10, %s3605_s21  ;;  %510 = sbr.rel (%p3316_p7) target bundleno = 34 (0x22), region = 64 }
  0x1d   : > { %v511_v0 = vld [vmem:[%s467_s27] sm:$0xff]  ;;  %vm515_vm0 = vcmask 523264   ;;  %v512_v1 = vld [vmem:[%s467_s27 + $0x8] sm:$0xff]  ;;  %v513_v2 = vld [vmem:[%s467_s27 + $0x10] sm:$0xff] }
  0x1e   : > { %516 = vst.msk [vmem:[%s4097_s17] sm:$0xff] %vm515_vm0, %v511_v0  ;;  %v514_v3 = vld [vmem:[%s467_s27 + $0x18] sm:$0xff] }
  0x1f   : > { %517 = vst.msk [vmem:[%s4097_s17 + $0x8] sm:$0xff] %vm515_vm0, %v512_v1 }
  0x20   : > { %518 = vst.msk [vmem:[%s4097_s17 + $0x10] sm:$0xff] %vm515_vm0, %v513_v2 }
  0x21   : > { %519 = vst.msk [vmem:[%s4097_s17 + $0x18] sm:$0xff] %vm515_vm0, %v514_v3 }
  0x22 PF: > { %vm550_vm1 = vcmask 523264   ;;  %v3956_v12 = vmov 64.0   ;;  %v3615_v39 = vld [vmem:[%s4077_s23 + $0x18] sm:$0xff]  ;;  %v3614_v40 = vld [vmem:[%s4077_s23 + $0x10] sm:$0xff]  ;;  %v3613_v41 = vld [vmem:[%s4077_s23 + $0x8] sm:$0xff]  ;;  %s3958_s2 = smov 32   ;;  %s5370_s22 = scalar_lea.vmem %s5347_s3, %s5408_s14 }
  0x23   : > { %3743 = vrcp.f32 %v3956_v12  ;;  %701 = vmatpush.bf16.msra.mxu0 %v3615_v39  ;;  %3656 = vmatpush.bf16.msra.mxu2 %v3615_v39  ;;  %v3612_v46 = vld [vmem:[%s4077_s23] sm:$0xff]  ;;  %s3959_s5 = smov 48   ;;  %s3960_s13 = smov 112  }
  0x24   : > { %s3961_s15 = smov 80   ;;  %s3962_s21 = smov 16  }
  0x25   : > { %v4108_v5 = vld [vmem:[%s4097_s17] sm:$0xff]  ;;  %s3963_s27 = smov 96  }
  0x26   : > { %v551_v7 = vsel %vm550_vm1, %v4108_v5, 0.0  ;;  %v4118_v9 = vld [vmem:[%s4097_s17 + $0x8] sm:$0xff] }
  0x27   : > { %v4105_v4 = vld [vmem:[%s4097_s17 + $0x10] sm:$0xff]  ;;  %552 = vadd.xlane.f32.xlu0 %v551_v7  ;;  %v554_v11 = vsel %vm550_vm1, %v4118_v9, 0.0  ;;  %702 = vmatpush.bf16.msra.mxu0 %v3614_v40 }
  0x28   : > { %v557_v6 = vsel %vm550_vm1, %v4105_v4, 0.0  ;;  %v4115_v8 = vld [vmem:[%s4097_s17 + $0x18] sm:$0xff]  ;;  %3657 = vmatpush.bf16.msra.mxu2 %v3614_v40 }
  0x29   : > { %558 = vadd.xlane.f32.xlu1 %v557_v6  ;;  %v560_v10 = vsel %vm550_vm1, %v4115_v8, 0.0  ;;  %v3744_v13 = vpop.eup %3743 }
  0x2a   : > { %v564_v14 = vmul.f32 64.0, %v3744_v13  ;;  %vm568_vm2 = vweird.f32 %v3744_v13 }
  0x2b   : > { %703 = vmatpush.bf16.msra.mxu0 %v3613_v41 }
  0x2c   : > { %v565_v15 = vsub.f32 1.0, %v564_v14  ;;  %3658 = vmatpush.bf16.msra.mxu2 %v3613_v41 }
  0x2e   : > { %v566_v16 = vmul.f32 %v3744_v13, %v565_v15  ;;  %v4163_v15 = vld [vmem:[%s4072_s16] sm:$0xff] }
  0x2f   : > { %555 = vadd.xlane.f32.xlu0 %v554_v11  ;;  %704 = vmatpush.bf16.msra.mxu0 %v3612_v46 }
  0x30   : > { %v567_v17 = vadd.f32 %v3744_v13, %v566_v16  ;;  %3659 = vmatpush.bf16.msra.mxu2 %v3612_v46  ;;  %v3619_v46 = vld [vmem:[%s4082_s24 + $0x18] sm:$0xff] }
  0x31   : > { %561 = vadd.xlane.f32.xlu1 %v560_v10 }
  0x32   : > { %v4124_v18 = vsel %vm568_vm2, %v3744_v13, %v567_v17 }
  0x9a   : > { %v553_v20 = vpop.xlane.xlu0 %552 }
  0x9b   : > { %v570_v22 = vmul.f32 %v4124_v18, %v553_v20 }
  0x9c   : > { %v559_v19 = vpop.xlane.xlu1 %558 }
  0x9d   : > { %v572_v21 = vmul.f32 %v4124_v18, %v559_v19  ;;  %v4132_v24 = vsub.f32 %v4108_v5, %v570_v22  ;;  %v646_v22 = vperm.slane %v4163_v15, 0 }
  0x9f   : > { %v4129_v23 = vsub.f32 %v4105_v4, %v572_v21  ;;  %v578_v26 = vmul.f32 %v4132_v24, %v4132_v24 }
  0xa1   : > { %v580_v25 = vmul.f32 %v4129_v23, %v4129_v23  ;;  %v582_v28 = vsel %vm550_vm1, %v578_v26, 0.0 }
  0xa2   : > { %583 = vadd.xlane.f32.xlu2 %v582_v28  ;;  %v556_v30 = vpop.xlane.xlu0 %555 }
  0xa3   : > { %v588_v27 = vsel %vm550_vm1, %v580_v25, 0.0  ;;  %v571_v32 = vmul.f32 %v4124_v18, %v556_v30 }
  0xa4   : > { %v562_v29 = vpop.xlane.xlu1 %561  ;;  %589 = vadd.xlane.f32.xlu0 %v588_v27 }
  0xa5   : > { %v573_v31 = vmul.f32 %v4124_v18, %v562_v29  ;;  %v4146_v34 = vsub.f32 %v4118_v9, %v571_v32 }
  0xa7   : > { %v4143_v33 = vsub.f32 %v4115_v8, %v573_v31  ;;  %v579_v36 = vmul.f32 %v4146_v34, %v4146_v34  ;;  %v651_v31 = vperm.slane %v4163_v15, 1 }
  0xa9   : > { %v581_v35 = vmul.f32 %v4143_v33, %v4143_v33  ;;  %v585_v38 = vsel %vm550_vm1, %v579_v36, 0.0 }
  0xaa   : > { %586 = vadd.xlane.f32.xlu2 %v585_v38 }
  0xab   : > { %v591_v37 = vsel %vm550_vm1, %v581_v35, 0.0 }
  0xac   : > { %592 = vadd.xlane.f32.xlu1 %v591_v37 }
 0x115   : > { %v584_v42 = vpop.xlane.xlu2 %583 }
 0x116   : > { %v594_v44 = vmul.f32 %v584_v42, %v4124_v18  ;;  %v3623_v42 = vld [vmem:[%s4082_s24 + $0x38] sm:$0xff] }
 0x117   : > { %v590_v43 = vpop.xlane.xlu0 %589  ;;  %863 = vmatpush.bf16.msra.mxu1 %v3623_v42 }
 0x118   : > { %v596_v45 = vmul.f32 %v590_v43, %v4124_v18  ;;  %v598_v47 = vadd.f32 1e-05, %v594_v44  ;;  %v3621_v43 = vld [vmem:[%s4082_s24 + $0x28] sm:$0xff]  ;;  %v3620_v44 = vld [vmem:[%s4082_s24 + $0x20] sm:$0xff] }
 0x11a   : > { %v600_v48 = vadd.f32 1e-05, %v596_v45  ;;  %3745 = vrsqrt.f32 %v598_v47  ;;  %vm608_vm6 = vweird.f32 %v598_v47  ;;  %v666_v45 = vperm.slane %v4163_v15, 2 }
 0x11c   : > { %3747 = vrsqrt.f32 %v600_v48  ;;  %vm628_vm3 = vweird.f32 %v600_v48 }
 0x11d   : > { %v587_v50 = vpop.xlane.xlu2 %586 }
 0x11e   : > { %v595_v52 = vmul.f32 %v587_v50, %v4124_v18 }
 0x11f   : > { %v593_v49 = vpop.xlane.xlu1 %592 }
 0x120   : > { %v597_v51 = vmul.f32 %v593_v49, %v4124_v18  ;;  %v3746_v53 = vpop.eup %3745  ;;  %v599_v55 = vadd.f32 1e-05, %v595_v52  ;;  %v3618_v49 = vld [vmem:[%s4082_s24 + $0x10] sm:$0xff]  ;;  %v3617_v52 = vld [vmem:[%s4082_s24 + $0x8] sm:$0xff] }
 0x121   : > { %v603_v57 = vmul.f32 %v3746_v53, %v598_v47  ;;  %vm609_vm5 = vweird.f32 %v3746_v53 }
 0x122   : > { %v601_v54 = vadd.f32 1e-05, %v597_v51  ;;  %v3748_v56 = vpop.eup %3747  ;;  %vm610_vm8 = vmor %vm608_vm6, %vm609_vm5  ;;  %vm618_vm13 = vweird.f32 %v599_v55 }
 0x123   : > { %v623_v58 = vmul.f32 %v3748_v56, %v600_v48  ;;  %v604_v59 = vmul.f32 %v3746_v53, %v603_v57  ;;  %vm629_vm4 = vweird.f32 %v3748_v56  ;;  %v3616_v57 = vld [vmem:[%s4082_s24] sm:$0xff] }
 0x124   : > { %3749 = vrsqrt.f32 %v601_v54  ;;  %vm630_vm7 = vmor %vm628_vm3, %vm629_vm4  ;;  %vm638_vm9 = vweird.f32 %v601_v54 }
 0x125   : > { %3751 = vrsqrt.f32 %v599_v55  ;;  %v624_v60 = vmul.f32 %v3748_v56, %v623_v58  ;;  %v605_v61 = vmul.f32 0.5, %v604_v59 }
 0x127   : > { %v625_v62 = vmul.f32 0.5, %v624_v60  ;;  %v606_v63 = vsub.f32 1.5, %v605_v61 }
 0x129   : > { %v626_v1 = vsub.f32 1.5, %v625_v62  ;;  %v607_v6 = vmul.f32 %v3746_v53, %v606_v63 }
 0x12a   : > { %v3750_v0 = vpop.eup %3749 }
 0x12b   : > { %v3752_v2 = vpop.eup %3751  ;;  %v633_v3 = vmul.f32 %v3750_v0, %v601_v54  ;;  %v627_v7 = vmul.f32 %v3748_v56, %v626_v1  ;;  %v611_v16 = vsel %vm610_vm8, %v3746_v53, %v607_v6  ;;  %vm639_vm10 = vweird.f32 %v3750_v0 }
 0x12c   : > { %v613_v10 = vmul.f32 %v3752_v2, %v599_v55  ;;  %vm619_vm11 = vweird.f32 %v3752_v2  ;;  %v642_v25 = vmul.f32 %v611_v16, %v4132_v24  ;;  %vm640_vm12 = vmor %vm638_vm9, %vm639_vm10 }
 0x12d   : > { %v634_v11 = vmul.f32 %v3750_v0, %v633_v3  ;;  %v631_v13 = vsel %vm630_vm7, %v3748_v56, %v627_v7  ;;  %vm620_vm14 = vmor %vm618_vm13, %vm619_vm11 }
 0x12e   : > { %v614_v12 = vmul.f32 %v3752_v2, %v613_v10  ;;  %v644_v20 = vmul.f32 %v631_v13, %v4129_v23  ;;  %v647_v35 = vmul.f32 %v646_v22, %v642_v25 }
 0x12f   : > { %v635_v14 = vmul.f32 0.5, %v634_v11 }
 0x130   : > { %v615_v17 = vmul.f32 0.5, %v614_v12  ;;  %v649_v23 = vmul.f32 %v646_v22, %v644_v20  ;;  %v652_v39 = vadd.f32 %v651_v31, %v647_v35 }
 0x131   : > { %v636_v19 = vsub.f32 1.5, %v635_v14 }
 0x132   : > { %v616_v21 = vsub.f32 1.5, %v615_v17  ;;  %v654_v37 = vadd.f32 %v651_v31, %v649_v23 }
 0x133   : > { %v637_v26 = vmul.f32 %v3750_v0, %v636_v19 }
 0x134   : > { %v617_v27 = vmul.f32 %v3752_v2, %v616_v21 }
 0x135   : > { %v641_v28 = vsel %vm640_vm12, %v3750_v0, %v637_v26 }
 0x136   : > { %v645_v29 = vmul.f32 %v641_v28, %v4143_v33  ;;  %v621_v30 = vsel %vm620_vm14, %v3752_v2, %v617_v27 }
 0x137   : > { %v643_v32 = vmul.f32 %v621_v30, %v4146_v34  ;;  %v3622_v34 = vld [vmem:[%s4082_s24 + $0x30] sm:$0xff] }
 0x138   : > { %v650_v36 = vmul.f32 %v646_v22, %v645_v29  ;;  %864 = vmatpush.bf16.msra.mxu1 %v3622_v34 }
 0x139   : > { %v648_v24 = vmul.f32 %v646_v22, %v643_v32 }
 0x13a   : > { %v655_v38 = vadd.f32 %v651_v31, %v650_v36 }
 0x13b   : > { %v653_v40 = vadd.f32 %v651_v31, %v648_v24 }
 0x13c   : > { %v665_v41 = vpack.c.bf16 %v655_v38, %v654_v37  ;;  %865 = vmatpush.bf16.msra.mxu1 %v3621_v43 }
 0x13d   : > { %v664_v33 = vpack.c.bf16 %v653_v40, %v652_v39 }
 0x13e   : > { %3334 = vmatmul.msk.bf16.vlgmr.msra.gmra.mxu2 %vm550_vm1, %v665_v41 }
 0x13f   : > { %3333 = vmatmul.msk.bf16.vlgmr.msra.gmra.mxu0 %vm550_vm1, %v664_v33 }
 0x140   : > { %866 = vmatpush.bf16.msra.mxu1 %v3620_v44 }
 0x144   : > { %867 = vmatpush.bf16.msra.mxu1 %v3619_v46 }
 0x148   : > { %868 = vmatpush.bf16.msra.mxu1 %v3618_v49 }
 0x14c   : > { %869 = vmatpush.bf16.msra.mxu1 %v3617_v52 }
 0x150   : > { %870 = vmatpush.bf16.msra.mxu1 %v3616_v57 }
 0x1bc   : > { %v706_v47 = vpop.f32.mrf.mxu0 }
 0x1bd   : > { %v4179_v48 = vadd.f32 %v706_v47, %v666_v45 }
 0x1bf   : > { %v3335_v50 = vmul.f32 -1.442695, %v4179_v48 }
 0x1c1   : > { %3753 = vpow2.f32 %v3335_v50  ;;  %v711_v51 = vpop.f32.mrf.mxu2 }
 0x1c2   : > { %v4184_v53 = vadd.f32 %v711_v51, %v666_v45 }
 0x1c4   : > { %v3337_v54 = vmul.f32 -1.442695, %v4184_v53  ;;  %v708_v55 = vpop.f32.mrf.mxu0 }
 0x1c5   : > { %v709_v56 = vadd.f32 %v708_v55, %v666_v45 }
 0x1c6   : > { %3755 = vpow2.f32 %v3337_v54 }
 0x1c7   : > { %v3754_v58 = vpop.eup %3753  ;;  %v3336_v59 = vmul.f32 -1.442695, %v709_v56 }
 0x1c8   : > { %v728_v60 = vadd.f32 1.0, %v3754_v58 }
 0x1c9   : > { %3757 = vpow2.f32 %v3336_v59  ;;  %v713_v61 = vpop.f32.mrf.mxu2  ;;  %v814_v59 = vperm.slane %v4163_v15, 3 }
 0x1ca   : > { %3759 = vrcp.f32 %v728_v60  ;;  %v4188_v62 = vadd.f32 %v713_v61, %v666_v45  ;;  %v743_v20 = vand.u32 2147483648, %v728_v60  ;;  %vm737_vm0 = vweird.f32 %v728_v60 }
 0x1cb   : > { %v741_v21 = vand.u32 2147483647, %v728_v60 }
 0x1cc   : > { %v3756_v63 = vpop.eup %3755  ;;  %v3338_v0 = vmul.f32 -1.442695, %v4188_v62  ;;  %v744_v30 = vor.u32 1.1754944e-38, %v743_v20 }
 0x1cd   : > { %v4191_v3 = vadd.f32 1.0, %v3756_v63  ;;  %vm742_vm4 = vcmp.eq.f32.partialorder %v741_v21, 8.507059e+37 }
 0x1ce   : > { %3761 = vpow2.f32 %v3338_v0 }
 0x1cf   : > { %v3758_v1 = vpop.eup %3757  ;;  %v773_v47 = vand.u32 2147483648, %v4191_v3  ;;  %vm767_vm12 = vweird.f32 %v4191_v3  ;;  %v771_v49 = vand.u32 2147483647, %v4191_v3 }
 0x1d0   : > { %v3760_v2 = vpop.eup %3759  ;;  %v729_v6 = vadd.f32 1.0, %v3758_v1 }
 0x1d1   : > { %v733_v7 = vmul.f32 %v3760_v2, %v728_v60  ;;  %vm738_vm15 = vweird.f32 %v3760_v2  ;;  %v774_v52 = vor.u32 1.1754944e-38, %v773_v47  ;;  %v3391_v47 = vld [vmem:[%s4087_s0 + $0x28] sm:$0xf0] }
 0x1d2   : > { %3763 = vrcp.f32 %v729_v6  ;;  %vm739_vm2 = vmor %vm737_vm0, %vm738_vm15  ;;  %v756_v25 = vand.u32 2147483647, %v729_v6  ;;  %v758_v26 = vand.u32 2147483648, %v729_v6  ;;  %vm752_vm5 = vweird.f32 %v729_v6 }
 0x1d3   : > { %v734_v10 = vsub.f32 1.0, %v733_v7  ;;  %3765 = vrcp.f32 %v4191_v3  ;;  %vm772_vm15 = vcmp.eq.f32.partialorder %v771_v49, 8.507059e+37 }
 0x1d4   : > { %v3762_v12 = vpop.eup %3761  ;;  %v759_v35 = vor.u32 1.1754944e-38, %v758_v26  ;;  %vm757_vm7 = vcmp.eq.f32.partialorder %v756_v25, 8.507059e+37 }
 0x1d5   : > { %v735_v11 = vmul.f32 %v3760_v2, %v734_v10  ;;  %v731_v13 = vadd.f32 1.0, %v3762_v12 }
 0x1d7   : > { %v736_v16 = vadd.f32 %v3760_v2, %v735_v11  ;;  %3767 = vrcp.f32 %v731_v13  ;;  %v788_v44 = vand.u32 2147483648, %v731_v13  ;;  %vm782_vm10 = vweird.f32 %v731_v13 }
 0x1d8   : > { %v3764_v14 = vpop.eup %3763  ;;  %v786_v46 = vand.u32 2147483647, %v731_v13 }
 0x1d9   : > { %v748_v17 = vmul.f32 %v3764_v14, %v729_v6  ;;  %v3766_v19 = vpop.eup %3765  ;;  %v740_v27 = vsel %vm739_vm2, %v3760_v2, %v736_v16  ;;  %vm753_vm3 = vweird.f32 %v3764_v14  ;;  %v789_v50 = vor.u32 1.1754944e-38, %v788_v44  ;;  %v3629_v44 = vld [vmem:[%s4087_s0 + $0x24] sm:$0xf0] }
 0x1da   : > { %v763_v28 = vmul.f32 %v3766_v19, %v4191_v3  ;;  %v745_v32 = vsel %vm742_vm4, %v744_v30, %v740_v27  ;;  %vm754_vm6 = vmor %vm752_vm5, %vm753_vm3  ;;  %vm768_vm9 = vweird.f32 %v3766_v19  ;;  %vm787_vm14 = vcmp.eq.f32.partialorder %v786_v46, 8.507059e+37 }
 0x1db   : > { %v749_v22 = vsub.f32 1.0, %v748_v17  ;;  %v792_v40 = vmul.f32 %v745_v32, %v4179_v48  ;;  %vm769_vm13 = vmor %vm767_vm12, %vm768_vm9 }
 0x1dc   : > { %v764_v24 = vsub.f32 1.0, %v763_v28 }
 0x1dd   : > { %v750_v29 = vmul.f32 %v3764_v14, %v749_v22  ;;  %v3768_v31 = vpop.eup %3767 }
 0x1de   : > { %v778_v36 = vmul.f32 %v3768_v31, %v731_v13  ;;  %v765_v42 = vmul.f32 %v3766_v19, %v764_v24  ;;  %vm783_vm8 = vweird.f32 %v3768_v31 }
 0x1df   : > { %v751_v23 = vadd.f32 %v3764_v14, %v750_v29  ;;  %vm784_vm11 = vmor %vm782_vm10, %vm783_vm8 }
 0x1e0   : > { %v779_v39 = vsub.f32 1.0, %v778_v36  ;;  %v766_v45 = vadd.f32 %v3766_v19, %v765_v42  ;;  %v3399_v42 = vld [vmem:[%s4087_s0 + $0x38] sm:$0xf0] }
 0x1e1   : > { %v755_v37 = vsel %vm754_vm6, %v3764_v14, %v751_v23 }
 0x1e2   : > { %v760_v38 = vsel %vm757_vm7, %v759_v35, %v755_v37  ;;  %v780_v33 = vmul.f32 %v3768_v31, %v779_v39  ;;  %v770_v51 = vsel %vm769_vm13, %v3766_v19, %v766_v45  ;;  %v3397_v39 = vld [vmem:[%s4087_s0 + $0x30] sm:$0xf]  ;;  %v3628_v45 = vld [vmem:[%s4087_s0 + $0x24] sm:$0xf]  ;;  %vm1092_vm13 = vcmask 130048  }
 0x1e3   : > { %v793_v41 = vmul.f32 %v760_v38, %v709_v56  ;;  %v775_v55 = vsel %vm772_vm15, %v774_v52, %v770_v51  ;;  %v3394_v49 = vor.u32 %v3628_v45, %v3391_v47  ;;  %v3627_v51 = vld [vmem:[%s4087_s0 + $0x14] sm:$0xf0]  ;;  %v3626_v52 = vld [vmem:[%s4087_s0 + $0x14] sm:$0xf] }
 0x1e4   : > { %v781_v43 = vadd.f32 %v3768_v31, %v780_v33  ;;  %v794_v57 = vmul.f32 %v775_v55, %v4184_v53 }
 0x1e5   : > { %v812_v34 = vpack.c.bf16 %v793_v41, %v792_v40  ;;  %v3631_v40 = vld [vmem:[%s4087_s0 + $0x34] sm:$0xf0]  ;;  %v3630_v41 = vld [vmem:[%s4087_s0 + $0x34] sm:$0xf] }
 0x1e6   : > { %v785_v48 = vsel %vm784_vm11, %v3768_v31, %v781_v43  ;;  %v3398_v33 = vor.u32 %v3631_v40, %v3397_v39  ;;  %v3389_v43 = vld [vmem:[%s4087_s0 + $0x20] sm:$0xf] }
 0x1e7   : > { %871 = vmatmul.bf16.vlgmr.msra.gmra.mxu1 %v812_v34  ;;  %v790_v54 = vsel %vm787_vm14, %v789_v50, %v785_v48  ;;  %v3402_v34 = vor.u32 %v3630_v41, %v3399_v42  ;;  %v3390_v46 = vor.u32 %v3629_v44, %v3389_v43  ;;  %v3381_v50 = vld [vmem:[%s4087_s0 + $0x10] sm:$0xf] }
 0x1e8   : > { %v795_v56 = vmul.f32 %v790_v54, %v4188_v62  ;;  %1050 = vmatpush.bf16.msrb.mxu2 %v3398_v33  ;;  %v3382_v55 = vor.u32 %v3627_v51, %v3381_v50  ;;  %v983_v33 = vperm.slane %v4163_v15, 5 }
 0x1e9   : > { %1069 = vmatpush.bf16.msra.mxu3 %v3402_v34 }
 0x1ea   : > { %v813_v58 = vpack.c.bf16 %v795_v56, %v794_v57  ;;  %v3383_v56 = vld [vmem:[%s4087_s0 + $0x18] sm:$0xf0] }
 0x1eb   : > { %v3386_v57 = vor.u32 %v3626_v52, %v3383_v56 }
 0x1ec   : > { %1051 = vmatpush.bf16.msrb.mxu2 %v3390_v46 }
 0x1ed   : > { %1070 = vmatpush.bf16.msra.mxu3 %v3394_v49 }
 0x1f0   : > { %1052 = vmatpush.bf16.msrb.mxu2 %v3382_v55 }
 0x1f1   : > { %1071 = vmatpush.bf16.msra.mxu3 %v3386_v57 }
 0x1f7   : > { %876 = vmatmul.bf16.gmra.mxu1 %v813_v58 }
 0x264   : > { %v872_v60 = vpop.f32.mrf.mxu1 }
 0x265   : > { %v873_v61 = vadd.f32 %v872_v60, %v814_v59  ;;  %v3625_v60 = vld [vmem:[%s4087_s0 + $0x4] sm:$0xf0] }
 0x267   : > { %v882_v63 = vmul.f32 0.5, %v873_v61  ;;  %v3624_v61 = vld [vmem:[%s4087_s0 + $0x4] sm:$0xf] }
 0x269   : > { %v4203_v0 = vadd.f32 %v882_v63, %v4108_v5 }
 0x26b   : > { %v890_v1 = vsel %vm550_vm1, %v4203_v0, 0.0 }
 0x26c   : > { %v874_v2 = vpop.f32.mrf.mxu1  ;;  %891 = vadd.xlane.f32.xlu2 %v890_v1  ;;  %v3375_v1 = vld [vmem:[%s4087_s0 + $0x8] sm:$0xf0] }
 0x26d   : > { %v875_v3 = vadd.f32 %v874_v2, %v814_v59  ;;  %v3378_v2 = vor.u32 %v3624_v61, %v3375_v1 }
 0x26f   : > { %v883_v6 = vmul.f32 0.5, %v875_v3  ;;  %1072 = vmatpush.bf16.msra.mxu3 %v3378_v2 }
 0x271   : > { %v4208_v62 = vadd.f32 %v883_v6, %v4118_v9 }
 0x273   : > { %v893_v53 = vsel %vm550_vm1, %v4208_v62, 0.0 }
 0x274   : > { %894 = vadd.xlane.f32.xlu0 %v893_v53  ;;  %v877_v7 = vpop.f32.mrf.mxu1 }
 0x275   : > { %v878_v10 = vadd.f32 %v877_v7, %v814_v59 }
 0x277   : > { %v884_v11 = vmul.f32 0.5, %v878_v10 }
 0x279   : > { %v4213_v5 = vadd.f32 %v884_v11, %v4105_v4 }
 0x27b   : > { %v896_v12 = vsel %vm550_vm1, %v4213_v5, 0.0 }
 0x27c   : > { %v879_v13 = vpop.f32.mrf.mxu1  ;;  %897 = vadd.xlane.f32.xlu1 %v896_v12 }
 0x27d   : > { %v880_v14 = vadd.f32 %v879_v13, %v814_v59  ;;  %v3373_v59 = vld [vmem:[%s4087_s0] sm:$0xf]  ;;  %s3957_s0 = smov 64  }
 0x27e   : > { %v3374_v63 = vor.u32 %v3625_v60, %v3373_v59 }
 0x27f   : > { %v885_v16 = vmul.f32 0.5, %v880_v14 }
 0x280   : > { %1053 = vmatpush.bf16.msrb.mxu2 %v3374_v63 }
 0x281   : > { %v4218_v9 = vadd.f32 %v885_v16, %v4115_v8 }
 0x283   : > { %v899_v17 = vsel %vm550_vm1, %v4218_v9, 0.0 }
 0x284   : > { %900 = vadd.xlane.f32.xlu2 %v899_v17 }
 0x2df   : > { %v892_v19 = vpop.xlane.xlu2 %891 }
 0x2e0   : > { %v902_v20 = vmul.f32 %v892_v19, %v4124_v18 }
 0x2e2   : > { %v4224_v4 = vsub.f32 %v4203_v0, %v902_v20 }
 0x2e4   : > { %v910_v21 = vmul.f32 %v4224_v4, %v4224_v4 }
 0x2e6   : > { %v914_v22 = vsel %vm550_vm1, %v910_v21, 0.0 }
 0x2e7   : > { %915 = vadd.xlane.f32.xlu0 %v914_v22  ;;  %v895_v25 = vpop.xlane.xlu0 %894 }
 0x2e8   : > { %v903_v8 = vmul.f32 %v895_v25, %v4124_v18 }
 0x2ea   : > { %v4231_v26 = vsub.f32 %v4208_v62, %v903_v8 }
 0x2ec   : > { %v911_v27 = vmul.f32 %v4231_v26, %v4231_v26 }
 0x2ee   : > { %v917_v28 = vsel %vm550_vm1, %v911_v27, 0.0 }
 0x2ef   : > { %v898_v29 = vpop.xlane.xlu1 %897  ;;  %918 = vadd.xlane.f32.xlu1 %v917_v28 }
 0x2f0   : > { %v904_v30 = vmul.f32 %v898_v29, %v4124_v18 }
 0x2f2   : > { %v4238_v31 = vsub.f32 %v4213_v5, %v904_v30 }
 0x2f4   : > { %v912_v23 = vmul.f32 %v4238_v31, %v4238_v31 }
 0x2f6   : > { %v920_v32 = vsel %vm550_vm1, %v912_v23, 0.0 }
 0x2f7   : > { %v901_v35 = vpop.xlane.xlu2 %900  ;;  %921 = vadd.xlane.f32.xlu2 %v920_v32 }
 0x2f8   : > { %v905_v36 = vmul.f32 %v901_v35, %v4124_v18  ;;  %v978_v35 = vperm.slane %v4163_v15, 4 }
 0x2fa   : > { %v4245_v24 = vsub.f32 %v4218_v9, %v905_v36 }
 0x2fc   : > { %v913_v37 = vmul.f32 %v4245_v24, %v4245_v24 }
 0x2fe   : > { %v923_v38 = vsel %vm550_vm1, %v913_v37, 0.0 }
 0x2ff   : > { %924 = vadd.xlane.f32.xlu0 %v923_v38 }
 0x35a   : > { %v916_v48 = vpop.xlane.xlu0 %915 }
 0x35b   : > { %v926_v54 = vmul.f32 %v916_v48, %v4124_v18 }
 0x35d   : > { %v930_v58 = vadd.f32 1e-05, %v926_v54 }
 0x35f   : > { %3769 = vrsqrt.f32 %v930_v58  ;;  %vm940_vm2 = vweird.f32 %v930_v58 }
 0x362   : > { %v919_v3 = vpop.xlane.xlu1 %918 }
 0x363   : > { %v927_v6 = vmul.f32 %v919_v3, %v4124_v18 }
 0x365   : > { %v3770_v53 = vpop.eup %3769  ;;  %v931_v7 = vadd.f32 1e-05, %v927_v6 }
 0x366   : > { %v935_v10 = vmul.f32 %v3770_v53, %v930_v58  ;;  %vm941_vm0 = vweird.f32 %v3770_v53 }
 0x367   : > { %3771 = vrsqrt.f32 %v931_v7  ;;  %vm942_vm3 = vmor %vm940_vm2, %vm941_vm0  ;;  %vm950_vm5 = vweird.f32 %v931_v7 }
 0x368   : > { %v936_v11 = vmul.f32 %v3770_v53, %v935_v10 }
 0x36a   : > { %v937_v12 = vmul.f32 0.5, %v936_v11  ;;  %v922_v13 = vpop.xlane.xlu2 %921  ;;  %v525_v11 = vld [vmem:[%s4072_s16 + $0x8] sm:$0xff] }
 0x36b   : > { %v928_v14 = vmul.f32 %v922_v13, %v4124_v18 }
 0x36c   : > { %v938_v16 = vsub.f32 1.5, %v937_v12  ;;  %v999_v12 = vperm.slane %v525_v11, 6 }
 0x36d   : > { %v3772_v17 = vpop.eup %3771  ;;  %v932_v19 = vadd.f32 1e-05, %v928_v14 }
 0x36e   : > { %v939_v20 = vmul.f32 %v3770_v53, %v938_v16  ;;  %v945_v21 = vmul.f32 %v3772_v17, %v931_v7  ;;  %vm951_vm4 = vweird.f32 %v3772_v17 }
 0x36f   : > { %3773 = vrsqrt.f32 %v932_v19  ;;  %vm952_vm6 = vmor %vm950_vm5, %vm951_vm4  ;;  %vm960_vm8 = vweird.f32 %v932_v19 }
 0x370   : > { %v946_v22 = vmul.f32 %v3772_v17, %v945_v21  ;;  %v943_v25 = vsel %vm942_vm3, %v3770_v53, %v939_v20  ;;  %vm1132_vm3 = vcmask 261120  }
 0x371   : > { %v974_v23 = vmul.f32 %v943_v25, %v4224_v4 }
 0x372   : > { %v947_v8 = vmul.f32 0.5, %v946_v22  ;;  %v925_v27 = vpop.xlane.xlu0 %924 }
 0x373   : > { %v929_v28 = vmul.f32 %v925_v27, %v4124_v18  ;;  %v979_v41 = vmul.f32 %v978_v35, %v974_v23 }
 0x374   : > { %v948_v29 = vsub.f32 1.5, %v947_v8 }
 0x375   : > { %v3774_v30 = vpop.eup %3773  ;;  %v933_v32 = vadd.f32 1e-05, %v929_v28  ;;  %v984_v4 = vadd.f32 %v983_v33, %v979_v41 }
 0x376   : > { %v949_v36 = vmul.f32 %v3772_v17, %v948_v29  ;;  %v955_v37 = vmul.f32 %v3774_v30, %v932_v19  ;;  %vm961_vm7 = vweird.f32 %v3774_v30 }
 0x377   : > { %3775 = vrsqrt.f32 %v933_v32  ;;  %vm962_vm9 = vmor %vm960_vm8, %vm961_vm7  ;;  %vm970_vm11 = vweird.f32 %v933_v32 }
 0x378   : > { %v953_v38 = vsel %vm952_vm6, %v3772_v17, %v949_v36  ;;  %v956_v39 = vmul.f32 %v3774_v30, %v955_v37 }
 0x379   : > { %v975_v40 = vmul.f32 %v953_v38, %v4231_v26 }
 0x37a   : > { %v957_v42 = vmul.f32 0.5, %v956_v39 }
 0x37b   : > { %v980_v34 = vmul.f32 %v978_v35, %v975_v40 }
 0x37c   : > { %v958_v43 = vsub.f32 1.5, %v957_v42 }
 0x37d   : > { %v3776_v44 = vpop.eup %3775  ;;  %v985_v45 = vadd.f32 %v983_v33, %v980_v34 }
 0x37e   : > { %v959_v46 = vmul.f32 %v3774_v30, %v958_v43  ;;  %v965_v47 = vmul.f32 %v3776_v44, %v933_v32  ;;  %vm971_vm10 = vweird.f32 %v3776_v44 }
 0x37f   : > { %v996_v49 = vpack.c.bf16 %v985_v45, %v984_v4  ;;  %vm972_vm12 = vmor %vm970_vm11, %vm971_vm10 }
 0x380   : > { %v966_v48 = vmul.f32 %v3776_v44, %v965_v47  ;;  %v963_v26 = vsel %vm962_vm9, %v3774_v30, %v959_v46 }
 0x381   : > { %3403 = vmatmul.msk.bf16.vlgmr.msrb.gmra.mxu2 %vm550_vm1, %v996_v49  ;;  %3405 = vmatmul.msk.bf16.vlgmr.msra.gmra.mxu3 %vm550_vm1, %v996_v49  ;;  %v976_v52 = vmul.f32 %v963_v26, %v4238_v31  ;;  %v998_v31 = vperm.slane %v4163_v15, 6  ;;  %v3964_v26 = vmov 0  }
 0x382   : > { %v967_v50 = vmul.f32 0.5, %v966_v48  ;;  %3740 = vset.pattern.permute.xlu0 %v3964_v26  ;;  %3742 = vset.pattern.permute.xlu1 %v3964_v26 }
 0x383   : > { %v981_v57 = vmul.f32 %v978_v35, %v976_v52  ;;  %3741 = vset.pattern.permute.xlu2 %v3964_v26 }
 0x384   : > { %v968_v51 = vsub.f32 1.5, %v967_v50  ;;  %v533_v50 = vld [vmem:[%s5370_s22] sm:$0x1] }
 0x385   : > { %v986_v59 = vadd.f32 %v983_v33, %v981_v57  ;;  %vm542_vm14 = vcmp.gt.f32.partialorder %v533_v50, 0.0 }
 0x386   : > { %v969_v54 = vmul.f32 %v3776_v44, %v968_v51  ;;  %v543_v51 = vsel %vm542_vm14, 1, %v3964_v26 }
 0x387   : > { %v544_v52 = vperm.slane %v543_v51, 0 }
 0x388   : > { %v973_v55 = vsel %vm972_vm12, %v3776_v44, %v969_v54  ;;  %v534_v54 = vld [vmem:[%s5345_s1] sm:$0xff] }
 0x389   : > { %v977_v56 = vmul.f32 %v973_v55, %v4245_v24  ;;  %vm538_vm15 = vcmp.gt.f32.partialorder %v534_v54, 0.0  ;;  %vm4350_vm0 = vcmp.eq.s32.totalorder %v544_v52, 1 }
 0x38a   : > { %vm4356_vm2 = vmand %vm538_vm15, %vm4350_vm0 }
 0x38b   : > { %v982_v58 = vmul.f32 %v978_v35, %v977_v56 }
 0x38d   : > { %v987_v60 = vadd.f32 %v983_v33, %v982_v58 }
 0x38f   : > { %v997_v61 = vpack.c.bf16 %v987_v60, %v986_v59  ;;  %v535_v60 = vld [vmem:[%s5345_s1 + $0x8] sm:$0xff] }
 0x390   : > { %vm539_vm4 = vcmp.gt.f32.partialorder %v535_v60, 0.0 }
 0x391   : > { %3404 = vmatmul.msk.bf16.gmra.mxu2 %vm550_vm1, %v997_v61  ;;  %3406 = vmatmul.msk.bf16.gmra.mxu3 %vm550_vm1, %v997_v61  ;;  %vm4377_vm5 = vmand %vm539_vm4, %vm4350_vm0 }
 0x404   : > { %v1055_v63 = vpop.f32.mrf.mxu2  ;;  %v1074_v1 = vpop.f32.mrf.mxu3 }
 0x405   : > { %v1056_v6 = vadd.f32 %v1055_v63, %v998_v31  ;;  %v1075_v25 = vadd.f32 %v1074_v1, %v999_v12 }
 0x40c   : > { %v1057_v2 = vpop.f32.mrf.mxu2  ;;  %v1076_v3 = vpop.f32.mrf.mxu3 }
 0x40d   : > { %v1058_v53 = vadd.f32 %v1057_v2, %v998_v31  ;;  %v1077_v20 = vadd.f32 %v1076_v3, %v999_v12 }
 0x40f   : > { %v4281_v7 = vpack.c.bf16 %v1058_v53, %v1056_v6  ;;  %v4297_v8 = vpack.c.bf16 %v1077_v20, %v1075_v25  ;;  %v537_v20 = vld [vmem:[%s5345_s1 + $0x18] sm:$0xff] }
 0x410   : > { %vm541_vm8 = vcmp.gt.f32.partialorder %v537_v20, 0.0 }
 0x411   : > { %1088 = vrot.lane.b32.xlu0 %v4281_v7, %s3957_s0  ;;  %vm4419_vm9 = vmand %vm541_vm8, %vm4350_vm0 }
 0x414   : > { %v1060_v24 = vpop.f32.mrf.mxu2  ;;  %v1079_v10 = vpop.f32.mrf.mxu3 }
 0x415   : > { %v1061_v16 = vadd.f32 %v1060_v24, %v998_v31  ;;  %v1080_v17 = vadd.f32 %v1079_v10, %v999_v12  ;;  %v536_v24 = vld [vmem:[%s5345_s1 + $0x10] sm:$0xff] }
 0x416   : > { %vm540_vm6 = vcmp.gt.f32.partialorder %v536_v24, 0.0 }
 0x417   : > { %vm4398_vm7 = vmand %vm540_vm6, %vm4350_vm0 }
 0x41c   : > { %v1062_v13 = vpop.f32.mrf.mxu2  ;;  %v1081_v14 = vpop.f32.mrf.mxu3 }
 0x41d   : > { %v1063_v19 = vadd.f32 %v1062_v13, %v998_v31  ;;  %v1082_v15 = vadd.f32 %v1081_v14, %v999_v12 }
 0x41f   : > { %v4286_v21 = vpack.c.bf16 %v1063_v19, %v1061_v16  ;;  %v4288_v22 = vpack.c.bf16 %v1082_v15, %v1080_v17 }
 0x421   : > { %1253 = vmatpush.bf16.msra.mxu2 %v4288_v22  ;;  %1458 = vrot.lane.b32.xlu0 %v4286_v21, %s3958_s2 }
 0x422   : > { %1272 = vrot.lane.b32.xlu2 %v4286_v21, %s3959_s5  ;;  %1090 = vrot.lane.b32.xlu1 %v4286_v21, %s3957_s0 }
 0x425   : > { %1254 = vmatpush.bf16.msra.mxu2 %v4297_v8 }
 0x429   : > { %1456 = vrot.lane.b32.xlu0 %v4281_v7, %s3958_s2 }
 0x42a   : > { %1270 = vrot.lane.b32.xlu2 %v4281_v7, %s3959_s5  ;;  %1266 = vrot.lane.b32.xlu1 %v4281_v7, %s3960_s13 }
 0x431   : > { %1636 = vrot.lane.b32.xlu0 %v4281_v7, %s3961_s15 }
 0x432   : > { %1268 = vrot.lane.b32.xlu2 %v4286_v21, %s3960_s13  ;;  %1642 = vrot.lane.b32.xlu1 %v4286_v21, %s3962_s21 }
 0x439   : > { %1423 = vrot.lane.b32.xlu0 %v4288_v22, %s3960_s13 }
 0x43a   : > { %1640 = vrot.lane.b32.xlu2 %v4281_v7, %s3962_s21  ;;  %1452 = vrot.lane.b32.xlu1 %v4281_v7, %s3963_s27 }
 0x442   : > { %1454 = vrot.lane.b32.xlu2 %v4286_v21, %s3963_s27  ;;  %1638 = vrot.lane.b32.xlu1 %v4286_v21, %s3961_s15 }
 0x44a   : > { %1421 = vrot.lane.b32.xlu2 %v4297_v8, %s3960_s13 }
 0x47c   : > { %v1273_v27 = vpop.permute.xlu2 %1272 }
 0x47d   : > { %v1284_v28 = vsel %vm1092_vm13, %v1273_v27, 0 }
 0x47e   : > { %1292 = vmatpush.bf16.xpose.msrb.mxu3 %v1284_v28 }
 0x483   : > { %v1089_v23 = vpop.permute.xlu0 %1088 }
 0x484   : > { %v1271_v29 = vpop.permute.xlu2 %1270  ;;  %v1100_v41 = vsel %vm1092_vm13, %v1089_v23, 0 }
 0x485   : > { %v1281_v30 = vsel %vm1092_vm13, %v1271_v29, 0 }
 0x486   : > { %1293 = vmatpush.bf16.xpose.msrb.mxu3 %v1281_v30 }
 0x48c   : > { %v1269_v32 = vpop.permute.xlu2 %1268 }
 0x493   : > { %v1459_v35 = vpop.permute.xlu0 %1458 }
 0x494   : > { %v1091_v36 = vpop.permute.xlu1 %1090  ;;  %v1641_v38 = vpop.permute.xlu2 %1640  ;;  %v1470_v33 = vsel %vm1092_vm13, %v1459_v35, 0 }
 0x495   : > { %v1103_v37 = vsel %vm1092_vm13, %v1091_v36, 0  ;;  %v1651_v46 = vsel %vm1092_vm13, %v1641_v38, 0 }
 0x496   : > { %1111 = vmatpush.bf16.xpose.msrb.mxu0 %v1103_v37 }
 0x49b   : > { %v1457_v39 = vpop.permute.xlu0 %1456 }
 0x49c   : > { %v1267_v40 = vpop.permute.xlu1 %1266  ;;  %v1455_v43 = vpop.permute.xlu2 %1454  ;;  %v1467_v4 = vsel %vm1092_vm13, %v1457_v39, 0 }
 0x49d   : > { %3411 = vmatmul.msk.bf16.vlgmr.msrb.gmra.mxu3 %vm1092_vm13, %v1267_v40 }
 0x49e   : > { %1112 = vmatpush.bf16.xpose.msrb.mxu0 %v1100_v41 }
 0x4a3   : > { %v1637_v42 = vpop.permute.xlu0 %1636 }
 0x4a4   : > { %v1643_v34 = vpop.permute.xlu1 %1642  ;;  %v1422_v47 = vpop.permute.xlu2 %1421 }
 0x4a5   : > { %v1654_v44 = vsel %vm1092_vm13, %v1643_v34, 0  ;;  %3407 = vmatmul.msk.bf16.vlgmr.msrb.gmra.mxu0 %vm1092_vm13, %v4281_v7 }
 0x4a6   : > { %1478 = vmatpush.bf16.xpose.msra.mxu0 %v1470_v33  ;;  %1662 = vmatpush.bf16.xpose.msra.mxu3 %v1654_v44 }
 0x4ab   : > { %v1424_v45 = vpop.permute.xlu0 %1423 }
 0x4ac   : > { %1439 = vmatpush.bf16.msrb.mxu1 %v1424_v45  ;;  %v1453_v49 = vpop.permute.xlu1 %1452 }
 0x4ad   : > { %3412 = vmatmul.msk.bf16.gmra.mxu3 %vm1092_vm13, %v1269_v32 }
 0x4ae   : > { %1479 = vmatpush.bf16.xpose.msra.mxu0 %v1467_v4  ;;  %1663 = vmatpush.bf16.xpose.msra.mxu3 %v1651_v46 }
 0x4b0   : > { %1440 = vmatpush.bf16.msrb.mxu1 %v1422_v47 }
 0x4b4   : > { %v1639_v48 = vpop.permute.xlu1 %1638 }
 0x4b5   : > { %3408 = vmatmul.msk.bf16.gmra.mxu0 %vm1092_vm13, %v4286_v21 }
 0x4bd   : > { %3419 = vmatmul.msk.bf16.vlgmr.msra.gmra.mxu3 %vm1092_vm13, %v1637_v42 }
 0x4c5   : > { %3415 = vmatmul.msk.bf16.vlgmr.msra.gmra.mxu0 %vm1092_vm13, %v1453_v49 }
 0x4cd   : > { %3420 = vmatmul.msk.bf16.gmra.mxu3 %vm1092_vm13, %v1639_v48 }
 0x4d5   : > { %3416 = vmatmul.msk.bf16.gmra.mxu0 %vm1092_vm13, %v1455_v43 }
 0x520   : > { %v1295_v56 = vpop.f32.mrf.mxu3 }
 0x521   : > { %v1305_v58 = vmul.f32 0.25, %v1295_v56 }
 0x522   : > { %v1114_v59 = vpop.f32.mrf.mxu0 }
 0x523   : > { %v1124_v61 = vmul.f32 0.25, %v1114_v59  ;;  %v4365_v63 = vsel %vm4356_vm2, %v1305_v58, -1e+30 }
 0x524   : > { %v1313_v1 = vsel %vm1132_vm3, %v4365_v63, -inf }
 0x525   : > { %1314 = vmax.xlane.f32.xlu1 %v1313_v1  ;;  %v4371_v31 = vsel %vm4356_vm2, %v1124_v61, -1e+30 }
 0x526   : > { %v1133_v2 = vsel %vm1132_vm3, %v4371_v31, -inf }
 0x527   : > { %1134 = vmax.xlane.f32.xlu0 %v1133_v2 }
 0x528   : > { %v1297_v3 = vpop.f32.mrf.mxu3 }
 0x529   : > { %v1306_v53 = vmul.f32 0.25, %v1297_v3 }
 0x52a   : > { %v1116_v7 = vpop.f32.mrf.mxu0 }
 0x52b   : > { %v1125_v10 = vmul.f32 0.25, %v1116_v7  ;;  %v4386_v11 = vsel %vm4377_vm5, %v1306_v53, -1e+30 }
 0x52c   : > { %v1316_v13 = vsel %vm1132_vm3, %v4386_v11, -inf }
 0x52d   : > { %v4390_v12 = vsel %vm4377_vm5, %v1125_v10, -1e+30 }
 0x52e   : > { %v1136_v14 = vsel %vm1132_vm3, %v4390_v12, -inf }
 0x52f   : > { %1317 = vmax.xlane.f32.xlu0 %v1316_v13  ;;  %1137 = vmax.xlane.f32.xlu2 %v1136_v14 }
 0x530   : > { %v1300_v16 = vpop.f32.mrf.mxu3 }
 0x531   : > { %v1307_v19 = vmul.f32 0.25, %v1300_v16 }
 0x532   : > { %v1119_v15 = vpop.f32.mrf.mxu0 }
 0x533   : > { %v1126_v21 = vmul.f32 0.25, %v1119_v15  ;;  %v4407_v25 = vsel %vm4398_vm7, %v1307_v19, -1e+30 }
 0x534   : > { %v1319_v28 = vsel %vm1132_vm3, %v4407_v25, -inf }
 0x535   : > { %v4411_v27 = vsel %vm4398_vm7, %v1126_v21, -1e+30 }
 0x536   : > { %v1139_v29 = vsel %vm1132_vm3, %v4411_v27, -inf }
 0x537   : > { %1320 = vmax.xlane.f32.xlu0 %v1319_v28  ;;  %1140 = vmax.xlane.f32.xlu2 %v1139_v29 }
 0x538   : > { %v1302_v30 = vpop.f32.mrf.mxu3 }
 0x539   : > { %v1308_v32 = vmul.f32 0.25, %v1302_v30 }
 0x53a   : > { %v1121_v35 = vpop.f32.mrf.mxu0 }
 0x53b   : > { %v1127_v36 = vmul.f32 0.25, %v1121_v35  ;;  %v4425_v37 = vsel %vm4419_vm9, %v1308_v32, -1e+30 }
 0x53c   : > { %v1322_v39 = vsel %vm1132_vm3, %v4425_v37, -inf }
 0x53d   : > { %v4429_v38 = vsel %vm4419_vm9, %v1127_v36, -1e+30 }
 0x53e   : > { %v1142_v40 = vsel %vm1132_vm3, %v4429_v38, -inf }
 0x53f   : > { %1323 = vmax.xlane.f32.xlu2 %v1322_v39  ;;  %1143 = vmax.xlane.f32.xlu1 %v1142_v40 }
 0x540   : > { %v1665_v41 = vpop.f32.mrf.mxu3 }
 0x541   : > { %v1675_v33 = vmul.f32 0.25, %v1665_v41 }
 0x542   : > { %v1481_v42 = vpop.f32.mrf.mxu0 }
 0x543   : > { %v4437_v34 = vsel %vm4356_vm2, %v1675_v33, -1e+30  ;;  %v1491_v1 = vmul.f32 0.25, %v1481_v42 }
 0x544   : > { %v1683_v43 = vsel %vm1132_vm3, %v4437_v34, -inf }
 0x545   : > { %v4469_v2 = vsel %vm4356_vm2, %v1491_v1, -1e+30 }
 0x546   : > { %v1499_v3 = vsel %vm1132_vm3, %v4469_v2, -inf }
 0x547   : > { %1684 = vmax.xlane.f32.xlu2 %v1683_v43 }
 0x548   : > { %v1667_v44 = vpop.f32.mrf.mxu3 }
 0x549   : > { %v1676_v53 = vmul.f32 0.25, %v1667_v44 }
 0x54a   : > { %v1483_v4 = vpop.f32.mrf.mxu0 }
 0x54b   : > { %v1492_v45 = vmul.f32 0.25, %v1483_v4  ;;  %v4475_v7 = vsel %vm4377_vm5, %v1676_v53, -1e+30 }
 0x54c   : > { %v1686_v10 = vsel %vm1132_vm3, %v4475_v7, -inf }
 0x54d   : > { %v4443_v46 = vsel %vm4377_vm5, %v1492_v45, -1e+30 }
 0x54e   : > { %v1502_v47 = vsel %vm1132_vm3, %v4443_v46, -inf }
 0x54f   : > { %1503 = vmax.xlane.f32.xlu0 %v1502_v47 }
 0x550   : > { %v1670_v49 = vpop.f32.mrf.mxu3 }
 0x551   : > { %v1677_v48 = vmul.f32 0.25, %v1670_v49 }
 0x552   : > { %v1486_v50 = vpop.f32.mrf.mxu0 }
 0x553   : > { %v1493_v51 = vmul.f32 0.25, %v1486_v50  ;;  %v4449_v52 = vsel %vm4398_vm7, %v1677_v48, -1e+30 }
 0x554   : > { %v1689_v54 = vsel %vm1132_vm3, %v4449_v52, -inf }
 0x555   : > { %1690 = vmax.xlane.f32.xlu2 %v1689_v54  ;;  %v4455_v55 = vsel %vm4398_vm7, %v1493_v51, -1e+30 }
 0x556   : > { %v1505_v56 = vsel %vm1132_vm3, %v4455_v55, -inf }
 0x557   : > { %1506 = vmax.xlane.f32.xlu0 %v1505_v56 }
 0x558   : > { %1607 = vrot.lane.b32.xlu1 %v4288_v22, %s3963_s27  ;;  %v1672_v24 = vpop.f32.mrf.mxu3 }
 0x559   : > { %v1678_v13 = vmul.f32 0.25, %v1672_v24 }
 0x55a   : > { %v1488_v58 = vpop.f32.mrf.mxu0 }
 0x55b   : > { %v1494_v59 = vmul.f32 0.25, %v1488_v58  ;;  %v4481_v14 = vsel %vm4419_vm9, %v1678_v13, -1e+30 }
 0x55c   : > { %v1692_v16 = vsel %vm1132_vm3, %v4481_v14, -inf }
 0x55d   : > { %v4463_v60 = vsel %vm4419_vm9, %v1494_v59, -1e+30 }
 0x55e   : > { %v1508_v61 = vsel %vm1132_vm3, %v4463_v60, -inf }
 0x55f   : > { %1509 = vmax.xlane.f32.xlu2 %v1508_v61 }
 0x582   : > { %1500 = vmax.xlane.f32.xlu1 %v1499_v3 }
 0x58a   : > { %1687 = vmax.xlane.f32.xlu1 %v1686_v10 }
 0x592   : > { %1693 = vmax.xlane.f32.xlu1 %v1692_v16 }
 0x598   : > { %v1315_v19 = vpop.xlane.xlu1 %1314 }
 0x599   : > { %v1325_v15 = vsub.f32 %v4365_v63, %v1315_v19 }
 0x59a   : > { %v1135_v20 = vpop.xlane.xlu0 %1134 }
 0x59b   : > { %v1329_v21 = vmul.f32 1.442695, %v1325_v15  ;;  %v1145_v28 = vsub.f32 %v4371_v31, %v1135_v20 }
 0x59d   : > { %3777 = vpow2.f32 %v1329_v21  ;;  %v1149_v29 = vmul.f32 1.442695, %v1145_v28 }
 0x59f   : > { %3779 = vpow2.f32 %v1149_v29 }
 0x5a2   : > { %v1138_v30 = vpop.xlane.xlu2 %1137  ;;  %v1318_v32 = vpop.xlane.xlu0 %1317 }
 0x5a3   : > { %v3778_v35 = vpop.eup %3777  ;;  %v1146_v36 = vsub.f32 %v4390_v12, %v1138_v30  ;;  %v1326_v39 = vsub.f32 %v4386_v11, %v1318_v32 }
 0x5a4   : > { %v4491_v40 = vsel %vm4356_vm2, %v3778_v35, 0.0 }
 0x5a5   : > { %v3780_v41 = vpop.eup %3779  ;;  %v1151_v63 = vmul.f32 1.442695, %v1146_v36  ;;  %v1331_v33 = vmul.f32 1.442695, %v1326_v39  ;;  %v1341_v31 = vsel %vm1132_vm3, %v4491_v40, 0.0 }
 0x5a6   : > { %1342 = vadd.xlane.f32.xlu0 %v1341_v31  ;;  %v4497_v42 = vsel %vm4356_vm2, %v3780_v41, 0.0 }
 0x5a7   : > { %3781 = vpow2.f32 %v1151_v63  ;;  %v1161_v12 = vsel %vm1132_vm3, %v4497_v42, 0.0 }
 0x5a8   : > { %3783 = vpow2.f32 %v1331_v33  ;;  %1162 = vadd.xlane.f32.xlu1 %v1161_v12 }
 0x5aa   : > { %v1141_v11 = vpop.xlane.xlu2 %1140  ;;  %v1321_v43 = vpop.xlane.xlu0 %1320 }
 0x5ab   : > { %v1147_v44 = vsub.f32 %v4411_v27, %v1141_v11  ;;  %v1327_v4 = vsub.f32 %v4407_v25, %v1321_v43 }
 0x5ad   : > { %v3782_v45 = vpop.eup %3781  ;;  %v1153_v47 = vmul.f32 1.442695, %v1147_v44  ;;  %v1333_v49 = vmul.f32 1.442695, %v1327_v4 }
 0x5ae   : > { %v3784_v48 = vpop.eup %3783  ;;  %v4505_v50 = vsel %vm4377_vm5, %v3782_v45, 0.0 }
 0x5af   : > { %3785 = vpow2.f32 %v1153_v47  ;;  %v1164_v51 = vsel %vm1132_vm3, %v4505_v50, 0.0  ;;  %v4511_v54 = vsel %vm4377_vm5, %v3784_v48, 0.0 }
 0x5b0   : > { %3787 = vpow2.f32 %v1333_v49  ;;  %1165 = vadd.xlane.f32.xlu0 %v1164_v51  ;;  %v1344_v25 = vsel %vm1132_vm3, %v4511_v54, 0.0 }
 0x5b1   : > { %1345 = vadd.xlane.f32.xlu2 %v1344_v25 }
 0x5b2   : > { %v1324_v27 = vpop.xlane.xlu2 %1323  ;;  %v1144_v16 = vpop.xlane.xlu1 %1143 }
 0x5b3   : > { %v1328_v56 = vsub.f32 %v4425_v37, %v1324_v27  ;;  %v1148_v35 = vsub.f32 %v4429_v38, %v1144_v16 }
 0x5b5   : > { %v3786_v58 = vpop.eup %3785  ;;  %v1335_v59 = vmul.f32 1.442695, %v1328_v56  ;;  %v1155_v36 = vmul.f32 1.442695, %v1148_v35 }
 0x5b6   : > { %v3788_v61 = vpop.eup %3787  ;;  %v4518_v1 = vsel %vm4398_vm7, %v3786_v58, 0.0 }
 0x5b7   : > { %3789 = vpow2.f32 %v1335_v59  ;;  %v1167_v3 = vsel %vm1132_vm3, %v4518_v1, 0.0  ;;  %v4524_v53 = vsel %vm4398_vm7, %v3788_v61, 0.0 }
 0x5b8   : > { %1168 = vadd.xlane.f32.xlu1 %v1167_v3  ;;  %v1347_v24 = vsel %vm1132_vm3, %v4524_v53, 0.0 }
 0x5b9   : > { %1348 = vadd.xlane.f32.xlu2 %v1347_v24 }
 0x5ba   : > { %v1685_v39 = vpop.xlane.xlu2 %1684 }
 0x5bb   : > { %v1695_v41 = vsub.f32 %v4437_v34, %v1685_v39 }
 0x5bd   : > { %v3790_v37 = vpop.eup %3789 }
 0x5be   : > { %v4530_v10 = vsel %vm4419_vm9, %v3790_v37, 0.0 }
 0x5bf   : > { %v1350_v13 = vsel %vm1132_vm3, %v4530_v10, 0.0 }
 0x5c0   : > { %1351 = vadd.xlane.f32.xlu1 %v1350_v13 }
 0x5c2   : > { %v1504_v19 = vpop.xlane.xlu0 %1503 }
 0x5c3   : > { %v1512_v43 = vsub.f32 %v4443_v46, %v1504_v19 }
 0x5c4   : > { %1605 = vrot.lane.b32.xlu0 %v4297_v8, %s3963_s27 }
 0x5c5   : > { %v1517_v45 = vmul.f32 1.442695, %v1512_v43 }
 0x5c8   : > { %v1691_v47 = vpop.xlane.xlu2 %1690 }
 0x5ca   : > { %v1608_v15 = vpop.permute.xlu1 %1607  ;;  %v1507_v20 = vpop.xlane.xlu0 %1506 }
 0x5cb   : > { %v1513_v21 = vsub.f32 %v4455_v55, %v1507_v20  ;;  %1623 = vmatpush.bf16.msrb.mxu2 %v1608_v15  ;;  %v1699_v55 = vmul.f32 1.442695, %v1695_v41 }
 0x5cd   : > { %v1519_v28 = vmul.f32 1.442695, %v1513_v21 }
 0x5cf   : > { %3791 = vpow2.f32 %v1519_v28 }
 0x5d0   : > { %3793 = vpow2.f32 %v1155_v36 }
 0x5d1   : > { %3795 = vpow2.f32 %v1699_v55 }
 0x5d2   : > { %v1510_v56 = vpop.xlane.xlu2 %1509 }
 0x5d3   : > { %v1514_v59 = vsub.f32 %v4463_v60, %v1510_v56  ;;  %v1697_v60 = vsub.f32 %v4449_v52, %v1691_v47 }
 0x5d5   : > { %v3792_v29 = vpop.eup %3791  ;;  %v1521_v3 = vmul.f32 1.442695, %v1514_v59  ;;  %v1703_v19 = vmul.f32 1.442695, %v1697_v60 }
 0x5d6   : > { %v4539_v30 = vsel %vm4398_vm7, %v3792_v29, 0.0  ;;  %v3794_v63 = vpop.eup %3793 }
 0x5d7   : > { %v1533_v32 = vsel %vm1132_vm3, %v4539_v30, 0.0  ;;  %v4547_v33 = vsel %vm4419_vm9, %v3794_v63, 0.0  ;;  %v3796_v12 = vpop.eup %3795 }
 0x5d8   : > { %1534 = vadd.xlane.f32.xlu2 %v1533_v32  ;;  %v1170_v31 = vsel %vm1132_vm3, %v4547_v33, 0.0  ;;  %v4553_v38 = vsel %vm4356_vm2, %v3796_v12, 0.0 }
 0x5d9   : > { %v1711_v34 = vsel %vm1132_vm3, %v4553_v38, 0.0 }
 0x5ee   : > { %1171 = vadd.xlane.f32.xlu0 %v1170_v31 }
 0x5f5   : > { %v1501_v11 = vpop.xlane.xlu1 %1500 }
 0x5f6   : > { %v1511_v44 = vsub.f32 %v4469_v2, %v1501_v11  ;;  %1712 = vadd.xlane.f32.xlu0 %v1711_v34 }
 0x5f8   : > { %v1515_v4 = vmul.f32 1.442695, %v1511_v44 }
 0x5fa   : > { %3797 = vpow2.f32 %v1515_v4 }
 0x5fb   : > { %3799 = vpow2.f32 %v1517_v45 }
 0x5fd   : > { %v1688_v49 = vpop.xlane.xlu1 %1687 }
 0x5fe   : > { %v1696_v48 = vsub.f32 %v4475_v7, %v1688_v49 }
 0x600   : > { %v3798_v51 = vpop.eup %3797  ;;  %v1701_v27 = vmul.f32 1.442695, %v1696_v48 }
 0x601   : > { %v4562_v25 = vsel %vm4356_vm2, %v3798_v51, 0.0  ;;  %v3800_v2 = vpop.eup %3799 }
 0x602   : > { %v1527_v46 = vsel %vm1132_vm3, %v4562_v25, 0.0  ;;  %3801 = vpow2.f32 %v1701_v27  ;;  %v4570_v7 = vsel %vm4377_vm5, %v3800_v2, 0.0 }
 0x603   : > { %1528 = vadd.xlane.f32.xlu1 %v1527_v46  ;;  %v1530_v24 = vsel %vm1132_vm3, %v4570_v7, 0.0 }
 0x605   : > { %v1694_v58 = vpop.xlane.xlu1 %1693 }
 0x606   : > { %v1698_v61 = vsub.f32 %v4481_v14, %v1694_v58 }
 0x608   : > { %v1705_v57 = vmul.f32 1.442695, %v1698_v61  ;;  %v3802_v37 = vpop.eup %3801 }
 0x609   : > { %v4579_v14 = vsel %vm4377_vm5, %v3802_v37, 0.0 }
 0x60a   : > { %3803 = vpow2.f32 %v1705_v57  ;;  %1789 = vrot.lane.b32.xlu0 %v4297_v8, %s3961_s15  ;;  %v1714_v8 = vsel %vm1132_vm3, %v4579_v14, 0.0 }
 0x60b   : > { %1531 = vadd.xlane.f32.xlu1 %v1530_v24  ;;  %3805 = vpow2.f32 %v1521_v3 }
 0x60c   : > { %3807 = vpow2.f32 %v1703_v19 }
 0x610   : > { %v3804_v13 = vpop.eup %3803 }
 0x611   : > { %v4583_v16 = vsel %vm4419_vm9, %v3804_v13, 0.0  ;;  %v3806_v52 = vpop.eup %3805 }
 0x612   : > { %v1720_v15 = vsel %vm1132_vm3, %v4583_v16, 0.0  ;;  %v4591_v6 = vsel %vm4419_vm9, %v3806_v52, 0.0  ;;  %v3808_v32 = vpop.eup %3807 }
 0x613   : > { %1715 = vadd.xlane.f32.xlu1 %v1714_v8  ;;  %1721 = vadd.xlane.f32.xlu2 %v1720_v15  ;;  %v1536_v28 = vsel %vm1132_vm3, %v4591_v6, 0.0  ;;  %v4597_v36 = vsel %vm4398_vm7, %v3808_v32, 0.0 }
 0x614   : > { %v1717_v23 = vsel %vm1132_vm3, %v4597_v36, 0.0 }
 0x619   : > { %v1343_v20 = vpop.xlane.xlu0 %1342 }
 0x61a   : > { %v1353_v21 = vmax.f32 %v1343_v20, 1e-30 }
 0x61b   : > { %v1163_v29 = vpop.xlane.xlu1 %1162  ;;  %1537 = vadd.xlane.f32.xlu1 %v1536_v28 }
 0x61c   : > { %3809 = vrcp.f32 %v1353_v21  ;;  %v1173_v35 = vmax.f32 %v1163_v29, 1e-30  ;;  %v1366_v17 = vand.u32 2147483647, %v1353_v21  ;;  %v1368_v44 = vand.u32 2147483648, %v1353_v21 }
 0x61d   : > { %vm1362_vm10 = vweird.f32 %v1353_v21 }
 0x61e   : > { %3811 = vrcp.f32 %v1173_v35  ;;  %v1369_v51 = vor.u32 1.1754944e-38, %v1368_v44  ;;  %v1186_v27 = vand.u32 2147483647, %v1173_v35  ;;  %vm4609_vm11 = vcmp.eq.f32.partialorder %v1366_v17, 8.507059e+37 }
 0x61f   : > { %v1188_v57 = vand.u32 2147483648, %v1173_v35  ;;  %vm1182_vm15 = vweird.f32 %v1173_v35 }
 0x620   : > { %vm4622_vm2 = vcmp.eq.f32.partialorder %v1186_v27, 8.507059e+37 }
 0x621   : > { %v1189_v32 = vor.u32 1.1754944e-38, %v1188_v57 }
 0x622   : > { %v4599_v39 = vpop.eup %3809 }
 0x623   : > { %v1358_v41 = vmul.f32 %v4599_v39, %v1353_v21  ;;  %1718 = vadd.xlane.f32.xlu1 %v1717_v23  ;;  %v1166_v55 = vpop.xlane.xlu0 %1165  ;;  %vm1363_vm14 = vweird.f32 %v4599_v39 }
 0x624   : > { %v1346_v63 = vpop.xlane.xlu2 %1345  ;;  %v1174_v31 = vmax.f32 %v1166_v55, 1e-30  ;;  %v3812_v12 = vpop.eup %3811  ;;  %vm4627_vm4 = vmor %vm1362_vm10, %vm1363_vm14 }
 0x625   : > { %v1354_v11 = vmax.f32 %v1346_v63, 1e-30  ;;  %v1359_v34 = vsub.f32 1.0, %v1358_v41  ;;  %v1178_v43 = vmul.f32 %v3812_v12, %v1173_v35  ;;  %vm1183_vm12 = vweird.f32 %v3812_v12 }
 0x626   : > { %3813 = vrcp.f32 %v1174_v31  ;;  %vm4618_vm0 = vmor %vm1182_vm15, %vm1183_vm12  ;;  %v1203_v15 = vand.u32 2147483648, %v1174_v31  ;;  %v1201_v29 = vand.u32 2147483647, %v1174_v31  ;;  %vm1197_vm8 = vweird.f32 %v1174_v31 }
 0x627   : > { %3815 = vrcp.f32 %v1354_v11  ;;  %v1179_v4 = vsub.f32 1.0, %v1178_v43  ;;  %v1360_v45 = vmul.f32 %v4599_v39, %v1359_v34  ;;  %v1381_v24 = vand.u32 2147483647, %v1354_v11 }
 0x628   : > { %v1383_v8 = vand.u32 2147483648, %v1354_v11  ;;  %vm1377_vm7 = vweird.f32 %v1354_v11  ;;  %v1204_v63 = vor.u32 1.1754944e-38, %v1203_v15  ;;  %vm1202_vm14 = vcmp.eq.f32.partialorder %v1201_v29, 8.507059e+37 }
 0x629   : > { %v1180_v47 = vmul.f32 %v3812_v12, %v1179_v4  ;;  %vm4636_vm9 = vcmp.eq.f32.partialorder %v1381_v24, 8.507059e+37 }
 0x62a   : > { %v1384_v44 = vor.u32 1.1754944e-38, %v1383_v8 }
 0x62b   : > { %v4605_v49 = vpop.xlane.xlu1 %1168  ;;  %1791 = vrot.lane.b32.xlu2 %v4288_v22, %s3961_s15  ;;  %v1181_v58 = vadd.f32 %v3812_v12, %v1180_v47  ;;  %v1361_v22 = vadd.f32 %v4599_v39, %v1360_v45 }
 0x62c   : > { %v3814_v48 = vpop.eup %3813  ;;  %v1349_v46 = vpop.xlane.xlu2 %1348 }
 0x62d   : > { %v3816_v2 = vpop.eup %3815  ;;  %v1193_v59 = vmul.f32 %v3814_v48, %v1174_v31  ;;  %v4613_v61 = vmax.f32 %v1349_v46, 1e-30  ;;  %v1185_v20 = vsel %vm4618_vm0, %v3812_v12, %v1181_v58  ;;  %vm1198_vm5 = vweird.f32 %v3814_v48 }
 0x62e   : > { %v1373_v3 = vmul.f32 %v3816_v2, %v1354_v11  ;;  %vm1378_vm6 = vweird.f32 %v3816_v2  ;;  %v1365_v23 = vsel %vm4627_vm4, %v4599_v39, %v1361_v22  ;;  %vm1199_vm10 = vmor %vm1197_vm8, %vm1198_vm5  ;;  %v1190_v34 = vsel %vm4622_vm2, %v1189_v32, %v1185_v20 }
 0x62f   : > { %v1194_v37 = vsub.f32 1.0, %v1193_v59  ;;  %3817 = vrcp.f32 %v4613_v61  ;;  %vm1379_vm12 = vmor %vm1377_vm7, %vm1378_vm6  ;;  %v1370_v39 = vsel %vm4609_vm11, %v1369_v51, %v1365_v23  ;;  %v1191_v27 = vmul.f32 %v1190_v34, %v4497_v42 }
 0x630   : > { %v1374_v19 = vsub.f32 1.0, %v1373_v3  ;;  %vm1392_vm15 = vweird.f32 %v4613_v61 }
 0x631   : > { %v1195_v28 = vmul.f32 %v3814_v48, %v1194_v37 }
 0x632   : > { %v1375_v35 = vmul.f32 %v3816_v2, %v1374_v19 }
 0x633   : > { %v1196_v41 = vadd.f32 %v3814_v48, %v1195_v28  ;;  %v1352_v21 = vpop.xlane.xlu1 %1351 }
 0x634   : > { %v1356_v12 = vmax.f32 %v1352_v21, 1e-30  ;;  %v1376_v43 = vadd.f32 %v3816_v2, %v1375_v35  ;;  %v1175_v35 = vmax.f32 %v4605_v49, 1e-30 }
 0x635   : > { %v3818_v17 = vpop.eup %3817  ;;  %v1200_v4 = vsel %vm1199_vm10, %v3814_v48, %v1196_v41  ;;  %v1371_v48 = vmul.f32 %v1370_v39, %v4491_v40  ;;  %v1396_v40 = vand.u32 2147483647, %v4613_v61 }
 0x636   : > { %v1388_v31 = vmul.f32 %v3818_v17, %v4613_v61  ;;  %3819 = vrcp.f32 %v1356_v12  ;;  %v1606_v11 = vpop.permute.xlu0 %1605  ;;  %v1205_v45 = vsel %vm1202_vm14, %v1204_v63, %v1200_v4  ;;  %v1380_v47 = vsel %vm1379_vm12, %v3816_v2, %v1376_v43 }
 0x637   : > { %1624 = vmatpush.bf16.msrb.mxu2 %v1606_v11  ;;  %v1206_v46 = vmul.f32 %v1205_v45, %v4505_v50  ;;  %v1385_v58 = vsel %vm4636_vm9, %v1384_v44, %v1380_v47  ;;  %vm1393_vm11 = vweird.f32 %v3818_v17  ;;  %v1398_v50 = vand.u32 2147483648, %v4613_v61 }
 0x638   : > { %v1389_v59 = vsub.f32 1.0, %v1388_v31  ;;  %v1386_v56 = vmul.f32 %v1385_v58, %v4511_v54  ;;  %vm1394_vm0 = vmor %vm1392_vm15, %vm1393_vm11  ;;  %v1413_v54 = vand.u32 2147483648, %v1356_v12  ;;  %v1411_v13 = vand.u32 2147483647, %v1356_v12 }
 0x639   : > { %v1237_v51 = vpack.c.bf16 %v1206_v46, %v1191_v27  ;;  %v1399_v19 = vor.u32 1.1754944e-38, %v1398_v50  ;;  %vm1397_vm4 = vcmp.eq.f32.partialorder %v1396_v40, 8.507059e+37  ;;  %vm1407_vm5 = vweird.f32 %v1356_v12 }
 0x63a   : > { %v1390_v57 = vmul.f32 %v3818_v17, %v1389_v59  ;;  %v1417_v3 = vpack.c.bf16 %v1386_v56, %v1371_v48  ;;  %v1414_v52 = vor.u32 1.1754944e-38, %v1413_v54  ;;  %vm1412_vm7 = vcmp.eq.f32.partialorder %v1411_v13, 8.507059e+37 }
 0x63b   : > { %3409 = vmatmul.msk.bf16.vlgmr.msra.gmra.mxu2 %vm1132_vm3, %v1237_v51  ;;  %3821 = vrcp.f32 %v1175_v35  ;;  %vm1212_vm9 = vweird.f32 %v1175_v35 }
 0x63c   : > { %v3820_v22 = vpop.eup %3819  ;;  %3413 = vmatmul.msk.bf16.vlgmr.msrb.gmra.mxu1 %vm1132_vm3, %v1417_v3  ;;  %v1391_v42 = vadd.f32 %v3818_v17, %v1390_v57 }
 0x63d   : > { %v1403_v2 = vmul.f32 %v3820_v22, %v1356_v12  ;;  %vm1408_vm2 = vweird.f32 %v3820_v22 }
 0x63e   : > { %v1395_v60 = vsel %vm1394_vm0, %v3818_v17, %v1391_v42  ;;  %vm1409_vm6 = vmor %vm1407_vm5, %vm1408_vm2 }
 0x63f   : > { %v1404_v24 = vsub.f32 1.0, %v1403_v2  ;;  %v1400_v15 = vsel %vm1397_vm4, %v1399_v19, %v1395_v60 }
 0x640   : > { %v1401_v29 = vmul.f32 %v1400_v15, %v4524_v53  ;;  %v1218_v53 = vand.u32 2147483648, %v1175_v35 }
 0x641   : > { %v1405_v37 = vmul.f32 %v3820_v22, %v1404_v24  ;;  %v3822_v23 = vpop.eup %3821 }
 0x642   : > { %v1208_v41 = vmul.f32 %v3822_v23, %v1175_v35  ;;  %vm1213_vm8 = vweird.f32 %v3822_v23  ;;  %v1219_v11 = vor.u32 1.1754944e-38, %v1218_v53 }
 0x643   : > { %v1406_v8 = vadd.f32 %v3820_v22, %v1405_v37  ;;  %vm1214_vm10 = vmor %vm1212_vm9, %vm1213_vm8 }
 0x644   : > { %v1209_v63 = vsub.f32 1.0, %v1208_v41 }
 0x645   : > { %v1410_v20 = vsel %vm1409_vm6, %v3820_v22, %v1406_v8 }
 0x646   : > { %v1415_v28 = vsel %vm1412_vm7, %v1414_v52, %v1410_v20  ;;  %v1210_v12 = vmul.f32 %v3822_v23, %v1209_v63 }
 0x647   : > { %v1416_v61 = vmul.f32 %v1415_v28, %v4530_v10  ;;  %v1216_v10 = vand.u32 2147483647, %v1175_v35 }
 0x648   : > { %v1211_v17 = vadd.f32 %v3822_v23, %v1210_v12 }
 0x649   : > { %v1418_v32 = vpack.c.bf16 %v1416_v61, %v1401_v29  ;;  %vm1217_vm14 = vcmp.eq.f32.partialorder %v1216_v10, 8.507059e+37 }
 0x64a   : > { %v1215_v49 = vsel %vm1214_vm10, %v3822_v23, %v1211_v17 }
 0x64b   : > { %v1220_v47 = vsel %vm1217_vm14, %v1219_v11, %v1215_v49  ;;  %v1535_v2 = vpop.xlane.xlu2 %1534 }
 0x64c   : > { %3414 = vmatmul.msk.bf16.gmra.mxu1 %vm1132_vm3, %v1418_v32  ;;  %v1221_v48 = vmul.f32 %v1220_v47, %v4518_v1  ;;  %v4666_v42 = vmax.f32 %v1535_v2, 1e-30 }
 0x661   : > { %v1172_v21 = vpop.xlane.xlu0 %1171 }
 0x662   : > { %v1176_v55 = vmax.f32 %v1172_v21, 1e-30 }
 0x664   : > { %3823 = vrcp.f32 %v1176_v55  ;;  %v1233_v4 = vand.u32 2147483648, %v1176_v55  ;;  %v1231_v31 = vand.u32 2147483647, %v1176_v55  ;;  %vm1227_vm11 = vweird.f32 %v1176_v55 }
 0x666   : > { %v1234_v27 = vor.u32 1.1754944e-38, %v1233_v4  ;;  %vm1232_vm0 = vcmp.eq.f32.partialorder %v1231_v31, 8.507059e+37 }
 0x669   : > { %v1713_v46 = vpop.xlane.xlu0 %1712 }
 0x66a   : > { %v3824_v34 = vpop.eup %3823  ;;  %v4662_v51 = vmax.f32 %v1713_v46, 1e-30 }
 0x66b   : > { %v1223_v43 = vmul.f32 %v3824_v34, %v1176_v55  ;;  %vm1228_vm12 = vweird.f32 %v3824_v34 }
 0x66c   : > { %vm1229_vm15 = vmor %vm1227_vm11, %vm1228_vm12  ;;  %vm1732_vm14 = vweird.f32 %v4662_v51 }
 0x66d   : > { %v1224_v44 = vsub.f32 1.0, %v1223_v43 }
 0x66f   : > { %v1225_v39 = vmul.f32 %v3824_v34, %v1224_v44 }
 0x671   : > { %v1226_v45 = vadd.f32 %v3824_v34, %v1225_v39 }
 0x673   : > { %v1230_v58 = vsel %vm1229_vm15, %v3824_v34, %v1226_v45 }
 0x674   : > { %v1235_v59 = vsel %vm1232_vm0, %v1234_v27, %v1230_v58  ;;  %v1738_v58 = vand.u32 2147483648, %v4662_v51 }
 0x675   : > { %v1236_v56 = vmul.f32 %v1235_v59, %v4547_v33 }
 0x676   : > { %v1529_v57 = vpop.xlane.xlu1 %1528 }
 0x677   : > { %v1539_v3 = vmax.f32 %v1529_v57, 1e-30  ;;  %v1238_v22 = vpack.c.bf16 %v1236_v56, %v1221_v48  ;;  %v1736_v56 = vand.u32 2147483647, %v4662_v51 }
 0x679   : > { %3825 = vrcp.f32 %v1539_v3  ;;  %3410 = vmatmul.msk.bf16.gmra.mxu2 %vm1132_vm3, %v1238_v22  ;;  %v1554_v35 = vand.u32 2147483648, %v1539_v3  ;;  %vm1548_vm4 = vweird.f32 %v1539_v3  ;;  %v1552_v23 = vand.u32 2147483647, %v1539_v3 }
 0x67a   : > { %3827 = vrcp.f32 %v4662_v51  ;;  %vm1737_vm0 = vcmp.eq.f32.partialorder %v1736_v56, 8.507059e+37 }
 0x67b   : > { %3829 = vrcp.f32 %v4666_v42  ;;  %v1555_v53 = vor.u32 1.1754944e-38, %v1554_v35  ;;  %vm1553_vm8 = vcmp.eq.f32.partialorder %v1552_v23, 8.507059e+37 }
 0x67c   : > { %v1790_v57 = vpop.permute.xlu0 %1789 }
 0x67e   : > { %v1532_v50 = vpop.xlane.xlu1 %1531 }
 0x67f   : > { %v3826_v24 = vpop.eup %3825  ;;  %v1540_v40 = vmax.f32 %v1532_v50, 1e-30 }
 0x680   : > { %v4668_v54 = vpop.eup %3827  ;;  %v1544_v1 = vmul.f32 %v3826_v24, %v1539_v3  ;;  %vm1549_vm2 = vweird.f32 %v3826_v24 }
 0x681   : > { %3831 = vrcp.f32 %v1540_v40  ;;  %v1728_v37 = vmul.f32 %v4668_v54, %v4662_v51  ;;  %v4673_v13 = vpop.eup %3829  ;;  %vm4683_vm5 = vmor %vm1548_vm4, %vm1549_vm2  ;;  %v1569_v63 = vand.u32 2147483648, %v1540_v40  ;;  %v1567_v43 = vand.u32 2147483647, %v1540_v40 }
 0x682   : > { %v1545_v33 = vsub.f32 1.0, %v1544_v1  ;;  %v1574_v32 = vmul.f32 %v4673_v13, %v4666_v42  ;;  %vm1733_vm7 = vweird.f32 %v4668_v54  ;;  %vm1563_vm9 = vweird.f32 %v1540_v40 }
 0x683   : > { %v1729_v52 = vsub.f32 1.0, %v1728_v37  ;;  %v1570_v31 = vor.u32 1.1754944e-38, %v1569_v63  ;;  %vm1568_vm12 = vcmp.eq.f32.partialorder %v1567_v43, 8.507059e+37  ;;  %vm4702_vm11 = vmor %vm1732_vm14, %vm1733_vm7  ;;  %vm1579_vm4 = vweird.f32 %v4673_v13 }
 0x684   : > { %v1546_v60 = vmul.f32 %v3826_v24, %v1545_v33  ;;  %v1575_v17 = vsub.f32 1.0, %v1574_v32  ;;  %vm1578_vm7 = vweird.f32 %v4666_v42 }
 0x685   : > { %v1730_v21 = vmul.f32 %v4668_v54, %v1729_v52 }
 0x686   : > { %v1716_v19 = vpop.xlane.xlu1 %1715  ;;  %v1722_v8 = vpop.xlane.xlu2 %1721  ;;  %v1547_v29 = vadd.f32 %v3826_v24, %v1546_v60  ;;  %v1576_v50 = vmul.f32 %v4673_v13, %v1575_v17 }
 0x687   : > { %v3832_v15 = vpop.eup %3831  ;;  %v4675_v20 = vmax.f32 %v1716_v19, 1e-30  ;;  %v4677_v28 = vmax.f32 %v1722_v8, 1e-30  ;;  %v1731_v49 = vadd.f32 %v4668_v54, %v1730_v21 }
 0x688   : > { %v1559_v61 = vmul.f32 %v3832_v15, %v1540_v40  ;;  %v1551_v12 = vsel %vm4683_vm5, %v3826_v24, %v1547_v29  ;;  %vm1564_vm6 = vweird.f32 %v3832_v15  ;;  %v1577_v29 = vadd.f32 %v4673_v13, %v1576_v50 }
 0x689   : > { %3833 = vrcp.f32 %v4675_v20  ;;  %vm1565_vm10 = vmor %vm1563_vm9, %vm1564_vm6  ;;  %v1556_v45 = vsel %vm1553_vm8, %v1555_v53, %v1551_v12  ;;  %v1735_v24 = vsel %vm4702_vm11, %v4668_v54, %v1731_v49  ;;  %v1751_v40 = vand.u32 2147483647, %v4675_v20 }
 0x68a   : > { %v1560_v41 = vsub.f32 1.0, %v1559_v61  ;;  %3835 = vrcp.f32 %v4677_v28  ;;  %v1557_v22 = vmul.f32 %v1556_v45, %v4562_v25  ;;  %v1753_v1 = vand.u32 2147483648, %v4675_v20  ;;  %vm1580_vm8 = vmor %vm1578_vm7, %vm1579_vm4 }
 0x68b   : > { %v1739_v25 = vor.u32 1.1754944e-38, %v1738_v58  ;;  %vm1747_vm2 = vweird.f32 %v4675_v20  ;;  %vm1752_vm6 = vcmp.eq.f32.partialorder %v1751_v40, 8.507059e+37  ;;  %v1581_v63 = vsel %vm1580_vm8, %v4673_v13, %v1577_v29 }
 0x68c   : > { %v1561_v34 = vmul.f32 %v3832_v15, %v1560_v41  ;;  %v1754_v8 = vor.u32 1.1754944e-38, %v1753_v1  ;;  %v1783_v45 = vand.u32 2147483648, %v4677_v28 }
 0x68d   : > { %v1740_v52 = vsel %vm1737_vm0, %v1739_v25, %v1735_v24  ;;  %vm1777_vm0 = vweird.f32 %v4677_v28 }
 0x68e   : > { %v1562_v44 = vadd.f32 %v3832_v15, %v1561_v34  ;;  %v1538_v10 = vpop.xlane.xlu1 %1537  ;;  %v1792_v4 = vpop.permute.xlu2 %1791  ;;  %v1741_v21 = vmul.f32 %v1740_v52, %v4553_v38 }
 0x68f   : > { %v3834_v39 = vpop.eup %3833  ;;  %v4692_v11 = vmax.f32 %v1538_v10, 1e-30  ;;  %1807 = vmatpush.bf16.msra.mxu1 %v1792_v4 }
 0x690   : > { %v1566_v47 = vsel %vm1565_vm10, %v3832_v15, %v1562_v44  ;;  %v1743_v27 = vmul.f32 %v3834_v39, %v4675_v20  ;;  %v4695_v46 = vpop.eup %3835  ;;  %vm1748_vm15 = vweird.f32 %v3834_v39  ;;  %v1582_v20 = vand.u32 2147483647, %v4666_v42 }
 0x691   : > { %3837 = vrcp.f32 %v4692_v11  ;;  %v1571_v59 = vsel %vm1568_vm12, %v1570_v31, %v1566_v47  ;;  %v1773_v51 = vmul.f32 %v4695_v46, %v4677_v28  ;;  %vm1749_vm5 = vmor %vm1747_vm2, %vm1748_vm15  ;;  %v1597_v34 = vand.u32 2147483647, %v4692_v11 }
 0x692   : > { %v1744_v3 = vsub.f32 1.0, %v1743_v27  ;;  %v1572_v2 = vmul.f32 %v1571_v59, %v4570_v7  ;;  %v1584_v7 = vand.u32 2147483648, %v4666_v42  ;;  %v1599_v43 = vand.u32 2147483648, %v4692_v11 }
 0x693   : > { %1808 = vmatpush.bf16.msra.mxu1 %v1790_v57  ;;  %v1774_v32 = vsub.f32 1.0, %v1773_v51  ;;  %vm1583_vm10 = vcmp.eq.f32.partialorder %v1582_v20, 8.507059e+37  ;;  %vm1593_vm12 = vweird.f32 %v4692_v11  ;;  %vm1778_vm11 = vweird.f32 %v4695_v46 }
 0x694   : > { %v1745_v33 = vmul.f32 %v3834_v39, %v1744_v3  ;;  %v1603_v37 = vpack.c.bf16 %v1572_v2, %v1557_v22  ;;  %v1585_v12 = vor.u32 1.1754944e-38, %v1584_v7  ;;  %v1600_v13 = vor.u32 1.1754944e-38, %v1599_v43  ;;  %vm1779_vm2 = vmor %vm1777_vm0, %vm1778_vm11 }
 0x695   : > { %v1775_v17 = vmul.f32 %v4695_v46, %v1774_v32  ;;  %vm1598_vm15 = vcmp.eq.f32.partialorder %v1597_v34, 8.507059e+37  ;;  %v1784_v3 = vor.u32 1.1754944e-38, %v1783_v45  ;;  %v3635_v32 = vld [vmem:[%s4092_s19 + $0x18] sm:$0xff]  ;;  %v529_v34 = vld [vmem:[%s4067_s30] sm:$0xff]  ;;  %vm1876_vm11 = vcmask 392192  }
 0x696   : > { %v1746_v60 = vadd.f32 %v3834_v39, %v1745_v33  ;;  %v1719_v19 = vpop.xlane.xlu1 %1718  ;;  %3417 = vmatmul.msk.bf16.vlgmr.msrb.gmra.mxu2 %vm1132_vm3, %v1603_v37  ;;  %v1586_v38 = vsel %vm1583_vm10, %v1585_v12, %v1581_v63  ;;  %1925 = vmatpush.bf16.msrb.mxu0 %v3635_v32  ;;  %v3633_v63 = vld [vmem:[%s4092_s19 + $0x8] sm:$0xff]  ;;  %v3632_v12 = vld [vmem:[%s4092_s19] sm:$0xff] }
 0x697   : > { %v3838_v54 = vpop.eup %3837  ;;  %v1725_v15 = vmax.f32 %v1719_v19, 1e-30  ;;  %v1587_v49 = vmul.f32 %v1586_v38, %v4539_v30 }
 0x698   : > { %v1750_v61 = vsel %vm1749_vm5, %v3834_v39, %v1746_v60  ;;  %v1589_v35 = vmul.f32 %v3838_v54, %v4692_v11  ;;  %vm1594_vm9 = vweird.f32 %v3838_v54  ;;  %v1776_v39 = vadd.f32 %v4695_v46, %v1775_v17  ;;  %v532_v17 = vld [vmem:[%s4067_s30 + $0x18] sm:$0xff] }
 0x699   : > { %3839 = vrcp.f32 %v1725_v15  ;;  %v1755_v23 = vsel %vm1752_vm6, %v1754_v8, %v1750_v61  ;;  %vm1595_vm14 = vmor %vm1593_vm12, %vm1594_vm9  ;;  %v1781_v11 = vand.u32 2147483647, %v4677_v28  ;;  %v1766_v58 = vand.u32 2147483647, %v1725_v15 }
 0x69a   : > { %v1590_v41 = vsub.f32 1.0, %v1589_v35  ;;  %v1756_v55 = vmul.f32 %v1755_v23, %v4579_v14  ;;  %v1768_v59 = vand.u32 2147483648, %v1725_v15  ;;  %v1780_v57 = vsel %vm1779_vm2, %v4695_v46, %v1776_v39 }
 0x69b   : > { %vm1762_vm5 = vweird.f32 %v1725_v15  ;;  %vm1782_vm6 = vcmp.eq.f32.partialorder %v1781_v11, 8.507059e+37  ;;  %vm1767_vm8 = vcmp.eq.f32.partialorder %v1766_v58, 8.507059e+37  ;;  %vm1949_vm9 = vcmp.gt.f32.partialorder %v529_v34, 0.0 }
 0x69c   : > { %v1591_v53 = vmul.f32 %v3838_v54, %v1590_v41  ;;  %v1787_v44 = vpack.c.bf16 %v1756_v55, %v1741_v21  ;;  %v1785_v22 = vsel %vm1782_vm6, %v1784_v3, %v1780_v57  ;;  %v3634_v55 = vld [vmem:[%s4092_s19 + $0x10] sm:$0xff]  ;;  %v1953_v43 = vsel %vm1949_vm9, 1, %v3964_v26 }
 0x69d   : > { %v1786_v24 = vmul.f32 %v1785_v22, %v4583_v16  ;;  %1926 = vmatpush.bf16.msrb.mxu0 %v3634_v55  ;;  %vm1952_vm10 = vcmp.gt.f32.partialorder %v532_v17, 0.0 }
 0x69e   : > { %3421 = vmatmul.msk.bf16.vlgmr.msra.gmra.mxu1 %vm1132_vm3, %v1787_v44  ;;  %v1592_v14 = vadd.f32 %v3838_v54, %v1591_v53  ;;  %v530_v53 = vld [vmem:[%s4067_s30 + $0x8] sm:$0xff]  ;;  %v1956_v38 = vsel %vm1952_vm10, 1, %v3964_v26 }
 0x69f   : > { %v3840_v42 = vpop.eup %3839  ;;  %vm1950_vm12 = vcmp.gt.f32.partialorder %v530_v53, 0.0 }
 0x6a0   : > { %v1758_v10 = vmul.f32 %v3840_v42, %v1725_v15  ;;  %v1596_v4 = vsel %vm1595_vm14, %v3838_v54, %v1592_v14  ;;  %vm1763_vm4 = vweird.f32 %v3840_v42  ;;  %v1954_v14 = vsel %vm1950_vm12, 1, %v3964_v26 }
 0x6a1   : > { %v1601_v31 = vsel %vm1598_vm15, %v1600_v13, %v1596_v4  ;;  %vm1764_vm7 = vmor %vm1762_vm5, %vm1763_vm4  ;;  %1927 = vmatpush.bf16.msrb.mxu0 %v3633_v63 }
 0x6a2   : > { %v1759_v47 = vsub.f32 1.0, %v1758_v10  ;;  %v1602_v27 = vmul.f32 %v1601_v31, %v4591_v6  ;;  %v1769_v6 = vor.u32 1.1754944e-38, %v1768_v59 }
 0x6a4   : > { %v1760_v48 = vmul.f32 %v3840_v42, %v1759_v47  ;;  %v1604_v56 = vpack.c.bf16 %v1602_v27, %v1587_v49 }
 0x6a5   : > { %1928 = vmatpush.bf16.msrb.mxu0 %v3632_v12 }
 0x6a6   : > { %3418 = vmatmul.msk.bf16.gmra.mxu2 %vm1132_vm3, %v1604_v56  ;;  %v1761_v30 = vadd.f32 %v3840_v42, %v1760_v48 }
 0x6a8   : > { %v1765_v2 = vsel %vm1764_vm7, %v3840_v42, %v1761_v30  ;;  %v531_v42 = vld [vmem:[%s4067_s30 + $0x10] sm:$0xff] }
 0x6a9   : > { %v1770_v28 = vsel %vm1767_vm8, %v1769_v6, %v1765_v2  ;;  %vm1951_vm14 = vcmp.gt.f32.partialorder %v531_v42, 0.0 }
 0x6aa   : > { %v1771_v50 = vmul.f32 %v1770_v28, %v4597_v36  ;;  %v1955_v39 = vsel %vm1951_vm14, 1, %v3964_v26 }
 0x6ac   : > { %v1788_v40 = vpack.c.bf16 %v1786_v24, %v1771_v50 }
 0x6ae   : > { %3422 = vmatmul.msk.bf16.gmra.mxu1 %vm1132_vm3, %v1788_v40 }
 0x6b9   : > { %v1442_v46 = vpop.f32.mrf.mxu1 }
 0x6be   : > { %v1256_v7 = vpop.f32.mrf.mxu2 }
 0x6c1   : > { %v1444_v1 = vpop.f32.mrf.mxu1 }
 0x6c2   : > { %v3710_v33 = vpack.i.bf16 %v1444_v1, %v1442_v46 }
 0x6c4   : > { %3711 = vrot.lane.b32.xlu0 %v3710_v33, %s3962_s21 }
 0x6c6   : > { %v1258_v60 = vpop.f32.mrf.mxu2 }
 0x6c9   : > { %v1447_v51 = vpop.f32.mrf.mxu1 }
 0x6d1   : > { %v1449_v37 = vpop.f32.mrf.mxu1 }
 0x6d2   : > { %v3725_v25 = vpack.i.bf16 %v1449_v37, %v1447_v51 }
 0x6d4   : > { %3726 = vrot.lane.b32.xlu1 %v3725_v25, %s3962_s21 }
 0x6dc   : > { %1967 = vperm.xlu1 %3742, %v1956_v38  }
 0x6fc   : > { %v4749_v19 = vpop.f32.mrf.mxu2 }
 0x704   : > { %v4751_v36 = vpop.f32.mrf.mxu2 }
 0x719   : > { %v1626_v16 = vpop.f32.mrf.mxu2 }
 0x71b   : > { %v1810_v54 = vpop.f32.mrf.mxu1 }
 0x721   : > { %v1628_v8 = vpop.f32.mrf.mxu2 }
 0x722   : > { %v3715_v15 = vpack.i.bf16 %v1628_v8, %v1626_v16 }
 0x723   : > { %v1812_v52 = vpop.f32.mrf.mxu1 }
 0x724   : > { %v3720_v29 = vpack.i.bf16 %v1812_v52, %v1810_v54  ;;  %3716 = vrot.lane.b32.xlu0 %v3715_v15, %s3958_s2 }
 0x726   : > { %3721 = vrot.lane.b32.xlu2 %v3720_v29, %s3959_s5 }
 0x729   : > { %v1631_v61 = vpop.f32.mrf.mxu2 }
 0x72b   : > { %v1815_v35 = vpop.f32.mrf.mxu1 }
 0x731   : > { %v1633_v23 = vpop.f32.mrf.mxu2 }
 0x732   : > { %v3730_v20 = vpack.i.bf16 %v1633_v23, %v1631_v61 }
 0x733   : > { %v1817_v41 = vpop.f32.mrf.mxu1 }
 0x734   : > { %v3735_v21 = vpack.i.bf16 %v1817_v41, %v1815_v35  ;;  %3731 = vrot.lane.b32.xlu0 %v3730_v20, %s3958_s2 }
 0x736   : > { %3736 = vrot.lane.b32.xlu2 %v3735_v21, %s3959_s5  ;;  %v3712_v44 = vpop.permute.xlu0 %3711 }
 0x737   : > { %v3714_v13 = vunpack.i.h.bf16 %v3712_v44  ;;  %v3713_v10 = vunpack.i.l.bf16 %v3712_v44 }
 0x739   : > { %v1869_v47 = vsel %vm1092_vm13, %v1258_v60, %v3714_v13  ;;  %v1868_v27 = vsel %vm1092_vm13, %v1256_v7, %v3713_v10  ;;  %v3913_v60 = vld [vmem:[%s4072_s16] sm:$0xff] }
 0x73a   : > { %v1944_v16 = vperm.slane %v3913_v60, 7  ;;  %v3638_v60 = vld [vmem:[%s4077_s23 + $0x50] sm:$0xff] }
 0x73c   : > { %1958 = vperm.xlu0 %3740, %v1953_v43  }
 0x73e   : > { %1961 = vperm.xlu2 %3741, %v1954_v14  }
 0x746   : > { %1964 = vperm.xlu2 %3741, %v1955_v39   ;;  %v3727_v3 = vpop.permute.xlu1 %3726 }
 0x747   : > { %v3729_v30 = vunpack.i.h.bf16 %v3727_v3  ;;  %v3728_v6 = vunpack.i.l.bf16 %v3727_v3  ;;  %v2243_v3 = vld [vmem:[%s5348_s4] sm:$0xff] }
 0x749   : > { %v1870_v24 = vsel %vm1092_vm13, %v4749_v19, %v3728_v6  ;;  %v1871_v40 = vsel %vm1092_vm13, %v4751_v36, %v3729_v30  ;;  %v3479_v30 = vld [vmem:[%s5348_s4 + $0x60] sm:$0xff]  ;;  %v3472_v6 = vld [vmem:[%s5348_s4 + $0x28] sm:$0xff] }
 0x780   : > { %v3722_v4 = vpop.permute.xlu2 %3721 }
 0x781   : > { %v3724_v11 = vunpack.i.h.bf16 %v3722_v4  ;;  %v3723_v58 = vunpack.i.l.bf16 %v3722_v4 }
 0x790   : > { %v3737_v22 = vpop.permute.xlu2 %3736 }
 0x791   : > { %v3739_v46 = vunpack.i.h.bf16 %v3737_v22  ;;  %v3738_v1 = vunpack.i.l.bf16 %v3737_v22  ;;  %v3471_v22 = vld [vmem:[%s5348_s4 + $0x20] sm:$0xff] }
 0x796   : > { %v3717_v49 = vpop.permute.xlu0 %3716 }
 0x797   : > { %v3719_v31 = vunpack.i.h.bf16 %v3717_v49  ;;  %v3718_v45 = vunpack.i.l.bf16 %v3717_v49 }
 0x798   : > { %v1962_v29 = vpop.permute.xlu2 %1961 }
 0x799   : > { %v1872_v59 = vsel %vm1132_vm3, %v1868_v27, %v3718_v45  ;;  %v1873_v48 = vsel %vm1132_vm3, %v1869_v47, %v3719_v31 }
 0x79a   : > { %v1877_v56 = vsel %vm1876_vm11, %v1872_v59, %v3723_v58  ;;  %v1878_v57 = vsel %vm1876_vm11, %v1873_v48, %v3724_v11 }
 0x79b   : > { %v1889_v26 = vpack.c.bf16 %v1878_v57, %v1877_v56 }
 0x79d   : > { %3439 = vmatmul.msk.bf16.vlgmr.msrb.gmra.mxu0 %vm550_vm1, %v1889_v26  ;;  %v2244_v26 = vld [vmem:[%s5348_s4 + $0x8] sm:$0xff] }
 0x7a0   : > { %v1965_v41 = vpop.permute.xlu2 %1964 }
 0x7a1   : > { %vm1971_vm15 = vcmp.eq.s32.totalorder %v1965_v41, 1 }
 0x7a6   : > { %v3732_v2 = vpop.permute.xlu0 %3731 }
 0x7a7   : > { %v3734_v28 = vunpack.i.h.bf16 %v3732_v2  ;;  %v3733_v50 = vunpack.i.l.bf16 %v3732_v2  ;;  %v3484_v2 = vld [vmem:[%s5348_s4 + $0x88] sm:$0xff] }
 0x7a9   : > { %v1875_v33 = vsel %vm1132_vm3, %v1871_v40, %v3734_v28  ;;  %v1874_v51 = vsel %vm1132_vm3, %v1870_v24, %v3733_v50  ;;  %vm1970_vm3 = vcmp.eq.s32.totalorder %v1962_v29, 1  ;;  %v3476_v28 = vld [vmem:[%s5348_s4 + $0x48] sm:$0xff]  ;;  %v3475_v50 = vld [vmem:[%s5348_s4 + $0x40] sm:$0xff] }
 0x7aa   : > { %v1879_v37 = vsel %vm1876_vm11, %v1874_v51, %v3738_v1  ;;  %v1880_v25 = vsel %vm1876_vm11, %v1875_v33, %v3739_v46  ;;  %v3491_v24 = vld [vmem:[%s5348_s4 + $0xc0] sm:$0xff]  ;;  %v3480_v46 = vld [vmem:[%s5348_s4 + $0x68] sm:$0xff]  ;;  %v2246_v1 = vld [vmem:[%s5348_s4 + $0x18] sm:$0xff] }
 0x7ab   : > { %v1890_v7 = vpack.c.bf16 %v1880_v25, %v1879_v37  ;;  %v3483_v40 = vld [vmem:[%s5348_s4 + $0x80] sm:$0xff]  ;;  %v3488_v33 = vld [vmem:[%s5348_s4 + $0xa8] sm:$0xff]  ;;  %v2245_v37 = vld [vmem:[%s5348_s4 + $0x10] sm:$0xff] }
 0x7ac   : > { %v3487_v51 = vld [vmem:[%s5348_s4 + $0xa0] sm:$0xff]  ;;  %v3492_v25 = vld [vmem:[%s5348_s4 + $0xc8] sm:$0xff] }
 0x7ad   : > { %3440 = vmatmul.msk.bf16.gmra.mxu0 %vm550_vm1, %v1890_v7  ;;  %v3639_v7 = vld [vmem:[%s4077_s23 + $0x58] sm:$0xff] }
 0x7ae   : > { %v1959_v54 = vpop.permute.xlu0 %1958  ;;  %2121 = vmatpush.bf16.msra.mxu2 %v3639_v7 }
 0x7af   : > { %vm1969_vm13 = vcmp.eq.s32.totalorder %v1959_v54, 1 }
 0x7b2   : > { %2122 = vmatpush.bf16.msra.mxu2 %v3638_v60 }
 0x81a   : > { %v1930_v19 = vpop.f32.mrf.mxu0 }
 0x81b   : > { %v1940_v8 = vadd.f32 %v1930_v19, %v4203_v0  ;;  %v3637_v19 = vld [vmem:[%s4077_s23 + $0x48] sm:$0xff] }
 0x81c   : > { %2123 = vmatpush.bf16.msra.mxu2 %v3637_v19 }
 0x81d   : > { %v1945_v36 = vadd.f32 %v1944_v16, %v1940_v8 }
 0x81f   : > { %v4787_v15 = vsel %vm1969_vm13, %v1945_v36, 0.0  ;;  %v3636_v36 = vld [vmem:[%s4077_s23 + $0x40] sm:$0xff] }
 0x820   : > { %v1977_v52 = vsel %vm550_vm1, %v4787_v15, 0.0  ;;  %2124 = vmatpush.bf16.msra.mxu2 %v3636_v36 }
 0x821   : > { %1978 = vadd.xlane.f32.xlu0 %v1977_v52 }
 0x822   : > { %v1932_v61 = vpop.f32.mrf.mxu0 }
 0x823   : > { %v1941_v32 = vadd.f32 %v1932_v61, %v4208_v62  ;;  %v1968_v62 = vpop.permute.xlu1 %1967 }
 0x824   : > { %vm1972_vm0 = vcmp.eq.s32.totalorder %v1968_v62, 1 }
 0x825   : > { %v1946_v35 = vadd.f32 %v1944_v16, %v1941_v32 }
 0x827   : > { %v4792_v23 = vsel %vm1970_vm3, %v1946_v35, 0.0 }
 0x828   : > { %v1980_v20 = vsel %vm550_vm1, %v4792_v23, 0.0 }
 0x829   : > { %1981 = vadd.xlane.f32.xlu2 %v1980_v20 }
 0x82a   : > { %v1935_v0 = vpop.f32.mrf.mxu0 }
 0x82b   : > { %v1942_v21 = vadd.f32 %v1935_v0, %v4213_v5 }
 0x82d   : > { %v1947_v55 = vadd.f32 %v1944_v16, %v1942_v21 }
 0x82f   : > { %v4797_v63 = vsel %vm1971_vm15, %v1947_v55, 0.0 }
 0x830   : > { %v1983_v12 = vsel %vm550_vm1, %v4797_v63, 0.0 }
 0x831   : > { %1984 = vadd.xlane.f32.xlu1 %v1983_v12 }
 0x832   : > { %v1937_v34 = vpop.f32.mrf.mxu0 }
 0x833   : > { %v1943_v43 = vadd.f32 %v1937_v34, %v4218_v9 }
 0x835   : > { %v1948_v17 = vadd.f32 %v1944_v16, %v1943_v43 }
 0x837   : > { %v4802_v53 = vsel %vm1972_vm0, %v1948_v17, 0.0 }
 0x838   : > { %v1986_v44 = vsel %vm550_vm1, %v4802_v53, 0.0 }
 0x839   : > { %1987 = vadd.xlane.f32.xlu0 %v1986_v44  ;;  %v4890_v44 = vld [vmem:[%s4072_s16 + $0x10] sm:$0xff] }
 0x83a   : > { %v2086_v19 = vperm.slane %v4890_v44, 2 }
 0x894   : > { %v1979_v5 = vpop.xlane.xlu0 %1978 }
 0x895   : > { %v1989_v38 = vmul.f32 %v1979_v5, %v4124_v18 }
 0x897   : > { %v4808_v14 = vsub.f32 %v4787_v15, %v1989_v38 }
 0x899   : > { %v1997_v42 = vmul.f32 %v4808_v14, %v4808_v14 }
 0x89b   : > { %v2001_v13 = vsel %vm550_vm1, %v1997_v42, 0.0 }
 0x89c   : > { %2002 = vadd.xlane.f32.xlu2 %v2001_v13  ;;  %v1982_v9 = vpop.xlane.xlu2 %1981 }
 0x89d   : > { %v1990_v10 = vmul.f32 %v1982_v9, %v4124_v18 }
 0x89f   : > { %v4815_v4 = vsub.f32 %v4792_v23, %v1990_v10 }
 0x8a1   : > { %v1998_v39 = vmul.f32 %v4815_v4, %v4815_v4 }
 0x8a3   : > { %v2004_v49 = vsel %vm550_vm1, %v1998_v39, 0.0  ;;  %v2065_v39 = vperm.slane %v4890_v44, 0 }
 0x8a4   : > { %2005 = vadd.xlane.f32.xlu1 %v2004_v49  ;;  %v1985_v31 = vpop.xlane.xlu1 %1984 }
 0x8a5   : > { %v1991_v45 = vmul.f32 %v1985_v31, %v4124_v18 }
 0x8a7   : > { %v4822_v47 = vsub.f32 %v4797_v63, %v1991_v45 }
 0x8a9   : > { %v1999_v27 = vmul.f32 %v4822_v47, %v4822_v47 }
 0x8ab   : > { %v2007_v11 = vsel %vm550_vm1, %v1999_v27, 0.0 }
 0x8ac   : > { %2008 = vadd.xlane.f32.xlu0 %v2007_v11  ;;  %v1988_v58 = vpop.xlane.xlu0 %1987 }
 0x8ad   : > { %v1992_v59 = vmul.f32 %v1988_v58, %v4124_v18 }
 0x8af   : > { %v4829_v48 = vsub.f32 %v4802_v53, %v1992_v59  ;;  %v2070_v59 = vperm.slane %v4890_v44, 1 }
 0x8b1   : > { %v2000_v56 = vmul.f32 %v4829_v48, %v4829_v48 }
 0x8b3   : > { %v2010_v57 = vsel %vm550_vm1, %v2000_v56, 0.0 }
 0x8b4   : > { %2011 = vadd.xlane.f32.xlu2 %v2010_v57 }
 0x8bd   : > { %2254 = vperm.xlu1 %3742, %v2244_v26  }
 0x8c0   : > { %2249 = vperm.xlu0 %3740, %v2243_v3  }
 0x8c5   : > { %2381 = vperm.xlu1 %3742, %v3479_v30  }
 0x8c8   : > { %2301 = vperm.xlu0 %3740, %v3472_v6  }
 0x8cc   : > { %2296 = vperm.xlu2 %3741, %v3471_v22  }
 0x8cd   : > { %2433 = vperm.xlu1 %3742, %v3484_v2  }
 0x8d0   : > { %2348 = vperm.xlu0 %3740, %v3476_v28  }
 0x8d4   : > { %2343 = vperm.xlu2 %3741, %v3475_v50  }
 0x8d5   : > { %2522 = vperm.xlu1 %3742, %v3491_v24  }
 0x8d8   : > { %2428 = vperm.xlu0 %3740, %v3483_v40  }
 0x8dc   : > { %2386 = vperm.xlu2 %3741, %v3480_v46  }
 0x8dd   : > { %2264 = vperm.xlu1 %3742, %v2246_v1  }
 0x8e0   : > { %2480 = vperm.xlu0 %3740, %v3488_v33  }
 0x8e4   : > { %2475 = vperm.xlu2 %3741, %v3487_v51  }
 0x8e8   : > { %2259 = vperm.xlu0 %3740, %v2245_v37  }
 0x8ec   : > { %2527 = vperm.xlu2 %3741, %v3492_v25  }
 0x90f   : > { %v2003_v16 = vpop.xlane.xlu2 %2002 }
 0x910   : > { %v2013_v54 = vmul.f32 %v2003_v16, %v4124_v18 }
 0x912   : > { %v2017_v8 = vadd.f32 1e-05, %v2013_v54 }
 0x914   : > { %3841 = vrsqrt.f32 %v2017_v8  ;;  %vm2027_vm4 = vweird.f32 %v2017_v8 }
 0x917   : > { %v2006_v52 = vpop.xlane.xlu1 %2005 }
 0x918   : > { %v2014_v29 = vmul.f32 %v2006_v52, %v4124_v18 }
 0x91a   : > { %v3842_v61 = vpop.eup %3841  ;;  %v2018_v32 = vadd.f32 1e-05, %v2014_v29 }
 0x91b   : > { %v2022_v35 = vmul.f32 %v3842_v61, %v2017_v8  ;;  %vm2028_vm2 = vweird.f32 %v3842_v61 }
 0x91c   : > { %3843 = vrsqrt.f32 %v2018_v32  ;;  %vm2029_vm5 = vmor %vm2027_vm4, %vm2028_vm2  ;;  %vm2037_vm7 = vweird.f32 %v2018_v32 }
 0x91d   : > { %v2023_v20 = vmul.f32 %v3842_v61, %v2022_v35 }
 0x91f   : > { %v2024_v0 = vmul.f32 0.5, %v2023_v20  ;;  %v2009_v41 = vpop.xlane.xlu0 %2008 }
 0x920   : > { %v2015_v21 = vmul.f32 %v2009_v41, %v4124_v18 }
 0x921   : > { %v2025_v55 = vsub.f32 1.5, %v2024_v0 }
 0x922   : > { %v3844_v12 = vpop.eup %3843  ;;  %v2019_v62 = vadd.f32 1e-05, %v2015_v21 }
 0x923   : > { %v2026_v34 = vmul.f32 %v3842_v61, %v2025_v55  ;;  %v2032_v43 = vmul.f32 %v3844_v12, %v2018_v32  ;;  %vm2038_vm6 = vweird.f32 %v3844_v12 }
 0x924   : > { %3845 = vrsqrt.f32 %v2019_v62  ;;  %vm2039_vm8 = vmor %vm2037_vm7, %vm2038_vm6  ;;  %vm2047_vm10 = vweird.f32 %v2019_v62 }
 0x925   : > { %v2033_v17 = vmul.f32 %v3844_v12, %v2032_v43  ;;  %v2030_v5 = vsel %vm2029_vm5, %v3842_v61, %v2026_v34 }
 0x926   : > { %v2061_v49 = vmul.f32 %v2030_v5, %v4808_v14 }
 0x927   : > { %v2034_v38 = vmul.f32 0.5, %v2033_v17  ;;  %v2012_v42 = vpop.xlane.xlu2 %2011 }
 0x928   : > { %v2016_v13 = vmul.f32 %v2012_v42, %v4124_v18  ;;  %v2066_v56 = vmul.f32 %v2065_v39, %v2061_v49 }
 0x929   : > { %v2035_v9 = vsub.f32 1.5, %v2034_v38 }
 0x92a   : > { %v3846_v10 = vpop.eup %3845  ;;  %v2020_v31 = vadd.f32 1e-05, %v2016_v13  ;;  %v2071_v22 = vadd.f32 %v2070_v59, %v2066_v56 }
 0x92b   : > { %v2036_v45 = vmul.f32 %v3844_v12, %v2035_v9  ;;  %v2042_v27 = vmul.f32 %v3846_v10, %v2019_v62  ;;  %vm2048_vm9 = vweird.f32 %v3846_v10 }
 0x92c   : > { %3847 = vrsqrt.f32 %v2020_v31  ;;  %vm2049_vm12 = vmor %vm2047_vm10, %vm2048_vm9  ;;  %vm2057_vm11 = vweird.f32 %v2020_v31 }
 0x92d   : > { %v2040_v11 = vsel %vm2039_vm8, %v3844_v12, %v2036_v45  ;;  %v2043_v58 = vmul.f32 %v3846_v10, %v2042_v27 }
 0x92e   : > { %v2062_v57 = vmul.f32 %v2040_v11, %v4815_v4 }
 0x92f   : > { %v2044_v26 = vmul.f32 0.5, %v2043_v58 }
 0x930   : > { %v2067_v3 = vmul.f32 %v2065_v39, %v2062_v57 }
 0x931   : > { %v2045_v30 = vsub.f32 1.5, %v2044_v26 }
 0x932   : > { %v3848_v6 = vpop.eup %3847  ;;  %v2072_v2 = vadd.f32 %v2070_v59, %v2067_v3 }
 0x933   : > { %v2046_v14 = vmul.f32 %v3846_v10, %v2045_v30  ;;  %v2052_v28 = vmul.f32 %v3848_v6, %v2020_v31  ;;  %vm2058_vm14 = vweird.f32 %v3848_v6 }
 0x934   : > { %v2084_v50 = vpack.c.bf16 %v2072_v2, %v2071_v22  ;;  %vm2059_vm13 = vmor %vm2057_vm11, %vm2058_vm14 }
 0x935   : > { %v2053_v24 = vmul.f32 %v3848_v6, %v2052_v28  ;;  %v2050_v40 = vsel %vm2049_vm12, %v3846_v10, %v2046_v14 }
 0x936   : > { %3465 = vmatmul.msk.bf16.vlgmr.msra.gmra.mxu2 %vm550_vm1, %v2084_v50  ;;  %v2063_v4 = vmul.f32 %v2050_v40, %v4822_v47 }
 0x937   : > { %v2054_v46 = vmul.f32 0.5, %v2053_v24 }
 0x938   : > { %v2068_v25 = vmul.f32 %v2065_v39, %v2063_v4  ;;  %v3474_v4 = vld [vmem:[%s5348_s4 + $0x38] sm:$0xff] }
 0x939   : > { %v2055_v1 = vsub.f32 1.5, %v2054_v46 }
 0x93a   : > { %v2073_v60 = vadd.f32 %v2070_v59, %v2068_v25 }
 0x93b   : > { %v2056_v33 = vmul.f32 %v3848_v6, %v2055_v1 }
 0x93d   : > { %v2060_v51 = vsel %vm2059_vm13, %v3848_v6, %v2056_v33 }
 0x93e   : > { %v2064_v37 = vmul.f32 %v2060_v51, %v4829_v48 }
 0x940   : > { %v2069_v7 = vmul.f32 %v2065_v39, %v2064_v37 }
 0x942   : > { %v2074_v16 = vadd.f32 %v2070_v59, %v2069_v7 }
 0x944   : > { %v2085_v54 = vpack.c.bf16 %v2074_v16, %v2073_v60 }
 0x946   : > { %3466 = vmatmul.msk.bf16.gmra.mxu2 %vm550_vm1, %v2085_v54 }
 0x9b9   : > { %v2126_v8 = vpop.f32.mrf.mxu2 }
 0x9ba   : > { %v4902_v36 = vadd.f32 %v2126_v8, %v2086_v19  ;;  %v3481_v8 = vld [vmem:[%s5348_s4 + $0x70] sm:$0xff] }
 0x9bc   : > { %v3467_v47 = vmul.f32 -1.442695, %v4902_v36 }
 0x9be   : > { %3849 = vpow2.f32 %v3467_v47 }
 0x9c1   : > { %v2128_v52 = vpop.f32.mrf.mxu2 }
 0x9c2   : > { %v4905_v29 = vadd.f32 %v2128_v52, %v2086_v19 }
 0x9c4   : > { %v3850_v61 = vpop.eup %3849  ;;  %v3468_v48 = vmul.f32 -1.442695, %v4905_v29 }
 0x9c5   : > { %v2148_v32 = vadd.f32 1.0, %v3850_v61  ;;  %v3477_v61 = vld [vmem:[%s5348_s4 + $0x50] sm:$0xff] }
 0x9c6   : > { %3851 = vpow2.f32 %v3468_v48 }
 0x9c7   : > { %3853 = vrcp.f32 %v2148_v32  ;;  %v2163_v43 = vand.u32 2147483648, %v2148_v32  ;;  %v2161_v38 = vand.u32 2147483647, %v2148_v32  ;;  %vm2157_vm15 = vweird.f32 %v2148_v32 }
 0x9c9   : > { %v2131_v35 = vpop.f32.mrf.mxu2  ;;  %v2164_v49 = vor.u32 1.1754944e-38, %v2163_v43  ;;  %vm2162_vm2 = vcmp.eq.f32.partialorder %v2161_v38, 8.507059e+37  ;;  %v2250_v43 = vpop.permute.xlu0 %2249 }
 0x9ca   : > { %v4908_v20 = vadd.f32 %v2131_v35, %v2086_v19  ;;  %v3473_v35 = vld [vmem:[%s5348_s4 + $0x30] sm:$0xff]  ;;  %v2297_v38 = vpop.permute.xlu2 %2296 }
 0x9cc   : > { %v3852_v0 = vpop.eup %3851  ;;  %v3469_v41 = vmul.f32 -1.442695, %v4908_v20 }
 0x9cd   : > { %v3854_v21 = vpop.eup %3853  ;;  %v2149_v55 = vadd.f32 1.0, %v3852_v0  ;;  %v3482_v0 = vld [vmem:[%s5348_s4 + $0x78] sm:$0xff] }
 0x9ce   : > { %3855 = vpow2.f32 %v3469_v41  ;;  %v2153_v12 = vmul.f32 %v3854_v21, %v2148_v32  ;;  %vm2158_vm3 = vweird.f32 %v3854_v21  ;;  %v3486_v32 = vld [vmem:[%s5348_s4 + $0x98] sm:$0xff]  ;;  %v3493_v41 = vld [vmem:[%s5348_s4 + $0xd0] sm:$0xff] }
 0x9cf   : > { %3857 = vrcp.f32 %v2149_v55  ;;  %vm2159_vm0 = vmor %vm2157_vm15, %vm2158_vm3  ;;  %v2178_v58 = vand.u32 2147483648, %v2149_v55  ;;  %v2176_v56 = vand.u32 2147483647, %v2149_v55  ;;  %vm2172_vm5 = vweird.f32 %v2149_v55 }
 0x9d0   : > { %v2154_v62 = vsub.f32 1.0, %v2153_v12  ;;  %v3485_v12 = vld [vmem:[%s5348_s4 + $0x90] sm:$0xff] }
 0x9d1   : > { %v2133_v34 = vpop.f32.mrf.mxu2  ;;  %v2179_v6 = vor.u32 1.1754944e-38, %v2178_v58  ;;  %vm2177_vm7 = vcmp.eq.f32.partialorder %v2176_v56, 8.507059e+37  ;;  %v2236_v56 = vlaneseq }
 0x9d2   : > { %v4911_v17 = vadd.f32 %v2133_v34, %v2086_v19  ;;  %v2155_v5 = vmul.f32 %v3854_v21, %v2154_v62  ;;  %v3494_v62 = vld [vmem:[%s5348_s4 + $0xd8] sm:$0xff] }
 0x9d3   : > { %v3490_v34 = vld [vmem:[%s5348_s4 + $0xb8] sm:$0xff] }
 0x9d4   : > { %v3856_v42 = vpop.eup %3855  ;;  %v3470_v13 = vmul.f32 -1.442695, %v4911_v17  ;;  %v2156_v9 = vadd.f32 %v3854_v21, %v2155_v5  ;;  %v2255_v5 = vpop.permute.xlu1 %2254 }
 0x9d5   : > { %v3858_v10 = vpop.eup %3857  ;;  %v2150_v39 = vadd.f32 1.0, %v3856_v42  ;;  %v2302_v42 = vpop.permute.xlu0 %2301 }
 0x9d6   : > { %3859 = vpow2.f32 %v3470_v13  ;;  %v2160_v31 = vsel %vm2159_vm0, %v3854_v21, %v2156_v9  ;;  %v2168_v45 = vmul.f32 %v3858_v10, %v2149_v55  ;;  %vm2173_vm4 = vweird.f32 %v3858_v10  ;;  %v3478_v21 = vld [vmem:[%s5348_s4 + $0x58] sm:$0xff]  ;;  %v3489_v55 = vld [vmem:[%s5348_s4 + $0xb0] sm:$0xff]  ;;  %v2344_v9 = vpop.permute.xlu2 %2343 }
 0x9d7   : > { %3861 = vrcp.f32 %v2150_v39  ;;  %v2165_v27 = vsel %vm2162_vm2, %v2164_v49, %v2160_v31  ;;  %vm2174_vm6 = vmor %vm2172_vm5, %vm2173_vm4  ;;  %v2193_v50 = vand.u32 2147483648, %v2150_v39  ;;  %v2191_v40 = vand.u32 2147483647, %v2150_v39 }
 0x9d8   : > { %2216 = vrot.lane.b32.xlu1 %v2165_v27, %s3957_s0  ;;  %v2169_v11 = vsub.f32 1.0, %v2168_v45  ;;  %vm2187_vm9 = vweird.f32 %v2150_v39 }
 0x9d9   : > { %v2194_v33 = vor.u32 1.1754944e-38, %v2193_v50  ;;  %vm2192_vm12 = vcmp.eq.f32.partialorder %v2191_v40, 8.507059e+37 }
 0x9da   : > { %v2170_v59 = vmul.f32 %v3858_v10, %v2169_v11 }
 0x9dc   : > { %v3860_v57 = vpop.eup %3859  ;;  %v2171_v26 = vadd.f32 %v3858_v10, %v2170_v59  ;;  %v2382_v13 = vpop.permute.xlu1 %2381 }
 0x9dd   : > { %v3862_v3 = vpop.eup %3861  ;;  %v2151_v30 = vadd.f32 1.0, %v3860_v57  ;;  %v4972_v57 = vshrl.u32 %v2236_v56, 7 }
 0x9de   : > { %v2175_v22 = vsel %vm2174_vm6, %v3858_v10, %v2171_v26  ;;  %v2183_v2 = vmul.f32 %v3862_v3, %v2150_v39  ;;  %vm2188_vm8 = vweird.f32 %v3862_v3  ;;  %v4954_v10 = vpop.permute.xlu0 %2348  ;;  %v4958_v49 = vpop.permute.xlu2 %2386 }
 0x9df   : > { %3863 = vrcp.f32 %v2151_v30  ;;  %v2180_v14 = vsel %vm2177_vm7, %v2179_v6, %v2175_v22  ;;  %vm2189_vm10 = vmor %vm2187_vm9, %vm2188_vm8  ;;  %v2208_v60 = vand.u32 2147483648, %v2151_v30  ;;  %v2206_v54 = vand.u32 2147483647, %v2151_v30 }
 0x9e0   : > { %2218 = vrot.lane.b32.xlu0 %v2180_v14, %s3957_s0  ;;  %v2184_v28 = vsub.f32 1.0, %v2183_v2  ;;  %vm2202_vm11 = vweird.f32 %v2151_v30  ;;  %vm2238_vm15 = vcmp.lt.s32.totalorder %v4972_v57, 3  ;;  %vm2284_vm0 = vcmp.lt.s32.totalorder %v4972_v57, 2 }
 0x9e1   : > { %v2209_v47 = vor.u32 1.1754944e-38, %v2208_v60  ;;  %vm2207_vm3 = vcmp.eq.f32.partialorder %v2206_v54, 8.507059e+37  ;;  %vm2331_vm2 = vcmp.lt.s32.totalorder %v4972_v57, 1  ;;  %vm2416_vm4 = vcmp.lt.s32.totalorder %v4972_v57, 7 }
 0x9e2   : > { %v2185_v24 = vmul.f32 %v3862_v3, %v2184_v28  ;;  %vm2463_vm5 = vcmp.lt.s32.totalorder %v4972_v57, 6  ;;  %vm2510_vm6 = vcmp.lt.s32.totalorder %v4972_v57, 5 }
 0x9e4   : > { %v2186_v46 = vadd.f32 %v3862_v3, %v2185_v24  ;;  %v4956_v39 = vpop.permute.xlu1 %2433  ;;  %v4989_v24 = vld [vmem:[%s4072_s16 + $0x20] sm:$0xff] }
 0x9e5   : > { %v3864_v1 = vpop.eup %3863 }
 0x9e6   : > { %v2190_v51 = vsel %vm2189_vm10, %v3862_v3, %v2186_v46  ;;  %v2198_v37 = vmul.f32 %v3864_v1, %v2151_v30  ;;  %vm2203_vm14 = vweird.f32 %v3864_v1  ;;  %v4960_v31 = vpop.permute.xlu0 %2428  ;;  %v4964_v27 = vpop.permute.xlu2 %2475 }
 0x9e7   : > { %v2195_v25 = vsel %vm2192_vm12, %v2194_v33, %v2190_v51  ;;  %vm2204_vm13 = vmor %vm2202_vm11, %vm2203_vm14  ;;  %v5003_v33 = vperm.slane %v4989_v24, 5 }
 0x9e8   : > { %2311 = vperm.xlu0 %3740, %v3474_v4   ;;  %2220 = vrot.lane.b32.xlu1 %v2195_v25, %s3957_s0  ;;  %v2199_v7 = vsub.f32 1.0, %v2198_v37  ;;  %v5006_v37 = vperm.slane %v4989_v24, 6 }
 0x9ea   : > { %v2200_v16 = vmul.f32 %v3864_v1, %v2199_v7 }
 0x9ec   : > { %v2201_v19 = vadd.f32 %v3864_v1, %v2200_v16  ;;  %v4962_v45 = vpop.permute.xlu1 %2522 }
 0x9ee   : > { %v2205_v52 = vsel %vm2204_vm13, %v3864_v1, %v2201_v19  ;;  %v4966_v11 = vpop.permute.xlu0 %2480  ;;  %v4970_v59 = vpop.permute.xlu2 %2527 }
 0x9ef   : > { %v2210_v48 = vsel %vm2207_vm3, %v2209_v47, %v2205_v52 }
 0x9f0   : > { %2391 = vperm.xlu0 %3740, %v3481_v8   ;;  %2222 = vrot.lane.b32.xlu2 %v2210_v48, %s3957_s0 }
 0x9f1   : > { %2353 = vperm.xlu1 %3742, %v3477_v61   ;;  %v5024_v61 = vperm.slane %v4989_v24, 7 }
 0x9f4   : > { %v4968_v58 = vpop.permute.xlu1 %2264 }
 0x9f6   : > { %v4974_v26 = vpop.permute.xlu0 %2259 }
 0x9f8   : > { %2443 = vperm.xlu0 %3740, %v3486_v32   ;;  %2306 = vperm.xlu2 %3741, %v3473_v35  }
 0x9f9   : > { %2396 = vperm.xlu1 %3742, %v3482_v0  }
 0xa00   : > { %2532 = vperm.xlu0 %3740, %v3493_v41   ;;  %2358 = vperm.xlu2 %3741, %v3478_v21  }
 0xa01   : > { %2485 = vperm.xlu1 %3742, %v3489_v55  }
 0xa08   : > { %2438 = vperm.xlu2 %3741, %v3485_v12  }
 0xa09   : > { %2537 = vperm.xlu1 %3742, %v3494_v62  }
 0xa10   : > { %2490 = vperm.xlu2 %3741, %v3490_v34  }
 0xa4a   : > { %v2217_v3 = vpop.permute.xlu1 %2216  ;;  %v2223_v30 = vpop.permute.xlu2 %2222 }
 0xa4b   : > { %v4977_v6 = vmul.f32 %v2217_v3, %v4902_v36  ;;  %v4980_v22 = vmul.f32 %v2223_v30, %v4911_v17 }
 0xa4d   : > { %v2232_v2 = vrot.slane %v4977_v6, 5  ;;  %v2235_v14 = vrot.slane %v4980_v22, 5  ;;  %v2280_v28 = vrot.slane %v4977_v6, 6  ;;  %v2283_v50 = vrot.slane %v4980_v22, 6 }
 0xa4e   : > { %v2327_v40 = vrot.slane %v4977_v6, 7  ;;  %v2330_v46 = vrot.slane %v4980_v22, 7  ;;  %v2412_v0 = vrot.slane %v4977_v6, 1  ;;  %v2399_v62 = vmul.f32 %v2382_v13, %v4977_v6 }
 0xa4f   : > { %v2242_v36 = vsel %vm2238_vm15, %v2235_v14, %v2232_v2  ;;  %v2288_v17 = vsel %vm2284_vm0, %v2283_v50, %v2280_v28  ;;  %v2459_v56 = vrot.slane %v4977_v6, 2 }
 0xa50   : > { %v2267_v4 = vmul.f32 %v2250_v43, %v2242_v36  ;;  %v2314_v51 = vmul.f32 %v2297_v38, %v2288_v17  ;;  %v2335_v7 = vsel %vm2331_vm2, %v2330_v46, %v2327_v40 }
 0xa51   : > { %v2361_v35 = vmul.f32 %v2344_v9, %v2335_v7 }
 0xa52   : > { %v2219_v1 = vpop.permute.xlu0 %2218  ;;  %v2307_v8 = vpop.permute.xlu2 %2306  ;;  %v2272_v47 = vmul.f32 %v5003_v33, %v2267_v4  ;;  %v2319_v52 = vmul.f32 %v5006_v37, %v2314_v51 }
 0xa53   : > { %v5009_v25 = vmul.f32 %v2219_v1, %v4905_v29  ;;  %v528_v29 = vld [vmem:[%s4072_s16 + $0x30] sm:$0xf]  ;;  %v2366_v36 = vmul.f32 %v5024_v61, %v2361_v35 }
 0xa54   : > { %v5037_v34 = vperm.slane %v528_v29, 0  ;;  %v2323_v9 = vadd.f32 %v2319_v52, %v2272_v47  ;;  %v5050_v30 = vperm.slane %v528_v29, 1  ;;  %v5065_v52 = vperm.slane %v528_v29, 2 }
 0xa55   : > { %v2233_v60 = vrot.slane %v5009_v25, 5  ;;  %v2281_v16 = vrot.slane %v5009_v25, 6  ;;  %v2413_v54 = vrot.slane %v5009_v25, 1  ;;  %v2328_v19 = vrot.slane %v5009_v25, 7 }
 0xa56   : > { %v2460_v12 = vrot.slane %v5009_v25, 2  ;;  %v2370_v7 = vadd.f32 %v2366_v36, %v2323_v9  ;;  %v2404_v47 = vmul.f32 %v5037_v34, %v2399_v62  ;;  %v2400_v35 = vmul.f32 %v4958_v49, %v5009_v25 }
 0xa57   : > { %v2241_v48 = vsel %vm2238_vm15, %v2232_v2, %v2233_v60  ;;  %v2287_v32 = vsel %vm2284_vm0, %v2280_v28, %v2281_v16  ;;  %v2334_v55 = vsel %vm2331_vm2, %v2327_v40, %v2328_v19  ;;  %v2419_v43 = vsel %vm2416_vm4, %v2412_v0, %v2413_v54 }
 0xa58   : > { %v2268_v41 = vmul.f32 %v2255_v5, %v2241_v48  ;;  %v2315_v21 = vmul.f32 %v2302_v42, %v2287_v32  ;;  %v2362_v2 = vmul.f32 %v4954_v10, %v2334_v55  ;;  %v2507_v28 = vrot.slane %v5009_v25, 3  ;;  %v3643_v48 = vld [vmem:[%s4092_s19 + $0x38] sm:$0xff]  ;;  %v3641_v25 = vld [vmem:[%s4092_s19 + $0x28] sm:$0xff] }
 0xa59   : > { %v2466_v17 = vsel %vm2463_vm5, %v2459_v56, %v2460_v12  ;;  %v2446_v40 = vmul.f32 %v4960_v31, %v2419_v43  ;;  %2694 = vmatpush.bf16.msrb.mxu3 %v3643_v48 }
 0xa5a   : > { %v2221_v5 = vpop.permute.xlu1 %2220  ;;  %v2273_v38 = vmul.f32 %v5003_v33, %v2268_v41  ;;  %v2320_v42 = vmul.f32 %v5006_v37, %v2315_v21  ;;  %v2312_v13 = vpop.permute.xlu0 %2311  ;;  %v2367_v32 = vmul.f32 %v5024_v61, %v2362_v2 }
 0xa5b   : > { %v5048_v3 = vmul.f32 %v2221_v5, %v4908_v20  ;;  %v5358_v20 = vrot.slane %v4977_v6, 3  ;;  %v2359_v21 = vpop.permute.xlu2 %2358  ;;  %v2451_v43 = vmul.f32 %v5050_v30, %v2446_v40 }
 0xa5c   : > { %v2324_v51 = vadd.f32 %v2320_v42, %v2273_v38 }
 0xa5d   : > { %v2234_v1 = vrot.slane %v5048_v3, 5  ;;  %v2282_v4 = vrot.slane %v5048_v3, 6  ;;  %v2414_v10 = vrot.slane %v5048_v3, 1  ;;  %v2513_v41 = vsel %vm2510_vm6, %v5358_v20, %v2507_v28 }
 0xa5e   : > { %v2329_v62 = vrot.slane %v5048_v3, 7  ;;  %v2371_v38 = vadd.f32 %v2367_v32, %v2324_v51  ;;  %v2461_v42 = vrot.slane %v5048_v3, 2  ;;  %v2508_v40 = vrot.slane %v5048_v3, 3 }
 0xa5f   : > { %v2286_v31 = vsel %vm2284_vm0, %v2281_v16, %v2282_v4  ;;  %v2418_v55 = vsel %vm2416_vm4, %v2413_v54, %v2414_v10  ;;  %v2493_v16 = vmul.f32 %v4964_v27, %v2466_v17  ;;  %v2240_v5 = vsel %vm2238_vm15, %v2233_v60, %v2234_v1 }
 0xa60   : > { %v2447_v49 = vmul.f32 %v4956_v39, %v2418_v55  ;;  %v2269_v9 = vmul.f32 %v4974_v26, %v2240_v5  ;;  %v2316_v2 = vmul.f32 %v2307_v8, %v2286_v31  ;;  %v2408_v54 = vadd.f32 %v2404_v47, %v2370_v7  ;;  %v3642_v7 = vld [vmem:[%s4092_s19 + $0x30] sm:$0xff] }
 0xa61   : > { %v2405_v27 = vmul.f32 %v5037_v34, %v2400_v35  ;;  %v5093_v39 = vperm.slane %v528_v29, 3  ;;  %v2239_v60 = vsel %vm2238_vm15, %v2234_v1, %v2235_v14  ;;  %v2285_v26 = vsel %vm2284_vm0, %v2282_v4, %v2283_v50  ;;  %2695 = vmatpush.bf16.msrb.mxu3 %v3642_v7 }
 0xa62   : > { %v2452_v36 = vmul.f32 %v5050_v30, %v2447_v49  ;;  %v2392_v17 = vpop.permute.xlu0 %2391  ;;  %v2455_v8 = vadd.f32 %v2451_v43, %v2408_v54  ;;  %v2540_v51 = vmul.f32 %v4962_v45, %v2513_v41  ;;  %v2333_v29 = vsel %vm2331_vm2, %v2328_v19, %v2329_v62 }
 0xa63   : > { %v2354_v20 = vpop.permute.xlu1 %2353  ;;  %v2498_v47 = vmul.f32 %v5065_v52, %v2493_v16  ;;  %v2409_v48 = vadd.f32 %v2405_v27, %v2371_v38  ;;  %v2465_v14 = vsel %vm2463_vm5, %v2460_v12, %v2461_v42  ;;  %v2274_v1 = vmul.f32 %v5003_v33, %v2269_v9 }
 0xa64   : > { %v2321_v50 = vmul.f32 %v5006_v37, %v2316_v2  ;;  %v2363_v4 = vmul.f32 %v2354_v20, %v2333_v29  ;;  %v2494_v45 = vmul.f32 %v4966_v11, %v2465_v14  ;;  %v2270_v31 = vmul.f32 %v4968_v58, %v2239_v60  ;;  %v2439_v20 = vpop.permute.xlu2 %2438 }
 0xa65   : > { %v2317_v19 = vmul.f32 %v2312_v13, %v2285_v26  ;;  %v2456_v32 = vadd.f32 %v2452_v36, %v2409_v48  ;;  %v2512_v35 = vsel %vm2510_vm6, %v2507_v28, %v2508_v40  ;;  %v2502_v55 = vadd.f32 %v2498_v47, %v2455_v8  ;;  %2696 = vmatpush.bf16.msrb.mxu3 %v3641_v25 }
 0xa66   : > { %v2499_v12 = vmul.f32 %v5065_v52, %v2494_v45  ;;  %v2541_v41 = vmul.f32 %v4970_v59, %v2512_v35  ;;  %v2332_v11 = vsel %vm2331_vm2, %v2329_v62, %v2330_v46  ;;  %v5130_v58 = vperm.slane %v4890_v44, 3  ;;  %v3640_v59 = vld [vmem:[%s4092_s19 + $0x20] sm:$0xff] }
 0xa67   : > { %v2545_v13 = vmul.f32 %v5093_v39, %v2540_v51  ;;  %v2325_v16 = vadd.f32 %v2321_v50, %v2274_v1  ;;  %v2368_v43 = vmul.f32 %v5024_v61, %v2363_v4  ;;  %v2275_v5 = vmul.f32 %v5003_v33, %v2270_v31 }
 0xa68   : > { %v2503_v28 = vadd.f32 %v2499_v12, %v2456_v32  ;;  %v2546_v49 = vmul.f32 %v5093_v39, %v2541_v41  ;;  %v2322_v38 = vmul.f32 %v5006_v37, %v2317_v19  ;;  %v5139_v62 = vperm.slane %v4890_v44, 4 }
 0xa69   : > { %v2549_v2 = vadd.f32 %v2545_v13, %v2502_v55  ;;  %v2415_v54 = vrot.slane %v4980_v22, 1  ;;  %v2401_v36 = vmul.f32 %v2392_v17, %v5048_v3  ;;  %v2364_v60 = vmul.f32 %v2359_v21, %v2332_v11  ;;  %2697 = vmatpush.bf16.msrb.mxu3 %v3640_v59 }
 0xa6a   : > { %v2444_v46 = vpop.permute.xlu0 %2443  ;;  %v2550_v27 = vadd.f32 %v2546_v49, %v2503_v28  ;;  %v5145_v8 = vperm.slane %v4890_v44, 5  ;;  %v2372_v37 = vadd.f32 %v2368_v43, %v2325_v16  ;;  %v2326_v29 = vadd.f32 %v2322_v38, %v2275_v5 }
 0xa6b   : > { %v2397_v9 = vpop.permute.xlu1 %2396  ;;  %v2554_v26 = vadd.f32 %v5130_v58, %v2549_v2  ;;  %v2417_v33 = vsel %vm2416_vm4, %v2414_v10, %v2415_v54  ;;  %v2406_v47 = vmul.f32 %v5037_v34, %v2401_v36  ;;  %v2462_v48 = vrot.slane %v4980_v22, 2 }
 0xa6c   : > { %v2402_v51 = vmul.f32 %v2397_v9, %v4980_v22  ;;  %v2555_v7 = vadd.f32 %v5130_v58, %v2550_v27  ;;  %v2448_v17 = vmul.f32 %v2439_v20, %v2417_v33  ;;  %v2369_v1 = vmul.f32 %v5024_v61, %v2364_v60  ;;  %v2491_v11 = vpop.permute.xlu2 %2490 }
 0xa6d   : > { %v2559_v21 = vmul.f32 %v5139_v62, %v2554_v26  ;;  %v2420_v10 = vsel %vm2416_vm4, %v2415_v54, %v2412_v0  ;;  %v2509_v50 = vrot.slane %v4980_v22, 3  ;;  %v2410_v45 = vadd.f32 %v2406_v47, %v2372_v37 }
 0xa6e   : > { %v2560_v14 = vmul.f32 %v5139_v62, %v2555_v7  ;;  %v2407_v25 = vmul.f32 %v5037_v34, %v2402_v51  ;;  %v2464_v31 = vsel %vm2463_vm5, %v2461_v42, %v2462_v48  ;;  %v2453_v19 = vmul.f32 %v5050_v30, %v2448_v17 }
 0xa6f   : > { %v5164_v4 = vadd.f32 %v5145_v8, %v2559_v21  ;;  %v2373_v32 = vadd.f32 %v2369_v1, %v2326_v29  ;;  %v2511_v22 = vsel %vm2510_vm6, %v2508_v40, %v2509_v50  ;;  %v2449_v12 = vmul.f32 %v2444_v46, %v2420_v10 }
 0xa70   : > { %v5172_v61 = vadd.f32 %v5145_v8, %v2560_v14  ;;  %v2457_v20 = vadd.f32 %v2453_v19, %v2410_v45  ;;  %v2467_v3 = vsel %vm2463_vm5, %v2462_v48, %v2459_v56  ;;  %v5395_v9 = vrot.slane %v4977_v6, 3 }
 0xa71   : > { %v3495_v34 = vmul.f32 -1.442695, %v5164_v4  ;;  %v2411_v13 = vadd.f32 %v2407_v25, %v2373_v32  ;;  %v2496_v40 = vmul.f32 %v2491_v11, %v2467_v3  ;;  %v2454_v43 = vmul.f32 %v5050_v30, %v2449_v12 }
 0xa72   : > { %v2533_v35 = vpop.permute.xlu0 %2532  ;;  %v3496_v42 = vmul.f32 -1.442695, %v5172_v61  ;;  %v2514_v46 = vsel %vm2510_vm6, %v2509_v50, %v5395_v9 }
 0xa73   : > { %v2486_v0 = vpop.permute.xlu1 %2485  ;;  %v2542_v55 = vmul.f32 %v2533_v35, %v2511_v22  ;;  %3865 = vpow2.f32 %v3495_v34  ;;  %v2458_v59 = vadd.f32 %v2454_v43, %v2411_v13  ;;  %v2501_v36 = vmul.f32 %v5065_v52, %v2496_v40 }
 0xa74   : > { %v2495_v41 = vmul.f32 %v2486_v0, %v2464_v31  ;;  %3867 = vpow2.f32 %v3496_v42 }
 0xa75   : > { %v2547_v49 = vmul.f32 %v5093_v39, %v2542_v55  ;;  %v2505_v33 = vadd.f32 %v2501_v36, %v2458_v59 }
 0xa76   : > { %v2500_v16 = vmul.f32 %v5065_v52, %v2495_v41 }
 0xa78   : > { %v2504_v28 = vadd.f32 %v2500_v16, %v2457_v20 }
 0xa79   : > { %v3866_v38 = vpop.eup %3865 }
 0xa7a   : > { %v2551_v5 = vadd.f32 %v2547_v49, %v2504_v28  ;;  %v3868_v54 = vpop.eup %3867  ;;  %v2580_v60 = vadd.f32 1.0, %v3866_v38 }
 0xa7b   : > { %v2538_v2 = vpop.permute.xlu1 %2537  ;;  %v2581_v30 = vadd.f32 1.0, %v3868_v54 }
 0xa7c   : > { %v2556_v56 = vadd.f32 %v5130_v58, %v2551_v5  ;;  %v2543_v27 = vmul.f32 %v2538_v2, %v2514_v46  ;;  %3869 = vrcp.f32 %v2580_v60  ;;  %v2595_v14 = vand.u32 2147483648, %v2580_v60 }
 0xa7d   : > { %3871 = vrcp.f32 %v2581_v30  ;;  %v2610_v45 = vand.u32 2147483648, %v2581_v30  ;;  %vm2589_vm9 = vweird.f32 %v2580_v60  ;;  %vm2604_vm12 = vweird.f32 %v2581_v30 }
 0xa7e   : > { %v2561_v26 = vmul.f32 %v5139_v62, %v2556_v56  ;;  %v2548_v37 = vmul.f32 %v5093_v39, %v2543_v27 }
 0xa7f   : > { %v2611_v35 = vor.u32 1.1754944e-38, %v2610_v45 }
 0xa80   : > { %v2552_v6 = vadd.f32 %v2548_v37, %v2505_v33  ;;  %v5197_v57 = vadd.f32 %v5145_v8, %v2561_v26 }
 0xa82   : > { %v2557_v51 = vadd.f32 %v5130_v58, %v2552_v6  ;;  %v3497_v52 = vmul.f32 -1.442695, %v5197_v57  ;;  %v3870_v7 = vpop.eup %3869  ;;  %v2593_v58 = vand.u32 2147483647, %v2580_v60  ;;  %v2659_v6 = vperm.slane %v4890_v44, 6 }
 0xa83   : > { %v3872_v17 = vpop.eup %3871  ;;  %v2585_v21 = vmul.f32 %v3870_v7, %v2580_v60  ;;  %vm2590_vm7 = vweird.f32 %v3870_v7 }
 0xa84   : > { %v2562_v29 = vmul.f32 %v5139_v62, %v2557_v51  ;;  %3873 = vpow2.f32 %v3497_v52  ;;  %v2600_v47 = vmul.f32 %v3872_v17, %v2581_v30  ;;  %vm2605_vm8 = vweird.f32 %v3872_v17  ;;  %vm2591_vm10 = vmor %vm2589_vm9, %vm2590_vm7 }
 0xa85   : > { %v2586_v39 = vsub.f32 1.0, %v2585_v21  ;;  %v2608_v62 = vand.u32 2147483647, %v2581_v30  ;;  %vm2594_vm14 = vcmp.eq.f32.partialorder %v2593_v58, 8.507059e+37  ;;  %vm2606_vm11 = vmor %vm2604_vm12, %vm2605_vm8 }
 0xa86   : > { %v5203_v48 = vadd.f32 %v5145_v8, %v2562_v29  ;;  %v2601_v1 = vsub.f32 1.0, %v2600_v47  ;;  %v2596_v8 = vor.u32 1.1754944e-38, %v2595_v14 }
 0xa87   : > { %v2587_v50 = vmul.f32 %v3870_v7, %v2586_v39  ;;  %vm2609_vm13 = vcmp.eq.f32.partialorder %v2608_v62, 8.507059e+37 }
 0xa88   : > { %v3498_v10 = vmul.f32 -1.442695, %v5203_v48  ;;  %v2602_v31 = vmul.f32 %v3872_v17, %v2601_v1 }
 0xa89   : > { %v2588_v19 = vadd.f32 %v3870_v7, %v2587_v50 }
 0xa8a   : > { %v3874_v25 = vpop.eup %3873  ;;  %3875 = vpow2.f32 %v3498_v10  ;;  %v2603_v0 = vadd.f32 %v3872_v17, %v2602_v31 }
 0xa8b   : > { %v2582_v32 = vadd.f32 1.0, %v3874_v25  ;;  %v2592_v22 = vsel %vm2591_vm10, %v3870_v7, %v2588_v19 }
 0xa8c   : > { %v2597_v34 = vsel %vm2594_vm14, %v2596_v8, %v2592_v22  ;;  %v2607_v12 = vsel %vm2606_vm11, %v3872_v17, %v2603_v0 }
 0xa8d   : > { %3877 = vrcp.f32 %v2582_v32  ;;  %v2612_v41 = vsel %vm2609_vm13, %v2611_v35, %v2607_v12  ;;  %v2644_v42 = vmul.f32 %v2597_v34, %v5164_v4  ;;  %v2625_v5 = vand.u32 2147483648, %v2582_v32 }
 0xa8e   : > { %v2645_v11 = vmul.f32 %v2612_v41, %v5172_v61  ;;  %vm2619_vm15 = vweird.f32 %v2582_v32  ;;  %v2623_v38 = vand.u32 2147483647, %v2582_v32 }
 0xa8f   : > { %v2626_v54 = vor.u32 1.1754944e-38, %v2625_v5 }
 0xa90   : > { %v3876_v55 = vpop.eup %3875  ;;  %v2657_v20 = vpack.c.bf16 %v2645_v11, %v2644_v42  ;;  %vm2624_vm4 = vcmp.eq.f32.partialorder %v2623_v38, 8.507059e+37 }
 0xa91   : > { %v2583_v13 = vadd.f32 1.0, %v3876_v55 }
 0xa92   : > { %3523 = vmatmul.msk.bf16.vlgmr.msrb.gmra.mxu3 %vm550_vm1, %v2657_v20 }
 0xa93   : > { %v3878_v16 = vpop.eup %3877  ;;  %3879 = vrcp.f32 %v2583_v13  ;;  %v2640_v4 = vand.u32 2147483648, %v2583_v13  ;;  %v2638_v2 = vand.u32 2147483647, %v2583_v13  ;;  %vm2634_vm5 = vweird.f32 %v2583_v13 }
 0xa94   : > { %v2615_v3 = vmul.f32 %v3878_v16, %v2582_v32  ;;  %vm2620_vm3 = vweird.f32 %v3878_v16 }
 0xa95   : > { %vm2621_vm0 = vmor %vm2619_vm15, %vm2620_vm3  ;;  %v2641_v27 = vor.u32 1.1754944e-38, %v2640_v4  ;;  %vm2639_vm7 = vcmp.eq.f32.partialorder %v2638_v2, 8.507059e+37 }
 0xa96   : > { %v2616_v40 = vsub.f32 1.0, %v2615_v3 }
 0xa98   : > { %v2617_v43 = vmul.f32 %v3878_v16, %v2616_v40  ;;  %v3646_v40 = vld [vmem:[%s4077_s23 + $0x30] sm:$0xff] }
 0xa99   : > { %v3880_v28 = vpop.eup %3879 }
 0xa9a   : > { %v2618_v49 = vadd.f32 %v3878_v16, %v2617_v43  ;;  %v2630_v59 = vmul.f32 %v3880_v28, %v2583_v13  ;;  %vm2635_vm2 = vweird.f32 %v3880_v28 }
 0xa9b   : > { %vm2636_vm6 = vmor %vm2634_vm5, %vm2635_vm2 }
 0xa9c   : > { %v2631_v9 = vsub.f32 1.0, %v2630_v59  ;;  %v2622_v61 = vsel %vm2621_vm0, %v3878_v16, %v2618_v49  ;;  %v3647_v16 = vld [vmem:[%s4077_s23 + $0x38] sm:$0xff]  ;;  %v3645_v49 = vld [vmem:[%s4077_s23 + $0x28] sm:$0xff] }
 0xa9d   : > { %v2627_v56 = vsel %vm2624_vm4, %v2626_v54, %v2622_v61  ;;  %2857 = vmatpush.bf16.msrb.mxu1 %v3647_v16 }
 0xa9e   : > { %v2632_v46 = vmul.f32 %v3880_v28, %v2631_v9  ;;  %v2646_v26 = vmul.f32 %v2627_v56, %v5197_v57  ;;  %v3644_v9 = vld [vmem:[%s4077_s23 + $0x20] sm:$0xff] }
 0xaa0   : > { %v2633_v36 = vadd.f32 %v3880_v28, %v2632_v46 }
 0xaa1   : > { %2858 = vmatpush.bf16.msrb.mxu1 %v3646_v40 }
 0xaa2   : > { %v2637_v60 = vsel %vm2636_vm6, %v3880_v28, %v2633_v36 }
 0xaa3   : > { %v2642_v30 = vsel %vm2639_vm7, %v2641_v27, %v2637_v60 }
 0xaa4   : > { %v2647_v33 = vmul.f32 %v2642_v30, %v5203_v48 }
 0xaa5   : > { %2859 = vmatpush.bf16.msrb.mxu1 %v3645_v49  ;;  %v3653_v49 = vld [vmem:[%s4082_s24 + $0x68] sm:$0xff] }
 0xaa6   : > { %v2658_v37 = vpack.c.bf16 %v2647_v33, %v2646_v26 }
 0xaa8   : > { %3524 = vmatmul.msk.bf16.gmra.mxu3 %vm550_vm1, %v2658_v37 }
 0xaa9   : > { %2860 = vmatpush.bf16.msrb.mxu1 %v3644_v9  ;;  %v3651_v9 = vld [vmem:[%s4082_s24 + $0x58] sm:$0xff] }
 0xb15   : > { %v2699_v51 = vpop.f32.mrf.mxu3 }
 0xb16   : > { %v2700_v52 = vadd.f32 %v2699_v51, %v2659_v6 }
 0xb18   : > { %v5214_v7 = vadd.f32 %v2700_v52, %v4787_v15 }
 0xb1a   : > { %v2713_v29 = vsel %vm550_vm1, %v5214_v7, 0.0 }
 0xb1b   : > { %2714 = vadd.xlane.f32.xlu2 %v2713_v29 }
 0xb1d   : > { %v2701_v17 = vpop.f32.mrf.mxu3 }
 0xb1e   : > { %v2702_v21 = vadd.f32 %v2701_v17, %v2659_v6 }
 0xb20   : > { %v5219_v57 = vadd.f32 %v2702_v21, %v4792_v23 }
 0xb22   : > { %v2716_v47 = vsel %vm550_vm1, %v5219_v57, 0.0 }
 0xb23   : > { %2717 = vadd.xlane.f32.xlu0 %v2716_v47 }
 0xb2b   : > { %v2704_v48 = vpop.f32.mrf.mxu3 }
 0xb2c   : > { %v2705_v44 = vadd.f32 %v2704_v48, %v2659_v6 }
 0xb2e   : > { %v5224_v39 = vadd.f32 %v2705_v44, %v4797_v63  ;;  %v2806_v44 = vperm.slane %v4989_v24, 0 }
 0xb30   : > { %v2719_v15 = vsel %vm550_vm1, %v5224_v39, 0.0 }
 0xb31   : > { %2720 = vadd.xlane.f32.xlu1 %v2719_v15 }
 0xb33   : > { %v2706_v14 = vpop.f32.mrf.mxu3 }
 0xb34   : > { %v2707_v1 = vadd.f32 %v2706_v14, %v2659_v6  ;;  %v3914_v6 = vld [vmem:[%s4072_s16 + $0x10] sm:$0xff] }
 0xb35   : > { %v2801_v51 = vperm.slane %v3914_v6, 7 }
 0xb36   : > { %v5229_v10 = vadd.f32 %v2707_v1, %v4802_v53 }
 0xb38   : > { %v2722_v23 = vsel %vm550_vm1, %v5229_v10, 0.0 }
 0xb39   : > { %2723 = vadd.xlane.f32.xlu2 %v2722_v23 }
 0xb8e   : > { %v2715_v50 = vpop.xlane.xlu2 %2714 }
 0xb8f   : > { %v2725_v58 = vmul.f32 %v2715_v50, %v4124_v18 }
 0xb91   : > { %v2729_v45 = vsub.f32 %v5214_v7, %v2725_v58 }
 0xb93   : > { %v2733_v63 = vmul.f32 %v2729_v45, %v2729_v45 }
 0xb95   : > { %v2737_v25 = vsel %vm550_vm1, %v2733_v63, 0.0 }
 0xb96   : > { %2738 = vadd.xlane.f32.xlu0 %v2737_v25  ;;  %v2718_v31 = vpop.xlane.xlu0 %2717 }
 0xb97   : > { %v2726_v62 = vmul.f32 %v2718_v31, %v4124_v18 }
 0xb99   : > { %v5238_v19 = vsub.f32 %v5219_v57, %v2726_v62 }
 0xb9b   : > { %v2734_v53 = vmul.f32 %v5238_v19, %v5238_v19 }
 0xb9d   : > { %v2740_v32 = vsel %vm550_vm1, %v2734_v53, 0.0 }
 0xb9e   : > { %2741 = vadd.xlane.f32.xlu1 %v2740_v32 }
 0xba4   : > { %v2721_v8 = vpop.xlane.xlu1 %2720 }
 0xba5   : > { %v2727_v0 = vmul.f32 %v2721_v8, %v4124_v18 }
 0xba7   : > { %v5245_v22 = vsub.f32 %v5224_v39, %v2727_v0 }
 0xba9   : > { %v2735_v35 = vmul.f32 %v5245_v22, %v5245_v22 }
 0xbab   : > { %v2743_v34 = vsel %vm550_vm1, %v2735_v35, 0.0 }
 0xbac   : > { %v2724_v12 = vpop.xlane.xlu2 %2723  ;;  %2744 = vadd.xlane.f32.xlu2 %v2743_v34 }
 0xbad   : > { %v2728_v41 = vmul.f32 %v2724_v12, %v4124_v18 }
 0xbaf   : > { %v5252_v55 = vsub.f32 %v5229_v10, %v2728_v41 }
 0xbb1   : > { %v2736_v42 = vmul.f32 %v5252_v55, %v5252_v55 }
 0xbb3   : > { %v2746_v11 = vsel %vm550_vm1, %v2736_v42, 0.0 }
 0xbb4   : > { %2747 = vadd.xlane.f32.xlu0 %v2746_v11 }
 0xc09   : > { %v2739_v13 = vpop.xlane.xlu0 %2738 }
 0xc0a   : > { %v2749_v20 = vmul.f32 %v2739_v13, %v4124_v18 }
 0xc0c   : > { %v2753_v3 = vadd.f32 1e-05, %v2749_v20 }
 0xc0e   : > { %3881 = vrsqrt.f32 %v2753_v3  ;;  %vm2763_vm9 = vweird.f32 %v2753_v3 }
 0xc11   : > { %v2742_v43 = vpop.xlane.xlu1 %2741 }
 0xc12   : > { %v2750_v28 = vmul.f32 %v2742_v43, %v4124_v18  ;;  %v3655_v43 = vld [vmem:[%s4082_s24 + $0x78] sm:$0xff] }
 0xc13   : > { %3020 = vmatpush.bf16.msra.mxu0 %v3655_v43 }
 0xc14   : > { %v3882_v59 = vpop.eup %3881  ;;  %v2754_v5 = vadd.f32 1e-05, %v2750_v28  ;;  %v2822_v28 = vperm.slane %v4989_v24, 1 }
 0xc15   : > { %v2758_v38 = vmul.f32 %v3882_v59, %v2753_v3  ;;  %vm2764_vm8 = vweird.f32 %v3882_v59 }
 0xc16   : > { %3883 = vrsqrt.f32 %v2754_v5  ;;  %vm2765_vm10 = vmor %vm2763_vm9, %vm2764_vm8  ;;  %vm2773_vm14 = vweird.f32 %v2754_v5 }
 0xc17   : > { %v2759_v4 = vmul.f32 %v3882_v59, %v2758_v38 }
 0xc19   : > { %v2760_v61 = vmul.f32 0.5, %v2759_v4 }
 0xc1b   : > { %v2761_v46 = vsub.f32 1.5, %v2760_v61 }
 0xc1c   : > { %v3884_v2 = vpop.eup %3883 }
 0xc1d   : > { %v2762_v54 = vmul.f32 %v3882_v59, %v2761_v46  ;;  %v2768_v36 = vmul.f32 %v3884_v2, %v2754_v5  ;;  %vm2774_vm12 = vweird.f32 %v3884_v2  ;;  %v3652_v5 = vld [vmem:[%s4082_s24 + $0x60] sm:$0xff]  ;;  %v3650_v46 = vld [vmem:[%s4082_s24 + $0x50] sm:$0xff] }
 0xc1e   : > { %vm2775_vm11 = vmor %vm2773_vm14, %vm2774_vm12 }
 0xc1f   : > { %v2745_v56 = vpop.xlane.xlu2 %2744  ;;  %v2769_v60 = vmul.f32 %v3884_v2, %v2768_v36  ;;  %v2766_v26 = vsel %vm2765_vm10, %v3882_v59, %v2762_v54 }
 0xc20   : > { %v2751_v27 = vmul.f32 %v2745_v56, %v4124_v18  ;;  %v2797_v52 = vmul.f32 %v2766_v26, %v2729_v45  ;;  %v3649_v56 = vld [vmem:[%s4082_s24 + $0x48] sm:$0xff] }
 0xc21   : > { %v2770_v33 = vmul.f32 0.5, %v2769_v60 }
 0xc22   : > { %v2755_v30 = vadd.f32 1e-05, %v2751_v27  ;;  %v2802_v15 = vmul.f32 %v2801_v51, %v2797_v52  ;;  %v3648_v27 = vld [vmem:[%s4082_s24 + $0x40] sm:$0xff] }
 0xc23   : > { %v2771_v37 = vsub.f32 1.5, %v2770_v33 }
 0xc24   : > { %3885 = vrsqrt.f32 %v2755_v30  ;;  %v2807_v63 = vadd.f32 %v2806_v44, %v2802_v15  ;;  %vm2783_vm3 = vweird.f32 %v2755_v30 }
 0xc25   : > { %v2772_v29 = vmul.f32 %v3884_v2, %v2771_v37 }
 0xc27   : > { %v2748_v17 = vpop.xlane.xlu0 %2747  ;;  %v2776_v47 = vsel %vm2775_vm11, %v3884_v2, %v2772_v29 }
 0xc28   : > { %v2752_v21 = vmul.f32 %v2748_v17, %v4124_v18  ;;  %v2798_v14 = vmul.f32 %v2776_v47, %v5238_v19 }
 0xc2a   : > { %v3886_v48 = vpop.eup %3885  ;;  %v2756_v1 = vadd.f32 1e-05, %v2752_v21  ;;  %v2803_v50 = vmul.f32 %v2801_v51, %v2798_v14 }
 0xc2b   : > { %v2778_v23 = vmul.f32 %v3886_v48, %v2755_v30  ;;  %vm2784_vm13 = vweird.f32 %v3886_v48 }
 0xc2c   : > { %3887 = vrsqrt.f32 %v2756_v1  ;;  %v2808_v45 = vadd.f32 %v2806_v44, %v2803_v50  ;;  %vm2785_vm15 = vmor %vm2783_vm3, %vm2784_vm13  ;;  %vm2793_vm2 = vweird.f32 %v2756_v1 }
 0xc2d   : > { %v2779_v58 = vmul.f32 %v3886_v48, %v2778_v23 }
 0xc2e   : > { %v2820_v31 = vpack.c.bf16 %v2808_v45, %v2807_v63 }
 0xc2f   : > { %v2780_v25 = vmul.f32 0.5, %v2779_v58 }
 0xc30   : > { %3549 = vmatmul.msk.bf16.vlgmr.msrb.gmra.mxu1 %vm550_vm1, %v2820_v31 }
 0xc31   : > { %v2781_v62 = vsub.f32 1.5, %v2780_v25 }
 0xc32   : > { %v3888_v53 = vpop.eup %3887 }
 0xc33   : > { %v2782_v32 = vmul.f32 %v3886_v48, %v2781_v62  ;;  %v2788_v8 = vmul.f32 %v3888_v53, %v2756_v1  ;;  %vm2794_vm0 = vweird.f32 %v3888_v53 }
 0xc34   : > { %vm2795_vm4 = vmor %vm2793_vm2, %vm2794_vm0 }
 0xc35   : > { %v2789_v0 = vmul.f32 %v3888_v53, %v2788_v8  ;;  %v2786_v19 = vsel %vm2785_vm15, %v3886_v48, %v2782_v32 }
 0xc36   : > { %v2799_v12 = vmul.f32 %v2786_v19, %v5245_v22  ;;  %v3654_v22 = vld [vmem:[%s4082_s24 + $0x70] sm:$0xff] }
 0xc37   : > { %v2790_v35 = vmul.f32 0.5, %v2789_v0  ;;  %3021 = vmatpush.bf16.msra.mxu0 %v3654_v22 }
 0xc38   : > { %v2804_v13 = vmul.f32 %v2801_v51, %v2799_v12 }
 0xc39   : > { %v2791_v34 = vsub.f32 1.5, %v2790_v35 }
 0xc3a   : > { %v2809_v16 = vadd.f32 %v2806_v44, %v2804_v13 }
 0xc3b   : > { %v2792_v41 = vmul.f32 %v3888_v53, %v2791_v34  ;;  %3022 = vmatpush.bf16.msra.mxu0 %v3653_v49 }
 0xc3d   : > { %v2796_v42 = vsel %vm2795_vm4, %v3888_v53, %v2792_v41 }
 0xc3e   : > { %v2800_v11 = vmul.f32 %v2796_v42, %v5252_v55 }
 0xc3f   : > { %3023 = vmatpush.bf16.msra.mxu0 %v3652_v5 }
 0xc40   : > { %v2805_v20 = vmul.f32 %v2801_v51, %v2800_v11 }
 0xc42   : > { %v2810_v3 = vadd.f32 %v2806_v44, %v2805_v20 }
 0xc43   : > { %3024 = vmatpush.bf16.msra.mxu0 %v3651_v9 }
 0xc44   : > { %v2821_v40 = vpack.c.bf16 %v2810_v3, %v2809_v16 }
 0xc46   : > { %3550 = vmatmul.msk.bf16.gmra.mxu1 %vm550_vm1, %v2821_v40 }
 0xc47   : > { %3025 = vmatpush.bf16.msra.mxu0 %v3650_v46 }
 0xc4b   : > { %3026 = vmatpush.bf16.msra.mxu0 %v3649_v56 }
 0xc4f   : > { %3027 = vmatpush.bf16.msra.mxu0 %v3648_v27 }
 0xcad   : > { %v2862_v59 = vpop.f32.mrf.mxu1 }
 0xcae   : > { %v5276_v55 = vadd.f32 %v2862_v59, %v2822_v28 }
 0xcb0   : > { %v3551_v38 = vmul.f32 -1.442695, %v5276_v55 }
 0xcb2   : > { %3889 = vpow2.f32 %v3551_v38 }
 0xcb5   : > { %v2864_v4 = vpop.f32.mrf.mxu1 }
 0xcb6   : > { %v2865_v61 = vadd.f32 %v2864_v4, %v2822_v28 }
 0xcb8   : > { %v3890_v2 = vpop.eup %3889  ;;  %v3552_v54 = vmul.f32 -1.442695, %v2865_v61 }
 0xcb9   : > { %v2884_v36 = vadd.f32 1.0, %v3890_v2 }
 0xcba   : > { %3891 = vpow2.f32 %v3552_v54 }
 0xcbb   : > { %3893 = vrcp.f32 %v2884_v36  ;;  %v2899_v15 = vand.u32 2147483648, %v2884_v36  ;;  %vm2893_vm6 = vweird.f32 %v2884_v36  ;;  %v2897_v1 = vand.u32 2147483647, %v2884_v36 }
 0xcbd   : > { %v2900_v62 = vor.u32 1.1754944e-38, %v2899_v15  ;;  %vm2898_vm9 = vcmp.eq.f32.partialorder %v2897_v1, 8.507059e+37 }
 0xcc0   : > { %v3892_v60 = vpop.eup %3891 }
 0xcc1   : > { %v3894_v30 = vpop.eup %3893  ;;  %v2885_v26 = vadd.f32 1.0, %v3892_v60  ;;  %v2971_v60 = vperm.slane %v4989_v24, 2 }
 0xcc2   : > { %v2889_v37 = vmul.f32 %v3894_v30, %v2884_v36  ;;  %vm2894_vm5 = vweird.f32 %v3894_v30 }
 0xcc3   : > { %v2867_v33 = vpop.f32.mrf.mxu1  ;;  %3895 = vrcp.f32 %v2885_v26  ;;  %vm2895_vm7 = vmor %vm2893_vm6, %vm2894_vm5  ;;  %v2912_v58 = vand.u32 2147483647, %v2885_v26  ;;  %v2914_v63 = vand.u32 2147483648, %v2885_v26  ;;  %vm2908_vm10 = vweird.f32 %v2885_v26 }
 0xcc4   : > { %v5284_v6 = vadd.f32 %v2867_v33, %v2822_v28  ;;  %v2890_v51 = vsub.f32 1.0, %v2889_v37 }
 0xcc5   : > { %v2915_v8 = vor.u32 1.1754944e-38, %v2914_v63  ;;  %vm2913_vm14 = vcmp.eq.f32.partialorder %v2912_v58, 8.507059e+37 }
 0xcc6   : > { %v3553_v52 = vmul.f32 -1.442695, %v5284_v6  ;;  %v2891_v29 = vmul.f32 %v3894_v30, %v2890_v51 }
 0xcc8   : > { %3897 = vpow2.f32 %v3553_v52  ;;  %v2892_v47 = vadd.f32 %v3894_v30, %v2891_v29 }
 0xcc9   : > { %v3896_v17 = vpop.eup %3895 }
 0xcca   : > { %v2904_v48 = vmul.f32 %v3896_v17, %v2885_v26  ;;  %v2896_v25 = vsel %vm2895_vm7, %v3894_v30, %v2892_v47  ;;  %vm2909_vm8 = vweird.f32 %v3896_v17 }
 0xccb   : > { %v2869_v21 = vpop.f32.mrf.mxu1  ;;  %v2901_v32 = vsel %vm2898_vm9, %v2900_v62, %v2896_v25  ;;  %vm2910_vm12 = vmor %vm2908_vm10, %vm2909_vm8 }
 0xccc   : > { %v2870_v44 = vadd.f32 %v2869_v21, %v2822_v28  ;;  %v2905_v23 = vsub.f32 1.0, %v2904_v48  ;;  %v2948_v34 = vmul.f32 %v2901_v32, %v5276_v55 }
 0xcce   : > { %v3898_v14 = vpop.eup %3897  ;;  %v3554_v50 = vmul.f32 -1.442695, %v2870_v44  ;;  %v2906_v31 = vmul.f32 %v3896_v17, %v2905_v23 }
 0xccf   : > { %v2886_v45 = vadd.f32 1.0, %v3898_v14 }
 0xcd0   : > { %3899 = vpow2.f32 %v3554_v50  ;;  %v2907_v53 = vadd.f32 %v3896_v17, %v2906_v31 }
 0xcd1   : > { %3901 = vrcp.f32 %v2886_v45  ;;  %v2929_v22 = vand.u32 2147483648, %v2886_v45  ;;  %vm2923_vm13 = vweird.f32 %v2886_v45  ;;  %v2927_v28 = vand.u32 2147483647, %v2886_v45 }
 0xcd2   : > { %v2911_v0 = vsel %vm2910_vm12, %v3896_v17, %v2907_v53 }
 0xcd3   : > { %v2916_v19 = vsel %vm2913_vm14, %v2915_v8, %v2911_v0  ;;  %v2930_v9 = vor.u32 1.1754944e-38, %v2929_v22  ;;  %vm2928_vm0 = vcmp.eq.f32.partialorder %v2927_v28, 8.507059e+37 }
 0xcd4   : > { %v2949_v12 = vmul.f32 %v2916_v19, %v2865_v61 }
 0xcd6   : > { %v3900_v35 = vpop.eup %3899  ;;  %v2969_v11 = vpack.c.bf16 %v2949_v12, %v2948_v34 }
 0xcd7   : > { %v3902_v41 = vpop.eup %3901  ;;  %v2887_v42 = vadd.f32 1.0, %v3900_v35 }
 0xcd8   : > { %v2919_v13 = vmul.f32 %v3902_v41, %v2886_v45  ;;  %3028 = vmatmul.bf16.vlgmr.msra.gmra.mxu0 %v2969_v11  ;;  %vm2924_vm11 = vweird.f32 %v3902_v41 }
 0xcd9   : > { %3903 = vrcp.f32 %v2887_v42  ;;  %vm2925_vm3 = vmor %vm2923_vm13, %vm2924_vm11  ;;  %v2944_v59 = vand.u32 2147483648, %v2887_v42  ;;  %v2942_v38 = vand.u32 2147483647, %v2887_v42  ;;  %vm2938_vm2 = vweird.f32 %v2887_v42 }
 0xcda   : > { %v2920_v20 = vsub.f32 1.0, %v2919_v13 }
 0xcdb   : > { %v2945_v46 = vor.u32 1.1754944e-38, %v2944_v59  ;;  %vm2943_vm5 = vcmp.eq.f32.partialorder %v2942_v38, 8.507059e+37 }
 0xcdc   : > { %v2921_v16 = vmul.f32 %v3902_v41, %v2920_v20 }
 0xcde   : > { %v2922_v40 = vadd.f32 %v3902_v41, %v2921_v16 }
 0xcdf   : > { %v3904_v3 = vpop.eup %3903 }
 0xce0   : > { %v2934_v43 = vmul.f32 %v3904_v3, %v2887_v42  ;;  %v2926_v55 = vsel %vm2925_vm3, %v3902_v41, %v2922_v40  ;;  %vm2939_vm15 = vweird.f32 %v3904_v3 }
 0xce1   : > { %v2931_v61 = vsel %vm2928_vm0, %v2930_v9, %v2926_v55  ;;  %vm2940_vm4 = vmor %vm2938_vm2, %vm2939_vm15 }
 0xce2   : > { %v2935_v49 = vsub.f32 1.0, %v2934_v43  ;;  %v2950_v36 = vmul.f32 %v2931_v61, %v5284_v6  ;;  %v3915_v61 = vld [vmem:[%s4072_s16 + $0x20] sm:$0xff] }
 0xce4   : > { %v2936_v5 = vmul.f32 %v3904_v3, %v2935_v49 }
 0xce6   : > { %v2937_v4 = vadd.f32 %v3904_v3, %v2936_v5 }
 0xce8   : > { %v2941_v2 = vsel %vm2940_vm4, %v3904_v3, %v2937_v4 }
 0xce9   : > { %v2946_v54 = vsel %vm2943_vm5, %v2945_v46, %v2941_v2  ;;  %v3135_v46 = vperm.slane %v3915_v61, 3 }
 0xcea   : > { %v2951_v56 = vmul.f32 %v2946_v54, %v2870_v44 }
 0xcec   : > { %v2970_v27 = vpack.c.bf16 %v2951_v56, %v2950_v36  ;;  %v3140_v56 = vperm.slane %v3915_v61, 4 }
 0xcee   : > { %3033 = vmatmul.bf16.gmra.mxu0 %v2970_v27 }
 0xd55   : > { %v3029_v30 = vpop.f32.mrf.mxu0 }
 0xd56   : > { %v3030_v26 = vadd.f32 %v3029_v30, %v2971_v60 }
 0xd58   : > { %v3039_v33 = vmul.f32 0.5, %v3030_v26 }
 0xd5a   : > { %v3043_v37 = vadd.f32 %v3039_v33, %v5214_v7 }
 0xd5c   : > { %v3047_v51 = vsel %vm550_vm1, %v3043_v37, 0.0 }
 0xd5d   : > { %v3031_v52 = vpop.f32.mrf.mxu0  ;;  %3048 = vadd.xlane.f32.xlu1 %v3047_v51 }
 0xd5e   : > { %v3032_v29 = vadd.f32 %v3031_v52, %v2971_v60 }
 0xd60   : > { %v3040_v17 = vmul.f32 0.5, %v3032_v29 }
 0xd62   : > { %v3044_v21 = vadd.f32 %v3040_v17, %v5219_v57 }
 0xd64   : > { %v3050_v6 = vsel %vm550_vm1, %v3044_v21, 0.0 }
 0xd65   : > { %3051 = vadd.xlane.f32.xlu2 %v3050_v6 }
 0xd6b   : > { %v3034_v47 = vpop.f32.mrf.mxu0 }
 0xd6c   : > { %v3035_v48 = vadd.f32 %v3034_v47, %v2971_v60 }
 0xd6e   : > { %v3041_v44 = vmul.f32 0.5, %v3035_v48 }
 0xd70   : > { %v3045_v24 = vadd.f32 %v3041_v44, %v5224_v39 }
 0xd72   : > { %v3053_v15 = vsel %vm550_vm1, %v3045_v24, 0.0 }
 0xd73   : > { %v3036_v14 = vpop.f32.mrf.mxu0  ;;  %3054 = vadd.xlane.f32.xlu0 %v3053_v15 }
 0xd74   : > { %v3037_v7 = vadd.f32 %v3036_v14, %v2971_v60 }
 0xd76   : > { %v3042_v1 = vmul.f32 0.5, %v3037_v7 }
 0xd78   : > { %v3046_v23 = vadd.f32 %v3042_v1, %v5229_v10 }
 0xd7a   : > { %v3056_v50 = vsel %vm550_vm1, %v3046_v23, 0.0 }
 0xd7b   : > { %3057 = vadd.xlane.f32.xlu1 %v3056_v50 }
 0xdd0   : > { %v3049_v57 = vpop.xlane.xlu1 %3048 }
 0xdd1   : > { %v3059_v58 = vmul.f32 %v3049_v57, %v4124_v18 }
 0xdd3   : > { %v3063_v63 = vsub.f32 %v3043_v37, %v3059_v58 }
 0xdd5   : > { %v3067_v45 = vmul.f32 %v3063_v63, %v3063_v63 }
 0xdd7   : > { %v3071_v25 = vsel %vm550_vm1, %v3067_v45, 0.0 }
 0xdd8   : > { %v3052_v31 = vpop.xlane.xlu2 %3051  ;;  %3072 = vadd.xlane.f32.xlu2 %v3071_v25 }
 0xdd9   : > { %v3060_v39 = vmul.f32 %v3052_v31, %v4124_v18 }
 0xddb   : > { %v3064_v62 = vsub.f32 %v3044_v21, %v3060_v39 }
 0xddd   : > { %v3068_v53 = vmul.f32 %v3064_v62, %v3064_v62 }
 0xddf   : > { %v3074_v32 = vsel %vm550_vm1, %v3068_v53, 0.0 }
 0xde0   : > { %3075 = vadd.xlane.f32.xlu0 %v3074_v32 }
 0xde6   : > { %v3055_v10 = vpop.xlane.xlu0 %3054 }
 0xde7   : > { %v3061_v8 = vmul.f32 %v3055_v10, %v4124_v18 }
 0xde9   : > { %v5303_v0 = vsub.f32 %v3045_v24, %v3061_v8 }
 0xdeb   : > { %v3069_v19 = vmul.f32 %v5303_v0, %v5303_v0 }
 0xded   : > { %v3077_v35 = vsel %vm550_vm1, %v3069_v19, 0.0 }
 0xdee   : > { %v3058_v34 = vpop.xlane.xlu1 %3057  ;;  %3078 = vadd.xlane.f32.xlu1 %v3077_v35 }
 0xdef   : > { %v3062_v12 = vmul.f32 %v3058_v34, %v4124_v18 }
 0xdf1   : > { %v5309_v41 = vsub.f32 %v3046_v23, %v3062_v12 }
 0xdf3   : > { %v3070_v42 = vmul.f32 %v5309_v41, %v5309_v41 }
 0xdf5   : > { %v3080_v11 = vsel %vm550_vm1, %v3070_v42, 0.0 }
 0xdf6   : > { %3081 = vadd.xlane.f32.xlu2 %v3080_v11 }
 0xe4b   : > { %v3073_v13 = vpop.xlane.xlu2 %3072 }
 0xe4c   : > { %v3083_v20 = vmul.f32 %v3073_v13, %v4124_v18 }
 0xe4e   : > { %v3087_v16 = vadd.f32 1e-05, %v3083_v20 }
 0xe50   : > { %3905 = vrsqrt.f32 %v3087_v16  ;;  %vm3097_vm7 = vweird.f32 %v3087_v16 }
 0xe53   : > { %v3076_v3 = vpop.xlane.xlu0 %3075 }
 0xe54   : > { %v3084_v40 = vmul.f32 %v3076_v3, %v4124_v18 }
 0xe56   : > { %v3906_v43 = vpop.eup %3905  ;;  %v3088_v22 = vadd.f32 1e-05, %v3084_v40 }
 0xe57   : > { %v3092_v28 = vmul.f32 %v3906_v43, %v3087_v16  ;;  %vm3098_vm6 = vweird.f32 %v3906_v43 }
 0xe58   : > { %3907 = vrsqrt.f32 %v3088_v22  ;;  %vm3099_vm8 = vmor %vm3097_vm7, %vm3098_vm6  ;;  %vm3107_vm10 = vweird.f32 %v3088_v22 }
 0xe59   : > { %v3093_v49 = vmul.f32 %v3906_v43, %v3092_v28 }
 0xe5b   : > { %v3094_v59 = vmul.f32 0.5, %v3093_v49 }
 0xe5d   : > { %v3095_v55 = vsub.f32 1.5, %v3094_v59 }
 0xe5e   : > { %v3908_v5 = vpop.eup %3907 }
 0xe5f   : > { %v3096_v38 = vmul.f32 %v3906_v43, %v3095_v55  ;;  %v3102_v9 = vmul.f32 %v3908_v5, %v3088_v22  ;;  %vm3108_vm9 = vweird.f32 %v3908_v5 }
 0xe60   : > { %vm3109_vm12 = vmor %vm3107_vm10, %vm3108_vm9 }
 0xe61   : > { %v3079_v4 = vpop.xlane.xlu1 %3078  ;;  %v3100_v54 = vsel %vm3099_vm8, %v3906_v43, %v3096_v38  ;;  %v3103_v36 = vmul.f32 %v3908_v5, %v3102_v9 }
 0xe62   : > { %v3085_v2 = vmul.f32 %v3079_v4, %v4124_v18  ;;  %v3131_v27 = vmul.f32 %v3100_v54, %v3063_v63 }
 0xe63   : > { %v3104_v30 = vmul.f32 0.5, %v3103_v36 }
 0xe64   : > { %v3089_v60 = vadd.f32 1e-05, %v3085_v2  ;;  %v3136_v26 = vmul.f32 %v3135_v46, %v3131_v27 }
 0xe65   : > { %v3105_v33 = vsub.f32 1.5, %v3104_v30 }
 0xe66   : > { %3909 = vrsqrt.f32 %v3089_v60  ;;  %v3141_v37 = vadd.f32 %v3140_v56, %v3136_v26  ;;  %vm3117_vm11 = vweird.f32 %v3089_v60 }
 0xe67   : > { %v3106_v51 = vmul.f32 %v3908_v5, %v3105_v33 }
 0xe68   : > { %3145 = vst.msk [vmem:[%s4097_s17] sm:$0xff] %vm550_vm1, %v3141_v37 }
 0xe69   : > { %v3082_v52 = vpop.xlane.xlu2 %3081  ;;  %v3110_v17 = vsel %vm3109_vm12, %v3908_v5, %v3106_v51 }
 0xe6a   : > { %v3086_v29 = vmul.f32 %v3082_v52, %v4124_v18  ;;  %v3132_v6 = vmul.f32 %v3110_v17, %v3064_v62 }
 0xe6c   : > { %v3910_v21 = vpop.eup %3909  ;;  %v3090_v47 = vadd.f32 1e-05, %v3086_v29  ;;  %v3137_v44 = vmul.f32 %v3135_v46, %v3132_v6 }
 0xe6d   : > { %v3112_v48 = vmul.f32 %v3910_v21, %v3089_v60  ;;  %vm3118_vm14 = vweird.f32 %v3910_v21 }
 0xe6e   : > { %3911 = vrsqrt.f32 %v3090_v47  ;;  %v3142_v15 = vadd.f32 %v3140_v56, %v3137_v44  ;;  %vm3119_vm13 = vmor %vm3117_vm11, %vm3118_vm14  ;;  %vm3127_vm15 = vweird.f32 %v3090_v47 }
 0xe6f   : > { %v3113_v24 = vmul.f32 %v3910_v21, %v3112_v48 }
 0xe70   : > { %3146 = vst.msk [vmem:[%s4097_s17 + $0x8] sm:$0xff] %vm550_vm1, %v3142_v15 }
 0xe71   : > { %v3114_v14 = vmul.f32 0.5, %v3113_v24 }
 0xe73   : > { %v3115_v7 = vsub.f32 1.5, %v3114_v14 }
 0xe74   : > { %v3912_v1 = vpop.eup %3911 }
 0xe75   : > { %v3116_v23 = vmul.f32 %v3910_v21, %v3115_v7  ;;  %v3122_v50 = vmul.f32 %v3912_v1, %v3090_v47  ;;  %vm3128_vm3 = vweird.f32 %v3912_v1 }
 0xe76   : > { %vm3129_vm0 = vmor %vm3127_vm15, %vm3128_vm3 }
 0xe77   : > { %v3120_v18 = vsel %vm3119_vm13, %v3910_v21, %v3116_v23  ;;  %v3123_v57 = vmul.f32 %v3912_v1, %v3122_v50 }
 0xe78   : > { %v3133_v58 = vmul.f32 %v3120_v18, %v5303_v0 }
 0xe79   : > { %v3124_v63 = vmul.f32 0.5, %v3123_v57 }
 0xe7a   : > { %v3138_v45 = vmul.f32 %v3135_v46, %v3133_v58 }
 0xe7b   : > { %v3125_v25 = vsub.f32 1.5, %v3124_v63 }
 0xe7c   : > { %v3143_v31 = vadd.f32 %v3140_v56, %v3138_v45 }
 0xe7d   : > { %v3126_v39 = vmul.f32 %v3912_v1, %v3125_v25 }
 0xe7e   : > { %3147 = vst.msk [vmem:[%s4097_s17 + $0x10] sm:$0xff] %vm550_vm1, %v3143_v31 }
 0xe7f   : > { %v3130_v62 = vsel %vm3129_vm0, %v3912_v1, %v3126_v39 }
 0xe80   : > { %v3134_v53 = vmul.f32 %v3130_v62, %v5309_v41 }
 0xe82   : > { %v3139_v32 = vmul.f32 %v3135_v46, %v3134_v53 }
 0xe84   : > { %v3144_v10 = vadd.f32 %v3140_v56, %v3139_v32 }
 0xe86   : > { %3148 = vst.msk [vmem:[%s4097_s17 + $0x18] sm:$0xff] %vm550_vm1, %v3144_v10 }
 0xe87 PF: > { %s5396_s16 = sld [smem:[#allocation4_spill]] }
 0xe88   : > { %s5397_s13 = sld [smem:[#allocation2_spill]] }
 0xe89   : > { %s5398_s14 = sld [smem:[#allocation3_spill]] }
 0xe8a   : > { %s5399_s15 = sld [smem:[#allocation5_spill]] }
 0xe8d   : > { %s20_s17 = sadd.s32 1, %s5396_s16   ;;  %s5400_s16 = sld [smem:[#allocation6_spill]] }
 0xe8e   : > { %p17_p8 = scmp.ge.s32.totalorder %s20_s17, 6  }
 0xe90   :  { %19 = sbr.rel (!%p17_p8) target bundleno = 4 (0x4), region = 125 }

</bundles_post_ra>
